<compile_context>
chip_gen: v6e
topology: v6e:2x2x1
jax: 0.10.0
libtpu: 0.0.40
codegen_flags: <defaults>
</compile_context>

<pallas_src>
import functools

import jax
import jax.numpy as jnp
from jax import lax
from jax.experimental import pallas as pl
from jax.experimental.pallas import tpu as pltpu


def _round_up(x, m):
    return ((x + m - 1) // m) * m


def _sigmoid(x):
    # One EUP op (tanh) instead of exp + divide.
    return 0.5 * jnp.tanh(0.5 * x) + 0.5


def _lstm_kernel(len_ref, x_ref, wi_ref, ws_ref, b_ref,
                 out_ref, hN_ref, cN_ref,
                 z_scr, h_scr, c_scr, *, hidden_size, chunk):
    """One grid step = `chunk` timesteps of the recurrence for one batch tile."""
    t_blk = pl.program_id(1)

    # (Re-)initialise the carries at the first time-chunk of every batch tile.
    @pl.when(t_blk == 0)
    def _():
        h_scr[...] = jnp.zeros_like(h_scr)
        c_scr[...] = jnp.zeros_like(c_scr)

    H = hidden_size
    fourH = 4 * H
    BT = h_scr.shape[0]
    D = x_ref.shape[-1]
    t0 = t_blk * chunk

    ws = ws_ref[...]                      # (H, 4H) f32, loop-invariant
    lens = len_ref[...]                   # (BT, 1)  int32

    # Fused input projection for the whole chunk: ONE big GEMM
    # (BT*chunk, D) @ (D, 4H) with the bias folded in, off the serial path.
    x2 = x_ref[...].reshape(BT * chunk, D)
    z_scr[...] = (
        jnp.dot(x2, wi_ref[...], preferred_element_type=jnp.float32)
        + b_ref[...]
    ).reshape(BT, chunk, fourH)

    h = h_scr[...]
    c = c_scr[...]
    # Static Python unroll over the chunk: all indices are compile-time
    # constants, and the per-step x-projection is already precomputed above.
    for k in range(chunk):
        # Serial recurrent projection (the only carry-dependent matmul).
        z = z_scr[:, k, :] + jnp.dot(h, ws, preferred_element_type=jnp.float32)

        input_gate = _sigmoid(z[:, 0 * H:1 * H])
        forget_gate = _sigmoid(z[:, 1 * H:2 * H])
        memory_init = jnp.tanh(z[:, 2 * H:3 * H])
        output_gate = _sigmoid(z[:, 3 * H:4 * H])

        c_new = input_gate * memory_init + forget_gate * c
        h_new = output_gate * jnp.tanh(c_new)

        mask = lens > (t0 + k)            # rows still inside their sequence
        h = jnp.where(mask, h_new, h)
        c = jnp.where(mask, c_new, c)
        out_ref[:, k, :] = jnp.where(mask, h_new, 0.0).astype(out_ref.dtype)

    h_scr[...] = h
    c_scr[...] = c

    # Final-state outputs: constant block index along the (arbitrary) time
    # axis -> block stays VMEM-resident, one deferred writeback per batch tile.
    @pl.when(t_blk == pl.num_programs(1) - 1)
    def _():
        hN_ref[...] = h_scr[...].astype(hN_ref.dtype)
        cN_ref[...] = c_scr[...].astype(cN_ref.dtype)


def dozat_lstm_cell(x_btd, lengths, w_input, w_state, b_state,
                    *, chunk=16, batch_tile=64):
    """Pallas DozatLstmCell forward (go_forward=True, eval mode).

    Args:
      x_btd:   (B, T, D) float padded sequence, batch-first (PyTorch layout).
      lengths: (B,) int sequence lengths (PackedSequence batch_lengths).
      w_input: (4H, D)  -- input_linearity.weight
      w_state: (4H, H)  -- state_linearity.weight
      b_state: (4H,)    -- state_linearity.bias
    Returns:
      outputs (B, T, H), h_final (1, B, H), c_final (1, B, H)
    """
    B, T, D = x_btd.shape
    fourH = w_input.shape[0]
    H = fourH // 4

    # Tile sizing.  batch_tile sets M of the serial recurrent matmul (feed the
    # MXU); chunk amortises the per-grid-step pipeline overhead.  Both clamped
    # so tiny demo inputs don't over-pad.  On v7x pick batch_tile so
    # B_pad // batch_tile >= 2 (two TensorCores on the "parallel" axis).
    batch_tile = max(8, _round_up(batch_tile, 8))
    batch_tile = min(batch_tile, _round_up(B, 8))
    chunk = max(8, _round_up(chunk, 8))
    chunk = min(chunk, _round_up(T, 8))

    B_pad = _round_up(B, batch_tile)
    T_pad = _round_up(T, chunk)
    nb = B_pad // batch_tile
    nt = T_pad // chunk

    # Padded rows get length 0, so they never update the carries and their
    # output slots stay 0 (PackedSequence padding semantics).
    x_p = jnp.zeros((B_pad, T_pad, D), jnp.float32).at[:B, :T].set(
        x_btd.astype(jnp.float32))
    len_p = jnp.zeros((B_pad, 1), jnp.int32).at[:B, 0].set(
        lengths.astype(jnp.int32))

    wi_t = jnp.transpose(w_input).astype(jnp.float32)   # (D, 4H)
    ws_t = jnp.transpose(w_state).astype(jnp.float32)   # (H, 4H)
    bias = b_state.reshape(1, fourH).astype(jnp.float32)

    # Scoped-VMEM limit sized to the real working set (double-buffered blocks
    # + scratch), with headroom; default scoped VMEM (16/32 MiB) would cap
    # enlarged tiles silently.
    f32b = 4
    est = (2 * batch_tile * chunk * D * f32b        # x blocks (double-buffered)
           + 2 * batch_tile * chunk * H * f32b      # out blocks
           + 2 * D * fourH * f32b                   # W_i^T
           + 2 * H * fourH * f32b                   # W_s^T
           + 2 * fourH * f32b + 2 * batch_tile * 4  # bias, lengths
           + 4 * batch_tile * H * f32b              # final h / c blocks
           + batch_tile * chunk * fourH * f32b      # z chunk scratch
           + 2 * batch_tile * H * f32b)             # h / c carries
    vmem_limit = int(min(max(2 * est, 32 * 1024 * 1024), 100 * 1024 * 1024))

    kernel = functools.partial(_lstm_kernel, hidden_size=H, chunk=chunk)

    out, h_fin, c_fin = pl.pallas_call(
        kernel,
        out_shape=(
            jax.ShapeDtypeStruct((B_pad, T_pad, H), jnp.float32),
            jax.ShapeDtypeStruct((B_pad, H), jnp.float32),
            jax.ShapeDtypeStruct((B_pad, H), jnp.float32),
        ),
        grid_spec=pltpu.PrefetchScalarGridSpec(
            num_scalar_prefetch=0,
            grid=(nb, nt),
            in_specs=[
                pl.BlockSpec((batch_tile, 1), lambda b, t: (b, 0)),          # lengths
                pl.BlockSpec((batch_tile, chunk, D), lambda b, t: (b, t, 0)),  # x
                pl.BlockSpec((D, fourH), lambda b, t: (0, 0)),               # W_i^T
                pl.BlockSpec((H, fourH), lambda b, t: (0, 0)),               # W_s^T
                pl.BlockSpec((1, fourH), lambda b, t: (0, 0)),               # bias
            ],
            out_specs=[
                pl.BlockSpec((batch_tile, chunk, H), lambda b, t: (b, t, 0)),  # outputs
                pl.BlockSpec((batch_tile, H), lambda b, t: (b, 0)),            # final h
                pl.BlockSpec((batch_tile, H), lambda b, t: (b, 0)),            # final c
            ],
            scratch_shapes=[
                pltpu.VMEM((batch_tile, chunk, fourH), jnp.float32),  # chunk z
                pltpu.VMEM((batch_tile, H), jnp.float32),             # h carry
                pltpu.VMEM((batch_tile, H), jnp.float32),             # c carry
            ],
        ),
        compiler_params=pltpu.CompilerParams(
            dimension_semantics=("parallel", "arbitrary"),
            vmem_limit_bytes=vmem_limit),
    )(len_p, x_p, wi_t, ws_t, bias)

    # Kernel already emits batch-major: just drop padding.
    return out[:B, :T], h_fin[None, :B], c_fin[None, :B]


def _reference(x_btd, lengths, w_input, w_state, b_state):
    """Pure-JAX reference mirroring the PyTorch per-timestep loop (f32)."""
    B, T, D = x_btd.shape
    H = w_input.shape[0] // 4
    wi_t = w_input.T.astype(jnp.float32)
    ws_t = w_state.T.astype(jnp.float32)

    def step(carry, t):
        h, c = carry
        x_t = x_btd[:, t, :].astype(jnp.float32)
        z = (jnp.dot(x_t, wi_t, preferred_element_type=jnp.float32)
             + b_state
             + jnp.dot(h, ws_t, preferred_element_type=jnp.float32))
        i = jax.nn.sigmoid(z[:, 0 * H:1 * H])
        f = jax.nn.sigmoid(z[:, 1 * H:2 * H])
        g = jnp.tanh(z[:, 2 * H:3 * H])
        o = jax.nn.sigmoid(z[:, 3 * H:4 * H])
        c_new = i * g + f * c
        h_new = o * jnp.tanh(c_new)
        mask = (lengths > t)[:, None]
        h = jnp.where(mask, h_new, h)
        c = jnp.where(mask, c_new, c)
        return (h, c), jnp.where(mask, h_new, 0.0)

    (h_f, c_f), outs = lax.scan(
        step,
        (jnp.zeros((B, H), jnp.float32), jnp.zeros((B, H), jnp.float32)),
        jnp.arange(T))
    return jnp.transpose(outs, (1, 0, 2)), h_f[None], c_f[None]


def _run_case(key, B, T, D, H, lengths, **kw):
    k_x, k_wi, k_ws = jax.random.split(key, 3)
    x = jax.random.normal(k_x, (B, T, D), dtype=jnp.float32)
    # Zero padded positions, as pad_packed_sequence would produce.
    t_idx = jnp.arange(T)[None, :, None]
    x = jnp.where(t_idx < lengths[:, None, None], x, 0.0)

    w_input = 0.1 * jax.random.normal(k_wi, (4 * H, D), dtype=jnp.float32)
    w_state = 0.1 * jax.random.normal(k_ws, (4 * H, H), dtype=jnp.float32)
    b_state = jnp.zeros((4 * H,), jnp.float32).at[H:2 * H].set(1.0)

    out, h_fin, c_fin = dozat_lstm_cell(x, lengths, w_input, w_state, b_state, **kw)
    jax.block_until_ready((out, h_fin, c_fin))

    out_r, h_r, c_r = _reference(x, lengths, w_input, w_state, b_state)

    # Tolerance covers MXU default f32 matmul precision differences vs. the
    # XLA reference path and the tanh-form sigmoid.
    assert jnp.allclose(out, out_r, atol=5e-3, rtol=5e-3), \
        float(jnp.max(jnp.abs(out - out_r)))
    assert jnp.allclose(h_fin, h_r, atol=5e-3, rtol=5e-3), \
        float(jnp.max(jnp.abs(h_fin - h_r)))
    assert jnp.allclose(c_fin, c_r, atol=5e-3, rtol=5e-3), \
        float(jnp.max(jnp.abs(c_fin - c_r)))


if __name__ == "__main__":
    key = jax.random.PRNGKey(0)
    k1, k2 = jax.random.split(key)

    # Case 1: tiny, single grid step (T deliberately not a multiple of chunk).
    _run_case(k1, B=4, T=13, D=32, H=32,
              lengths=jnp.array([13, 9, 5, 2], dtype=jnp.int32))

    # Case 2: multiple batch tiles and multiple time chunks, exercising the
    # carry across grid steps and the deferred final-state writeback.
    lengths2 = jnp.array([20, 18, 15, 13, 12, 9, 7, 6, 5, 3, 2, 1],
                         dtype=jnp.int32)
    _run_case(k2, B=12, T=20, D=48, H=32, lengths=lengths2,
              chunk=8, batch_tile=8)

    print("KERNEL_OK")
</pallas_src>

<mosaic_0001>
module attributes {stable_mosaic.version = 11 : i64} {
  func.func @_lstm_kernel(%arg0: i32, %arg1: i32, %arg2: memref<8x1xi32, #tpu.memory_space<vmem>>, %arg3: memref<8x16x32xf32, #tpu.memory_space<vmem>>, %arg4: memref<32x128xf32, #tpu.memory_space<vmem>>, %arg5: memref<32x128xf32, #tpu.memory_space<vmem>>, %arg6: memref<1x128xf32, #tpu.memory_space<vmem>>, %arg7: memref<8x16x32xf32, #tpu.memory_space<vmem>>, %arg8: memref<8x32xf32, #tpu.memory_space<vmem>>, %arg9: memref<8x32xf32, #tpu.memory_space<vmem>>, %arg10: memref<8x16x128xf32, #tpu.memory_space<vmem>>, %arg11: memref<8x32xf32, #tpu.memory_space<vmem>>, %arg12: memref<8x32xf32, #tpu.memory_space<vmem>>) attributes {dimension_semantics = [#tpu.dimension_semantics<parallel>, #tpu.dimension_semantics<arbitrary>], iteration_bounds = array<i64: 1, 1>, scalar_prefetch = 0 : i64, scratch_operands = 3 : i64, tpu.core_type = #tpu.core_type<tc>, window_params = [{transform_indices = @transform_0, window_bounds = array<i64: 8, 1>}, {transform_indices = @transform_1, window_bounds = array<i64: 8, 16, 32>}, {pipeline_mode = #tpu.pipeline_mode<synchronous>, transform_indices = @transform_2, window_bounds = array<i64: 32, 128>}, {pipeline_mode = #tpu.pipeline_mode<synchronous>, transform_indices = @transform_3, window_bounds = array<i64: 32, 128>}, {pipeline_mode = #tpu.pipeline_mode<synchronous>, transform_indices = @transform_4, window_bounds = array<i64: 1, 128>}, {transform_indices = @transform_5, window_bounds = array<i64: 8, 16, 32>}, {transform_indices = @transform_6, window_bounds = array<i64: 8, 32>}, {transform_indices = @transform_7, window_bounds = array<i64: 8, 32>}]} {
    %c0_i32 = arith.constant 0 : i32
    %0 = arith.cmpi eq, %arg1, %c0_i32 : i32
    %1 = arith.extui %0 : i1 to i32
    %c0_i32_0 = arith.constant 0 : i32
    %2 = arith.cmpi ne, %1, %c0_i32_0 : i32
    scf.if %2 {
      %cst_282 = arith.constant 0.000000e+00 : f32
      %838 = vector.broadcast %cst_282 : f32 to vector<8x32xf32>
      %c0_283 = arith.constant 0 : index
      %c0_284 = arith.constant 0 : index
      %839 = vector.load %arg11[%c0_283, %c0_284] : memref<8x32xf32, #tpu.memory_space<vmem>>, vector<8x32xf32>
      tpu.vector_store %arg11[%c0_283, %c0_284], %838 {strides = array<i32>} : memref<8x32xf32, #tpu.memory_space<vmem>>, vector<8x32xf32>,
      %cst_285 = arith.constant 0.000000e+00 : f32
      %840 = vector.broadcast %cst_285 : f32 to vector<8x32xf32>
      %c0_286 = arith.constant 0 : index
      %c0_287 = arith.constant 0 : index
      %841 = vector.load %arg12[%c0_286, %c0_287] : memref<8x32xf32, #tpu.memory_space<vmem>>, vector<8x32xf32>
      tpu.vector_store %arg12[%c0_286, %c0_287], %840 {strides = array<i32>} : memref<8x32xf32, #tpu.memory_space<vmem>>, vector<8x32xf32>,
    } else {
    }
    %c16_i32 = arith.constant 16 : i32
    %3 = arith.muli %arg1, %c16_i32 : i32
    %c0 = arith.constant 0 : index
    %c0_1 = arith.constant 0 : index
    %4 = vector.load %arg5[%c0, %c0_1] : memref<32x128xf32, #tpu.memory_space<vmem>>, vector<32x128xf32>
    %c0_2 = arith.constant 0 : index
    %c0_3 = arith.constant 0 : index
    %5 = vector.load %arg2[%c0_2, %c0_3] : memref<8x1xi32, #tpu.memory_space<vmem>>, vector<8x1xi32>
    %c0_4 = arith.constant 0 : index
    %c0_5 = arith.constant 0 : index
    %c0_6 = arith.constant 0 : index
    %6 = vector.load %arg3[%c0_4, %c0_5, %c0_6] : memref<8x16x32xf32, #tpu.memory_space<vmem>>, vector<8x16x32xf32>
    %7 = vector.shape_cast %6 : vector<8x16x32xf32> to vector<128x32xf32>
    %c0_7 = arith.constant 0 : index
    %c0_8 = arith.constant 0 : index
    %8 = vector.load %arg4[%c0_7, %c0_8] : memref<32x128xf32, #tpu.memory_space<vmem>>, vector<32x128xf32>
    %cst = arith.constant dense<0.000000e+00> : vector<128x128xf32>
    %9 = tpu.matmul %7, %8, %cst {dimension_numbers = #tpu.dot_dimension_numbers<[1], [0], [0], [1], [0, 0, 1, 1], [], []>} : vector<128x32xf32>, vector<32x128xf32>, vector<128x128xf32> -> vector<128x128xf32>
    %c0_9 = arith.constant 0 : index
    %c0_10 = arith.constant 0 : index
    %10 = vector.load %arg6[%c0_9, %c0_10] : memref<1x128xf32, #tpu.memory_space<vmem>>, vector<1x128xf32>
    %11 = vector.broadcast %10 : vector<1x128xf32> to vector<128x128xf32>
    %12 = arith.addf %9, %11 : vector<128x128xf32>
    %13 = vector.shape_cast %12 : vector<128x128xf32> to vector<8x16x128xf32>
    %c0_11 = arith.constant 0 : index
    %c0_12 = arith.constant 0 : index
    %c0_13 = arith.constant 0 : index
    %14 = vector.load %arg10[%c0_11, %c0_12, %c0_13] : memref<8x16x128xf32, #tpu.memory_space<vmem>>, vector<8x16x128xf32>
    tpu.vector_store %arg10[%c0_11, %c0_12, %c0_13], %13 {strides = array<i32>} : memref<8x16x128xf32, #tpu.memory_space<vmem>>, vector<8x16x128xf32>,
    %c0_14 = arith.constant 0 : index
    %c0_15 = arith.constant 0 : index
    %15 = vector.load %arg11[%c0_14, %c0_15] : memref<8x32xf32, #tpu.memory_space<vmem>>, vector<8x32xf32>
    %c0_16 = arith.constant 0 : index
    %c0_17 = arith.constant 0 : index
    %16 = vector.load %arg12[%c0_16, %c0_17] : memref<8x32xf32, #tpu.memory_space<vmem>>, vector<8x32xf32>
    %c0_18 = arith.constant 0 : index
    %c0_19 = arith.constant 0 : index
    %c0_20 = arith.constant 0 : index
    %17 = vector.load %arg10[%c0_18, %c0_19, %c0_20] : memref<8x16x128xf32, #tpu.memory_space<vmem>>, vector<8x1x128xf32>
    %18 = vector.shape_cast %17 : vector<8x1x128xf32> to vector<8x128xf32>
    %cst_21 = arith.constant dense<0.000000e+00> : vector<8x128xf32>
    %19 = tpu.matmul %15, %4, %cst_21 {dimension_numbers = #tpu.dot_dimension_numbers<[1], [0], [0], [1], [0, 0, 1, 1], [], []>} : vector<8x32xf32>, vector<32x128xf32>, vector<8x128xf32> -> vector<8x128xf32>
    %20 = arith.addf %18, %19 : vector<8x128xf32>
    %21 = vector.extract_strided_slice %20 {offsets = [0, 0], sizes = [8, 32], strides = [1, 1]} : vector<8x128xf32> to vector<8x32xf32>
    %cst_22 = arith.constant 5.000000e-01 : f32
    %22 = vector.broadcast %cst_22 : f32 to vector<8x32xf32>
    %23 = arith.mulf %22, %21 : vector<8x32xf32>
    %24 = math.tanh %23 : vector<8x32xf32>
    %cst_23 = arith.constant 5.000000e-01 : f32
    %25 = vector.broadcast %cst_23 : f32 to vector<8x32xf32>
    %26 = arith.mulf %25, %24 : vector<8x32xf32>
    %cst_24 = arith.constant 5.000000e-01 : f32
    %27 = vector.broadcast %cst_24 : f32 to vector<8x32xf32>
    %28 = arith.addf %26, %27 : vector<8x32xf32>
    %29 = vector.extract_strided_slice %20 {offsets = [0, 32], sizes = [8, 32], strides = [1, 1]} : vector<8x128xf32> to vector<8x32xf32>
    %cst_25 = arith.constant 5.000000e-01 : f32
    %30 = vector.broadcast %cst_25 : f32 to vector<8x32xf32>
    %31 = arith.mulf %30, %29 : vector<8x32xf32>
    %32 = math.tanh %31 : vector<8x32xf32>
    %cst_26 = arith.constant 5.000000e-01 : f32
    %33 = vector.broadcast %cst_26 : f32 to vector<8x32xf32>
    %34 = arith.mulf %33, %32 : vector<8x32xf32>
    %cst_27 = arith.constant 5.000000e-01 : f32
    %35 = vector.broadcast %cst_27 : f32 to vector<8x32xf32>
    %36 = arith.addf %34, %35 : vector<8x32xf32>
    %37 = vector.extract_strided_slice %20 {offsets = [0, 64], sizes = [8, 32], strides = [1, 1]} : vector<8x128xf32> to vector<8x32xf32>
    %38 = math.tanh %37 : vector<8x32xf32>
    %39 = vector.extract_strided_slice %20 {offsets = [0, 96], sizes = [8, 32], strides = [1, 1]} : vector<8x128xf32> to vector<8x32xf32>
    %cst_28 = arith.constant 5.000000e-01 : f32
    %40 = vector.broadcast %cst_28 : f32 to vector<8x32xf32>
    %41 = arith.mulf %40, %39 : vector<8x32xf32>
    %42 = math.tanh %41 : vector<8x32xf32>
    %cst_29 = arith.constant 5.000000e-01 : f32
    %43 = vector.broadcast %cst_29 : f32 to vector<8x32xf32>
    %44 = arith.mulf %43, %42 : vector<8x32xf32>
    %cst_30 = arith.constant 5.000000e-01 : f32
    %45 = vector.broadcast %cst_30 : f32 to vector<8x32xf32>
    %46 = arith.addf %44, %45 : vector<8x32xf32>
    %47 = arith.mulf %28, %38 : vector<8x32xf32>
    %48 = arith.mulf %36, %16 : vector<8x32xf32>
    %49 = arith.addf %47, %48 : vector<8x32xf32>
    %50 = math.tanh %49 : vector<8x32xf32>
    %51 = arith.mulf %46, %50 : vector<8x32xf32>
    %c0_i32_31 = arith.constant 0 : i32
    %52 = arith.addi %3, %c0_i32_31 : i32
    %53 = vector.broadcast %52 : i32 to vector<8x1xi32>
    %54 = arith.cmpi sgt, %5, %53 : vector<8x1xi32>
    %55 = vector.shape_cast %54 : vector<8x1xi1> to vector<8x1xi1>
    %56 = vector.broadcast %55 : vector<8x1xi1> to vector<8x32xi1>
    %57 = arith.select %56, %51, %15 : vector<8x32xi1>, vector<8x32xf32>
    %58 = vector.shape_cast %54 : vector<8x1xi1> to vector<8x1xi1>
    %59 = vector.broadcast %58 : vector<8x1xi1> to vector<8x32xi1>
    %60 = arith.select %59, %49, %16 : vector<8x32xi1>, vector<8x32xf32>
    %cst_32 = arith.constant 0.000000e+00 : f32
    %61 = vector.shape_cast %54 : vector<8x1xi1> to vector<8x1xi1>
    %62 = vector.broadcast %61 : vector<8x1xi1> to vector<8x32xi1>
    %63 = vector.broadcast %cst_32 : f32 to vector<8x32xf32>
    %64 = arith.select %62, %51, %63 : vector<8x32xi1>, vector<8x32xf32>
    %c0_33 = arith.constant 0 : index
    %c0_34 = arith.constant 0 : index
    %c0_35 = arith.constant 0 : index
    %65 = vector.load %arg7[%c0_33, %c0_34, %c0_35] : memref<8x16x32xf32, #tpu.memory_space<vmem>>, vector<8x1x32xf32>
    %66 = vector.shape_cast %65 : vector<8x1x32xf32> to vector<8x32xf32>
    %67 = vector.shape_cast %64 : vector<8x32xf32> to vector<8x1x32xf32>
    tpu.vector_store %arg7[%c0_33, %c0_34, %c0_35], %67 {strides = array<i32>} : memref<8x16x32xf32, #tpu.memory_space<vmem>>, vector<8x1x32xf32>,
    %c0_36 = arith.constant 0 : index
    %c1 = arith.constant 1 : index
    %c0_37 = arith.constant 0 : index
    %68 = vector.load %arg10[%c0_36, %c1, %c0_37] : memref<8x16x128xf32, #tpu.memory_space<vmem>>, vector<8x1x128xf32>
    %69 = vector.shape_cast %68 : vector<8x1x128xf32> to vector<8x128xf32>
    %cst_38 = arith.constant dense<0.000000e+00> : vector<8x128xf32>
    %70 = tpu.matmul %57, %4, %cst_38 {dimension_numbers = #tpu.dot_dimension_numbers<[1], [0], [0], [1], [0, 0, 1, 1], [], []>} : vector<8x32xf32>, vector<32x128xf32>, vector<8x128xf32> -> vector<8x128xf32>
    %71 = arith.addf %69, %70 : vector<8x128xf32>
    %72 = vector.extract_strided_slice %71 {offsets = [0, 0], sizes = [8, 32], strides = [1, 1]} : vector<8x128xf32> to vector<8x32xf32>
    %cst_39 = arith.constant 5.000000e-01 : f32
    %73 = vector.broadcast %cst_39 : f32 to vector<8x32xf32>
    %74 = arith.mulf %73, %72 : vector<8x32xf32>
    %75 = math.tanh %74 : vector<8x32xf32>
    %cst_40 = arith.constant 5.000000e-01 : f32
    %76 = vector.broadcast %cst_40 : f32 to vector<8x32xf32>
    %77 = arith.mulf %76, %75 : vector<8x32xf32>
    %cst_41 = arith.constant 5.000000e-01 : f32
    %78 = vector.broadcast %cst_41 : f32 to vector<8x32xf32>
    %79 = arith.addf %77, %78 : vector<8x32xf32>
    %80 = vector.extract_strided_slice %71 {offsets = [0, 32], sizes = [8, 32], strides = [1, 1]} : vector<8x128xf32> to vector<8x32xf32>
    %cst_42 = arith.constant 5.000000e-01 : f32
    %81 = vector.broadcast %cst_42 : f32 to vector<8x32xf32>
    %82 = arith.mulf %81, %80 : vector<8x32xf32>
    %83 = math.tanh %82 : vector<8x32xf32>
    %cst_43 = arith.constant 5.000000e-01 : f32
    %84 = vector.broadcast %cst_43 : f32 to vector<8x32xf32>
    %85 = arith.mulf %84, %83 : vector<8x32xf32>
    %cst_44 = arith.constant 5.000000e-01 : f32
    %86 = vector.broadcast %cst_44 : f32 to vector<8x32xf32>
    %87 = arith.addf %85, %86 : vector<8x32xf32>
    %88 = vector.extract_strided_slice %71 {offsets = [0, 64], sizes = [8, 32], strides = [1, 1]} : vector<8x128xf32> to vector<8x32xf32>
    %89 = math.tanh %88 : vector<8x32xf32>
    %90 = vector.extract_strided_slice %71 {offsets = [0, 96], sizes = [8, 32], strides = [1, 1]} : vector<8x128xf32> to vector<8x32xf32>
    %cst_45 = arith.constant 5.000000e-01 : f32
    %91 = vector.broadcast %cst_45 : f32 to vector<8x32xf32>
    %92 = arith.mulf %91, %90 : vector<8x32xf32>
    %93 = math.tanh %92 : vector<8x32xf32>
    %cst_46 = arith.constant 5.000000e-01 : f32
    %94 = vector.broadcast %cst_46 : f32 to vector<8x32xf32>
    %95 = arith.mulf %94, %93 : vector<8x32xf32>
    %cst_47 = arith.constant 5.000000e-01 : f32
    %96 = vector.broadcast %cst_47 : f32 to vector<8x32xf32>
    %97 = arith.addf %95, %96 : vector<8x32xf32>
    %98 = arith.mulf %79, %89 : vector<8x32xf32>
    %99 = arith.mulf %87, %60 : vector<8x32xf32>
    %100 = arith.addf %98, %99 : vector<8x32xf32>
    %101 = math.tanh %100 : vector<8x32xf32>
    %102 = arith.mulf %97, %101 : vector<8x32xf32>
    %c1_i32 = arith.constant 1 : i32
    %103 = arith.addi %3, %c1_i32 : i32
    %104 = vector.broadcast %103 : i32 to vector<8x1xi32>
    %105 = arith.cmpi sgt, %5, %104 : vector<8x1xi32>
    %106 = vector.shape_cast %105 : vector<8x1xi1> to vector<8x1xi1>
    %107 = vector.broadcast %106 : vector<8x1xi1> to vector<8x32xi1>
    %108 = arith.select %107, %102, %57 : vector<8x32xi1>, vector<8x32xf32>
    %109 = vector.shape_cast %105 : vector<8x1xi1> to vector<8x1xi1>
    %110 = vector.broadcast %109 : vector<8x1xi1> to vector<8x32xi1>
    %111 = arith.select %110, %100, %60 : vector<8x32xi1>, vector<8x32xf32>
    %cst_48 = arith.constant 0.000000e+00 : f32
    %112 = vector.shape_cast %105 : vector<8x1xi1> to vector<8x1xi1>
    %113 = vector.broadcast %112 : vector<8x1xi1> to vector<8x32xi1>
    %114 = vector.broadcast %cst_48 : f32 to vector<8x32xf32>
    %115 = arith.select %113, %102, %114 : vector<8x32xi1>, vector<8x32xf32>
    %c0_49 = arith.constant 0 : index
    %c1_50 = arith.constant 1 : index
    %c0_51 = arith.constant 0 : index
    %116 = vector.load %arg7[%c0_49, %c1_50, %c0_51] : memref<8x16x32xf32, #tpu.memory_space<vmem>>, vector<8x1x32xf32>
    %117 = vector.shape_cast %116 : vector<8x1x32xf32> to vector<8x32xf32>
    %118 = vector.shape_cast %115 : vector<8x32xf32> to vector<8x1x32xf32>
    tpu.vector_store %arg7[%c0_49, %c1_50, %c0_51], %118 {strides = array<i32>} : memref<8x16x32xf32, #tpu.memory_space<vmem>>, vector<8x1x32xf32>,
    %c0_52 = arith.constant 0 : index
    %c2 = arith.constant 2 : index
    %c0_53 = arith.constant 0 : index
    %119 = vector.load %arg10[%c0_52, %c2, %c0_53] : memref<8x16x128xf32, #tpu.memory_space<vmem>>, vector<8x1x128xf32>
    %120 = vector.shape_cast %119 : vector<8x1x128xf32> to vector<8x128xf32>
    %cst_54 = arith.constant dense<0.000000e+00> : vector<8x128xf32>
    %121 = tpu.matmul %108, %4, %cst_54 {dimension_numbers = #tpu.dot_dimension_numbers<[1], [0], [0], [1], [0, 0, 1, 1], [], []>} : vector<8x32xf32>, vector<32x128xf32>, vector<8x128xf32> -> vector<8x128xf32>
    %122 = arith.addf %120, %121 : vector<8x128xf32>
    %123 = vector.extract_strided_slice %122 {offsets = [0, 0], sizes = [8, 32], strides = [1, 1]} : vector<8x128xf32> to vector<8x32xf32>
    %cst_55 = arith.constant 5.000000e-01 : f32
    %124 = vector.broadcast %cst_55 : f32 to vector<8x32xf32>
    %125 = arith.mulf %124, %123 : vector<8x32xf32>
    %126 = math.tanh %125 : vector<8x32xf32>
    %cst_56 = arith.constant 5.000000e-01 : f32
    %127 = vector.broadcast %cst_56 : f32 to vector<8x32xf32>
    %128 = arith.mulf %127, %126 : vector<8x32xf32>
    %cst_57 = arith.constant 5.000000e-01 : f32
    %129 = vector.broadcast %cst_57 : f32 to vector<8x32xf32>
    %130 = arith.addf %128, %129 : vector<8x32xf32>
    %131 = vector.extract_strided_slice %122 {offsets = [0, 32], sizes = [8, 32], strides = [1, 1]} : vector<8x128xf32> to vector<8x32xf32>
    %cst_58 = arith.constant 5.000000e-01 : f32
    %132 = vector.broadcast %cst_58 : f32 to vector<8x32xf32>
    %133 = arith.mulf %132, %131 : vector<8x32xf32>
    %134 = math.tanh %133 : vector<8x32xf32>
    %cst_59 = arith.constant 5.000000e-01 : f32
    %135 = vector.broadcast %cst_59 : f32 to vector<8x32xf32>
    %136 = arith.mulf %135, %134 : vector<8x32xf32>
    %cst_60 = arith.constant 5.000000e-01 : f32
    %137 = vector.broadcast %cst_60 : f32 to vector<8x32xf32>
    %138 = arith.addf %136, %137 : vector<8x32xf32>
    %139 = vector.extract_strided_slice %122 {offsets = [0, 64], sizes = [8, 32], strides = [1, 1]} : vector<8x128xf32> to vector<8x32xf32>
    %140 = math.tanh %139 : vector<8x32xf32>
    %141 = vector.extract_strided_slice %122 {offsets = [0, 96], sizes = [8, 32], strides = [1, 1]} : vector<8x128xf32> to vector<8x32xf32>
    %cst_61 = arith.constant 5.000000e-01 : f32
    %142 = vector.broadcast %cst_61 : f32 to vector<8x32xf32>
    %143 = arith.mulf %142, %141 : vector<8x32xf32>
    %144 = math.tanh %143 : vector<8x32xf32>
    %cst_62 = arith.constant 5.000000e-01 : f32
    %145 = vector.broadcast %cst_62 : f32 to vector<8x32xf32>
    %146 = arith.mulf %145, %144 : vector<8x32xf32>
    %cst_63 = arith.constant 5.000000e-01 : f32
    %147 = vector.broadcast %cst_63 : f32 to vector<8x32xf32>
    %148 = arith.addf %146, %147 : vector<8x32xf32>
    %149 = arith.mulf %130, %140 : vector<8x32xf32>
    %150 = arith.mulf %138, %111 : vector<8x32xf32>
    %151 = arith.addf %149, %150 : vector<8x32xf32>
    %152 = math.tanh %151 : vector<8x32xf32>
    %153 = arith.mulf %148, %152 : vector<8x32xf32>
    %c2_i32 = arith.constant 2 : i32
    %154 = arith.addi %3, %c2_i32 : i32
    %155 = vector.broadcast %154 : i32 to vector<8x1xi32>
    %156 = arith.cmpi sgt, %5, %155 : vector<8x1xi32>
    %157 = vector.shape_cast %156 : vector<8x1xi1> to vector<8x1xi1>
    %158 = vector.broadcast %157 : vector<8x1xi1> to vector<8x32xi1>
    %159 = arith.select %158, %153, %108 : vector<8x32xi1>, vector<8x32xf32>
    %160 = vector.shape_cast %156 : vector<8x1xi1> to vector<8x1xi1>
    %161 = vector.broadcast %160 : vector<8x1xi1> to vector<8x32xi1>
    %162 = arith.select %161, %151, %111 : vector<8x32xi1>, vector<8x32xf32>
    %cst_64 = arith.constant 0.000000e+00 : f32
    %163 = vector.shape_cast %156 : vector<8x1xi1> to vector<8x1xi1>
    %164 = vector.broadcast %163 : vector<8x1xi1> to vector<8x32xi1>
    %165 = vector.broadcast %cst_64 : f32 to vector<8x32xf32>
    %166 = arith.select %164, %153, %165 : vector<8x32xi1>, vector<8x32xf32>
    %c0_65 = arith.constant 0 : index
    %c2_66 = arith.constant 2 : index
    %c0_67 = arith.constant 0 : index
    %167 = vector.load %arg7[%c0_65, %c2_66, %c0_67] : memref<8x16x32xf32, #tpu.memory_space<vmem>>, vector<8x1x32xf32>
    %168 = vector.shape_cast %167 : vector<8x1x32xf32> to vector<8x32xf32>
    %169 = vector.shape_cast %166 : vector<8x32xf32> to vector<8x1x32xf32>
    tpu.vector_store %arg7[%c0_65, %c2_66, %c0_67], %169 {strides = array<i32>} : memref<8x16x32xf32, #tpu.memory_space<vmem>>, vector<8x1x32xf32>,
    %c0_68 = arith.constant 0 : index
    %c3 = arith.constant 3 : index
    %c0_69 = arith.constant 0 : index
    %170 = vector.load %arg10[%c0_68, %c3, %c0_69] : memref<8x16x128xf32, #tpu.memory_space<vmem>>, vector<8x1x128xf32>
    %171 = vector.shape_cast %170 : vector<8x1x128xf32> to vector<8x128xf32>
    %cst_70 = arith.constant dense<0.000000e+00> : vector<8x128xf32>
    %172 = tpu.matmul %159, %4, %cst_70 {dimension_numbers = #tpu.dot_dimension_numbers<[1], [0], [0], [1], [0, 0, 1, 1], [], []>} : vector<8x32xf32>, vector<32x128xf32>, vector<8x128xf32> -> vector<8x128xf32>
    %173 = arith.addf %171, %172 : vector<8x128xf32>
    %174 = vector.extract_strided_slice %173 {offsets = [0, 0], sizes = [8, 32], strides = [1, 1]} : vector<8x128xf32> to vector<8x32xf32>
    %cst_71 = arith.constant 5.000000e-01 : f32
    %175 = vector.broadcast %cst_71 : f32 to vector<8x32xf32>
    %176 = arith.mulf %175, %174 : vector<8x32xf32>
    %177 = math.tanh %176 : vector<8x32xf32>
    %cst_72 = arith.constant 5.000000e-01 : f32
    %178 = vector.broadcast %cst_72 : f32 to vector<8x32xf32>
    %179 = arith.mulf %178, %177 : vector<8x32xf32>
    %cst_73 = arith.constant 5.000000e-01 : f32
    %180 = vector.broadcast %cst_73 : f32 to vector<8x32xf32>
    %181 = arith.addf %179, %180 : vector<8x32xf32>
    %182 = vector.extract_strided_slice %173 {offsets = [0, 32], sizes = [8, 32], strides = [1, 1]} : vector<8x128xf32> to vector<8x32xf32>
    %cst_74 = arith.constant 5.000000e-01 : f32
    %183 = vector.broadcast %cst_74 : f32 to vector<8x32xf32>
    %184 = arith.mulf %183, %182 : vector<8x32xf32>
    %185 = math.tanh %184 : vector<8x32xf32>
    %cst_75 = arith.constant 5.000000e-01 : f32
    %186 = vector.broadcast %cst_75 : f32 to vector<8x32xf32>
    %187 = arith.mulf %186, %185 : vector<8x32xf32>
    %cst_76 = arith.constant 5.000000e-01 : f32
    %188 = vector.broadcast %cst_76 : f32 to vector<8x32xf32>
    %189 = arith.addf %187, %188 : vector<8x32xf32>
    %190 = vector.extract_strided_slice %173 {offsets = [0, 64], sizes = [8, 32], strides = [1, 1]} : vector<8x128xf32> to vector<8x32xf32>
    %191 = math.tanh %190 : vector<8x32xf32>
    %192 = vector.extract_strided_slice %173 {offsets = [0, 96], sizes = [8, 32], strides = [1, 1]} : vector<8x128xf32> to vector<8x32xf32>
    %cst_77 = arith.constant 5.000000e-01 : f32
    %193 = vector.broadcast %cst_77 : f32 to vector<8x32xf32>
    %194 = arith.mulf %193, %192 : vector<8x32xf32>
    %195 = math.tanh %194 : vector<8x32xf32>
    %cst_78 = arith.constant 5.000000e-01 : f32
    %196 = vector.broadcast %cst_78 : f32 to vector<8x32xf32>
    %197 = arith.mulf %196, %195 : vector<8x32xf32>
    %cst_79 = arith.constant 5.000000e-01 : f32
    %198 = vector.broadcast %cst_79 : f32 to vector<8x32xf32>
    %199 = arith.addf %197, %198 : vector<8x32xf32>
    %200 = arith.mulf %181, %191 : vector<8x32xf32>
    %201 = arith.mulf %189, %162 : vector<8x32xf32>
    %202 = arith.addf %200, %201 : vector<8x32xf32>
    %203 = math.tanh %202 : vector<8x32xf32>
    %204 = arith.mulf %199, %203 : vector<8x32xf32>
    %c3_i32 = arith.constant 3 : i32
    %205 = arith.addi %3, %c3_i32 : i32
    %206 = vector.broadcast %205 : i32 to vector<8x1xi32>
    %207 = arith.cmpi sgt, %5, %206 : vector<8x1xi32>
    %208 = vector.shape_cast %207 : vector<8x1xi1> to vector<8x1xi1>
    %209 = vector.broadcast %208 : vector<8x1xi1> to vector<8x32xi1>
    %210 = arith.select %209, %204, %159 : vector<8x32xi1>, vector<8x32xf32>
    %211 = vector.shape_cast %207 : vector<8x1xi1> to vector<8x1xi1>
    %212 = vector.broadcast %211 : vector<8x1xi1> to vector<8x32xi1>
    %213 = arith.select %212, %202, %162 : vector<8x32xi1>, vector<8x32xf32>
    %cst_80 = arith.constant 0.000000e+00 : f32
    %214 = vector.shape_cast %207 : vector<8x1xi1> to vector<8x1xi1>
    %215 = vector.broadcast %214 : vector<8x1xi1> to vector<8x32xi1>
    %216 = vector.broadcast %cst_80 : f32 to vector<8x32xf32>
    %217 = arith.select %215, %204, %216 : vector<8x32xi1>, vector<8x32xf32>
    %c0_81 = arith.constant 0 : index
    %c3_82 = arith.constant 3 : index
    %c0_83 = arith.constant 0 : index
    %218 = vector.load %arg7[%c0_81, %c3_82, %c0_83] : memref<8x16x32xf32, #tpu.memory_space<vmem>>, vector<8x1x32xf32>
    %219 = vector.shape_cast %218 : vector<8x1x32xf32> to vector<8x32xf32>
    %220 = vector.shape_cast %217 : vector<8x32xf32> to vector<8x1x32xf32>
    tpu.vector_store %arg7[%c0_81, %c3_82, %c0_83], %220 {strides = array<i32>} : memref<8x16x32xf32, #tpu.memory_space<vmem>>, vector<8x1x32xf32>,
    %c0_84 = arith.constant 0 : index
    %c4 = arith.constant 4 : index
    %c0_85 = arith.constant 0 : index
    %221 = vector.load %arg10[%c0_84, %c4, %c0_85] : memref<8x16x128xf32, #tpu.memory_space<vmem>>, vector<8x1x128xf32>
    %222 = vector.shape_cast %221 : vector<8x1x128xf32> to vector<8x128xf32>
    %cst_86 = arith.constant dense<0.000000e+00> : vector<8x128xf32>
    %223 = tpu.matmul %210, %4, %cst_86 {dimension_numbers = #tpu.dot_dimension_numbers<[1], [0], [0], [1], [0, 0, 1, 1], [], []>} : vector<8x32xf32>, vector<32x128xf32>, vector<8x128xf32> -> vector<8x128xf32>
    %224 = arith.addf %222, %223 : vector<8x128xf32>
    %225 = vector.extract_strided_slice %224 {offsets = [0, 0], sizes = [8, 32], strides = [1, 1]} : vector<8x128xf32> to vector<8x32xf32>
    %cst_87 = arith.constant 5.000000e-01 : f32
    %226 = vector.broadcast %cst_87 : f32 to vector<8x32xf32>
    %227 = arith.mulf %226, %225 : vector<8x32xf32>
    %228 = math.tanh %227 : vector<8x32xf32>
    %cst_88 = arith.constant 5.000000e-01 : f32
    %229 = vector.broadcast %cst_88 : f32 to vector<8x32xf32>
    %230 = arith.mulf %229, %228 : vector<8x32xf32>
    %cst_89 = arith.constant 5.000000e-01 : f32
    %231 = vector.broadcast %cst_89 : f32 to vector<8x32xf32>
    %232 = arith.addf %230, %231 : vector<8x32xf32>
    %233 = vector.extract_strided_slice %224 {offsets = [0, 32], sizes = [8, 32], strides = [1, 1]} : vector<8x128xf32> to vector<8x32xf32>
    %cst_90 = arith.constant 5.000000e-01 : f32
    %234 = vector.broadcast %cst_90 : f32 to vector<8x32xf32>
    %235 = arith.mulf %234, %233 : vector<8x32xf32>
    %236 = math.tanh %235 : vector<8x32xf32>
    %cst_91 = arith.constant 5.000000e-01 : f32
    %237 = vector.broadcast %cst_91 : f32 to vector<8x32xf32>
    %238 = arith.mulf %237, %236 : vector<8x32xf32>
    %cst_92 = arith.constant 5.000000e-01 : f32
    %239 = vector.broadcast %cst_92 : f32 to vector<8x32xf32>
    %240 = arith.addf %238, %239 : vector<8x32xf32>
    %241 = vector.extract_strided_slice %224 {offsets = [0, 64], sizes = [8, 32], strides = [1, 1]} : vector<8x128xf32> to vector<8x32xf32>
    %242 = math.tanh %241 : vector<8x32xf32>
    %243 = vector.extract_strided_slice %224 {offsets = [0, 96], sizes = [8, 32], strides = [1, 1]} : vector<8x128xf32> to vector<8x32xf32>
    %cst_93 = arith.constant 5.000000e-01 : f32
    %244 = vector.broadcast %cst_93 : f32 to vector<8x32xf32>
    %245 = arith.mulf %244, %243 : vector<8x32xf32>
    %246 = math.tanh %245 : vector<8x32xf32>
    %cst_94 = arith.constant 5.000000e-01 : f32
    %247 = vector.broadcast %cst_94 : f32 to vector<8x32xf32>
    %248 = arith.mulf %247, %246 : vector<8x32xf32>
    %cst_95 = arith.constant 5.000000e-01 : f32
    %249 = vector.broadcast %cst_95 : f32 to vector<8x32xf32>
    %250 = arith.addf %248, %249 : vector<8x32xf32>
    %251 = arith.mulf %232, %242 : vector<8x32xf32>
    %252 = arith.mulf %240, %213 : vector<8x32xf32>
    %253 = arith.addf %251, %252 : vector<8x32xf32>
    %254 = math.tanh %253 : vector<8x32xf32>
    %255 = arith.mulf %250, %254 : vector<8x32xf32>
    %c4_i32 = arith.constant 4 : i32
    %256 = arith.addi %3, %c4_i32 : i32
    %257 = vector.broadcast %256 : i32 to vector<8x1xi32>
    %258 = arith.cmpi sgt, %5, %257 : vector<8x1xi32>
    %259 = vector.shape_cast %258 : vector<8x1xi1> to vector<8x1xi1>
    %260 = vector.broadcast %259 : vector<8x1xi1> to vector<8x32xi1>
    %261 = arith.select %260, %255, %210 : vector<8x32xi1>, vector<8x32xf32>
    %262 = vector.shape_cast %258 : vector<8x1xi1> to vector<8x1xi1>
    %263 = vector.broadcast %262 : vector<8x1xi1> to vector<8x32xi1>
    %264 = arith.select %263, %253, %213 : vector<8x32xi1>, vector<8x32xf32>
    %cst_96 = arith.constant 0.000000e+00 : f32
    %265 = vector.shape_cast %258 : vector<8x1xi1> to vector<8x1xi1>
    %266 = vector.broadcast %265 : vector<8x1xi1> to vector<8x32xi1>
    %267 = vector.broadcast %cst_96 : f32 to vector<8x32xf32>
    %268 = arith.select %266, %255, %267 : vector<8x32xi1>, vector<8x32xf32>
    %c0_97 = arith.constant 0 : index
    %c4_98 = arith.constant 4 : index
    %c0_99 = arith.constant 0 : index
    %269 = vector.load %arg7[%c0_97, %c4_98, %c0_99] : memref<8x16x32xf32, #tpu.memory_space<vmem>>, vector<8x1x32xf32>
    %270 = vector.shape_cast %269 : vector<8x1x32xf32> to vector<8x32xf32>
    %271 = vector.shape_cast %268 : vector<8x32xf32> to vector<8x1x32xf32>
    tpu.vector_store %arg7[%c0_97, %c4_98, %c0_99], %271 {strides = array<i32>} : memref<8x16x32xf32, #tpu.memory_space<vmem>>, vector<8x1x32xf32>,
    %c0_100 = arith.constant 0 : index
    %c5 = arith.constant 5 : index
    %c0_101 = arith.constant 0 : index
    %272 = vector.load %arg10[%c0_100, %c5, %c0_101] : memref<8x16x128xf32, #tpu.memory_space<vmem>>, vector<8x1x128xf32>
    %273 = vector.shape_cast %272 : vector<8x1x128xf32> to vector<8x128xf32>
    %cst_102 = arith.constant dense<0.000000e+00> : vector<8x128xf32>
    %274 = tpu.matmul %261, %4, %cst_102 {dimension_numbers = #tpu.dot_dimension_numbers<[1], [0], [0], [1], [0, 0, 1, 1], [], []>} : vector<8x32xf32>, vector<32x128xf32>, vector<8x128xf32> -> vector<8x128xf32>
    %275 = arith.addf %273, %274 : vector<8x128xf32>
    %276 = vector.extract_strided_slice %275 {offsets = [0, 0], sizes = [8, 32], strides = [1, 1]} : vector<8x128xf32> to vector<8x32xf32>
    %cst_103 = arith.constant 5.000000e-01 : f32
    %277 = vector.broadcast %cst_103 : f32 to vector<8x32xf32>
    %278 = arith.mulf %277, %276 : vector<8x32xf32>
    %279 = math.tanh %278 : vector<8x32xf32>
    %cst_104 = arith.constant 5.000000e-01 : f32
    %280 = vector.broadcast %cst_104 : f32 to vector<8x32xf32>
    %281 = arith.mulf %280, %279 : vector<8x32xf32>
    %cst_105 = arith.constant 5.000000e-01 : f32
    %282 = vector.broadcast %cst_105 : f32 to vector<8x32xf32>
    %283 = arith.addf %281, %282 : vector<8x32xf32>
    %284 = vector.extract_strided_slice %275 {offsets = [0, 32], sizes = [8, 32], strides = [1, 1]} : vector<8x128xf32> to vector<8x32xf32>
    %cst_106 = arith.constant 5.000000e-01 : f32
    %285 = vector.broadcast %cst_106 : f32 to vector<8x32xf32>
    %286 = arith.mulf %285, %284 : vector<8x32xf32>
    %287 = math.tanh %286 : vector<8x32xf32>
    %cst_107 = arith.constant 5.000000e-01 : f32
    %288 = vector.broadcast %cst_107 : f32 to vector<8x32xf32>
    %289 = arith.mulf %288, %287 : vector<8x32xf32>
    %cst_108 = arith.constant 5.000000e-01 : f32
    %290 = vector.broadcast %cst_108 : f32 to vector<8x32xf32>
    %291 = arith.addf %289, %290 : vector<8x32xf32>
    %292 = vector.extract_strided_slice %275 {offsets = [0, 64], sizes = [8, 32], strides = [1, 1]} : vector<8x128xf32> to vector<8x32xf32>
    %293 = math.tanh %292 : vector<8x32xf32>
    %294 = vector.extract_strided_slice %275 {offsets = [0, 96], sizes = [8, 32], strides = [1, 1]} : vector<8x128xf32> to vector<8x32xf32>
    %cst_109 = arith.constant 5.000000e-01 : f32
    %295 = vector.broadcast %cst_109 : f32 to vector<8x32xf32>
    %296 = arith.mulf %295, %294 : vector<8x32xf32>
    %297 = math.tanh %296 : vector<8x32xf32>
    %cst_110 = arith.constant 5.000000e-01 : f32
    %298 = vector.broadcast %cst_110 : f32 to vector<8x32xf32>
    %299 = arith.mulf %298, %297 : vector<8x32xf32>
    %cst_111 = arith.constant 5.000000e-01 : f32
    %300 = vector.broadcast %cst_111 : f32 to vector<8x32xf32>
    %301 = arith.addf %299, %300 : vector<8x32xf32>
    %302 = arith.mulf %283, %293 : vector<8x32xf32>
    %303 = arith.mulf %291, %264 : vector<8x32xf32>
    %304 = arith.addf %302, %303 : vector<8x32xf32>
    %305 = math.tanh %304 : vector<8x32xf32>
    %306 = arith.mulf %301, %305 : vector<8x32xf32>
    %c5_i32 = arith.constant 5 : i32
    %307 = arith.addi %3, %c5_i32 : i32
    %308 = vector.broadcast %307 : i32 to vector<8x1xi32>
    %309 = arith.cmpi sgt, %5, %308 : vector<8x1xi32>
    %310 = vector.shape_cast %309 : vector<8x1xi1> to vector<8x1xi1>
    %311 = vector.broadcast %310 : vector<8x1xi1> to vector<8x32xi1>
    %312 = arith.select %311, %306, %261 : vector<8x32xi1>, vector<8x32xf32>
    %313 = vector.shape_cast %309 : vector<8x1xi1> to vector<8x1xi1>
    %314 = vector.broadcast %313 : vector<8x1xi1> to vector<8x32xi1>
    %315 = arith.select %314, %304, %264 : vector<8x32xi1>, vector<8x32xf32>
    %cst_112 = arith.constant 0.000000e+00 : f32
    %316 = vector.shape_cast %309 : vector<8x1xi1> to vector<8x1xi1>
    %317 = vector.broadcast %316 : vector<8x1xi1> to vector<8x32xi1>
    %318 = vector.broadcast %cst_112 : f32 to vector<8x32xf32>
    %319 = arith.select %317, %306, %318 : vector<8x32xi1>, vector<8x32xf32>
    %c0_113 = arith.constant 0 : index
    %c5_114 = arith.constant 5 : index
    %c0_115 = arith.constant 0 : index
    %320 = vector.load %arg7[%c0_113, %c5_114, %c0_115] : memref<8x16x32xf32, #tpu.memory_space<vmem>>, vector<8x1x32xf32>
    %321 = vector.shape_cast %320 : vector<8x1x32xf32> to vector<8x32xf32>
    %322 = vector.shape_cast %319 : vector<8x32xf32> to vector<8x1x32xf32>
    tpu.vector_store %arg7[%c0_113, %c5_114, %c0_115], %322 {strides = array<i32>} : memref<8x16x32xf32, #tpu.memory_space<vmem>>, vector<8x1x32xf32>,
    %c0_116 = arith.constant 0 : index
    %c6 = arith.constant 6 : index
    %c0_117 = arith.constant 0 : index
    %323 = vector.load %arg10[%c0_116, %c6, %c0_117] : memref<8x16x128xf32, #tpu.memory_space<vmem>>, vector<8x1x128xf32>
    %324 = vector.shape_cast %323 : vector<8x1x128xf32> to vector<8x128xf32>
    %cst_118 = arith.constant dense<0.000000e+00> : vector<8x128xf32>
    %325 = tpu.matmul %312, %4, %cst_118 {dimension_numbers = #tpu.dot_dimension_numbers<[1], [0], [0], [1], [0, 0, 1, 1], [], []>} : vector<8x32xf32>, vector<32x128xf32>, vector<8x128xf32> -> vector<8x128xf32>
    %326 = arith.addf %324, %325 : vector<8x128xf32>
    %327 = vector.extract_strided_slice %326 {offsets = [0, 0], sizes = [8, 32], strides = [1, 1]} : vector<8x128xf32> to vector<8x32xf32>
    %cst_119 = arith.constant 5.000000e-01 : f32
    %328 = vector.broadcast %cst_119 : f32 to vector<8x32xf32>
    %329 = arith.mulf %328, %327 : vector<8x32xf32>
    %330 = math.tanh %329 : vector<8x32xf32>
    %cst_120 = arith.constant 5.000000e-01 : f32
    %331 = vector.broadcast %cst_120 : f32 to vector<8x32xf32>
    %332 = arith.mulf %331, %330 : vector<8x32xf32>
    %cst_121 = arith.constant 5.000000e-01 : f32
    %333 = vector.broadcast %cst_121 : f32 to vector<8x32xf32>
    %334 = arith.addf %332, %333 : vector<8x32xf32>
    %335 = vector.extract_strided_slice %326 {offsets = [0, 32], sizes = [8, 32], strides = [1, 1]} : vector<8x128xf32> to vector<8x32xf32>
    %cst_122 = arith.constant 5.000000e-01 : f32
    %336 = vector.broadcast %cst_122 : f32 to vector<8x32xf32>
    %337 = arith.mulf %336, %335 : vector<8x32xf32>
    %338 = math.tanh %337 : vector<8x32xf32>
    %cst_123 = arith.constant 5.000000e-01 : f32
    %339 = vector.broadcast %cst_123 : f32 to vector<8x32xf32>
    %340 = arith.mulf %339, %338 : vector<8x32xf32>
    %cst_124 = arith.constant 5.000000e-01 : f32
    %341 = vector.broadcast %cst_124 : f32 to vector<8x32xf32>
    %342 = arith.addf %340, %341 : vector<8x32xf32>
    %343 = vector.extract_strided_slice %326 {offsets = [0, 64], sizes = [8, 32], strides = [1, 1]} : vector<8x128xf32> to vector<8x32xf32>
    %344 = math.tanh %343 : vector<8x32xf32>
    %345 = vector.extract_strided_slice %326 {offsets = [0, 96], sizes = [8, 32], strides = [1, 1]} : vector<8x128xf32> to vector<8x32xf32>
    %cst_125 = arith.constant 5.000000e-01 : f32
    %346 = vector.broadcast %cst_125 : f32 to vector<8x32xf32>
    %347 = arith.mulf %346, %345 : vector<8x32xf32>
    %348 = math.tanh %347 : vector<8x32xf32>
    %cst_126 = arith.constant 5.000000e-01 : f32
    %349 = vector.broadcast %cst_126 : f32 to vector<8x32xf32>
    %350 = arith.mulf %349, %348 : vector<8x32xf32>
    %cst_127 = arith.constant 5.000000e-01 : f32
    %351 = vector.broadcast %cst_127 : f32 to vector<8x32xf32>
    %352 = arith.addf %350, %351 : vector<8x32xf32>
    %353 = arith.mulf %334, %344 : vector<8x32xf32>
    %354 = arith.mulf %342, %315 : vector<8x32xf32>
    %355 = arith.addf %353, %354 : vector<8x32xf32>
    %356 = math.tanh %355 : vector<8x32xf32>
    %357 = arith.mulf %352, %356 : vector<8x32xf32>
    %c6_i32 = arith.constant 6 : i32
    %358 = arith.addi %3, %c6_i32 : i32
    %359 = vector.broadcast %358 : i32 to vector<8x1xi32>
    %360 = arith.cmpi sgt, %5, %359 : vector<8x1xi32>
    %361 = vector.shape_cast %360 : vector<8x1xi1> to vector<8x1xi1>
    %362 = vector.broadcast %361 : vector<8x1xi1> to vector<8x32xi1>
    %363 = arith.select %362, %357, %312 : vector<8x32xi1>, vector<8x32xf32>
    %364 = vector.shape_cast %360 : vector<8x1xi1> to vector<8x1xi1>
    %365 = vector.broadcast %364 : vector<8x1xi1> to vector<8x32xi1>
    %366 = arith.select %365, %355, %315 : vector<8x32xi1>, vector<8x32xf32>
    %cst_128 = arith.constant 0.000000e+00 : f32
    %367 = vector.shape_cast %360 : vector<8x1xi1> to vector<8x1xi1>
    %368 = vector.broadcast %367 : vector<8x1xi1> to vector<8x32xi1>
    %369 = vector.broadcast %cst_128 : f32 to vector<8x32xf32>
    %370 = arith.select %368, %357, %369 : vector<8x32xi1>, vector<8x32xf32>
    %c0_129 = arith.constant 0 : index
    %c6_130 = arith.constant 6 : index
    %c0_131 = arith.constant 0 : index
    %371 = vector.load %arg7[%c0_129, %c6_130, %c0_131] : memref<8x16x32xf32, #tpu.memory_space<vmem>>, vector<8x1x32xf32>
    %372 = vector.shape_cast %371 : vector<8x1x32xf32> to vector<8x32xf32>
    %373 = vector.shape_cast %370 : vector<8x32xf32> to vector<8x1x32xf32>
    tpu.vector_store %arg7[%c0_129, %c6_130, %c0_131], %373 {strides = array<i32>} : memref<8x16x32xf32, #tpu.memory_space<vmem>>, vector<8x1x32xf32>,
    %c0_132 = arith.constant 0 : index
    %c7 = arith.constant 7 : index
    %c0_133 = arith.constant 0 : index
    %374 = vector.load %arg10[%c0_132, %c7, %c0_133] : memref<8x16x128xf32, #tpu.memory_space<vmem>>, vector<8x1x128xf32>
    %375 = vector.shape_cast %374 : vector<8x1x128xf32> to vector<8x128xf32>
    %cst_134 = arith.constant dense<0.000000e+00> : vector<8x128xf32>
    %376 = tpu.matmul %363, %4, %cst_134 {dimension_numbers = #tpu.dot_dimension_numbers<[1], [0], [0], [1], [0, 0, 1, 1], [], []>} : vector<8x32xf32>, vector<32x128xf32>, vector<8x128xf32> -> vector<8x128xf32>
    %377 = arith.addf %375, %376 : vector<8x128xf32>
    %378 = vector.extract_strided_slice %377 {offsets = [0, 0], sizes = [8, 32], strides = [1, 1]} : vector<8x128xf32> to vector<8x32xf32>
    %cst_135 = arith.constant 5.000000e-01 : f32
    %379 = vector.broadcast %cst_135 : f32 to vector<8x32xf32>
    %380 = arith.mulf %379, %378 : vector<8x32xf32>
    %381 = math.tanh %380 : vector<8x32xf32>
    %cst_136 = arith.constant 5.000000e-01 : f32
    %382 = vector.broadcast %cst_136 : f32 to vector<8x32xf32>
    %383 = arith.mulf %382, %381 : vector<8x32xf32>
    %cst_137 = arith.constant 5.000000e-01 : f32
    %384 = vector.broadcast %cst_137 : f32 to vector<8x32xf32>
    %385 = arith.addf %383, %384 : vector<8x32xf32>
    %386 = vector.extract_strided_slice %377 {offsets = [0, 32], sizes = [8, 32], strides = [1, 1]} : vector<8x128xf32> to vector<8x32xf32>
    %cst_138 = arith.constant 5.000000e-01 : f32
    %387 = vector.broadcast %cst_138 : f32 to vector<8x32xf32>
    %388 = arith.mulf %387, %386 : vector<8x32xf32>
    %389 = math.tanh %388 : vector<8x32xf32>
    %cst_139 = arith.constant 5.000000e-01 : f32
    %390 = vector.broadcast %cst_139 : f32 to vector<8x32xf32>
    %391 = arith.mulf %390, %389 : vector<8x32xf32>
    %cst_140 = arith.constant 5.000000e-01 : f32
    %392 = vector.broadcast %cst_140 : f32 to vector<8x32xf32>
    %393 = arith.addf %391, %392 : vector<8x32xf32>
    %394 = vector.extract_strided_slice %377 {offsets = [0, 64], sizes = [8, 32], strides = [1, 1]} : vector<8x128xf32> to vector<8x32xf32>
    %395 = math.tanh %394 : vector<8x32xf32>
    %396 = vector.extract_strided_slice %377 {offsets = [0, 96], sizes = [8, 32], strides = [1, 1]} : vector<8x128xf32> to vector<8x32xf32>
    %cst_141 = arith.constant 5.000000e-01 : f32
    %397 = vector.broadcast %cst_141 : f32 to vector<8x32xf32>
    %398 = arith.mulf %397, %396 : vector<8x32xf32>
    %399 = math.tanh %398 : vector<8x32xf32>
    %cst_142 = arith.constant 5.000000e-01 : f32
    %400 = vector.broadcast %cst_142 : f32 to vector<8x32xf32>
    %401 = arith.mulf %400, %399 : vector<8x32xf32>
    %cst_143 = arith.constant 5.000000e-01 : f32
    %402 = vector.broadcast %cst_143 : f32 to vector<8x32xf32>
    %403 = arith.addf %401, %402 : vector<8x32xf32>
    %404 = arith.mulf %385, %395 : vector<8x32xf32>
    %405 = arith.mulf %393, %366 : vector<8x32xf32>
    %406 = arith.addf %404, %405 : vector<8x32xf32>
    %407 = math.tanh %406 : vector<8x32xf32>
    %408 = arith.mulf %403, %407 : vector<8x32xf32>
    %c7_i32 = arith.constant 7 : i32
    %409 = arith.addi %3, %c7_i32 : i32
    %410 = vector.broadcast %409 : i32 to vector<8x1xi32>
    %411 = arith.cmpi sgt, %5, %410 : vector<8x1xi32>
    %412 = vector.shape_cast %411 : vector<8x1xi1> to vector<8x1xi1>
    %413 = vector.broadcast %412 : vector<8x1xi1> to vector<8x32xi1>
    %414 = arith.select %413, %408, %363 : vector<8x32xi1>, vector<8x32xf32>
    %415 = vector.shape_cast %411 : vector<8x1xi1> to vector<8x1xi1>
    %416 = vector.broadcast %415 : vector<8x1xi1> to vector<8x32xi1>
    %417 = arith.select %416, %406, %366 : vector<8x32xi1>, vector<8x32xf32>
    %cst_144 = arith.constant 0.000000e+00 : f32
    %418 = vector.shape_cast %411 : vector<8x1xi1> to vector<8x1xi1>
    %419 = vector.broadcast %418 : vector<8x1xi1> to vector<8x32xi1>
    %420 = vector.broadcast %cst_144 : f32 to vector<8x32xf32>
    %421 = arith.select %419, %408, %420 : vector<8x32xi1>, vector<8x32xf32>
    %c0_145 = arith.constant 0 : index
    %c7_146 = arith.constant 7 : index
    %c0_147 = arith.constant 0 : index
    %422 = vector.load %arg7[%c0_145, %c7_146, %c0_147] : memref<8x16x32xf32, #tpu.memory_space<vmem>>, vector<8x1x32xf32>
    %423 = vector.shape_cast %422 : vector<8x1x32xf32> to vector<8x32xf32>
    %424 = vector.shape_cast %421 : vector<8x32xf32> to vector<8x1x32xf32>
    tpu.vector_store %arg7[%c0_145, %c7_146, %c0_147], %424 {strides = array<i32>} : memref<8x16x32xf32, #tpu.memory_space<vmem>>, vector<8x1x32xf32>,
    %c0_148 = arith.constant 0 : index
    %c8 = arith.constant 8 : index
    %c0_149 = arith.constant 0 : index
    %425 = vector.load %arg10[%c0_148, %c8, %c0_149] : memref<8x16x128xf32, #tpu.memory_space<vmem>>, vector<8x1x128xf32>
    %426 = vector.shape_cast %425 : vector<8x1x128xf32> to vector<8x128xf32>
    %cst_150 = arith.constant dense<0.000000e+00> : vector<8x128xf32>
    %427 = tpu.matmul %414, %4, %cst_150 {dimension_numbers = #tpu.dot_dimension_numbers<[1], [0], [0], [1], [0, 0, 1, 1], [], []>} : vector<8x32xf32>, vector<32x128xf32>, vector<8x128xf32> -> vector<8x128xf32>
    %428 = arith.addf %426, %427 : vector<8x128xf32>
    %429 = vector.extract_strided_slice %428 {offsets = [0, 0], sizes = [8, 32], strides = [1, 1]} : vector<8x128xf32> to vector<8x32xf32>
    %cst_151 = arith.constant 5.000000e-01 : f32
    %430 = vector.broadcast %cst_151 : f32 to vector<8x32xf32>
    %431 = arith.mulf %430, %429 : vector<8x32xf32>
    %432 = math.tanh %431 : vector<8x32xf32>
    %cst_152 = arith.constant 5.000000e-01 : f32
    %433 = vector.broadcast %cst_152 : f32 to vector<8x32xf32>
    %434 = arith.mulf %433, %432 : vector<8x32xf32>
    %cst_153 = arith.constant 5.000000e-01 : f32
    %435 = vector.broadcast %cst_153 : f32 to vector<8x32xf32>
    %436 = arith.addf %434, %435 : vector<8x32xf32>
    %437 = vector.extract_strided_slice %428 {offsets = [0, 32], sizes = [8, 32], strides = [1, 1]} : vector<8x128xf32> to vector<8x32xf32>
    %cst_154 = arith.constant 5.000000e-01 : f32
    %438 = vector.broadcast %cst_154 : f32 to vector<8x32xf32>
    %439 = arith.mulf %438, %437 : vector<8x32xf32>
    %440 = math.tanh %439 : vector<8x32xf32>
    %cst_155 = arith.constant 5.000000e-01 : f32
    %441 = vector.broadcast %cst_155 : f32 to vector<8x32xf32>
    %442 = arith.mulf %441, %440 : vector<8x32xf32>
    %cst_156 = arith.constant 5.000000e-01 : f32
    %443 = vector.broadcast %cst_156 : f32 to vector<8x32xf32>
    %444 = arith.addf %442, %443 : vector<8x32xf32>
    %445 = vector.extract_strided_slice %428 {offsets = [0, 64], sizes = [8, 32], strides = [1, 1]} : vector<8x128xf32> to vector<8x32xf32>
    %446 = math.tanh %445 : vector<8x32xf32>
    %447 = vector.extract_strided_slice %428 {offsets = [0, 96], sizes = [8, 32], strides = [1, 1]} : vector<8x128xf32> to vector<8x32xf32>
    %cst_157 = arith.constant 5.000000e-01 : f32
    %448 = vector.broadcast %cst_157 : f32 to vector<8x32xf32>
    %449 = arith.mulf %448, %447 : vector<8x32xf32>
    %450 = math.tanh %449 : vector<8x32xf32>
    %cst_158 = arith.constant 5.000000e-01 : f32
    %451 = vector.broadcast %cst_158 : f32 to vector<8x32xf32>
    %452 = arith.mulf %451, %450 : vector<8x32xf32>
    %cst_159 = arith.constant 5.000000e-01 : f32
    %453 = vector.broadcast %cst_159 : f32 to vector<8x32xf32>
    %454 = arith.addf %452, %453 : vector<8x32xf32>
    %455 = arith.mulf %436, %446 : vector<8x32xf32>
    %456 = arith.mulf %444, %417 : vector<8x32xf32>
    %457 = arith.addf %455, %456 : vector<8x32xf32>
    %458 = math.tanh %457 : vector<8x32xf32>
    %459 = arith.mulf %454, %458 : vector<8x32xf32>
    %c8_i32 = arith.constant 8 : i32
    %460 = arith.addi %3, %c8_i32 : i32
    %461 = vector.broadcast %460 : i32 to vector<8x1xi32>
    %462 = arith.cmpi sgt, %5, %461 : vector<8x1xi32>
    %463 = vector.shape_cast %462 : vector<8x1xi1> to vector<8x1xi1>
    %464 = vector.broadcast %463 : vector<8x1xi1> to vector<8x32xi1>
    %465 = arith.select %464, %459, %414 : vector<8x32xi1>, vector<8x32xf32>
    %466 = vector.shape_cast %462 : vector<8x1xi1> to vector<8x1xi1>
    %467 = vector.broadcast %466 : vector<8x1xi1> to vector<8x32xi1>
    %468 = arith.select %467, %457, %417 : vector<8x32xi1>, vector<8x32xf32>
    %cst_160 = arith.constant 0.000000e+00 : f32
    %469 = vector.shape_cast %462 : vector<8x1xi1> to vector<8x1xi1>
    %470 = vector.broadcast %469 : vector<8x1xi1> to vector<8x32xi1>
    %471 = vector.broadcast %cst_160 : f32 to vector<8x32xf32>
    %472 = arith.select %470, %459, %471 : vector<8x32xi1>, vector<8x32xf32>
    %c0_161 = arith.constant 0 : index
    %c8_162 = arith.constant 8 : index
    %c0_163 = arith.constant 0 : index
    %473 = vector.load %arg7[%c0_161, %c8_162, %c0_163] : memref<8x16x32xf32, #tpu.memory_space<vmem>>, vector<8x1x32xf32>
    %474 = vector.shape_cast %473 : vector<8x1x32xf32> to vector<8x32xf32>
    %475 = vector.shape_cast %472 : vector<8x32xf32> to vector<8x1x32xf32>
    tpu.vector_store %arg7[%c0_161, %c8_162, %c0_163], %475 {strides = array<i32>} : memref<8x16x32xf32, #tpu.memory_space<vmem>>, vector<8x1x32xf32>,
    %c0_164 = arith.constant 0 : index
    %c9 = arith.constant 9 : index
    %c0_165 = arith.constant 0 : index
    %476 = vector.load %arg10[%c0_164, %c9, %c0_165] : memref<8x16x128xf32, #tpu.memory_space<vmem>>, vector<8x1x128xf32>
    %477 = vector.shape_cast %476 : vector<8x1x128xf32> to vector<8x128xf32>
    %cst_166 = arith.constant dense<0.000000e+00> : vector<8x128xf32>
    %478 = tpu.matmul %465, %4, %cst_166 {dimension_numbers = #tpu.dot_dimension_numbers<[1], [0], [0], [1], [0, 0, 1, 1], [], []>} : vector<8x32xf32>, vector<32x128xf32>, vector<8x128xf32> -> vector<8x128xf32>
    %479 = arith.addf %477, %478 : vector<8x128xf32>
    %480 = vector.extract_strided_slice %479 {offsets = [0, 0], sizes = [8, 32], strides = [1, 1]} : vector<8x128xf32> to vector<8x32xf32>
    %cst_167 = arith.constant 5.000000e-01 : f32
    %481 = vector.broadcast %cst_167 : f32 to vector<8x32xf32>
    %482 = arith.mulf %481, %480 : vector<8x32xf32>
    %483 = math.tanh %482 : vector<8x32xf32>
    %cst_168 = arith.constant 5.000000e-01 : f32
    %484 = vector.broadcast %cst_168 : f32 to vector<8x32xf32>
    %485 = arith.mulf %484, %483 : vector<8x32xf32>
    %cst_169 = arith.constant 5.000000e-01 : f32
    %486 = vector.broadcast %cst_169 : f32 to vector<8x32xf32>
    %487 = arith.addf %485, %486 : vector<8x32xf32>
    %488 = vector.extract_strided_slice %479 {offsets = [0, 32], sizes = [8, 32], strides = [1, 1]} : vector<8x128xf32> to vector<8x32xf32>
    %cst_170 = arith.constant 5.000000e-01 : f32
    %489 = vector.broadcast %cst_170 : f32 to vector<8x32xf32>
    %490 = arith.mulf %489, %488 : vector<8x32xf32>
    %491 = math.tanh %490 : vector<8x32xf32>
    %cst_171 = arith.constant 5.000000e-01 : f32
    %492 = vector.broadcast %cst_171 : f32 to vector<8x32xf32>
    %493 = arith.mulf %492, %491 : vector<8x32xf32>
    %cst_172 = arith.constant 5.000000e-01 : f32
    %494 = vector.broadcast %cst_172 : f32 to vector<8x32xf32>
    %495 = arith.addf %493, %494 : vector<8x32xf32>
    %496 = vector.extract_strided_slice %479 {offsets = [0, 64], sizes = [8, 32], strides = [1, 1]} : vector<8x128xf32> to vector<8x32xf32>
    %497 = math.tanh %496 : vector<8x32xf32>
    %498 = vector.extract_strided_slice %479 {offsets = [0, 96], sizes = [8, 32], strides = [1, 1]} : vector<8x128xf32> to vector<8x32xf32>
    %cst_173 = arith.constant 5.000000e-01 : f32
    %499 = vector.broadcast %cst_173 : f32 to vector<8x32xf32>
    %500 = arith.mulf %499, %498 : vector<8x32xf32>
    %501 = math.tanh %500 : vector<8x32xf32>
    %cst_174 = arith.constant 5.000000e-01 : f32
    %502 = vector.broadcast %cst_174 : f32 to vector<8x32xf32>
    %503 = arith.mulf %502, %501 : vector<8x32xf32>
    %cst_175 = arith.constant 5.000000e-01 : f32
    %504 = vector.broadcast %cst_175 : f32 to vector<8x32xf32>
    %505 = arith.addf %503, %504 : vector<8x32xf32>
    %506 = arith.mulf %487, %497 : vector<8x32xf32>
    %507 = arith.mulf %495, %468 : vector<8x32xf32>
    %508 = arith.addf %506, %507 : vector<8x32xf32>
    %509 = math.tanh %508 : vector<8x32xf32>
    %510 = arith.mulf %505, %509 : vector<8x32xf32>
    %c9_i32 = arith.constant 9 : i32
    %511 = arith.addi %3, %c9_i32 : i32
    %512 = vector.broadcast %511 : i32 to vector<8x1xi32>
    %513 = arith.cmpi sgt, %5, %512 : vector<8x1xi32>
    %514 = vector.shape_cast %513 : vector<8x1xi1> to vector<8x1xi1>
    %515 = vector.broadcast %514 : vector<8x1xi1> to vector<8x32xi1>
    %516 = arith.select %515, %510, %465 : vector<8x32xi1>, vector<8x32xf32>
    %517 = vector.shape_cast %513 : vector<8x1xi1> to vector<8x1xi1>
    %518 = vector.broadcast %517 : vector<8x1xi1> to vector<8x32xi1>
    %519 = arith.select %518, %508, %468 : vector<8x32xi1>, vector<8x32xf32>
    %cst_176 = arith.constant 0.000000e+00 : f32
    %520 = vector.shape_cast %513 : vector<8x1xi1> to vector<8x1xi1>
    %521 = vector.broadcast %520 : vector<8x1xi1> to vector<8x32xi1>
    %522 = vector.broadcast %cst_176 : f32 to vector<8x32xf32>
    %523 = arith.select %521, %510, %522 : vector<8x32xi1>, vector<8x32xf32>
    %c0_177 = arith.constant 0 : index
    %c9_178 = arith.constant 9 : index
    %c0_179 = arith.constant 0 : index
    %524 = vector.load %arg7[%c0_177, %c9_178, %c0_179] : memref<8x16x32xf32, #tpu.memory_space<vmem>>, vector<8x1x32xf32>
    %525 = vector.shape_cast %524 : vector<8x1x32xf32> to vector<8x32xf32>
    %526 = vector.shape_cast %523 : vector<8x32xf32> to vector<8x1x32xf32>
    tpu.vector_store %arg7[%c0_177, %c9_178, %c0_179], %526 {strides = array<i32>} : memref<8x16x32xf32, #tpu.memory_space<vmem>>, vector<8x1x32xf32>,
    %c0_180 = arith.constant 0 : index
    %c10 = arith.constant 10 : index
    %c0_181 = arith.constant 0 : index
    %527 = vector.load %arg10[%c0_180, %c10, %c0_181] : memref<8x16x128xf32, #tpu.memory_space<vmem>>, vector<8x1x128xf32>
    %528 = vector.shape_cast %527 : vector<8x1x128xf32> to vector<8x128xf32>
    %cst_182 = arith.constant dense<0.000000e+00> : vector<8x128xf32>
    %529 = tpu.matmul %516, %4, %cst_182 {dimension_numbers = #tpu.dot_dimension_numbers<[1], [0], [0], [1], [0, 0, 1, 1], [], []>} : vector<8x32xf32>, vector<32x128xf32>, vector<8x128xf32> -> vector<8x128xf32>
    %530 = arith.addf %528, %529 : vector<8x128xf32>
    %531 = vector.extract_strided_slice %530 {offsets = [0, 0], sizes = [8, 32], strides = [1, 1]} : vector<8x128xf32> to vector<8x32xf32>
    %cst_183 = arith.constant 5.000000e-01 : f32
    %532 = vector.broadcast %cst_183 : f32 to vector<8x32xf32>
    %533 = arith.mulf %532, %531 : vector<8x32xf32>
    %534 = math.tanh %533 : vector<8x32xf32>
    %cst_184 = arith.constant 5.000000e-01 : f32
    %535 = vector.broadcast %cst_184 : f32 to vector<8x32xf32>
    %536 = arith.mulf %535, %534 : vector<8x32xf32>
    %cst_185 = arith.constant 5.000000e-01 : f32
    %537 = vector.broadcast %cst_185 : f32 to vector<8x32xf32>
    %538 = arith.addf %536, %537 : vector<8x32xf32>
    %539 = vector.extract_strided_slice %530 {offsets = [0, 32], sizes = [8, 32], strides = [1, 1]} : vector<8x128xf32> to vector<8x32xf32>
    %cst_186 = arith.constant 5.000000e-01 : f32
    %540 = vector.broadcast %cst_186 : f32 to vector<8x32xf32>
    %541 = arith.mulf %540, %539 : vector<8x32xf32>
    %542 = math.tanh %541 : vector<8x32xf32>
    %cst_187 = arith.constant 5.000000e-01 : f32
    %543 = vector.broadcast %cst_187 : f32 to vector<8x32xf32>
    %544 = arith.mulf %543, %542 : vector<8x32xf32>
    %cst_188 = arith.constant 5.000000e-01 : f32
    %545 = vector.broadcast %cst_188 : f32 to vector<8x32xf32>
    %546 = arith.addf %544, %545 : vector<8x32xf32>
    %547 = vector.extract_strided_slice %530 {offsets = [0, 64], sizes = [8, 32], strides = [1, 1]} : vector<8x128xf32> to vector<8x32xf32>
    %548 = math.tanh %547 : vector<8x32xf32>
    %549 = vector.extract_strided_slice %530 {offsets = [0, 96], sizes = [8, 32], strides = [1, 1]} : vector<8x128xf32> to vector<8x32xf32>
    %cst_189 = arith.constant 5.000000e-01 : f32
    %550 = vector.broadcast %cst_189 : f32 to vector<8x32xf32>
    %551 = arith.mulf %550, %549 : vector<8x32xf32>
    %552 = math.tanh %551 : vector<8x32xf32>
    %cst_190 = arith.constant 5.000000e-01 : f32
    %553 = vector.broadcast %cst_190 : f32 to vector<8x32xf32>
    %554 = arith.mulf %553, %552 : vector<8x32xf32>
    %cst_191 = arith.constant 5.000000e-01 : f32
    %555 = vector.broadcast %cst_191 : f32 to vector<8x32xf32>
    %556 = arith.addf %554, %555 : vector<8x32xf32>
    %557 = arith.mulf %538, %548 : vector<8x32xf32>
    %558 = arith.mulf %546, %519 : vector<8x32xf32>
    %559 = arith.addf %557, %558 : vector<8x32xf32>
    %560 = math.tanh %559 : vector<8x32xf32>
    %561 = arith.mulf %556, %560 : vector<8x32xf32>
    %c10_i32 = arith.constant 10 : i32
    %562 = arith.addi %3, %c10_i32 : i32
    %563 = vector.broadcast %562 : i32 to vector<8x1xi32>
    %564 = arith.cmpi sgt, %5, %563 : vector<8x1xi32>
    %565 = vector.shape_cast %564 : vector<8x1xi1> to vector<8x1xi1>
    %566 = vector.broadcast %565 : vector<8x1xi1> to vector<8x32xi1>
    %567 = arith.select %566, %561, %516 : vector<8x32xi1>, vector<8x32xf32>
    %568 = vector.shape_cast %564 : vector<8x1xi1> to vector<8x1xi1>
    %569 = vector.broadcast %568 : vector<8x1xi1> to vector<8x32xi1>
    %570 = arith.select %569, %559, %519 : vector<8x32xi1>, vector<8x32xf32>
    %cst_192 = arith.constant 0.000000e+00 : f32
    %571 = vector.shape_cast %564 : vector<8x1xi1> to vector<8x1xi1>
    %572 = vector.broadcast %571 : vector<8x1xi1> to vector<8x32xi1>
    %573 = vector.broadcast %cst_192 : f32 to vector<8x32xf32>
    %574 = arith.select %572, %561, %573 : vector<8x32xi1>, vector<8x32xf32>
    %c0_193 = arith.constant 0 : index
    %c10_194 = arith.constant 10 : index
    %c0_195 = arith.constant 0 : index
    %575 = vector.load %arg7[%c0_193, %c10_194, %c0_195] : memref<8x16x32xf32, #tpu.memory_space<vmem>>, vector<8x1x32xf32>
    %576 = vector.shape_cast %575 : vector<8x1x32xf32> to vector<8x32xf32>
    %577 = vector.shape_cast %574 : vector<8x32xf32> to vector<8x1x32xf32>
    tpu.vector_store %arg7[%c0_193, %c10_194, %c0_195], %577 {strides = array<i32>} : memref<8x16x32xf32, #tpu.memory_space<vmem>>, vector<8x1x32xf32>,
    %c0_196 = arith.constant 0 : index
    %c11 = arith.constant 11 : index
    %c0_197 = arith.constant 0 : index
    %578 = vector.load %arg10[%c0_196, %c11, %c0_197] : memref<8x16x128xf32, #tpu.memory_space<vmem>>, vector<8x1x128xf32>
    %579 = vector.shape_cast %578 : vector<8x1x128xf32> to vector<8x128xf32>
    %cst_198 = arith.constant dense<0.000000e+00> : vector<8x128xf32>
    %580 = tpu.matmul %567, %4, %cst_198 {dimension_numbers = #tpu.dot_dimension_numbers<[1], [0], [0], [1], [0, 0, 1, 1], [], []>} : vector<8x32xf32>, vector<32x128xf32>, vector<8x128xf32> -> vector<8x128xf32>
    %581 = arith.addf %579, %580 : vector<8x128xf32>
    %582 = vector.extract_strided_slice %581 {offsets = [0, 0], sizes = [8, 32], strides = [1, 1]} : vector<8x128xf32> to vector<8x32xf32>
    %cst_199 = arith.constant 5.000000e-01 : f32
    %583 = vector.broadcast %cst_199 : f32 to vector<8x32xf32>
    %584 = arith.mulf %583, %582 : vector<8x32xf32>
    %585 = math.tanh %584 : vector<8x32xf32>
    %cst_200 = arith.constant 5.000000e-01 : f32
    %586 = vector.broadcast %cst_200 : f32 to vector<8x32xf32>
    %587 = arith.mulf %586, %585 : vector<8x32xf32>
    %cst_201 = arith.constant 5.000000e-01 : f32
    %588 = vector.broadcast %cst_201 : f32 to vector<8x32xf32>
    %589 = arith.addf %587, %588 : vector<8x32xf32>
    %590 = vector.extract_strided_slice %581 {offsets = [0, 32], sizes = [8, 32], strides = [1, 1]} : vector<8x128xf32> to vector<8x32xf32>
    %cst_202 = arith.constant 5.000000e-01 : f32
    %591 = vector.broadcast %cst_202 : f32 to vector<8x32xf32>
    %592 = arith.mulf %591, %590 : vector<8x32xf32>
    %593 = math.tanh %592 : vector<8x32xf32>
    %cst_203 = arith.constant 5.000000e-01 : f32
    %594 = vector.broadcast %cst_203 : f32 to vector<8x32xf32>
    %595 = arith.mulf %594, %593 : vector<8x32xf32>
    %cst_204 = arith.constant 5.000000e-01 : f32
    %596 = vector.broadcast %cst_204 : f32 to vector<8x32xf32>
    %597 = arith.addf %595, %596 : vector<8x32xf32>
    %598 = vector.extract_strided_slice %581 {offsets = [0, 64], sizes = [8, 32], strides = [1, 1]} : vector<8x128xf32> to vector<8x32xf32>
    %599 = math.tanh %598 : vector<8x32xf32>
    %600 = vector.extract_strided_slice %581 {offsets = [0, 96], sizes = [8, 32], strides = [1, 1]} : vector<8x128xf32> to vector<8x32xf32>
    %cst_205 = arith.constant 5.000000e-01 : f32
    %601 = vector.broadcast %cst_205 : f32 to vector<8x32xf32>
    %602 = arith.mulf %601, %600 : vector<8x32xf32>
    %603 = math.tanh %602 : vector<8x32xf32>
    %cst_206 = arith.constant 5.000000e-01 : f32
    %604 = vector.broadcast %cst_206 : f32 to vector<8x32xf32>
    %605 = arith.mulf %604, %603 : vector<8x32xf32>
    %cst_207 = arith.constant 5.000000e-01 : f32
    %606 = vector.broadcast %cst_207 : f32 to vector<8x32xf32>
    %607 = arith.addf %605, %606 : vector<8x32xf32>
    %608 = arith.mulf %589, %599 : vector<8x32xf32>
    %609 = arith.mulf %597, %570 : vector<8x32xf32>
    %610 = arith.addf %608, %609 : vector<8x32xf32>
    %611 = math.tanh %610 : vector<8x32xf32>
    %612 = arith.mulf %607, %611 : vector<8x32xf32>
    %c11_i32 = arith.constant 11 : i32
    %613 = arith.addi %3, %c11_i32 : i32
    %614 = vector.broadcast %613 : i32 to vector<8x1xi32>
    %615 = arith.cmpi sgt, %5, %614 : vector<8x1xi32>
    %616 = vector.shape_cast %615 : vector<8x1xi1> to vector<8x1xi1>
    %617 = vector.broadcast %616 : vector<8x1xi1> to vector<8x32xi1>
    %618 = arith.select %617, %612, %567 : vector<8x32xi1>, vector<8x32xf32>
    %619 = vector.shape_cast %615 : vector<8x1xi1> to vector<8x1xi1>
    %620 = vector.broadcast %619 : vector<8x1xi1> to vector<8x32xi1>
    %621 = arith.select %620, %610, %570 : vector<8x32xi1>, vector<8x32xf32>
    %cst_208 = arith.constant 0.000000e+00 : f32
    %622 = vector.shape_cast %615 : vector<8x1xi1> to vector<8x1xi1>
    %623 = vector.broadcast %622 : vector<8x1xi1> to vector<8x32xi1>
    %624 = vector.broadcast %cst_208 : f32 to vector<8x32xf32>
    %625 = arith.select %623, %612, %624 : vector<8x32xi1>, vector<8x32xf32>
    %c0_209 = arith.constant 0 : index
    %c11_210 = arith.constant 11 : index
    %c0_211 = arith.constant 0 : index
    %626 = vector.load %arg7[%c0_209, %c11_210, %c0_211] : memref<8x16x32xf32, #tpu.memory_space<vmem>>, vector<8x1x32xf32>
    %627 = vector.shape_cast %626 : vector<8x1x32xf32> to vector<8x32xf32>
    %628 = vector.shape_cast %625 : vector<8x32xf32> to vector<8x1x32xf32>
    tpu.vector_store %arg7[%c0_209, %c11_210, %c0_211], %628 {strides = array<i32>} : memref<8x16x32xf32, #tpu.memory_space<vmem>>, vector<8x1x32xf32>,
    %c0_212 = arith.constant 0 : index
    %c12 = arith.constant 12 : index
    %c0_213 = arith.constant 0 : index
    %629 = vector.load %arg10[%c0_212, %c12, %c0_213] : memref<8x16x128xf32, #tpu.memory_space<vmem>>, vector<8x1x128xf32>
    %630 = vector.shape_cast %629 : vector<8x1x128xf32> to vector<8x128xf32>
    %cst_214 = arith.constant dense<0.000000e+00> : vector<8x128xf32>
    %631 = tpu.matmul %618, %4, %cst_214 {dimension_numbers = #tpu.dot_dimension_numbers<[1], [0], [0], [1], [0, 0, 1, 1], [], []>} : vector<8x32xf32>, vector<32x128xf32>, vector<8x128xf32> -> vector<8x128xf32>
    %632 = arith.addf %630, %631 : vector<8x128xf32>
    %633 = vector.extract_strided_slice %632 {offsets = [0, 0], sizes = [8, 32], strides = [1, 1]} : vector<8x128xf32> to vector<8x32xf32>
    %cst_215 = arith.constant 5.000000e-01 : f32
    %634 = vector.broadcast %cst_215 : f32 to vector<8x32xf32>
    %635 = arith.mulf %634, %633 : vector<8x32xf32>
    %636 = math.tanh %635 : vector<8x32xf32>
    %cst_216 = arith.constant 5.000000e-01 : f32
    %637 = vector.broadcast %cst_216 : f32 to vector<8x32xf32>
    %638 = arith.mulf %637, %636 : vector<8x32xf32>
    %cst_217 = arith.constant 5.000000e-01 : f32
    %639 = vector.broadcast %cst_217 : f32 to vector<8x32xf32>
    %640 = arith.addf %638, %639 : vector<8x32xf32>
    %641 = vector.extract_strided_slice %632 {offsets = [0, 32], sizes = [8, 32], strides = [1, 1]} : vector<8x128xf32> to vector<8x32xf32>
    %cst_218 = arith.constant 5.000000e-01 : f32
    %642 = vector.broadcast %cst_218 : f32 to vector<8x32xf32>
    %643 = arith.mulf %642, %641 : vector<8x32xf32>
    %644 = math.tanh %643 : vector<8x32xf32>
    %cst_219 = arith.constant 5.000000e-01 : f32
    %645 = vector.broadcast %cst_219 : f32 to vector<8x32xf32>
    %646 = arith.mulf %645, %644 : vector<8x32xf32>
    %cst_220 = arith.constant 5.000000e-01 : f32
    %647 = vector.broadcast %cst_220 : f32 to vector<8x32xf32>
    %648 = arith.addf %646, %647 : vector<8x32xf32>
    %649 = vector.extract_strided_slice %632 {offsets = [0, 64], sizes = [8, 32], strides = [1, 1]} : vector<8x128xf32> to vector<8x32xf32>
    %650 = math.tanh %649 : vector<8x32xf32>
    %651 = vector.extract_strided_slice %632 {offsets = [0, 96], sizes = [8, 32], strides = [1, 1]} : vector<8x128xf32> to vector<8x32xf32>
    %cst_221 = arith.constant 5.000000e-01 : f32
    %652 = vector.broadcast %cst_221 : f32 to vector<8x32xf32>
    %653 = arith.mulf %652, %651 : vector<8x32xf32>
    %654 = math.tanh %653 : vector<8x32xf32>
    %cst_222 = arith.constant 5.000000e-01 : f32
    %655 = vector.broadcast %cst_222 : f32 to vector<8x32xf32>
    %656 = arith.mulf %655, %654 : vector<8x32xf32>
    %cst_223 = arith.constant 5.000000e-01 : f32
    %657 = vector.broadcast %cst_223 : f32 to vector<8x32xf32>
    %658 = arith.addf %656, %657 : vector<8x32xf32>
    %659 = arith.mulf %640, %650 : vector<8x32xf32>
    %660 = arith.mulf %648, %621 : vector<8x32xf32>
    %661 = arith.addf %659, %660 : vector<8x32xf32>
    %662 = math.tanh %661 : vector<8x32xf32>
    %663 = arith.mulf %658, %662 : vector<8x32xf32>
    %c12_i32 = arith.constant 12 : i32
    %664 = arith.addi %3, %c12_i32 : i32
    %665 = vector.broadcast %664 : i32 to vector<8x1xi32>
    %666 = arith.cmpi sgt, %5, %665 : vector<8x1xi32>
    %667 = vector.shape_cast %666 : vector<8x1xi1> to vector<8x1xi1>
    %668 = vector.broadcast %667 : vector<8x1xi1> to vector<8x32xi1>
    %669 = arith.select %668, %663, %618 : vector<8x32xi1>, vector<8x32xf32>
    %670 = vector.shape_cast %666 : vector<8x1xi1> to vector<8x1xi1>
    %671 = vector.broadcast %670 : vector<8x1xi1> to vector<8x32xi1>
    %672 = arith.select %671, %661, %621 : vector<8x32xi1>, vector<8x32xf32>
    %cst_224 = arith.constant 0.000000e+00 : f32
    %673 = vector.shape_cast %666 : vector<8x1xi1> to vector<8x1xi1>
    %674 = vector.broadcast %673 : vector<8x1xi1> to vector<8x32xi1>
    %675 = vector.broadcast %cst_224 : f32 to vector<8x32xf32>
    %676 = arith.select %674, %663, %675 : vector<8x32xi1>, vector<8x32xf32>
    %c0_225 = arith.constant 0 : index
    %c12_226 = arith.constant 12 : index
    %c0_227 = arith.constant 0 : index
    %677 = vector.load %arg7[%c0_225, %c12_226, %c0_227] : memref<8x16x32xf32, #tpu.memory_space<vmem>>, vector<8x1x32xf32>
    %678 = vector.shape_cast %677 : vector<8x1x32xf32> to vector<8x32xf32>
    %679 = vector.shape_cast %676 : vector<8x32xf32> to vector<8x1x32xf32>
    tpu.vector_store %arg7[%c0_225, %c12_226, %c0_227], %679 {strides = array<i32>} : memref<8x16x32xf32, #tpu.memory_space<vmem>>, vector<8x1x32xf32>,
    %c0_228 = arith.constant 0 : index
    %c13 = arith.constant 13 : index
    %c0_229 = arith.constant 0 : index
    %680 = vector.load %arg10[%c0_228, %c13, %c0_229] : memref<8x16x128xf32, #tpu.memory_space<vmem>>, vector<8x1x128xf32>
    %681 = vector.shape_cast %680 : vector<8x1x128xf32> to vector<8x128xf32>
    %cst_230 = arith.constant dense<0.000000e+00> : vector<8x128xf32>
    %682 = tpu.matmul %669, %4, %cst_230 {dimension_numbers = #tpu.dot_dimension_numbers<[1], [0], [0], [1], [0, 0, 1, 1], [], []>} : vector<8x32xf32>, vector<32x128xf32>, vector<8x128xf32> -> vector<8x128xf32>
    %683 = arith.addf %681, %682 : vector<8x128xf32>
    %684 = vector.extract_strided_slice %683 {offsets = [0, 0], sizes = [8, 32], strides = [1, 1]} : vector<8x128xf32> to vector<8x32xf32>
    %cst_231 = arith.constant 5.000000e-01 : f32
    %685 = vector.broadcast %cst_231 : f32 to vector<8x32xf32>
    %686 = arith.mulf %685, %684 : vector<8x32xf32>
    %687 = math.tanh %686 : vector<8x32xf32>
    %cst_232 = arith.constant 5.000000e-01 : f32
    %688 = vector.broadcast %cst_232 : f32 to vector<8x32xf32>
    %689 = arith.mulf %688, %687 : vector<8x32xf32>
    %cst_233 = arith.constant 5.000000e-01 : f32
    %690 = vector.broadcast %cst_233 : f32 to vector<8x32xf32>
    %691 = arith.addf %689, %690 : vector<8x32xf32>
    %692 = vector.extract_strided_slice %683 {offsets = [0, 32], sizes = [8, 32], strides = [1, 1]} : vector<8x128xf32> to vector<8x32xf32>
    %cst_234 = arith.constant 5.000000e-01 : f32
    %693 = vector.broadcast %cst_234 : f32 to vector<8x32xf32>
    %694 = arith.mulf %693, %692 : vector<8x32xf32>
    %695 = math.tanh %694 : vector<8x32xf32>
    %cst_235 = arith.constant 5.000000e-01 : f32
    %696 = vector.broadcast %cst_235 : f32 to vector<8x32xf32>
    %697 = arith.mulf %696, %695 : vector<8x32xf32>
    %cst_236 = arith.constant 5.000000e-01 : f32
    %698 = vector.broadcast %cst_236 : f32 to vector<8x32xf32>
    %699 = arith.addf %697, %698 : vector<8x32xf32>
    %700 = vector.extract_strided_slice %683 {offsets = [0, 64], sizes = [8, 32], strides = [1, 1]} : vector<8x128xf32> to vector<8x32xf32>
    %701 = math.tanh %700 : vector<8x32xf32>
    %702 = vector.extract_strided_slice %683 {offsets = [0, 96], sizes = [8, 32], strides = [1, 1]} : vector<8x128xf32> to vector<8x32xf32>
    %cst_237 = arith.constant 5.000000e-01 : f32
    %703 = vector.broadcast %cst_237 : f32 to vector<8x32xf32>
    %704 = arith.mulf %703, %702 : vector<8x32xf32>
    %705 = math.tanh %704 : vector<8x32xf32>
    %cst_238 = arith.constant 5.000000e-01 : f32
    %706 = vector.broadcast %cst_238 : f32 to vector<8x32xf32>
    %707 = arith.mulf %706, %705 : vector<8x32xf32>
    %cst_239 = arith.constant 5.000000e-01 : f32
    %708 = vector.broadcast %cst_239 : f32 to vector<8x32xf32>
    %709 = arith.addf %707, %708 : vector<8x32xf32>
    %710 = arith.mulf %691, %701 : vector<8x32xf32>
    %711 = arith.mulf %699, %672 : vector<8x32xf32>
    %712 = arith.addf %710, %711 : vector<8x32xf32>
    %713 = math.tanh %712 : vector<8x32xf32>
    %714 = arith.mulf %709, %713 : vector<8x32xf32>
    %c13_i32 = arith.constant 13 : i32
    %715 = arith.addi %3, %c13_i32 : i32
    %716 = vector.broadcast %715 : i32 to vector<8x1xi32>
    %717 = arith.cmpi sgt, %5, %716 : vector<8x1xi32>
    %718 = vector.shape_cast %717 : vector<8x1xi1> to vector<8x1xi1>
    %719 = vector.broadcast %718 : vector<8x1xi1> to vector<8x32xi1>
    %720 = arith.select %719, %714, %669 : vector<8x32xi1>, vector<8x32xf32>
    %721 = vector.shape_cast %717 : vector<8x1xi1> to vector<8x1xi1>
    %722 = vector.broadcast %721 : vector<8x1xi1> to vector<8x32xi1>
    %723 = arith.select %722, %712, %672 : vector<8x32xi1>, vector<8x32xf32>
    %cst_240 = arith.constant 0.000000e+00 : f32
    %724 = vector.shape_cast %717 : vector<8x1xi1> to vector<8x1xi1>
    %725 = vector.broadcast %724 : vector<8x1xi1> to vector<8x32xi1>
    %726 = vector.broadcast %cst_240 : f32 to vector<8x32xf32>
    %727 = arith.select %725, %714, %726 : vector<8x32xi1>, vector<8x32xf32>
    %c0_241 = arith.constant 0 : index
    %c13_242 = arith.constant 13 : index
    %c0_243 = arith.constant 0 : index
    %728 = vector.load %arg7[%c0_241, %c13_242, %c0_243] : memref<8x16x32xf32, #tpu.memory_space<vmem>>, vector<8x1x32xf32>
    %729 = vector.shape_cast %728 : vector<8x1x32xf32> to vector<8x32xf32>
    %730 = vector.shape_cast %727 : vector<8x32xf32> to vector<8x1x32xf32>
    tpu.vector_store %arg7[%c0_241, %c13_242, %c0_243], %730 {strides = array<i32>} : memref<8x16x32xf32, #tpu.memory_space<vmem>>, vector<8x1x32xf32>,
    %c0_244 = arith.constant 0 : index
    %c14 = arith.constant 14 : index
    %c0_245 = arith.constant 0 : index
    %731 = vector.load %arg10[%c0_244, %c14, %c0_245] : memref<8x16x128xf32, #tpu.memory_space<vmem>>, vector<8x1x128xf32>
    %732 = vector.shape_cast %731 : vector<8x1x128xf32> to vector<8x128xf32>
    %cst_246 = arith.constant dense<0.000000e+00> : vector<8x128xf32>
    %733 = tpu.matmul %720, %4, %cst_246 {dimension_numbers = #tpu.dot_dimension_numbers<[1], [0], [0], [1], [0, 0, 1, 1], [], []>} : vector<8x32xf32>, vector<32x128xf32>, vector<8x128xf32> -> vector<8x128xf32>
    %734 = arith.addf %732, %733 : vector<8x128xf32>
    %735 = vector.extract_strided_slice %734 {offsets = [0, 0], sizes = [8, 32], strides = [1, 1]} : vector<8x128xf32> to vector<8x32xf32>
    %cst_247 = arith.constant 5.000000e-01 : f32
    %736 = vector.broadcast %cst_247 : f32 to vector<8x32xf32>
    %737 = arith.mulf %736, %735 : vector<8x32xf32>
    %738 = math.tanh %737 : vector<8x32xf32>
    %cst_248 = arith.constant 5.000000e-01 : f32
    %739 = vector.broadcast %cst_248 : f32 to vector<8x32xf32>
    %740 = arith.mulf %739, %738 : vector<8x32xf32>
    %cst_249 = arith.constant 5.000000e-01 : f32
    %741 = vector.broadcast %cst_249 : f32 to vector<8x32xf32>
    %742 = arith.addf %740, %741 : vector<8x32xf32>
    %743 = vector.extract_strided_slice %734 {offsets = [0, 32], sizes = [8, 32], strides = [1, 1]} : vector<8x128xf32> to vector<8x32xf32>
    %cst_250 = arith.constant 5.000000e-01 : f32
    %744 = vector.broadcast %cst_250 : f32 to vector<8x32xf32>
    %745 = arith.mulf %744, %743 : vector<8x32xf32>
    %746 = math.tanh %745 : vector<8x32xf32>
    %cst_251 = arith.constant 5.000000e-01 : f32
    %747 = vector.broadcast %cst_251 : f32 to vector<8x32xf32>
    %748 = arith.mulf %747, %746 : vector<8x32xf32>
    %cst_252 = arith.constant 5.000000e-01 : f32
    %749 = vector.broadcast %cst_252 : f32 to vector<8x32xf32>
    %750 = arith.addf %748, %749 : vector<8x32xf32>
    %751 = vector.extract_strided_slice %734 {offsets = [0, 64], sizes = [8, 32], strides = [1, 1]} : vector<8x128xf32> to vector<8x32xf32>
    %752 = math.tanh %751 : vector<8x32xf32>
    %753 = vector.extract_strided_slice %734 {offsets = [0, 96], sizes = [8, 32], strides = [1, 1]} : vector<8x128xf32> to vector<8x32xf32>
    %cst_253 = arith.constant 5.000000e-01 : f32
    %754 = vector.broadcast %cst_253 : f32 to vector<8x32xf32>
    %755 = arith.mulf %754, %753 : vector<8x32xf32>
    %756 = math.tanh %755 : vector<8x32xf32>
    %cst_254 = arith.constant 5.000000e-01 : f32
    %757 = vector.broadcast %cst_254 : f32 to vector<8x32xf32>
    %758 = arith.mulf %757, %756 : vector<8x32xf32>
    %cst_255 = arith.constant 5.000000e-01 : f32
    %759 = vector.broadcast %cst_255 : f32 to vector<8x32xf32>
    %760 = arith.addf %758, %759 : vector<8x32xf32>
    %761 = arith.mulf %742, %752 : vector<8x32xf32>
    %762 = arith.mulf %750, %723 : vector<8x32xf32>
    %763 = arith.addf %761, %762 : vector<8x32xf32>
    %764 = math.tanh %763 : vector<8x32xf32>
    %765 = arith.mulf %760, %764 : vector<8x32xf32>
    %c14_i32 = arith.constant 14 : i32
    %766 = arith.addi %3, %c14_i32 : i32
    %767 = vector.broadcast %766 : i32 to vector<8x1xi32>
    %768 = arith.cmpi sgt, %5, %767 : vector<8x1xi32>
    %769 = vector.shape_cast %768 : vector<8x1xi1> to vector<8x1xi1>
    %770 = vector.broadcast %769 : vector<8x1xi1> to vector<8x32xi1>
    %771 = arith.select %770, %765, %720 : vector<8x32xi1>, vector<8x32xf32>
    %772 = vector.shape_cast %768 : vector<8x1xi1> to vector<8x1xi1>
    %773 = vector.broadcast %772 : vector<8x1xi1> to vector<8x32xi1>
    %774 = arith.select %773, %763, %723 : vector<8x32xi1>, vector<8x32xf32>
    %cst_256 = arith.constant 0.000000e+00 : f32
    %775 = vector.shape_cast %768 : vector<8x1xi1> to vector<8x1xi1>
    %776 = vector.broadcast %775 : vector<8x1xi1> to vector<8x32xi1>
    %777 = vector.broadcast %cst_256 : f32 to vector<8x32xf32>
    %778 = arith.select %776, %765, %777 : vector<8x32xi1>, vector<8x32xf32>
    %c0_257 = arith.constant 0 : index
    %c14_258 = arith.constant 14 : index
    %c0_259 = arith.constant 0 : index
    %779 = vector.load %arg7[%c0_257, %c14_258, %c0_259] : memref<8x16x32xf32, #tpu.memory_space<vmem>>, vector<8x1x32xf32>
    %780 = vector.shape_cast %779 : vector<8x1x32xf32> to vector<8x32xf32>
    %781 = vector.shape_cast %778 : vector<8x32xf32> to vector<8x1x32xf32>
    tpu.vector_store %arg7[%c0_257, %c14_258, %c0_259], %781 {strides = array<i32>} : memref<8x16x32xf32, #tpu.memory_space<vmem>>, vector<8x1x32xf32>,
    %c0_260 = arith.constant 0 : index
    %c15 = arith.constant 15 : index
    %c0_261 = arith.constant 0 : index
    %782 = vector.load %arg10[%c0_260, %c15, %c0_261] : memref<8x16x128xf32, #tpu.memory_space<vmem>>, vector<8x1x128xf32>
    %783 = vector.shape_cast %782 : vector<8x1x128xf32> to vector<8x128xf32>
    %cst_262 = arith.constant dense<0.000000e+00> : vector<8x128xf32>
    %784 = tpu.matmul %771, %4, %cst_262 {dimension_numbers = #tpu.dot_dimension_numbers<[1], [0], [0], [1], [0, 0, 1, 1], [], []>} : vector<8x32xf32>, vector<32x128xf32>, vector<8x128xf32> -> vector<8x128xf32>
    %785 = arith.addf %783, %784 : vector<8x128xf32>
    %786 = vector.extract_strided_slice %785 {offsets = [0, 0], sizes = [8, 32], strides = [1, 1]} : vector<8x128xf32> to vector<8x32xf32>
    %cst_263 = arith.constant 5.000000e-01 : f32
    %787 = vector.broadcast %cst_263 : f32 to vector<8x32xf32>
    %788 = arith.mulf %787, %786 : vector<8x32xf32>
    %789 = math.tanh %788 : vector<8x32xf32>
    %cst_264 = arith.constant 5.000000e-01 : f32
    %790 = vector.broadcast %cst_264 : f32 to vector<8x32xf32>
    %791 = arith.mulf %790, %789 : vector<8x32xf32>
    %cst_265 = arith.constant 5.000000e-01 : f32
    %792 = vector.broadcast %cst_265 : f32 to vector<8x32xf32>
    %793 = arith.addf %791, %792 : vector<8x32xf32>
    %794 = vector.extract_strided_slice %785 {offsets = [0, 32], sizes = [8, 32], strides = [1, 1]} : vector<8x128xf32> to vector<8x32xf32>
    %cst_266 = arith.constant 5.000000e-01 : f32
    %795 = vector.broadcast %cst_266 : f32 to vector<8x32xf32>
    %796 = arith.mulf %795, %794 : vector<8x32xf32>
    %797 = math.tanh %796 : vector<8x32xf32>
    %cst_267 = arith.constant 5.000000e-01 : f32
    %798 = vector.broadcast %cst_267 : f32 to vector<8x32xf32>
    %799 = arith.mulf %798, %797 : vector<8x32xf32>
    %cst_268 = arith.constant 5.000000e-01 : f32
    %800 = vector.broadcast %cst_268 : f32 to vector<8x32xf32>
    %801 = arith.addf %799, %800 : vector<8x32xf32>
    %802 = vector.extract_strided_slice %785 {offsets = [0, 64], sizes = [8, 32], strides = [1, 1]} : vector<8x128xf32> to vector<8x32xf32>
    %803 = math.tanh %802 : vector<8x32xf32>
    %804 = vector.extract_strided_slice %785 {offsets = [0, 96], sizes = [8, 32], strides = [1, 1]} : vector<8x128xf32> to vector<8x32xf32>
    %cst_269 = arith.constant 5.000000e-01 : f32
    %805 = vector.broadcast %cst_269 : f32 to vector<8x32xf32>
    %806 = arith.mulf %805, %804 : vector<8x32xf32>
    %807 = math.tanh %806 : vector<8x32xf32>
    %cst_270 = arith.constant 5.000000e-01 : f32
    %808 = vector.broadcast %cst_270 : f32 to vector<8x32xf32>
    %809 = arith.mulf %808, %807 : vector<8x32xf32>
    %cst_271 = arith.constant 5.000000e-01 : f32
    %810 = vector.broadcast %cst_271 : f32 to vector<8x32xf32>
    %811 = arith.addf %809, %810 : vector<8x32xf32>
    %812 = arith.mulf %793, %803 : vector<8x32xf32>
    %813 = arith.mulf %801, %774 : vector<8x32xf32>
    %814 = arith.addf %812, %813 : vector<8x32xf32>
    %815 = math.tanh %814 : vector<8x32xf32>
    %816 = arith.mulf %811, %815 : vector<8x32xf32>
    %c15_i32 = arith.constant 15 : i32
    %817 = arith.addi %3, %c15_i32 : i32
    %818 = vector.broadcast %817 : i32 to vector<8x1xi32>
    %819 = arith.cmpi sgt, %5, %818 : vector<8x1xi32>
    %820 = vector.shape_cast %819 : vector<8x1xi1> to vector<8x1xi1>
    %821 = vector.broadcast %820 : vector<8x1xi1> to vector<8x32xi1>
    %822 = arith.select %821, %816, %771 : vector<8x32xi1>, vector<8x32xf32>
    %823 = vector.shape_cast %819 : vector<8x1xi1> to vector<8x1xi1>
    %824 = vector.broadcast %823 : vector<8x1xi1> to vector<8x32xi1>
    %825 = arith.select %824, %814, %774 : vector<8x32xi1>, vector<8x32xf32>
    %cst_272 = arith.constant 0.000000e+00 : f32
    %826 = vector.shape_cast %819 : vector<8x1xi1> to vector<8x1xi1>
    %827 = vector.broadcast %826 : vector<8x1xi1> to vector<8x32xi1>
    %828 = vector.broadcast %cst_272 : f32 to vector<8x32xf32>
    %829 = arith.select %827, %816, %828 : vector<8x32xi1>, vector<8x32xf32>
    %c0_273 = arith.constant 0 : index
    %c15_274 = arith.constant 15 : index
    %c0_275 = arith.constant 0 : index
    %830 = vector.load %arg7[%c0_273, %c15_274, %c0_275] : memref<8x16x32xf32, #tpu.memory_space<vmem>>, vector<8x1x32xf32>
    %831 = vector.shape_cast %830 : vector<8x1x32xf32> to vector<8x32xf32>
    %832 = vector.shape_cast %829 : vector<8x32xf32> to vector<8x1x32xf32>
    tpu.vector_store %arg7[%c0_273, %c15_274, %c0_275], %832 {strides = array<i32>} : memref<8x16x32xf32, #tpu.memory_space<vmem>>, vector<8x1x32xf32>,
    %c0_276 = arith.constant 0 : index
    %c0_277 = arith.constant 0 : index
    %833 = vector.load %arg11[%c0_276, %c0_277] : memref<8x32xf32, #tpu.memory_space<vmem>>, vector<8x32xf32>
    tpu.vector_store %arg11[%c0_276, %c0_277], %822 {strides = array<i32>} : memref<8x32xf32, #tpu.memory_space<vmem>>, vector<8x32xf32>,
    %c0_278 = arith.constant 0 : index
    %c0_279 = arith.constant 0 : index
    %834 = vector.load %arg12[%c0_278, %c0_279] : memref<8x32xf32, #tpu.memory_space<vmem>>, vector<8x32xf32>
    tpu.vector_store %arg12[%c0_278, %c0_279], %825 {strides = array<i32>} : memref<8x32xf32, #tpu.memory_space<vmem>>, vector<8x32xf32>,
    %c0_i32_280 = arith.constant 0 : i32
    %835 = arith.cmpi eq, %arg1, %c0_i32_280 : i32
    %836 = arith.extui %835 : i1 to i32
    %c0_i32_281 = arith.constant 0 : i32
    %837 = arith.cmpi ne, %836, %c0_i32_281 : i32
    scf.if %837 {
      %c0_282 = arith.constant 0 : index
      %c0_283 = arith.constant 0 : index
      %838 = vector.load %arg11[%c0_282, %c0_283] : memref<8x32xf32, #tpu.memory_space<vmem>>, vector<8x32xf32>
      %c0_284 = arith.constant 0 : index
      %c0_285 = arith.constant 0 : index
      %839 = vector.load %arg8[%c0_284, %c0_285] : memref<8x32xf32, #tpu.memory_space<vmem>>, vector<8x32xf32>
      tpu.vector_store %arg8[%c0_284, %c0_285], %838 {strides = array<i32>} : memref<8x32xf32, #tpu.memory_space<vmem>>, vector<8x32xf32>,
      %c0_286 = arith.constant 0 : index
      %c0_287 = arith.constant 0 : index
      %840 = vector.load %arg12[%c0_286, %c0_287] : memref<8x32xf32, #tpu.memory_space<vmem>>, vector<8x32xf32>
      %c0_288 = arith.constant 0 : index
      %c0_289 = arith.constant 0 : index
      %841 = vector.load %arg9[%c0_288, %c0_289] : memref<8x32xf32, #tpu.memory_space<vmem>>, vector<8x32xf32>
      tpu.vector_store %arg9[%c0_288, %c0_289], %840 {strides = array<i32>} : memref<8x32xf32, #tpu.memory_space<vmem>>, vector<8x32xf32>,
    } else {
    }
    return
  }
  func.func @transform_0(%arg0: i32, %arg1: i32) -> (i32, i32) {
    %c0_i32 = arith.constant 0 : i32
    %c0_i32_0 = arith.constant 0 : i32
    return %arg0, %c0_i32 : i32, i32
  }
  func.func @transform_1(%arg0: i32, %arg1: i32) -> (i32, i32, i32) {
    %c0_i32 = arith.constant 0 : i32
    %c0_i32_0 = arith.constant 0 : i32
    return %arg0, %arg1, %c0_i32 : i32, i32, i32
  }
  func.func @transform_2(%arg0: i32, %arg1: i32) -> (i32, i32) {
    %c0_i32 = arith.constant 0 : i32
    %c0_i32_0 = arith.constant 0 : i32
    %c0_i32_1 = arith.constant 0 : i32
    return %c0_i32, %c0_i32_0 : i32, i32
  }
  func.func @transform_3(%arg0: i32, %arg1: i32) -> (i32, i32) {
    %c0_i32 = arith.constant 0 : i32
    %c0_i32_0 = arith.constant 0 : i32
    %c0_i32_1 = arith.constant 0 : i32
    return %c0_i32, %c0_i32_0 : i32, i32
  }
  func.func @transform_4(%arg0: i32, %arg1: i32) -> (i32, i32) {
    %c0_i32 = arith.constant 0 : i32
    %c0_i32_0 = arith.constant 0 : i32
    %c0_i32_1 = arith.constant 0 : i32
    return %c0_i32, %c0_i32_0 : i32, i32
  }
  func.func @transform_5(%arg0: i32, %arg1: i32) -> (i32, i32, i32) {
    %c0_i32 = arith.constant 0 : i32
    %c0_i32_0 = arith.constant 0 : i32
    return %arg0, %arg1, %c0_i32 : i32, i32, i32
  }
  func.func @transform_6(%arg0: i32, %arg1: i32) -> (i32, i32) {
    %c0_i32 = arith.constant 0 : i32
    %c0_i32_0 = arith.constant 0 : i32
    return %arg0, %c0_i32 : i32, i32
  }
  func.func @transform_7(%arg0: i32, %arg1: i32) -> (i32, i32) {
    %c0_i32 = arith.constant 0 : i32
    %c0_i32_0 = arith.constant 0 : i32
    return %arg0, %c0_i32 : i32, i32
  }
}

</mosaic_0001>

<bundles_post_ra>
// kernel: tpu_custom_call.1
= control target key start
LH: loop header
LB: loop body
LE: loop exit
PB: predicated region body
PF: predicated region fallthrough
CT: control target
= control target key end

     0   :  { %13 = vsyncpa [#allocation6], 0  ;;  %s11021_s0 = inlined_call_operand.vmem [shape: s32[8,1], index: 0, kind: input, shape index: {}]   ;;  %s11022_s1 = inlined_call_operand.hbm [shape: f32[8,16,32], index: 1, kind: input, shape index: {}]   ;;  %s11023_s2 = inlined_call_operand.hbm [shape: f32[32,128], index: 2, kind: input, shape index: {}]   ;;  %s11024_s3 = inlined_call_operand.hbm [shape: f32[32,128], index: 3, kind: input, shape index: {}]   ;;  %s11025_s4 = inlined_call_operand.vmem [shape: f32[1,128], index: 4, kind: input, shape index: {}]   ;;  %s11026_s5 = inlined_call_operand.hbm [shape: f32[8,16,32], index: 5, kind: output, shape index: {0}]   ;;  %s11027_s6 = inlined_call_operand.hbm [shape: f32[8,32], index: 6, kind: output, shape index: {1}]   ;;  %s11028_s7 = inlined_call_operand.hbm [shape: f32[8,32], index: 7, kind: output, shape index: {2}]  }
   0x1   :  { %14 = vsyncpa [#allocation9], 0 }
   0x2   :  { %15 = vsyncpa [#allocation7], 0 }
   0x3   :  { %16 = vsyncpa [#allocation13], 0  ;;  %s8672_s24 = smov [#allocation8]   ;;  %s8673_s26 = smov [#allocation5]  }
   0x4   :  { %s36_s25 = sshll.u32 %s8672_s24, 4  ;;  %s24_s27 = sshll.u32 %s8673_s26, 4  ;;  %s37_s25 = int_to_ptr.vmem [resolvable:$true] %s36_s25  ;;  %s25_s27 = int_to_ptr.vmem [resolvable:$true] %s24_s27 }
   0x5   :  { %s8552_s28 = scalar_lea.vmem %s37_s25, 512  ;;  %p8557_p1 = scmp.lt.s32.totalorder %s37_s25, %s37_s25 }
   0x6   :  { %p8553_p0 = scmp.ne.s32.totalorder %s37_s25, %s8552_s28  ;;  %p8558_p2 = scmp.lt.s32.totalorder %s8552_s28, %s8552_s28 }
   0x8   :  { %p8559_p3 = por %p8558_p2, %p8557_p1 }
   0xa   :  { %p8560_p4 = pnand %p8559_p3, %p8553_p0 }
   0xc   :  { %8563 = shalt.err (!%p8560_p4)
}
   0xd   :  { %s8674_s29 = smov 128   ;;  %s8675_s30 = smov 8  }
   0xe   :  { %42 = dma.hbm_to_vmem [thread:$0]  %s11023_s2, 512, %s37_s25, [#allocation9], %s8674_s29, %s8674_s29, %s8675_s30  }
   0xf   :  { %s8572_s10 = scalar_lea.vmem %s25_s27, 2048  ;;  %p8577_p6 = scmp.lt.s32.totalorder %s25_s27, %s25_s27 }
  0x10   :  { %p8573_p5 = scmp.ne.s32.totalorder %s25_s27, %s8572_s10  ;;  %p8578_p7 = scmp.lt.s32.totalorder %s8572_s10, %s8572_s10 }
  0x12   :  { %p8579_p8 = por %p8578_p7, %p8577_p6 }
  0x14   :  { %p8580_p9 = pnand %p8579_p8, %p8573_p5 }
  0x16   :  { %8583 = shalt.err (!%p8580_p9)
}
  0x17   :  { %30 = dma.hbm_to_vmem [thread:$0]  %s11022_s1, 2048, %s25_s27, [#allocation6], %s8674_s29, %s8674_s29, %s8675_s30  }
  0x18   :  { %s8676_s13 = smov [#allocation10]  }
  0x19   :  { %s48_s14 = sshll.u32 %s8676_s13, 4  ;;  %s49_s14 = int_to_ptr.vmem [resolvable:$true] %s48_s14 }
  0x1a   :  { %s8592_s15 = scalar_lea.vmem %s49_s14, 512  ;;  %p8597_p11 = scmp.lt.s32.totalorder %s49_s14, %s49_s14 }
  0x1b   :  { %p8593_p10 = scmp.ne.s32.totalorder %s49_s14, %s8592_s15  ;;  %p8598_p12 = scmp.lt.s32.totalorder %s8592_s15, %s8592_s15 }
  0x1d   :  { %p8599_p13 = por %p8598_p12, %p8597_p11 }
  0x1f   :  { %p8600_p0 = pnand %p8599_p13, %p8593_p10 }
  0x21   :  { %8603 = shalt.err (!%p8600_p0)
}
  0x22   :  { %54 = dma.hbm_to_vmem [thread:$0]  %s11024_s3, 512, %s49_s14, [#allocation9], %s8674_s29, %s8674_s29, %s8675_s30  }
  0x23   :  { %8664 = dma.done.wait [#allocation6], 2048  }
  0x24   :  { %8665 = vsyncadd [#allocation6], 4294965248 }
  0x25   :  { %8666 = dma.done.wait [#allocation9], 1024  }
  0x26   :  { %8667 = vsyncadd [#allocation9], 4294966272  ;;  %vm70_vm0 = vcmask 261120   ;;  %v8677_v0 = vmov 0.0   ;;  %vm8678_vm1 = vmmov 0   ;;  %v98_v1 = vld [vmem:[#allocation8 + $0x18] sm:$0xff] }
  0x27   :  { %7552 = vmatprep.subr.mxu1 %v8677_v0  ;;  %71 = vst.msk [vmem:[#allocation3] sm:$0xff] %vm70_vm0, %v8677_v0  ;;  %72 = vst.msk [vmem:[#allocation4] sm:$0xff] %vm70_vm0, %v8677_v0  ;;  %7560 = vmatprep.mubr.msk.f32.mxu1 %vm8678_vm1, %v8677_v0  ;;  %v97_v2 = vld [vmem:[#allocation8 + $0x10] sm:$0xff]  ;;  %v79_v3 = vld [vmem:[#allocation5] sm:$0xff]  ;;  %s8679_s1 = smov 32   ;;  %s8681_s18 = smov 96  }
  0x28   :  { %7520 = vmatprep.subr.mxu0 %v98_v1  ;;  %v96_v4 = vld [vmem:[#allocation8 + $0x8] sm:$0xff]  ;;  %7528 = vmatprep.mubr.msk.f32.mxu0 %vm70_vm0, %v79_v3  ;;  %v8753_v5 = vld [vmem:[#allocation10 + $0x18] sm:$0xff]  ;;  %v8756_v6 = vld [vmem:[#allocation10 + $0x10] sm:$0xff]  ;;  %vm647_vm2 = vcmask 1041409   ;;  %vm650_vm3 = vcmask 1042434   ;;  %vm653_vm4 = vcmask 1043459  }
  0x29   :  { %7521 = vmatpush3.msra.mxu0 %v98_v1  ;;  %7553 = vmatpush3.msra.mxu1 %v8753_v5  ;;  %v95_v7 = vld [vmem:[#allocation8] sm:$0xff]  ;;  %v8759_v8 = vld [vmem:[#allocation10 + $0x8] sm:$0xff]  ;;  %v81_v11 = vld [vmem:[#allocation5 + $0x10] sm:$0xff]  ;;  %vm656_vm5 = vcmask 1044484   ;;  %vm659_vm6 = vcmask 1045509   ;;  %vm662_vm7 = vcmask 1046534  }
  0x2a   :  { %7522 = vmatprep.subr.mxu0 %v97_v2  ;;  %7554 = vmatprep.subr.mxu1 %v8677_v0  ;;  %v80_v9 = vld [vmem:[#allocation5 + $0x8] sm:$0xff]  ;;  %v8763_v10 = vld [vmem:[#allocation10] sm:$0xff]  ;;  %v82_v15 = vld [vmem:[#allocation5 + $0x18] sm:$0xff]  ;;  %vm665_vm8 = vcmask 1047559   ;;  %vm754_vm11 = vcmask 253952   ;;  %s8685_s15 = smov [#allocation14]  }
  0x2b   :  { %7523 = vmatpush3.msra.mxu0 %v97_v2  ;;  %7555 = vmatpush3.msra.mxu1 %v8756_v6  ;;  %v83_v16 = vld [vmem:[#allocation5 + $0x20] sm:$0xff]  ;;  %v84_v19 = vld [vmem:[#allocation5 + $0x28] sm:$0xff]  ;;  %v85_v20 = vld [vmem:[#allocation5 + $0x30] sm:$0xff]  ;;  %s7370_s2 = sshll.u32 %s8685_s15, 4  ;;  %s8686_s16 = smov [#allocation11]   ;;  %s7371_s2 = int_to_ptr.vmem [resolvable:$true] %s7370_s2 }
  0x2c   :  { %7524 = vmatprep.subr.mxu0 %v96_v4  ;;  %7556 = vmatprep.subr.mxu1 %v8677_v0  ;;  %v86_v23 = vld [vmem:[#allocation5 + $0x38] sm:$0xff]  ;;  %v87_v24 = vld [vmem:[#allocation5 + $0x40] sm:$0xff]  ;;  %v88_v27 = vld [vmem:[#allocation5 + $0x48] sm:$0xff] }
  0x2d   :  { %7525 = vmatpush3.msra.mxu0 %v96_v4  ;;  %7557 = vmatpush3.msra.mxu1 %v8759_v8  ;;  %v89_v28 = vld [vmem:[#allocation5 + $0x50] sm:$0xff]  ;;  %v90_v29 = vld [vmem:[#allocation5 + $0x58] sm:$0xff]  ;;  %v91_v30 = vld [vmem:[#allocation5 + $0x60] sm:$0xff] }
  0x2e   :  { %7526 = vmatprep.subr.mxu0 %v95_v7  ;;  %v8766_v12 = vld [vmem:[#allocation3] sm:$0xff]  ;;  %7558 = vmatprep.subr.mxu1 %v8677_v0  ;;  %v8769_v13 = vld [vmem:[#allocation4] sm:$0xff]  ;;  %v92_v31 = vld [vmem:[#allocation5 + $0x68] sm:$0xff] }
  0x2f   :  { %7527 = vmatpush3.msra.mxu0 %v95_v7  ;;  %7559 = vmatpush3.msra.mxu1 %v8763_v10  ;;  %v504_v14 = vrot.slane %v8769_v13, 1  ;;  %v505_v17 = vrot.slane %v8769_v13, 2  ;;  %v506_v18 = vrot.slane %v8769_v13, 3  ;;  %v507_v21 = vrot.slane %v8769_v13, 4  ;;  %v93_v32 = vld [vmem:[#allocation5 + $0x70] sm:$0xff]  ;;  %v94_v33 = vld [vmem:[#allocation5 + $0x78] sm:$0xff] }
  0x30   :  { %7529 = vmatmul.mubr.msk.f32.vlgmr.msra.gmra.mxu0 %vm70_vm0, %v80_v9  ;;  %7561 = vmatmul.mubr.msk.f32.vlgmr.msra.gmra.mxu1 %vm70_vm0, %v8766_v12  ;;  %v508_v22 = vrot.slane %v8769_v13, 5  ;;  %v509_v25 = vrot.slane %v8769_v13, 6  ;;  %v510_v26 = vrot.slane %v8769_v13, 7  ;;  %v8830_v34 = vld [vmem:[%s11025_s4] ss:$0 sm:$0xff]  ;;  %s8680_s4 = smov 64  }
  0x31   :  { %7531 = vmatprep.mubr.msk.f32.mxu0 %vm70_vm0, %v81_v11  ;;  %511 = vrot.lane.b32.xlu1 %v8769_v13, %s8679_s1 }
  0x32   :  { %513 = vrot.lane.b32.xlu0 %v504_v14, %s8679_s1  ;;  %7563 = vmatprep.subr.mxu1 %v8677_v0 }
  0x33   :  { %7571 = vmatprep.mubr.msk.f32.mxu1 %vm8678_vm1, %v8677_v0  ;;  %7564 = vmatpush3.msra.mxu1 %v8753_v5 }
  0x34   :  { %7532 = vmatmul.mubr.msk.f32.gmra.mxu0 %vm70_vm0, %v82_v15  ;;  %7565 = vmatprep.subr.mxu1 %v8677_v0 }
  0x35   :  { %7534 = vmatprep.mubr.msk.f32.mxu0 %vm70_vm0, %v83_v16  ;;  %517 = vrot.lane.b32.xlu1 %v506_v18, %s8679_s1 }
  0x36   :  { %515 = vrot.lane.b32.xlu0 %v505_v17, %s8679_s1  ;;  %7566 = vmatpush3.msra.mxu1 %v8756_v6 }
  0x37   :  { %7596 = vmatprep.subr.mxu0 %v8677_v0  ;;  %7567 = vmatprep.subr.mxu1 %v8677_v0 }
  0x38   :  { %7535 = vmatmul.mubr.msk.f32.gmra.mxu0 %vm70_vm0, %v84_v19  ;;  %7568 = vmatpush3.msra.mxu1 %v8759_v8 }
  0x39   :  { %7537 = vmatprep.mubr.msk.f32.mxu0 %vm70_vm0, %v85_v20  ;;  %521 = vrot.lane.b32.xlu1 %v508_v22, %s8679_s1 }
  0x3a   :  { %519 = vrot.lane.b32.xlu0 %v507_v21, %s8679_s1  ;;  %7569 = vmatprep.subr.mxu1 %v8677_v0 }
  0x3b   :  { %7597 = vmatpush3.msra.mxu0 %v8753_v5  ;;  %7570 = vmatpush3.msra.mxu1 %v8763_v10 }
  0x3c   :  { %7538 = vmatmul.mubr.msk.f32.gmra.mxu0 %vm70_vm0, %v86_v23  ;;  %7574 = vmatprep.subr.mxu1 %v8677_v0 }
  0x3d   :  { %7540 = vmatprep.mubr.msk.f32.mxu0 %vm70_vm0, %v87_v24  ;;  %525 = vrot.lane.b32.xlu1 %v510_v26, %s8679_s1 }
  0x3e   :  { %523 = vrot.lane.b32.xlu0 %v509_v25, %s8679_s1  ;;  %7598 = vmatprep.subr.mxu0 %v8677_v0 }
  0x3f   :  { %7599 = vmatpush3.msra.mxu0 %v8756_v6 }
  0x40   :  { %7541 = vmatmul.mubr.msk.f32.gmra.mxu0 %vm70_vm0, %v88_v27  ;;  %7600 = vmatprep.subr.mxu0 %v8677_v0 }
  0x41   :  { %7543 = vmatprep.mubr.msk.f32.mxu0 %vm70_vm0, %v89_v28  ;;  %7601 = vmatpush3.msra.mxu0 %v8759_v8 }
  0x42   :  { %7602 = vmatprep.subr.mxu0 %v8677_v0 }
  0x43   :  { %7603 = vmatpush3.msra.mxu0 %v8763_v10 }
  0x44   :  { %7544 = vmatmul.mubr.msk.f32.gmra.mxu0 %vm70_vm0, %v90_v29  ;;  %7618 = vmatprep.subr.mxu0 %v8677_v0 }
  0x45   :  { %7546 = vmatprep.mubr.msk.f32.mxu0 %vm70_vm0, %v91_v30 }
  0x48   :  { %7547 = vmatmul.mubr.msk.f32.gmra.mxu0 %vm70_vm0, %v92_v31 }
  0x49   :  { %7549 = vmatprep.mubr.msk.f32.mxu0 %vm70_vm0, %v93_v32 }
  0x4c   :  { %7550 = vmatmul.mubr.msk.f32.gmra.mxu0 %vm70_vm0, %v94_v33 }
  0x4d   :  { %7604 = vmatprep.mubr.msk.f32.mxu0 %vm8678_vm1, %v8677_v0 }
  0xf0   :  { %v7530_v35 = vpop.f32.mrf.mxu0  ;;  %v8833_v37 = vpop.f32.mrf.mxu1 }
  0xf1   :  { %v227_v36 = vadd.f32 %v7530_v35, %v8830_v34  ;;  %v400_v52 = vrot.slane %v8833_v37, 1  ;;  %v401_v59 = vrot.slane %v8833_v37, 2  ;;  %v402_v11 = vrot.slane %v8833_v37, 3 }
  0xf2   :  { %v221_v38 = vpop.f32.mrf.mxu0  ;;  %v7562_v40 = vpop.f32.mrf.mxu1  ;;  %v403_v21 = vrot.slane %v8833_v37, 4  ;;  %v404_v30 = vrot.slane %v8833_v37, 5 }
  0xf3   :  { %301 = vst [vmem:[#allocation2 + $0x8] sm:$0xff] %v227_v36  ;;  %v222_v39 = vadd.f32 %v8830_v34, %v221_v38  ;;  %v512_v38 = vpop.permute.xlu1 %511 }
  0xf4   :  { %v7533_v41 = vpop.f32.mrf.mxu0 }
  0xf5   :  { %300 = vst [vmem:[#allocation2] sm:$0xff] %v222_v39  ;;  %v237_v42 = vadd.f32 %v7533_v41, %v8830_v34 }
  0xf6   :  { %v231_v43 = vpop.f32.mrf.mxu0 }
  0xf7   :  { %303 = vst [vmem:[#allocation2 + $0x18] sm:$0xff] %v237_v42  ;;  %v232_v44 = vadd.f32 %v8830_v34, %v231_v43  ;;  %v405_v43 = vrot.slane %v8833_v37, 6 }
  0xf8   :  { %v7536_v45 = vpop.f32.mrf.mxu0 }
  0xf9   :  { %302 = vst [vmem:[#allocation2 + $0x10] sm:$0xff] %v232_v44  ;;  %v247_v46 = vadd.f32 %v7536_v45, %v8830_v34  ;;  %v514_v44 = vpop.permute.xlu0 %513 }
  0xfa   :  { %v241_v47 = vpop.f32.mrf.mxu0 }
  0xfb   :  { %305 = vst [vmem:[#allocation2 + $0x28] sm:$0xff] %v247_v46  ;;  %v242_v48 = vadd.f32 %v8830_v34, %v241_v47 }
  0xfc   :  { %v7539_v49 = vpop.f32.mrf.mxu0  ;;  %v318_v50 = vld [vmem:[#allocation2] sm:$0x1] }
  0xfd   :  { %304 = vst [vmem:[#allocation2 + $0x20] sm:$0xff] %v242_v48  ;;  %v257_v51 = vadd.f32 %v7539_v49, %v8830_v34  ;;  %v415_v53 = vadd.f32 %v8833_v37, %v318_v50 }
  0xfe   :  { %v251_v54 = vpop.f32.mrf.mxu0 }
  0xff   :  { %307 = vst [vmem:[#allocation2 + $0x38] sm:$0xff] %v257_v51  ;;  %7745 = vtanh.f32 %v415_v53  ;;  %v252_v55 = vadd.f32 %v8830_v34, %v251_v54  ;;  %v423_v56 = vmul.f32 0.5, %v415_v53 }
 0x100   :  { %v319_v57 = vld [vmem:[#allocation2 + $0x10] sm:$0x1]  ;;  %v7542_v58 = vpop.f32.mrf.mxu0 }
 0x101   :  { %v416_v60 = vadd.f32 %v400_v52, %v319_v57  ;;  %306 = vst [vmem:[#allocation2 + $0x30] sm:$0xff] %v252_v55  ;;  %v267_v61 = vadd.f32 %v7542_v58, %v8830_v34  ;;  %7747 = vtanh.f32 %v423_v56  ;;  %v406_v52 = vrot.slane %v8833_v37, 7  ;;  %v516_v57 = vpop.permute.xlu0 %515 }
 0x102   :  { %v261_v62 = vpop.f32.mrf.mxu0 }
 0x103   :  { %7749 = vtanh.f32 %v416_v60  ;;  %309 = vst [vmem:[#allocation2 + $0x48] sm:$0xff] %v267_v61  ;;  %v262_v63 = vadd.f32 %v8830_v34, %v261_v62  ;;  %v424_v1 = vmul.f32 0.5, %v416_v60 }
 0x104   :  { %v320_v2 = vld [vmem:[#allocation2 + $0x20] sm:$0x1]  ;;  %v7545_v3 = vpop.f32.mrf.mxu0 }
 0x105   :  { %v417_v4 = vadd.f32 %v401_v59, %v320_v2  ;;  %308 = vst [vmem:[#allocation2 + $0x40] sm:$0xff] %v262_v63  ;;  %v277_v7 = vadd.f32 %v7545_v3, %v8830_v34  ;;  %7751 = vtanh.f32 %v424_v1 }
 0x106   :  { %v271_v9 = vpop.f32.mrf.mxu0 }
 0x107   :  { %7753 = vtanh.f32 %v417_v4  ;;  %311 = vst [vmem:[#allocation2 + $0x58] sm:$0xff] %v277_v7  ;;  %v272_v14 = vadd.f32 %v8830_v34, %v271_v9  ;;  %v425_v15 = vmul.f32 0.5, %v417_v4  ;;  %v518_v9 = vpop.permute.xlu1 %517 }
 0x108   :  { %v7548_v16 = vpop.f32.mrf.mxu0  ;;  %v321_v17 = vld [vmem:[#allocation2 + $0x30] sm:$0x1] }
 0x109   :  { %310 = vst [vmem:[#allocation2 + $0x50] sm:$0xff] %v272_v14  ;;  %v287_v18 = vadd.f32 %v7548_v16, %v8830_v34  ;;  %v418_v19 = vadd.f32 %v402_v11, %v321_v17  ;;  %7755 = vtanh.f32 %v425_v15 }
 0x10a   :  { %v281_v20 = vpop.f32.mrf.mxu0 }
 0x10b   :  { %313 = vst [vmem:[#allocation2 + $0x68] sm:$0xff] %v287_v18  ;;  %v282_v22 = vadd.f32 %v8830_v34, %v281_v20  ;;  %7757 = vtanh.f32 %v418_v19  ;;  %v426_v23 = vmul.f32 0.5, %v418_v19  ;;  %v520_v18 = vpop.permute.xlu0 %519 }
 0x10c   :  { %v7746_v24 = vpop.eup %7745  ;;  %v7551_v25 = vpop.f32.mrf.mxu0  ;;  %v322_v26 = vld [vmem:[#allocation2 + $0x40] sm:$0x1] }
 0x10d   :  { %312 = vst [vmem:[#allocation2 + $0x60] sm:$0xff] %v282_v22  ;;  %v297_v27 = vadd.f32 %v7551_v25, %v8830_v34  ;;  %471 = vrot.lane.b32.xlu0 %v7746_v24, %s8680_s4  ;;  %v419_v28 = vadd.f32 %v403_v21, %v322_v26  ;;  %7759 = vtanh.f32 %v426_v23  ;;  %v522_v24 = vpop.permute.xlu1 %521 }
 0x10e   :  { %v7748_v29 = vpop.eup %7747  ;;  %v291_v31 = vpop.f32.mrf.mxu0 }
 0x10f   :  { %315 = vst [vmem:[#allocation2 + $0x78] sm:$0xff] %v297_v27  ;;  %v292_v32 = vadd.f32 %v8830_v34, %v291_v31  ;;  %v439_v33 = vmul.f32 0.5, %v7748_v29  ;;  %7761 = vtanh.f32 %v419_v28  ;;  %v427_v35 = vmul.f32 0.5, %v419_v28  ;;  %v524_v25 = vpop.permute.xlu0 %523 }
 0x110   :  { %v7750_v36 = vpop.eup %7749  ;;  %v323_v39 = vld [vmem:[#allocation2 + $0x50] sm:$0x1] }
 0x111   :  { %314 = vst [vmem:[#allocation2 + $0x70] sm:$0xff] %v292_v32  ;;  %473 = vrot.lane.b32.xlu0 %v7750_v36, %s8680_s4  ;;  %v8858_v40 = vadd.f32 0.5, %v439_v33  ;;  %v420_v41 = vadd.f32 %v404_v30, %v323_v39  ;;  %7763 = vtanh.f32 %v427_v35  ;;  %v526_v31 = vpop.permute.xlu1 %525  ;;  %v8682_v35 = vmov 0  }
 0x112   :  { %v7752_v42 = vpop.eup %7751  ;;  %7743 = vset.pattern.permute.xlu0 %v8682_v35  ;;  %7744 = vset.pattern.permute.xlu1 %v8682_v35 }
 0x113   :  { %v535_v45 = vmul.f32 %v512_v38, %v8858_v40  ;;  %v440_v34 = vmul.f32 0.5, %v7752_v42  ;;  %7765 = vtanh.f32 %v420_v41  ;;  %v428_v46 = vmul.f32 0.5, %v420_v41 }
 0x114   :  { %v7754_v47 = vpop.eup %7753  ;;  %v324_v48 = vld [vmem:[#allocation2 + $0x60] sm:$0x1] }
 0x115   :  { %475 = vrot.lane.b32.xlu1 %v7754_v47, %s8680_s4  ;;  %551 = vrot.lane.b32.xlu0 %v535_v45, %s8681_s18  ;;  %v8864_v49 = vadd.f32 0.5, %v440_v34  ;;  %v421_v50 = vadd.f32 %v405_v43, %v324_v48  ;;  %7767 = vtanh.f32 %v428_v46 }
 0x116   :  { %v7756_v51 = vpop.eup %7755 }
 0x117   :  { %v536_v53 = vmul.f32 %v514_v44, %v8864_v49  ;;  %v441_v54 = vmul.f32 0.5, %v7756_v51  ;;  %7769 = vtanh.f32 %v421_v50  ;;  %v429_v55 = vmul.f32 0.5, %v421_v50 }
 0x118   :  { %v7758_v56 = vpop.eup %7757  ;;  %v325_v58 = vld [vmem:[#allocation2 + $0x70] sm:$0x1] }
 0x119   :  { %477 = vrot.lane.b32.xlu1 %v7758_v56, %s8680_s4  ;;  %553 = vrot.lane.b32.xlu0 %v536_v53, %s8681_s18  ;;  %v8870_v59 = vadd.f32 0.5, %v441_v54  ;;  %v422_v60 = vadd.f32 %v406_v52, %v325_v58  ;;  %7771 = vtanh.f32 %v429_v55 }
 0x11a   :  { %v7760_v61 = vpop.eup %7759 }
 0x11b   :  { %v537_v62 = vmul.f32 %v516_v57, %v8870_v59  ;;  %v442_v37 = vmul.f32 0.5, %v7760_v61  ;;  %7773 = vtanh.f32 %v422_v60  ;;  %v430_v63 = vmul.f32 0.5, %v422_v60 }
 0x11c   :  { %v7762_v1 = vpop.eup %7761 }
 0x11d   :  { %479 = vrot.lane.b32.xlu1 %v7762_v1, %s8680_s4  ;;  %555 = vrot.lane.b32.xlu0 %v537_v62, %s8681_s18  ;;  %7775 = vtanh.f32 %v430_v63  ;;  %v8875_v3 = vadd.f32 0.5, %v442_v37 }
 0x11e   :  { %v7764_v2 = vpop.eup %7763 }
 0x11f   :  { %v443_v4 = vmul.f32 0.5, %v7764_v2  ;;  %v538_v14 = vmul.f32 %v518_v9, %v8875_v3 }
 0x120   :  { %v7766_v7 = vpop.eup %7765 }
 0x121   :  { %481 = vrot.lane.b32.xlu1 %v7766_v7, %s8680_s4  ;;  %v8879_v15 = vadd.f32 0.5, %v443_v4 }
 0x122   :  { %v7768_v11 = vpop.eup %7767 }
 0x123   :  { %v444_v16 = vmul.f32 0.5, %v7768_v11  ;;  %v539_v20 = vmul.f32 %v520_v18, %v8879_v15 }
 0x124   :  { %v7770_v17 = vpop.eup %7769 }
 0x125   :  { %557 = vrot.lane.b32.xlu1 %v538_v14, %s8681_s18  ;;  %483 = vrot.lane.b32.xlu0 %v7770_v17, %s8680_s4  ;;  %v8884_v21 = vadd.f32 0.5, %v444_v16 }
 0x126   :  { %v7772_v19 = vpop.eup %7771 }
 0x127   :  { %v445_v22 = vmul.f32 0.5, %v7772_v19  ;;  %v540_v28 = vmul.f32 %v522_v24, %v8884_v21 }
 0x128   :  { %v7774_v23 = vpop.eup %7773 }
 0x129   :  { %559 = vrot.lane.b32.xlu1 %v539_v20, %s8681_s18  ;;  %485 = vrot.lane.b32.xlu0 %v7774_v23, %s8680_s4  ;;  %v8888_v26 = vadd.f32 0.5, %v445_v22 }
 0x12a   :  { %v7776_v27 = vpop.eup %7775 }
 0x12b   :  { %v541_v29 = vmul.f32 %v524_v25, %v8888_v26  ;;  %v446_v30 = vmul.f32 0.5, %v7776_v27 }
 0x12d   :  { %561 = vrot.lane.b32.xlu1 %v540_v28, %s8681_s18  ;;  %563 = vrot.lane.b32.xlu0 %v541_v29, %s8681_s18  ;;  %v8894_v32 = vadd.f32 0.5, %v446_v30 }
 0x12f   :  { %v542_v33 = vmul.f32 %v526_v31, %v8894_v32 }
 0x131   :  { %565 = vrot.lane.b32.xlu1 %v542_v33, %s8681_s18 }
 0x17f   :  { %v472_v36 = vpop.permute.xlu0 %471 }
 0x180   :  { %v495_v39 = vmul.f32 %v472_v36, %v8858_v40 }
 0x183   :  { %v474_v38 = vpop.permute.xlu0 %473 }
 0x184   :  { %v496_v44 = vmul.f32 %v474_v38, %v8864_v49 }
 0x187   :  { %v476_v41 = vpop.permute.xlu1 %475  ;;  %v552_v42 = vpop.permute.xlu0 %551 }
 0x188   :  { %v575_v43 = vadd.f32 %v552_v42, %v495_v39  ;;  %v497_v47 = vmul.f32 %v476_v41, %v8870_v59  ;;  %v8923_v41 = vld [vmem:[%s11021_s0] sm:$0xff] }
 0x189   :  { %vm632_vm9 = vcmp.gt.s32.totalorder %v8923_v41, 0  ;;  %vm1078_vm12 = vcmp.gt.s32.totalorder %v8923_v41, 1 }
 0x18a   :  { %7777 = vtanh.f32 %v575_v43 }
 0x18b   :  { %v478_v45 = vpop.permute.xlu1 %477  ;;  %v554_v34 = vpop.permute.xlu0 %553 }
 0x18c   :  { %v576_v46 = vadd.f32 %v554_v34, %v496_v44  ;;  %v498_v57 = vmul.f32 %v478_v45, %v8875_v3  ;;  %v633_v44 = vsel %vm632_vm9, 1, %v8682_v35 }
 0x18e   :  { %7779 = vtanh.f32 %v576_v46  ;;  %v679_v48 = vrot.slane %v576_v46, 7 }
 0x18f   :  { %v480_v50 = vpop.permute.xlu1 %479  ;;  %v556_v51 = vpop.permute.xlu0 %555 }
 0x190   :  { %v680_v52 = vsel %vm647_vm2, %v679_v48, %v575_v43  ;;  %v577_v53 = vadd.f32 %v556_v51, %v497_v47  ;;  %v499_v37 = vmul.f32 %v480_v50, %v8879_v15 }
 0x192   :  { %7781 = vtanh.f32 %v577_v53  ;;  %v681_v54 = vrot.slane %v577_v53, 6 }
 0x193   :  { %v482_v55 = vpop.permute.xlu1 %481 }
 0x194   :  { %v682_v56 = vsel %vm650_vm3, %v681_v54, %v680_v52  ;;  %v500_v11 = vmul.f32 %v482_v55, %v8884_v21 }
 0x197   :  { %v7778_v58 = vpop.eup %7777  ;;  %v558_v60 = vpop.permute.xlu1 %557 }
 0x198   :  { %v484_v61 = vpop.permute.xlu0 %483  ;;  %v578_v62 = vadd.f32 %v558_v60, %v498_v57  ;;  %599 = vrot.lane.b32.xlu0 %v7778_v58, %s8681_s18 }
 0x199   :  { %v501_v14 = vmul.f32 %v484_v61, %v8888_v26 }
 0x19a   :  { %7783 = vtanh.f32 %v578_v62  ;;  %v683_v63 = vrot.slane %v578_v62, 5 }
 0x19b   :  { %v7780_v1 = vpop.eup %7779  ;;  %v560_v2 = vpop.permute.xlu1 %559 }
 0x19c   :  { %v486_v4 = vpop.permute.xlu0 %485  ;;  %v684_v7 = vsel %vm653_vm4, %v683_v63, %v682_v56  ;;  %v579_v9 = vadd.f32 %v560_v2, %v499_v37  ;;  %601 = vrot.lane.b32.xlu0 %v7780_v1, %s8681_s18 }
 0x19d   :  { %v502_v24 = vmul.f32 %v486_v4, %v8894_v32 }
 0x19e   :  { %7785 = vtanh.f32 %v579_v9  ;;  %v685_v16 = vrot.slane %v579_v9, 4 }
 0x19f   :  { %v7782_v17 = vpop.eup %7781  ;;  %v562_v18 = vpop.permute.xlu1 %561 }
 0x1a0   :  { %v564_v19 = vpop.permute.xlu0 %563  ;;  %v686_v20 = vsel %vm656_vm5, %v685_v16, %v684_v7  ;;  %v580_v22 = vadd.f32 %v562_v18, %v500_v11  ;;  %603 = vrot.lane.b32.xlu1 %v7782_v17, %s8681_s18 }
 0x1a1   :  { %v581_v23 = vadd.f32 %v564_v19, %v501_v14 }
 0x1a2   :  { %7787 = vtanh.f32 %v580_v22  ;;  %v687_v25 = vrot.slane %v580_v22, 3  ;;  %v8683_v22 = vmov 1966171168  }
 0x1a3   :  { %v689_v27 = vrot.slane %v581_v23, 2  ;;  %7789 = vtanh.f32 %v581_v23  ;;  %v566_v28 = vpop.permute.xlu1 %565  ;;  %v699_v23 = vunpack.c.l.s4 %v8683_v22 }
 0x1a4   :  { %v688_v29 = vsel %vm659_vm6, %v687_v25, %v686_v20  ;;  %v582_v30 = vadd.f32 %v566_v28, %v502_v24  ;;  %v701_v24 = vlaneseq }
 0x1a5   :  { %v690_v31 = vsel %vm662_vm7, %v689_v27, %v688_v29  ;;  %v700_v25 = vunpack.c.0.s8 %v699_v23 }
 0x1a6   :  { %7791 = vtanh.f32 %v582_v30  ;;  %v691_v33 = vrot.slane %v582_v30, 1  ;;  %v702_v27 = vshrl.u32 %v701_v24, 7 }
 0x1a7   :  { %v7784_v36 = vpop.eup %7783 }
 0x1a8   :  { %605 = vrot.lane.b32.xlu1 %v7784_v36, %s8681_s18  ;;  %v692_v38 = vsel %vm665_vm8, %v691_v33, %v690_v31  ;;  %v8966_v28 = vsub.s32 %v700_v25, %v702_v27 }
 0x1ab   :  { %v7786_v39 = vpop.eup %7785 }
 0x1ac   :  { %607 = vrot.lane.b32.xlu0 %v7786_v39, %s8681_s18 }
 0x1af   :  { %v7788_v42 = vpop.eup %7787 }
 0x1b0   :  { %v7790_v43 = vpop.eup %7789  ;;  %609 = vrot.lane.b32.xlu1 %v7788_v42, %s8681_s18 }
 0x1b1   :  { %611 = vrot.lane.b32.xlu0 %v7790_v43, %s8681_s18 }
 0x1b3   :  { %v7792_v45 = vpop.eup %7791 }
 0x1b4   :  { %613 = vrot.lane.b32.xlu1 %v7792_v45, %s8681_s18 }
 0x1b5   :  { %635 = vperm.xlu0 %7743, %v633_v44  }
 0x20a   :  { %v600_v34 = vpop.permute.xlu0 %599 }
 0x20b   :  { %v623_v57 = vmul.f32 %v600_v34, %v8858_v40 }
 0x20e   :  { %v602_v47 = vpop.permute.xlu0 %601 }
 0x20f   :  { %v624_v50 = vmul.f32 %v602_v47, %v8864_v49  ;;  %v763_v47 = vld [vmem:[#allocation2 + $0x1] sm:$0x1] }
 0x211   :  { %v646_v54 = vrot.slane %v624_v50, 7 }
 0x212   :  { %v604_v46 = vpop.permute.xlu1 %603 }
 0x213   :  { %v625_v51 = vmul.f32 %v604_v46, %v8870_v59  ;;  %v648_v62 = vsel %vm647_vm2, %v646_v54, %v623_v57  ;;  %v765_v54 = vld [vmem:[#allocation2 + $0x21] sm:$0x1]  ;;  %v766_v57 = vld [vmem:[#allocation2 + $0x31] sm:$0x1] }
 0x215   :  { %v649_v56 = vrot.slane %v625_v51, 6 }
 0x217   :  { %v651_v49 = vsel %vm650_vm3, %v649_v56, %v648_v62  ;;  %v767_v62 = vld [vmem:[#allocation2 + $0x41] sm:$0x1] }
 0x21a   :  { %v606_v48 = vpop.permute.xlu1 %605 }
 0x21b   :  { %v626_v52 = vmul.f32 %v606_v48, %v8875_v3 }
 0x21d   :  { %v652_v58 = vrot.slane %v626_v52, 5 }
 0x21e   :  { %v608_v53 = vpop.permute.xlu0 %607 }
 0x21f   :  { %v627_v55 = vmul.f32 %v608_v53, %v8879_v15  ;;  %v654_v3 = vsel %vm653_vm4, %v652_v58, %v651_v49  ;;  %v764_v53 = vld [vmem:[#allocation2 + $0x11] sm:$0x1] }
 0x221   :  { %v655_v60 = vrot.slane %v627_v55, 4 }
 0x222   :  { %v610_v61 = vpop.permute.xlu1 %609 }
 0x223   :  { %v628_v37 = vmul.f32 %v610_v61, %v8884_v21  ;;  %v612_v63 = vpop.permute.xlu0 %611  ;;  %v657_v15 = vsel %vm656_vm5, %v655_v60, %v654_v3 }
 0x224   :  { %v629_v59 = vmul.f32 %v612_v63, %v8888_v26  ;;  %v769_v63 = vld [vmem:[#allocation2 + $0x61] sm:$0x1] }
 0x225   :  { %v658_v1 = vrot.slane %v628_v37, 3 }
 0x226   :  { %v661_v2 = vrot.slane %v629_v59, 2  ;;  %v614_v4 = vpop.permute.xlu1 %613  ;;  %v770_v59 = vld [vmem:[#allocation2 + $0x71] sm:$0x1] }
 0x227   :  { %v630_v40 = vmul.f32 %v614_v4, %v8894_v32  ;;  %v660_v7 = vsel %vm659_vm6, %v658_v1, %v657_v15  ;;  %v768_v4 = vld [vmem:[#allocation2 + $0x51] sm:$0x1] }
 0x228   :  { %v663_v11 = vsel %vm662_vm7, %v661_v2, %v660_v7 }
 0x229   :  { %v664_v9 = vrot.slane %v630_v40, 1 }
 0x22b   :  { %v666_v21 = vsel %vm665_vm8, %v664_v9, %v663_v11 }
 0x22c   :  { %667 = vrot.lane.b32.xlu1 %v666_v21, %s8679_s1 }
 0x230   :  { %v636_v14 = vpop.permute.xlu0 %635 }
 0x231   :  { %vm637_vm10 = vcmp.eq.s32.totalorder %v636_v14, 1 }
 0x232   :  { %v8948_v26 = vsel %vm637_vm10, %v692_v38, %v8769_v13 }
 0x233   :  { %v950_v16 = vrot.slane %v8948_v26, 2  ;;  %v949_v17 = vrot.slane %v8948_v26, 1  ;;  %v951_v32 = vrot.slane %v8948_v26, 3  ;;  %v953_v18 = vrot.slane %v8948_v26, 5 }
 0x234   :  { %v952_v13 = vrot.slane %v8948_v26, 4  ;;  %v955_v19 = vrot.slane %v8948_v26, 7  ;;  %v954_v20 = vrot.slane %v8948_v26, 6 }
 0x235   :  { %960 = vrot.lane.b32.xlu0 %v950_v16, %s8679_s1  ;;  %958 = vrot.lane.b32.xlu1 %v949_v17, %s8679_s1 }
 0x239   :  { %962 = vrot.lane.b32.xlu0 %v951_v32, %s8679_s1  ;;  %956 = vrot.lane.b32.xlu1 %v8948_v26, %s8679_s1 }
 0x23d   :  { %966 = vrot.lane.b32.xlu0 %v953_v18, %s8679_s1  ;;  %964 = vrot.lane.b32.xlu1 %v952_v13, %s8679_s1 }
 0x241   :  { %970 = vrot.lane.b32.xlu0 %v955_v19, %s8679_s1  ;;  %968 = vrot.lane.b32.xlu1 %v954_v20, %s8679_s1 }
 0x29e   :  { %v668_v29 = vpop.permute.xlu1 %667 }
 0x29f   :  { %v8970_v30 = vsel %vm637_vm10, %v668_v29, %v8766_v12  ;;  %v695_v31 = vsel %vm637_vm10, %v668_v29, 0.0 }
 0x2a0   :  { %v697_v33 = vcombine.high %v695_v31, %v695_v31  ;;  %v704_v36 = vrot.slane %v695_v31, %v8966_v28  ;;  %7572 = vmatmul.mubr.msk.f32.vlgmr.msra.gmra.mxu1 %vm70_vm0, %v8970_v30 }
 0x2a1   :  { %7575 = vmatpush3.msra.mxu1 %v8753_v5  ;;  %7582 = vmatprep.mubr.msk.f32.mxu1 %vm8678_vm1, %v8677_v0 }
 0x2a2   :  { %v711_v38 = vrot.slane %v697_v33, %v8966_v28  ;;  %v712_v39 = vcombine.high %v704_v36, %v704_v36  ;;  %v720_v12 = vrot.slane %v704_v36, %v8966_v28  ;;  %7576 = vmatprep.subr.mxu1 %v8677_v0 }
 0x2a3   :  { %7577 = vmatpush3.msra.mxu1 %v8756_v6 }
 0x2a4   :  { %v713_v42 = vcombine.high %v711_v38, %v711_v38  ;;  %v727_v43 = vrot.slane %v711_v38, %v8966_v28  ;;  %v734_v44 = vrot.slane %v712_v39, %v8966_v28  ;;  %v742_v45 = vcombine.high %v720_v12, %v720_v12  ;;  %755 = vst.msk [vmem:[#allocation11] sm:$0x1] %vm754_vm11, %v720_v12 }
 0x2a5   :  { %7578 = vmatprep.subr.mxu1 %v8677_v0 }
 0x2a6   :  { %7579 = vmatpush3.msra.mxu1 %v8759_v8  ;;  %v741_v5 = vrot.slane %v713_v42, %v8966_v28  ;;  %v743_v34 = vcombine.high %v727_v43, %v727_v43  ;;  %v744_v46 = vcombine.high %v734_v44, %v734_v44  ;;  %756 = vst.msk [vmem:[#allocation11 + $0x10] sm:$0x1] %vm754_vm11, %v734_v44  ;;  %757 = vst.msk [vmem:[#allocation11 + $0x20] sm:$0x1] %vm754_vm11, %v742_v45 }
 0x2a7   :  { %759 = vst.msk [vmem:[#allocation11 + $0x40] sm:$0x1] %vm754_vm11, %v727_v43  ;;  %7580 = vmatprep.subr.mxu1 %v8677_v0  ;;  %v959_v25 = vpop.permute.xlu1 %958  ;;  %v961_v33 = vpop.permute.xlu0 %960 }
 0x2a8   :  { %7581 = vmatpush3.msra.mxu1 %v8763_v10  ;;  %v745_v6 = vcombine.high %v741_v5, %v741_v5  ;;  %758 = vst.msk [vmem:[#allocation11 + $0x30] sm:$0x1] %vm754_vm11, %v744_v46  ;;  %760 = vst.msk [vmem:[#allocation11 + $0x50] sm:$0x1] %vm754_vm11, %v741_v5 }
 0x2a9   :  { %761 = vst.msk [vmem:[#allocation11 + $0x60] sm:$0x1] %vm754_vm11, %v743_v34  ;;  %7585 = vmatprep.subr.mxu1 %v8677_v0 }
 0x2aa   :  { %762 = vst.msk [vmem:[#allocation11 + $0x70] sm:$0x1] %vm754_vm11, %v745_v6 }
 0x2ab   :  { %v957_v34 = vpop.permute.xlu1 %956 }
 0x360   :  { %v840_v8 = vpop.f32.mrf.mxu1 }
 0x361   :  { %v845_v48 = vrot.slane %v840_v8, 1  ;;  %v846_v50 = vrot.slane %v840_v8, 2  ;;  %v847_v51 = vrot.slane %v840_v8, 3  ;;  %v848_v52 = vrot.slane %v840_v8, 4 }
 0x362   :  { %v850_v10 = vrot.slane %v840_v8, 6  ;;  %v860_v55 = vadd.f32 %v840_v8, %v763_v47  ;;  %v7573_v56 = vpop.f32.mrf.mxu1  ;;  %v851_v58 = vrot.slane %v840_v8, 7  ;;  %v849_v3 = vrot.slane %v840_v8, 5 }
 0x363   :  { %v861_v60 = vadd.f32 %v845_v48, %v764_v53  ;;  %v862_v61 = vadd.f32 %v846_v50, %v765_v54  ;;  %v863_v37 = vadd.f32 %v847_v51, %v766_v57  ;;  %v864_v49 = vadd.f32 %v848_v52, %v767_v62  ;;  %v963_v48 = vpop.permute.xlu0 %962  ;;  %v965_v56 = vpop.permute.xlu1 %964 }
 0x364   :  { %7793 = vtanh.f32 %v860_v55  ;;  %v866_v1 = vadd.f32 %v850_v10, %v769_v63  ;;  %v867_v15 = vadd.f32 %v851_v58, %v770_v59  ;;  %v868_v2 = vmul.f32 0.5, %v860_v55 }
 0x365   :  { %7795 = vtanh.f32 %v862_v61  ;;  %v871_v40 = vmul.f32 0.5, %v863_v37  ;;  %v865_v7 = vadd.f32 %v849_v3, %v768_v4  ;;  %v869_v9 = vmul.f32 0.5, %v861_v60 }
 0x366   :  { %7797 = vtanh.f32 %v861_v60  ;;  %v872_v11 = vmul.f32 0.5, %v864_v49  ;;  %v870_v21 = vmul.f32 0.5, %v862_v61  ;;  %v874_v16 = vmul.f32 0.5, %v866_v1 }
 0x367   :  { %7799 = vtanh.f32 %v863_v37  ;;  %v873_v14 = vmul.f32 0.5, %v865_v7  ;;  %v875_v32 = vmul.f32 0.5, %v867_v15  ;;  %v967_v61 = vpop.permute.xlu0 %966  ;;  %v969_v59 = vpop.permute.xlu1 %968 }
 0x368   :  { %7801 = vtanh.f32 %v864_v49 }
 0x369   :  { %7803 = vtanh.f32 %v866_v1 }
 0x36a   :  { %7805 = vtanh.f32 %v867_v15 }
 0x36b   :  { %7807 = vtanh.f32 %v868_v2  ;;  %v971_v1 = vpop.permute.xlu0 %970 }
 0x36c   :  { %7809 = vtanh.f32 %v871_v40 }
 0x36d   :  { %7811 = vtanh.f32 %v869_v9 }
 0x36e   :  { %7813 = vtanh.f32 %v872_v11 }
 0x36f   :  { %7815 = vtanh.f32 %v870_v21 }
 0x370   :  { %7817 = vtanh.f32 %v865_v7 }
 0x371   :  { %v7794_v17 = vpop.eup %7793  ;;  %7819 = vtanh.f32 %v873_v14 }
 0x372   :  { %916 = vrot.lane.b32.xlu1 %v7794_v17, %s8680_s4  ;;  %v7796_v18 = vpop.eup %7795  ;;  %7821 = vtanh.f32 %v874_v16 }
 0x373   :  { %v7798_v13 = vpop.eup %7797  ;;  %920 = vrot.lane.b32.xlu0 %v7796_v18, %s8680_s4  ;;  %7823 = vtanh.f32 %v875_v32 }
 0x374   :  { %v7800_v19 = vpop.eup %7799 }
 0x375   :  { %v7802_v20 = vpop.eup %7801 }
 0x376   :  { %918 = vrot.lane.b32.xlu1 %v7798_v13, %s8680_s4  ;;  %v7804_v22 = vpop.eup %7803 }
 0x377   :  { %v7806_v23 = vpop.eup %7805  ;;  %922 = vrot.lane.b32.xlu0 %v7800_v19, %s8680_s4 }
 0x378   :  { %v7808_v24 = vpop.eup %7807 }
 0x379   :  { %v7810_v27 = vpop.eup %7809  ;;  %v884_v29 = vmul.f32 0.5, %v7808_v24 }
 0x37a   :  { %928 = vrot.lane.b32.xlu1 %v7804_v22, %s8680_s4  ;;  %v7812_v31 = vpop.eup %7811  ;;  %v887_v36 = vmul.f32 0.5, %v7810_v27 }
 0x37b   :  { %v7814_v38 = vpop.eup %7813  ;;  %924 = vrot.lane.b32.xlu0 %v7802_v20, %s8680_s4  ;;  %v9005_v39 = vadd.f32 0.5, %v884_v29  ;;  %v885_v12 = vmul.f32 0.5, %v7812_v31 }
 0x37c   :  { %v7816_v42 = vpop.eup %7815  ;;  %v9008_v44 = vadd.f32 0.5, %v887_v36  ;;  %v888_v45 = vmul.f32 0.5, %v7814_v38 }
 0x37d   :  { %v7818_v43 = vpop.eup %7817  ;;  %v980_v46 = vmul.f32 %v957_v34, %v9005_v39  ;;  %v9012_v6 = vadd.f32 0.5, %v885_v12  ;;  %v886_v8 = vmul.f32 0.5, %v7816_v42 }
 0x37e   :  { %930 = vrot.lane.b32.xlu1 %v7806_v23, %s8680_s4  ;;  %v7820_v5 = vpop.eup %7819  ;;  %v983_v50 = vmul.f32 %v963_v48, %v9008_v44  ;;  %v9016_v51 = vadd.f32 0.5, %v888_v45 }
 0x37f   :  { %926 = vrot.lane.b32.xlu0 %v7818_v43, %s8680_s4  ;;  %v7822_v47 = vpop.eup %7821  ;;  %v889_v52 = vmul.f32 0.5, %v7820_v5  ;;  %v981_v54 = vmul.f32 %v959_v25, %v9012_v6  ;;  %v9020_v10 = vadd.f32 0.5, %v886_v8 }
 0x380   :  { %v7824_v53 = vpop.eup %7823  ;;  %v890_v55 = vmul.f32 0.5, %v7822_v47  ;;  %v984_v57 = vmul.f32 %v965_v56, %v9016_v51 }
 0x381   :  { %v9024_v58 = vadd.f32 0.5, %v889_v52  ;;  %v891_v60 = vmul.f32 0.5, %v7824_v53  ;;  %v982_v62 = vmul.f32 %v961_v33, %v9020_v10 }
 0x382   :  { %996 = vrot.lane.b32.xlu1 %v980_v46, %s8681_s18  ;;  %v9028_v37 = vadd.f32 0.5, %v890_v55 }
 0x383   :  { %1002 = vrot.lane.b32.xlu0 %v983_v50, %s8681_s18  ;;  %v985_v63 = vmul.f32 %v967_v61, %v9024_v58  ;;  %v9032_v49 = vadd.f32 0.5, %v891_v60 }
 0x384   :  { %v986_v3 = vmul.f32 %v969_v59, %v9028_v37 }
 0x385   :  { %v987_v15 = vmul.f32 %v971_v1, %v9032_v49 }
 0x386   :  { %998 = vrot.lane.b32.xlu1 %v981_v54, %s8681_s18 }
 0x387   :  { %1004 = vrot.lane.b32.xlu0 %v984_v57, %s8681_s18 }
 0x38a   :  { %1000 = vrot.lane.b32.xlu1 %v982_v62, %s8681_s18 }
 0x38b   :  { %1006 = vrot.lane.b32.xlu0 %v985_v63, %s8681_s18 }
 0x38e   :  { %1008 = vrot.lane.b32.xlu1 %v986_v3, %s8681_s18 }
 0x38f   :  { %1010 = vrot.lane.b32.xlu0 %v987_v15, %s8681_s18 }
 0x3e4   :  { %v917_v2 = vpop.permute.xlu1 %916 }
 0x3e5   :  { %v921_v4 = vpop.permute.xlu0 %920  ;;  %v940_v16 = vmul.f32 %v917_v2, %v9005_v39 }
 0x3e6   :  { %v942_v25 = vmul.f32 %v921_v4, %v9020_v10 }
 0x3e8   :  { %v919_v40 = vpop.permute.xlu1 %918 }
 0x3e9   :  { %v923_v7 = vpop.permute.xlu0 %922  ;;  %v941_v13 = vmul.f32 %v919_v40, %v9012_v6  ;;  %v1079_v40 = vsel %vm1078_vm12, 1, %v8682_v35 }
 0x3ea   :  { %v943_v23 = vmul.f32 %v923_v7, %v9008_v44 }
 0x3ec   :  { %v929_v9 = vpop.permute.xlu1 %928 }
 0x3ed   :  { %v925_v11 = vpop.permute.xlu0 %924  ;;  %v946_v43 = vmul.f32 %v929_v9, %v9028_v37 }
 0x3ee   :  { %v944_v20 = vmul.f32 %v925_v11, %v9016_v51 }
 0x3f0   :  { %v931_v21 = vpop.permute.xlu1 %930 }
 0x3f1   :  { %v927_v14 = vpop.permute.xlu0 %926  ;;  %v947_v34 = vmul.f32 %v931_v21, %v9032_v49 }
 0x3f2   :  { %v945_v36 = vmul.f32 %v927_v14, %v9024_v58 }
 0x3f4   :  { %v997_v17 = vpop.permute.xlu1 %996 }
 0x3f5   :  { %v1020_v32 = vadd.f32 %v997_v17, %v940_v16  ;;  %v1003_v18 = vpop.permute.xlu0 %1002 }
 0x3f6   :  { %v1023_v31 = vadd.f32 %v1003_v18, %v943_v23 }
 0x3f7   :  { %7825 = vtanh.f32 %v1020_v32 }
 0x3f8   :  { %v999_v19 = vpop.permute.xlu1 %998  ;;  %v1122_v46 = vrot.slane %v1023_v31, 5 }
 0x3f9   :  { %v1021_v22 = vadd.f32 %v999_v19, %v941_v13  ;;  %v1005_v24 = vpop.permute.xlu0 %1004 }
 0x3fa   :  { %v1024_v29 = vadd.f32 %v1005_v24, %v944_v20 }
 0x3fb   :  { %7827 = vtanh.f32 %v1021_v22  ;;  %v1118_v27 = vrot.slane %v1021_v22, 7 }
 0x3fc   :  { %v1001_v33 = vpop.permute.xlu1 %1000  ;;  %7829 = vtanh.f32 %v1024_v29  ;;  %v1124_v47 = vrot.slane %v1024_v29, 4 }
 0x3fd   :  { %v1119_v38 = vsel %vm647_vm2, %v1118_v27, %v1020_v32  ;;  %v1022_v12 = vadd.f32 %v1001_v33, %v942_v25  ;;  %v1007_v42 = vpop.permute.xlu0 %1006 }
 0x3fe   :  { %v1025_v5 = vadd.f32 %v1007_v42, %v945_v36 }
 0x3ff   :  { %7831 = vtanh.f32 %v1022_v12  ;;  %v1120_v45 = vrot.slane %v1022_v12, 6 }
 0x400   :  { %v1009_v8 = vpop.permute.xlu1 %1008  ;;  %v1126_v50 = vrot.slane %v1025_v5, 3  ;;  %7833 = vtanh.f32 %v1023_v31 }
 0x401   :  { %v1121_v48 = vsel %vm650_vm3, %v1120_v45, %v1119_v38  ;;  %v1026_v52 = vadd.f32 %v1009_v8, %v946_v43  ;;  %v1011_v54 = vpop.permute.xlu0 %1010 }
 0x402   :  { %v1123_v53 = vsel %vm653_vm4, %v1122_v46, %v1121_v48  ;;  %v1027_v57 = vadd.f32 %v1011_v54, %v947_v34 }
 0x403   :  { %v1125_v55 = vsel %vm656_vm5, %v1124_v47, %v1123_v53  ;;  %7835 = vtanh.f32 %v1026_v52  ;;  %v1128_v56 = vrot.slane %v1026_v52, 2 }
 0x404   :  { %v7826_v60 = vpop.eup %7825  ;;  %v1127_v61 = vsel %vm659_vm6, %v1126_v50, %v1125_v55  ;;  %v1130_v63 = vrot.slane %v1027_v57, 1  ;;  %7837 = vtanh.f32 %v1025_v5  ;;  %v9108_v55 = vld [vmem:[#allocation10 + $0x18] sm:$0xff] }
 0x405   :  { %v1129_v62 = vsel %vm662_vm7, %v1128_v56, %v1127_v61  ;;  %1044 = vrot.lane.b32.xlu1 %v7826_v60, %s8681_s18  ;;  %7839 = vtanh.f32 %v1027_v57  ;;  %v9116_v60 = vld [vmem:[#allocation10 + $0x10] sm:$0xff] }
 0x406   :  { %v1131_v59 = vsel %vm665_vm8, %v1130_v63, %v1129_v62 }
 0x408   :  { %v7828_v3 = vpop.eup %7827 }
 0x409   :  { %1046 = vrot.lane.b32.xlu1 %v7828_v3, %s8681_s18  ;;  %v7830_v1 = vpop.eup %7829  ;;  %v9123_v3 = vld [vmem:[#allocation10 + $0x8] sm:$0xff] }
 0x40c   :  { %v7832_v15 = vpop.eup %7831 }
 0x40d   :  { %1048 = vrot.lane.b32.xlu0 %v7832_v15, %s8681_s18  ;;  %1052 = vrot.lane.b32.xlu1 %v7830_v1, %s8681_s18  ;;  %v7834_v2 = vpop.eup %7833 }
 0x410   :  { %v7836_v4 = vpop.eup %7835 }
 0x411   :  { %1050 = vrot.lane.b32.xlu0 %v7834_v2, %s8681_s18  ;;  %1056 = vrot.lane.b32.xlu1 %v7836_v4, %s8681_s18  ;;  %v7838_v7 = vpop.eup %7837  ;;  %v9131_v4 = vld [vmem:[#allocation10] sm:$0xff] }
 0x412   :  { %v7840_v9 = vpop.eup %7839 }
 0x415   :  { %1054 = vrot.lane.b32.xlu0 %v7838_v7, %s8681_s18  ;;  %1081 = vperm.xlu1 %7744, %v1079_v40  }
 0x419   :  { %1058 = vrot.lane.b32.xlu0 %v7840_v9, %s8681_s18  ;;  %v1201_v9 = vld [vmem:[#allocation2 + $0x2] sm:$0x1] }
 0x477   :  { %v1045_v11 = vpop.permute.xlu1 %1044 }
 0x478   :  { %v1068_v19 = vmul.f32 %v1045_v11, %v9005_v39 }
 0x47b   :  { %v1047_v21 = vpop.permute.xlu1 %1046 }
 0x47c   :  { %v1069_v14 = vmul.f32 %v1047_v21, %v9012_v6 }
 0x47e   :  { %v1092_v32 = vrot.slane %v1069_v14, 7 }
 0x47f   :  { %v1049_v16 = vpop.permute.xlu0 %1048  ;;  %v1053_v17 = vpop.permute.xlu1 %1052 }
 0x480   :  { %v1070_v41 = vmul.f32 %v1049_v16, %v9020_v10  ;;  %v1072_v22 = vmul.f32 %v1053_v17, %v9016_v51  ;;  %v1093_v23 = vsel %vm647_vm2, %v1092_v32, %v1068_v19  ;;  %v1203_v17 = vld [vmem:[#allocation2 + $0x22] sm:$0x1]  ;;  %v1204_v19 = vld [vmem:[#allocation2 + $0x32] sm:$0x1] }
 0x482   :  { %v1094_v18 = vrot.slane %v1070_v41, 6  ;;  %v1098_v31 = vrot.slane %v1072_v22, 4  ;;  %v1202_v41 = vld [vmem:[#allocation2 + $0x12] sm:$0x1] }
 0x483   :  { %v1051_v13 = vpop.permute.xlu0 %1050  ;;  %v1057_v25 = vpop.permute.xlu1 %1056 }
 0x484   :  { %v1071_v20 = vmul.f32 %v1051_v13, %v9008_v44  ;;  %v1095_v27 = vsel %vm650_vm3, %v1094_v18, %v1093_v23  ;;  %v1074_v33 = vmul.f32 %v1057_v25, %v9028_v37 }
 0x486   :  { %v1096_v24 = vrot.slane %v1071_v20, 5  ;;  %v1102_v12 = vrot.slane %v1074_v33, 2 }
 0x487   :  { %v1055_v6 = vpop.permute.xlu0 %1054 }
 0x488   :  { %v1097_v29 = vsel %vm653_vm4, %v1096_v24, %v1095_v27  ;;  %v1073_v10 = vmul.f32 %v1055_v6, %v9024_v58  ;;  %v1205_v24 = vld [vmem:[#allocation2 + $0x42] sm:$0x1] }
 0x489   :  { %v1099_v44 = vsel %vm656_vm5, %v1098_v31, %v1097_v29  ;;  %v1207_v27 = vld [vmem:[#allocation2 + $0x62] sm:$0x1]  ;;  %v1208_v29 = vld [vmem:[#allocation2 + $0x72] sm:$0x1] }
 0x48a   :  { %v1100_v36 = vrot.slane %v1073_v10, 3 }
 0x48b   :  { %v1059_v39 = vpop.permute.xlu0 %1058 }
 0x48c   :  { %v1075_v51 = vmul.f32 %v1059_v39, %v9032_v49  ;;  %v1101_v38 = vsel %vm659_vm6, %v1100_v36, %v1099_v44  ;;  %v1206_v39 = vld [vmem:[#allocation2 + $0x52] sm:$0x1] }
 0x48d   :  { %v1103_v43 = vsel %vm662_vm7, %v1102_v12, %v1101_v38 }
 0x48e   :  { %v1104_v42 = vrot.slane %v1075_v51, 1 }
 0x490   :  { %v1082_v45 = vpop.permute.xlu1 %1081  ;;  %v1105_v5 = vsel %vm665_vm8, %v1104_v42, %v1103_v43 }
 0x491   :  { %vm1083_vm13 = vcmp.eq.s32.totalorder %v1082_v45, 1  ;;  %1106 = vrot.lane.b32.xlu0 %v1105_v5, %s8679_s1 }
 0x492   :  { %v9082_v58 = vsel %vm1083_vm13, %v1131_v59, %v8948_v26 }
 0x493   :  { %v1388_v37 = vrot.slane %v9082_v58, 2  ;;  %v1387_v49 = vrot.slane %v9082_v58, 1  ;;  %v1389_v34 = vrot.slane %v9082_v58, 3  ;;  %v1391_v46 = vrot.slane %v9082_v58, 5 }
 0x494   :  { %v1390_v26 = vrot.slane %v9082_v58, 4  ;;  %v1393_v8 = vrot.slane %v9082_v58, 7  ;;  %v1392_v47 = vrot.slane %v9082_v58, 6 }
 0x495   :  { %1398 = vrot.lane.b32.xlu0 %v1388_v37, %s8679_s1  ;;  %1396 = vrot.lane.b32.xlu1 %v1387_v49, %s8679_s1 }
 0x499   :  { %1400 = vrot.lane.b32.xlu0 %v1389_v34, %s8679_s1  ;;  %1394 = vrot.lane.b32.xlu1 %v9082_v58, %s8679_s1 }
 0x49d   :  { %1404 = vrot.lane.b32.xlu0 %v1391_v46, %s8679_s1  ;;  %1402 = vrot.lane.b32.xlu1 %v1390_v26, %s8679_s1 }
 0x4a1   :  { %1408 = vrot.lane.b32.xlu0 %v1393_v8, %s8679_s1  ;;  %1406 = vrot.lane.b32.xlu1 %v1392_v47, %s8679_s1 }
 0x503   :  { %v1107_v48 = vpop.permute.xlu0 %1106 }
 0x504   :  { %v9102_v50 = vsel %vm1083_vm13, %v1107_v48, %v8970_v30  ;;  %v1134_v52 = vsel %vm1083_vm13, %v1107_v48, 0.0 }
 0x505   :  { %v1136_v53 = vcombine.high %v1134_v52, %v1134_v52  ;;  %v1143_v54 = vrot.slane %v1134_v52, %v8966_v28  ;;  %7583 = vmatmul.mubr.msk.f32.vlgmr.msra.gmra.mxu1 %vm70_vm0, %v9102_v50 }
 0x506   :  { %7586 = vmatpush3.msra.mxu1 %v9108_v55  ;;  %7593 = vmatprep.mubr.msk.f32.mxu1 %vm8678_vm1, %v8677_v0 }
 0x507   :  { %v1150_v56 = vrot.slane %v1136_v53, %v8966_v28  ;;  %v1151_v57 = vcombine.high %v1143_v54, %v1143_v54  ;;  %v1159_v30 = vrot.slane %v1143_v54, %v8966_v28  ;;  %7587 = vmatprep.subr.mxu1 %v8677_v0  ;;  %v1397_v52 = vpop.permute.xlu1 %1396 }
 0x508   :  { %7588 = vmatpush3.msra.mxu1 %v9116_v60 }
 0x509   :  { %v1152_v61 = vcombine.high %v1150_v56, %v1150_v56  ;;  %v1166_v62 = vrot.slane %v1150_v56, %v8966_v28  ;;  %v1173_v63 = vrot.slane %v1151_v57, %v8966_v28  ;;  %v1181_v59 = vcombine.high %v1159_v30, %v1159_v30  ;;  %1193 = vst.msk [vmem:[#allocation11 + $0x1] sm:$0x1] %vm754_vm11, %v1159_v30  ;;  %v1399_v57 = vpop.permute.xlu0 %1398 }
 0x50a   :  { %7589 = vmatprep.subr.mxu1 %v8677_v0 }
 0x50b   :  { %7590 = vmatpush3.msra.mxu1 %v9123_v3  ;;  %v1180_v1 = vrot.slane %v1152_v61, %v8966_v28  ;;  %v1182_v15 = vcombine.high %v1166_v62, %v1166_v62  ;;  %v1183_v2 = vcombine.high %v1173_v63, %v1173_v63  ;;  %1194 = vst.msk [vmem:[#allocation11 + $0x11] sm:$0x1] %vm754_vm11, %v1173_v63  ;;  %1195 = vst.msk [vmem:[#allocation11 + $0x21] sm:$0x1] %vm754_vm11, %v1181_v59 }
 0x50c   :  { %1197 = vst.msk [vmem:[#allocation11 + $0x41] sm:$0x1] %vm754_vm11, %v1166_v62  ;;  %7591 = vmatprep.subr.mxu1 %v8677_v0 }
 0x50d   :  { %7592 = vmatpush3.msra.mxu1 %v9131_v4  ;;  %v1184_v40 = vcombine.high %v1180_v1, %v1180_v1  ;;  %1196 = vst.msk [vmem:[#allocation11 + $0x31] sm:$0x1] %vm754_vm11, %v1183_v2  ;;  %1198 = vst.msk [vmem:[#allocation11 + $0x51] sm:$0x1] %vm754_vm11, %v1180_v1 }
 0x50e   :  { %1199 = vst.msk [vmem:[#allocation11 + $0x61] sm:$0x1] %vm754_vm11, %v1182_v15  ;;  %7607 = vmatprep.subr.mxu1 %v8677_v0 }
 0x50f   :  { %1200 = vst.msk [vmem:[#allocation11 + $0x71] sm:$0x1] %vm754_vm11, %v1184_v40 }
 0x5c5   :  { %v1278_v7 = vpop.f32.mrf.mxu1 }
 0x5c6   :  { %v1283_v11 = vrot.slane %v1278_v7, 1  ;;  %v1284_v21 = vrot.slane %v1278_v7, 2  ;;  %v1285_v14 = vrot.slane %v1278_v7, 3  ;;  %v1286_v16 = vrot.slane %v1278_v7, 4 }
 0x5c7   :  { %v1288_v32 = vrot.slane %v1278_v7, 6  ;;  %v1298_v18 = vadd.f32 %v1278_v7, %v1201_v9  ;;  %v7584_v13 = vpop.f32.mrf.mxu1  ;;  %v1289_v20 = vrot.slane %v1278_v7, 7  ;;  %v1287_v10 = vrot.slane %v1278_v7, 5  ;;  %v1395_v7 = vpop.permute.xlu1 %1394 }
 0x5c8   :  { %v1299_v22 = vadd.f32 %v1283_v11, %v1202_v41  ;;  %v1300_v23 = vadd.f32 %v1284_v21, %v1203_v17  ;;  %v1301_v25 = vadd.f32 %v1285_v14, %v1204_v19  ;;  %v1302_v6 = vadd.f32 %v1286_v16, %v1205_v24  ;;  %v1401_v16 = vpop.permute.xlu0 %1400 }
 0x5c9   :  { %7841 = vtanh.f32 %v1298_v18  ;;  %v1304_v31 = vadd.f32 %v1288_v32, %v1207_v27  ;;  %v1305_v33 = vadd.f32 %v1289_v20, %v1208_v29  ;;  %v1306_v36 = vmul.f32 0.5, %v1298_v18 }
 0x5ca   :  { %7843 = vtanh.f32 %v1300_v23  ;;  %v1309_v44 = vmul.f32 0.5, %v1301_v25  ;;  %v1303_v51 = vadd.f32 %v1287_v10, %v1206_v39  ;;  %v1307_v38 = vmul.f32 0.5, %v1299_v22 }
 0x5cb   :  { %7845 = vtanh.f32 %v1299_v22  ;;  %v1310_v12 = vmul.f32 0.5, %v1302_v6  ;;  %v1308_v42 = vmul.f32 0.5, %v1300_v23  ;;  %v1312_v45 = vmul.f32 0.5, %v1304_v31  ;;  %v1403_v22 = vpop.permute.xlu1 %1402 }
 0x5cc   :  { %7847 = vtanh.f32 %v1301_v25  ;;  %v1311_v43 = vmul.f32 0.5, %v1303_v51  ;;  %v1313_v37 = vmul.f32 0.5, %v1305_v33  ;;  %v1405_v27 = vpop.permute.xlu0 %1404 }
 0x5cd   :  { %7849 = vtanh.f32 %v1302_v6 }
 0x5ce   :  { %7851 = vtanh.f32 %v1304_v31 }
 0x5cf   :  { %7853 = vtanh.f32 %v1305_v33  ;;  %v1407_v33 = vpop.permute.xlu1 %1406 }
 0x5d0   :  { %7855 = vtanh.f32 %v1306_v36  ;;  %v1409_v39 = vpop.permute.xlu0 %1408 }
 0x5d1   :  { %7857 = vtanh.f32 %v1309_v44 }
 0x5d2   :  { %7859 = vtanh.f32 %v1307_v38 }
 0x5d3   :  { %7861 = vtanh.f32 %v1310_v12 }
 0x5d4   :  { %7863 = vtanh.f32 %v1308_v42 }
 0x5d5   :  { %7865 = vtanh.f32 %v1303_v51 }
 0x5d6   :  { %v7842_v5 = vpop.eup %7841  ;;  %7867 = vtanh.f32 %v1311_v43 }
 0x5d7   :  { %1354 = vrot.lane.b32.xlu1 %v7842_v5, %s8680_s4  ;;  %v7844_v49 = vpop.eup %7843  ;;  %7869 = vtanh.f32 %v1312_v45 }
 0x5d8   :  { %v7846_v34 = vpop.eup %7845  ;;  %1358 = vrot.lane.b32.xlu0 %v7844_v49, %s8680_s4  ;;  %7871 = vtanh.f32 %v1313_v37 }
 0x5d9   :  { %v7848_v46 = vpop.eup %7847 }
 0x5da   :  { %v7850_v26 = vpop.eup %7849 }
 0x5db   :  { %1356 = vrot.lane.b32.xlu1 %v7846_v34, %s8680_s4  ;;  %v7852_v8 = vpop.eup %7851 }
 0x5dc   :  { %v7854_v47 = vpop.eup %7853  ;;  %1360 = vrot.lane.b32.xlu0 %v7848_v46, %s8680_s4 }
 0x5dd   :  { %v7856_v48 = vpop.eup %7855 }
 0x5de   :  { %v7858_v53 = vpop.eup %7857  ;;  %v1322_v54 = vmul.f32 0.5, %v7856_v48 }
 0x5df   :  { %1366 = vrot.lane.b32.xlu1 %v7852_v8, %s8680_s4  ;;  %v7860_v56 = vpop.eup %7859  ;;  %v1325_v30 = vmul.f32 0.5, %v7858_v53 }
 0x5e0   :  { %v7862_v61 = vpop.eup %7861  ;;  %1362 = vrot.lane.b32.xlu0 %v7850_v26, %s8680_s4  ;;  %v9145_v62 = vadd.f32 0.5, %v1322_v54  ;;  %v1323_v63 = vmul.f32 0.5, %v7860_v56 }
 0x5e1   :  { %v7864_v59 = vpop.eup %7863  ;;  %v9148_v15 = vadd.f32 0.5, %v1325_v30  ;;  %v1326_v2 = vmul.f32 0.5, %v7862_v61 }
 0x5e2   :  { %v7866_v1 = vpop.eup %7865  ;;  %v1418_v9 = vmul.f32 %v1395_v7, %v9145_v62  ;;  %v9152_v11 = vadd.f32 0.5, %v1323_v63  ;;  %v1324_v21 = vmul.f32 0.5, %v7864_v59 }
 0x5e3   :  { %1368 = vrot.lane.b32.xlu1 %v7854_v47, %s8680_s4  ;;  %v7868_v40 = vpop.eup %7867  ;;  %v1421_v41 = vmul.f32 %v1401_v16, %v9148_v15  ;;  %v9156_v17 = vadd.f32 0.5, %v1326_v2 }
 0x5e4   :  { %1364 = vrot.lane.b32.xlu0 %v7866_v1, %s8680_s4  ;;  %v7870_v14 = vpop.eup %7869  ;;  %v1327_v32 = vmul.f32 0.5, %v7868_v40  ;;  %v1419_v13 = vmul.f32 %v1397_v52, %v9152_v11  ;;  %v9160_v19 = vadd.f32 0.5, %v1324_v21 }
 0x5e5   :  { %v7872_v18 = vpop.eup %7871  ;;  %v1328_v20 = vmul.f32 0.5, %v7870_v14  ;;  %v1422_v23 = vmul.f32 %v1403_v22, %v9156_v17 }
 0x5e6   :  { %v9164_v24 = vadd.f32 0.5, %v1327_v32  ;;  %v1329_v25 = vmul.f32 0.5, %v7872_v18  ;;  %v1420_v6 = vmul.f32 %v1399_v57, %v9160_v19 }
 0x5e7   :  { %1434 = vrot.lane.b32.xlu1 %v1418_v9, %s8681_s18  ;;  %v9168_v29 = vadd.f32 0.5, %v1328_v20 }
 0x5e8   :  { %1440 = vrot.lane.b32.xlu0 %v1421_v41, %s8681_s18  ;;  %v1423_v10 = vmul.f32 %v1405_v27, %v9164_v24  ;;  %v9172_v31 = vadd.f32 0.5, %v1329_v25 }
 0x5e9   :  { %v1424_v36 = vmul.f32 %v1407_v33, %v9168_v29 }
 0x5ea   :  { %v1425_v44 = vmul.f32 %v1409_v39, %v9172_v31 }
 0x5eb   :  { %1436 = vrot.lane.b32.xlu1 %v1419_v13, %s8681_s18 }
 0x5ec   :  { %1442 = vrot.lane.b32.xlu0 %v1422_v23, %s8681_s18 }
 0x5ef   :  { %1438 = vrot.lane.b32.xlu1 %v1420_v6, %s8681_s18 }
 0x5f0   :  { %1444 = vrot.lane.b32.xlu0 %v1423_v10, %s8681_s18 }
 0x5f3   :  { %1446 = vrot.lane.b32.xlu1 %v1424_v36, %s8681_s18 }
 0x5f4   :  { %1448 = vrot.lane.b32.xlu0 %v1425_v44, %s8681_s18 }
 0x649   :  { %v1355_v51 = vpop.permute.xlu1 %1354 }
 0x64a   :  { %v1359_v38 = vpop.permute.xlu0 %1358  ;;  %v1378_v49 = vmul.f32 %v1355_v51, %v9145_v62 }
 0x64b   :  { %v1380_v56 = vmul.f32 %v1359_v38, %v9160_v19 }
 0x64d   :  { %v1357_v12 = vpop.permute.xlu1 %1356 }
 0x64e   :  { %v1361_v42 = vpop.permute.xlu0 %1360  ;;  %v1379_v8 = vmul.f32 %v1357_v12, %v9152_v11 }
 0x64f   :  { %v1381_v53 = vmul.f32 %v1361_v42, %v9148_v15 }
 0x651   :  { %v1367_v43 = vpop.permute.xlu1 %1366 }
 0x652   :  { %v1363_v45 = vpop.permute.xlu0 %1362  ;;  %v1384_v7 = vmul.f32 %v1367_v43, %v9168_v29  ;;  %v9201_v43 = vld [vmem:[%s11021_s0] sm:$0xff] }
 0x653   :  { %v1382_v48 = vmul.f32 %v1363_v45, %v9156_v17  ;;  %vm1516_vm14 = vcmp.gt.s32.totalorder %v9201_v43, 2  ;;  %vm1954_vm9 = vcmp.gt.s32.totalorder %v9201_v43, 3 }
 0x655   :  { %v1369_v5 = vpop.permute.xlu1 %1368 }
 0x656   :  { %v1365_v37 = vpop.permute.xlu0 %1364  ;;  %v1385_v14 = vmul.f32 %v1369_v5, %v9172_v31  ;;  %v1517_v5 = vsel %vm1516_vm14, 1, %v8682_v35 }
 0x657   :  { %v1383_v59 = vmul.f32 %v1365_v37, %v9164_v24 }
 0x659   :  { %v1435_v34 = vpop.permute.xlu1 %1434 }
 0x65a   :  { %v1458_v46 = vadd.f32 %v1435_v34, %v1378_v49  ;;  %v1441_v26 = vpop.permute.xlu0 %1440 }
 0x65b   :  { %v1461_v61 = vadd.f32 %v1441_v26, %v1381_v53 }
 0x65c   :  { %7873 = vtanh.f32 %v1458_v46 }
 0x65d   :  { %v1437_v47 = vpop.permute.xlu1 %1436  ;;  %v1560_v16 = vrot.slane %v1461_v61, 5 }
 0x65e   :  { %v1459_v52 = vadd.f32 %v1437_v47, %v1379_v8  ;;  %v1443_v54 = vpop.permute.xlu0 %1442 }
 0x65f   :  { %v1462_v30 = vadd.f32 %v1443_v54, %v1382_v48 }
 0x660   :  { %7875 = vtanh.f32 %v1459_v52  ;;  %v1556_v57 = vrot.slane %v1459_v52, 7 }
 0x661   :  { %v1439_v63 = vpop.permute.xlu1 %1438  ;;  %7877 = vtanh.f32 %v1462_v30  ;;  %v1562_v32 = vrot.slane %v1462_v30, 4 }
 0x662   :  { %v1557_v1 = vsel %vm647_vm2, %v1556_v57, %v1458_v46  ;;  %v1460_v2 = vadd.f32 %v1439_v63, %v1380_v56  ;;  %v1445_v40 = vpop.permute.xlu0 %1444 }
 0x663   :  { %v1463_v21 = vadd.f32 %v1445_v40, %v1383_v59 }
 0x664   :  { %7879 = vtanh.f32 %v1460_v2  ;;  %v1558_v9 = vrot.slane %v1460_v2, 6 }
 0x665   :  { %v1447_v41 = vpop.permute.xlu1 %1446  ;;  %v1564_v13 = vrot.slane %v1463_v21, 3  ;;  %7881 = vtanh.f32 %v1461_v61 }
 0x666   :  { %v1559_v18 = vsel %vm650_vm3, %v1558_v9, %v1557_v1  ;;  %v1464_v20 = vadd.f32 %v1447_v41, %v1384_v7  ;;  %v1449_v23 = vpop.permute.xlu0 %1448 }
 0x667   :  { %v1561_v22 = vsel %vm653_vm4, %v1560_v16, %v1559_v18  ;;  %v1465_v6 = vadd.f32 %v1449_v23, %v1385_v14 }
 0x668   :  { %v1563_v25 = vsel %vm656_vm5, %v1562_v32, %v1561_v22  ;;  %7883 = vtanh.f32 %v1464_v20  ;;  %v1566_v27 = vrot.slane %v1464_v20, 2 }
 0x669   :  { %v7874_v10 = vpop.eup %7873  ;;  %v1565_v33 = vsel %vm659_vm6, %v1564_v13, %v1563_v25  ;;  %v1568_v39 = vrot.slane %v1465_v6, 1  ;;  %7885 = vtanh.f32 %v1463_v21 }
 0x66a   :  { %v1567_v36 = vsel %vm662_vm7, %v1566_v27, %v1565_v33  ;;  %1482 = vrot.lane.b32.xlu1 %v7874_v10, %s8681_s18  ;;  %7887 = vtanh.f32 %v1465_v6 }
 0x66b   :  { %v1569_v44 = vsel %vm665_vm8, %v1568_v39, %v1567_v36 }
 0x66d   :  { %v7876_v51 = vpop.eup %7875 }
 0x66e   :  { %1484 = vrot.lane.b32.xlu1 %v7876_v51, %s8681_s18  ;;  %v7878_v38 = vpop.eup %7877 }
 0x671   :  { %v7880_v12 = vpop.eup %7879 }
 0x672   :  { %1486 = vrot.lane.b32.xlu0 %v7880_v12, %s8681_s18  ;;  %1490 = vrot.lane.b32.xlu1 %v7878_v38, %s8681_s18  ;;  %v7882_v42 = vpop.eup %7881 }
 0x675   :  { %v7884_v45 = vpop.eup %7883 }
 0x676   :  { %1488 = vrot.lane.b32.xlu0 %v7882_v42, %s8681_s18  ;;  %1494 = vrot.lane.b32.xlu1 %v7884_v45, %s8681_s18  ;;  %v7886_v37 = vpop.eup %7885 }
 0x677   :  { %v7888_v49 = vpop.eup %7887 }
 0x67a   :  { %1492 = vrot.lane.b32.xlu0 %v7886_v37, %s8681_s18  ;;  %1519 = vperm.xlu1 %7744, %v1517_v5   ;;  %v1639_v5 = vld [vmem:[#allocation2 + $0x3] sm:$0x1] }
 0x67e   :  { %1496 = vrot.lane.b32.xlu0 %v7888_v49, %s8681_s18 }
 0x6dc   :  { %v1483_v34 = vpop.permute.xlu1 %1482 }
 0x6dd   :  { %v1506_v56 = vmul.f32 %v1483_v34, %v9145_v62 }
 0x6e0   :  { %v1485_v46 = vpop.permute.xlu1 %1484 }
 0x6e1   :  { %v1507_v26 = vmul.f32 %v1485_v46, %v9152_v11 }
 0x6e3   :  { %v1530_v52 = vrot.slane %v1507_v26, 7  ;;  %v1640_v26 = vld [vmem:[#allocation2 + $0x13] sm:$0x1] }
 0x6e4   :  { %v1487_v8 = vpop.permute.xlu0 %1486  ;;  %v1491_v48 = vpop.permute.xlu1 %1490 }
 0x6e5   :  { %v1508_v47 = vmul.f32 %v1487_v8, %v9160_v19  ;;  %v1510_v30 = vmul.f32 %v1491_v48, %v9156_v17  ;;  %v1531_v61 = vsel %vm647_vm2, %v1530_v52, %v1506_v56  ;;  %v1641_v8 = vld [vmem:[#allocation2 + $0x23] sm:$0x1]  ;;  %v1642_v52 = vld [vmem:[#allocation2 + $0x33] sm:$0x1] }
 0x6e7   :  { %v1532_v53 = vrot.slane %v1508_v47, 6  ;;  %v1536_v40 = vrot.slane %v1510_v30, 4 }
 0x6e8   :  { %v1489_v54 = vpop.permute.xlu0 %1488  ;;  %v1495_v59 = vpop.permute.xlu1 %1494 }
 0x6e9   :  { %v1509_v57 = vmul.f32 %v1489_v54, %v9148_v15  ;;  %v1533_v1 = vsel %vm650_vm3, %v1532_v53, %v1531_v61  ;;  %v1512_v7 = vmul.f32 %v1495_v59, %v9168_v29  ;;  %v1645_v61 = vld [vmem:[#allocation2 + $0x63] sm:$0x1]  ;;  %v1646_v59 = vld [vmem:[#allocation2 + $0x73] sm:$0x1] }
 0x6eb   :  { %v1534_v63 = vrot.slane %v1509_v57, 5  ;;  %v1540_v14 = vrot.slane %v1512_v7, 2  ;;  %v1643_v57 = vld [vmem:[#allocation2 + $0x43] sm:$0x1] }
 0x6ec   :  { %v1493_v11 = vpop.permute.xlu0 %1492 }
 0x6ed   :  { %v1535_v2 = vsel %vm653_vm4, %v1534_v63, %v1533_v1  ;;  %v1511_v19 = vmul.f32 %v1493_v11, %v9164_v24 }
 0x6ee   :  { %v1537_v62 = vsel %vm656_vm5, %v1536_v40, %v1535_v2  ;;  %v1644_v40 = vld [vmem:[#allocation2 + $0x53] sm:$0x1] }
 0x6ef   :  { %v1538_v9 = vrot.slane %v1511_v19, 3 }
 0x6f0   :  { %v1497_v15 = vpop.permute.xlu0 %1496 }
 0x6f1   :  { %v1539_v17 = vsel %vm659_vm6, %v1538_v9, %v1537_v62  ;;  %v1513_v21 = vmul.f32 %v1497_v15, %v9172_v31 }
 0x6f2   :  { %v1541_v41 = vsel %vm662_vm7, %v1540_v14, %v1539_v17 }
 0x6f3   :  { %v1542_v16 = vrot.slane %v1513_v21, 1 }
 0x6f5   :  { %v1520_v32 = vpop.permute.xlu1 %1519  ;;  %v1543_v18 = vsel %vm665_vm8, %v1542_v16, %v1541_v41 }
 0x6f6   :  { %vm1521_vm15 = vcmp.eq.s32.totalorder %v1520_v32, 1  ;;  %1544 = vrot.lane.b32.xlu0 %v1543_v18, %s8679_s1 }
 0x6f7   :  { %v9227_v24 = vsel %vm1521_vm15, %v1569_v44, %v9082_v58 }
 0x6f8   :  { %v1826_v29 = vrot.slane %v9227_v24, 2  ;;  %v1825_v13 = vrot.slane %v9227_v24, 1  ;;  %v1827_v31 = vrot.slane %v9227_v24, 3  ;;  %v1829_v20 = vrot.slane %v9227_v24, 5 }
 0x6f9   :  { %v1828_v58 = vrot.slane %v9227_v24, 4  ;;  %v1831_v22 = vrot.slane %v9227_v24, 7  ;;  %v1830_v23 = vrot.slane %v9227_v24, 6 }
 0x6fa   :  { %1836 = vrot.lane.b32.xlu0 %v1826_v29, %s8679_s1  ;;  %1834 = vrot.lane.b32.xlu1 %v1825_v13, %s8679_s1 }
 0x6fe   :  { %1838 = vrot.lane.b32.xlu0 %v1827_v31, %s8679_s1  ;;  %1832 = vrot.lane.b32.xlu1 %v9227_v24, %s8679_s1 }
 0x702   :  { %1842 = vrot.lane.b32.xlu0 %v1829_v20, %s8679_s1  ;;  %1840 = vrot.lane.b32.xlu1 %v1828_v58, %s8679_s1 }
 0x706   :  { %1846 = vrot.lane.b32.xlu0 %v1831_v22, %s8679_s1  ;;  %1844 = vrot.lane.b32.xlu1 %v1830_v23, %s8679_s1 }
 0x768   :  { %v1545_v25 = vpop.permute.xlu0 %1544 }
 0x769   :  { %v9247_v27 = vsel %vm1521_vm15, %v1545_v25, %v9102_v50  ;;  %v1572_v6 = vsel %vm1521_vm15, %v1545_v25, 0.0 }
 0x76a   :  { %v1574_v10 = vcombine.high %v1572_v6, %v1572_v6  ;;  %v1581_v33 = vrot.slane %v1572_v6, %v8966_v28  ;;  %7594 = vmatmul.mubr.msk.f32.vlgmr.msra.gmra.mxu1 %vm70_vm0, %v9247_v27 }
 0x76b   :  { %7608 = vmatpush3.msra.mxu1 %v9108_v55  ;;  %7615 = vmatprep.mubr.msk.f32.mxu1 %vm8678_vm1, %v8677_v0 }
 0x76c   :  { %v1588_v36 = vrot.slane %v1574_v10, %v8966_v28  ;;  %v1589_v39 = vcombine.high %v1581_v33, %v1581_v33  ;;  %v1597_v44 = vrot.slane %v1581_v33, %v8966_v28  ;;  %7609 = vmatprep.subr.mxu1 %v8677_v0  ;;  %v1835_v22 = vpop.permute.xlu1 %1834  ;;  %v1837_v10 = vpop.permute.xlu0 %1836 }
 0x76d   :  { %7610 = vmatpush3.msra.mxu1 %v9116_v60 }
 0x76e   :  { %v1590_v50 = vcombine.high %v1588_v36, %v1588_v36  ;;  %v1604_v51 = vrot.slane %v1588_v36, %v8966_v28  ;;  %v1611_v38 = vrot.slane %v1589_v39, %v8966_v28  ;;  %v1619_v12 = vcombine.high %v1597_v44, %v1597_v44  ;;  %1631 = vst.msk [vmem:[#allocation11 + $0x2] sm:$0x1] %vm754_vm11, %v1597_v44 }
 0x76f   :  { %7611 = vmatprep.subr.mxu1 %v8677_v0 }
 0x770   :  { %7612 = vmatpush3.msra.mxu1 %v9123_v3  ;;  %v1618_v55 = vrot.slane %v1590_v50, %v8966_v28  ;;  %v1620_v42 = vcombine.high %v1604_v51, %v1604_v51  ;;  %v1621_v45 = vcombine.high %v1611_v38, %v1611_v38  ;;  %1632 = vst.msk [vmem:[#allocation11 + $0x12] sm:$0x1] %vm754_vm11, %v1611_v38  ;;  %1633 = vst.msk [vmem:[#allocation11 + $0x22] sm:$0x1] %vm754_vm11, %v1619_v12 }
 0x771   :  { %1635 = vst.msk [vmem:[#allocation11 + $0x42] sm:$0x1] %vm754_vm11, %v1604_v51  ;;  %7613 = vmatprep.subr.mxu1 %v8677_v0 }
 0x772   :  { %7614 = vmatpush3.msra.mxu1 %v9131_v4  ;;  %v1622_v60 = vcombine.high %v1618_v55, %v1618_v55  ;;  %1634 = vst.msk [vmem:[#allocation11 + $0x32] sm:$0x1] %vm754_vm11, %v1621_v45  ;;  %1636 = vst.msk [vmem:[#allocation11 + $0x52] sm:$0x1] %vm754_vm11, %v1618_v55 }
 0x773   :  { %1637 = vst.msk [vmem:[#allocation11 + $0x62] sm:$0x1] %vm754_vm11, %v1620_v42  ;;  %7629 = vmatprep.subr.mxu1 %v8677_v0  ;;  %v1833_v42 = vpop.permute.xlu1 %1832 }
 0x774   :  { %1638 = vst.msk [vmem:[#allocation11 + $0x72] sm:$0x1] %vm754_vm11, %v1622_v60 }
 0x82a   :  { %v1716_v3 = vpop.f32.mrf.mxu1 }
 0x82b   :  { %v1721_v37 = vrot.slane %v1716_v3, 1  ;;  %v1722_v49 = vrot.slane %v1716_v3, 2  ;;  %v1723_v34 = vrot.slane %v1716_v3, 3  ;;  %v1724_v46 = vrot.slane %v1716_v3, 4 }
 0x82c   :  { %v1726_v4 = vrot.slane %v1716_v3, 6  ;;  %v1736_v47 = vadd.f32 %v1716_v3, %v1639_v5  ;;  %v7595_v48 = vpop.f32.mrf.mxu1  ;;  %v1727_v53 = vrot.slane %v1716_v3, 7  ;;  %v1725_v1 = vrot.slane %v1716_v3, 5 }
 0x82d   :  { %v1737_v54 = vadd.f32 %v1721_v37, %v1640_v26  ;;  %v1738_v56 = vadd.f32 %v1722_v49, %v1641_v8  ;;  %v1739_v30 = vadd.f32 %v1723_v34, %v1642_v52  ;;  %v1740_v63 = vadd.f32 %v1724_v46, %v1643_v57  ;;  %v1839_v37 = vpop.permute.xlu0 %1838  ;;  %v1841_v48 = vpop.permute.xlu1 %1840 }
 0x82e   :  { %7889 = vtanh.f32 %v1736_v47  ;;  %v1742_v11 = vadd.f32 %v1726_v4, %v1645_v61  ;;  %v1743_v2 = vadd.f32 %v1727_v53, %v1646_v59  ;;  %v1744_v19 = vmul.f32 0.5, %v1736_v47 }
 0x82f   :  { %7891 = vtanh.f32 %v1738_v56  ;;  %v1747_v7 = vmul.f32 0.5, %v1739_v30  ;;  %v1741_v9 = vadd.f32 %v1725_v1, %v1644_v40  ;;  %v1745_v62 = vmul.f32 0.5, %v1737_v54 }
 0x830   :  { %7893 = vtanh.f32 %v1737_v54  ;;  %v1748_v15 = vmul.f32 0.5, %v1740_v63  ;;  %v1746_v17 = vmul.f32 0.5, %v1738_v56  ;;  %v1750_v14 = vmul.f32 0.5, %v1742_v11 }
 0x831   :  { %7895 = vtanh.f32 %v1739_v30  ;;  %v1749_v21 = vmul.f32 0.5, %v1741_v9  ;;  %v1751_v41 = vmul.f32 0.5, %v1743_v2  ;;  %v1843_v56 = vpop.permute.xlu0 %1842  ;;  %v1845_v59 = vpop.permute.xlu1 %1844 }
 0x832   :  { %7897 = vtanh.f32 %v1740_v63 }
 0x833   :  { %7899 = vtanh.f32 %v1742_v11 }
 0x834   :  { %7901 = vtanh.f32 %v1743_v2 }
 0x835   :  { %7903 = vtanh.f32 %v1744_v19  ;;  %v1847_v11 = vpop.permute.xlu0 %1846 }
 0x836   :  { %7905 = vtanh.f32 %v1747_v7 }
 0x837   :  { %7907 = vtanh.f32 %v1745_v62 }
 0x838   :  { %7909 = vtanh.f32 %v1748_v15 }
 0x839   :  { %7911 = vtanh.f32 %v1746_v17 }
 0x83a   :  { %7913 = vtanh.f32 %v1741_v9 }
 0x83b   :  { %v7890_v16 = vpop.eup %7889  ;;  %7915 = vtanh.f32 %v1749_v21 }
 0x83c   :  { %1792 = vrot.lane.b32.xlu1 %v7890_v16, %s8680_s4  ;;  %v7892_v32 = vpop.eup %7891  ;;  %7917 = vtanh.f32 %v1750_v14 }
 0x83d   :  { %v7894_v18 = vpop.eup %7893  ;;  %1796 = vrot.lane.b32.xlu0 %v7892_v32, %s8680_s4  ;;  %7919 = vtanh.f32 %v1751_v41 }
 0x83e   :  { %v7896_v29 = vpop.eup %7895 }
 0x83f   :  { %v7898_v13 = vpop.eup %7897 }
 0x840   :  { %1794 = vrot.lane.b32.xlu1 %v7894_v18, %s8680_s4  ;;  %v7900_v31 = vpop.eup %7899 }
 0x841   :  { %v7902_v20 = vpop.eup %7901  ;;  %1798 = vrot.lane.b32.xlu0 %v7896_v29, %s8680_s4 }
 0x842   :  { %v7904_v58 = vpop.eup %7903 }
 0x843   :  { %v7906_v23 = vpop.eup %7905  ;;  %v1760_v25 = vmul.f32 0.5, %v7904_v58 }
 0x844   :  { %1804 = vrot.lane.b32.xlu1 %v7900_v31, %s8680_s4  ;;  %v7908_v6 = vpop.eup %7907  ;;  %v1763_v33 = vmul.f32 0.5, %v7906_v23 }
 0x845   :  { %v7910_v36 = vpop.eup %7909  ;;  %1800 = vrot.lane.b32.xlu0 %v7898_v13, %s8680_s4  ;;  %v9282_v39 = vadd.f32 0.5, %v1760_v25  ;;  %v1761_v44 = vmul.f32 0.5, %v7908_v6 }
 0x846   :  { %v7912_v50 = vpop.eup %7911  ;;  %v9285_v38 = vadd.f32 0.5, %v1763_v33  ;;  %v1764_v12 = vmul.f32 0.5, %v7910_v36 }
 0x847   :  { %v7914_v51 = vpop.eup %7913  ;;  %v1856_v45 = vmul.f32 %v1833_v42, %v9282_v39  ;;  %v9289_v60 = vadd.f32 0.5, %v1761_v44  ;;  %v1762_v3 = vmul.f32 0.5, %v7912_v50 }
 0x848   :  { %1806 = vrot.lane.b32.xlu1 %v7902_v20, %s8680_s4  ;;  %v7916_v55 = vpop.eup %7915  ;;  %v1859_v49 = vmul.f32 %v1839_v37, %v9285_v38  ;;  %v9293_v34 = vadd.f32 0.5, %v1764_v12 }
 0x849   :  { %1802 = vrot.lane.b32.xlu0 %v7914_v51, %s8680_s4  ;;  %v7918_v5 = vpop.eup %7917  ;;  %v1765_v46 = vmul.f32 0.5, %v7916_v55  ;;  %v1857_v8 = vmul.f32 %v1835_v22, %v9289_v60  ;;  %v9297_v4 = vadd.f32 0.5, %v1762_v3 }
 0x84a   :  { %v7920_v26 = vpop.eup %7919  ;;  %v1766_v47 = vmul.f32 0.5, %v7918_v5  ;;  %v1860_v52 = vmul.f32 %v1841_v48, %v9293_v34 }
 0x84b   :  { %v9301_v53 = vadd.f32 0.5, %v1765_v46  ;;  %v1767_v54 = vmul.f32 0.5, %v7920_v26  ;;  %v1858_v57 = vmul.f32 %v1837_v10, %v9297_v4 }
 0x84c   :  { %1872 = vrot.lane.b32.xlu1 %v1856_v45, %s8681_s18  ;;  %v9305_v30 = vadd.f32 0.5, %v1766_v47 }
 0x84d   :  { %1878 = vrot.lane.b32.xlu0 %v1859_v49, %s8681_s18  ;;  %v1861_v61 = vmul.f32 %v1843_v56, %v9301_v53  ;;  %v9309_v63 = vadd.f32 0.5, %v1767_v54 }
 0x84e   :  { %v1862_v1 = vmul.f32 %v1845_v59, %v9305_v30 }
 0x84f   :  { %v1863_v2 = vmul.f32 %v1847_v11, %v9309_v63 }
 0x850   :  { %1874 = vrot.lane.b32.xlu1 %v1857_v8, %s8681_s18 }
 0x851   :  { %1880 = vrot.lane.b32.xlu0 %v1860_v52, %s8681_s18 }
 0x854   :  { %1876 = vrot.lane.b32.xlu1 %v1858_v57, %s8681_s18 }
 0x855   :  { %1882 = vrot.lane.b32.xlu0 %v1861_v61, %s8681_s18 }
 0x858   :  { %1884 = vrot.lane.b32.xlu1 %v1862_v1, %s8681_s18 }
 0x859   :  { %1886 = vrot.lane.b32.xlu0 %v1863_v2, %s8681_s18 }
 0x8ae   :  { %v1793_v19 = vpop.permute.xlu1 %1792 }
 0x8af   :  { %v1797_v40 = vpop.permute.xlu0 %1796  ;;  %v1816_v14 = vmul.f32 %v1793_v19, %v9282_v39 }
 0x8b0   :  { %v1818_v22 = vmul.f32 %v1797_v40, %v9297_v4 }
 0x8b2   :  { %v1795_v7 = vpop.permute.xlu1 %1794 }
 0x8b3   :  { %v1799_v9 = vpop.permute.xlu0 %1798  ;;  %v1817_v18 = vmul.f32 %v1795_v7, %v9289_v60  ;;  %v1955_v7 = vsel %vm1954_vm9, 1, %v8682_v35 }
 0x8b4   :  { %v1819_v20 = vmul.f32 %v1799_v9, %v9285_v38 }
 0x8b6   :  { %v1805_v62 = vpop.permute.xlu1 %1804 }
 0x8b7   :  { %v1801_v15 = vpop.permute.xlu0 %1800  ;;  %v1822_v51 = vmul.f32 %v1805_v62, %v9305_v30 }
 0x8b8   :  { %v1820_v13 = vmul.f32 %v1801_v15, %v9293_v34 }
 0x8ba   :  { %v1807_v17 = vpop.permute.xlu1 %1806 }
 0x8bb   :  { %v1803_v21 = vpop.permute.xlu0 %1802  ;;  %v1823_v42 = vmul.f32 %v1807_v17, %v9309_v63 }
 0x8bc   :  { %v1821_v33 = vmul.f32 %v1803_v21, %v9301_v53 }
 0x8be   :  { %v1873_v16 = vpop.permute.xlu1 %1872 }
 0x8bf   :  { %v1896_v41 = vadd.f32 %v1873_v16, %v1816_v14  ;;  %v1879_v32 = vpop.permute.xlu0 %1878 }
 0x8c0   :  { %v1899_v6 = vadd.f32 %v1879_v32, %v1819_v20 }
 0x8c1   :  { %7921 = vtanh.f32 %v1896_v41 }
 0x8c2   :  { %v1875_v29 = vpop.permute.xlu1 %1874  ;;  %v1998_v45 = vrot.slane %v1899_v6, 5 }
 0x8c3   :  { %v1897_v31 = vadd.f32 %v1875_v29, %v1817_v18  ;;  %v1881_v58 = vpop.permute.xlu0 %1880 }
 0x8c4   :  { %v1900_v25 = vadd.f32 %v1881_v58, %v1820_v13 }
 0x8c5   :  { %7923 = vtanh.f32 %v1897_v31  ;;  %v1994_v23 = vrot.slane %v1897_v31, 7 }
 0x8c6   :  { %v1877_v10 = vpop.permute.xlu1 %1876  ;;  %7925 = vtanh.f32 %v1900_v25  ;;  %v2000_v5 = vrot.slane %v1900_v25, 4 }
 0x8c7   :  { %v1995_v36 = vsel %vm647_vm2, %v1994_v23, %v1896_v41  ;;  %v1898_v44 = vadd.f32 %v1877_v10, %v1818_v22  ;;  %v1883_v50 = vpop.permute.xlu0 %1882 }
 0x8c8   :  { %v1901_v55 = vadd.f32 %v1883_v50, %v1821_v33 }
 0x8c9   :  { %7927 = vtanh.f32 %v1898_v44  ;;  %v1996_v12 = vrot.slane %v1898_v44, 6 }
 0x8ca   :  { %v1885_v3 = vpop.permute.xlu1 %1884  ;;  %v2002_v49 = vrot.slane %v1901_v55, 3  ;;  %7929 = vtanh.f32 %v1899_v6 }
 0x8cb   :  { %v1997_v37 = vsel %vm650_vm3, %v1996_v12, %v1995_v36  ;;  %v1902_v46 = vadd.f32 %v1885_v3, %v1822_v51  ;;  %v1887_v8 = vpop.permute.xlu0 %1886 }
 0x8cc   :  { %v1999_v26 = vsel %vm653_vm4, %v1998_v45, %v1997_v37  ;;  %v1903_v52 = vadd.f32 %v1887_v8, %v1823_v42 }
 0x8cd   :  { %v2001_v47 = vsel %vm656_vm5, %v2000_v5, %v1999_v26  ;;  %7931 = vtanh.f32 %v1902_v46  ;;  %v2004_v48 = vrot.slane %v1902_v46, 2 }
 0x8ce   :  { %v7922_v54 = vpop.eup %7921  ;;  %v2003_v56 = vsel %vm659_vm6, %v2002_v49, %v2001_v47  ;;  %v2006_v61 = vrot.slane %v1903_v52, 1  ;;  %7933 = vtanh.f32 %v1901_v55  ;;  %v9385_v47 = vld [vmem:[#allocation10 + $0x18] sm:$0xff] }
 0x8cf   :  { %v2005_v57 = vsel %vm662_vm7, %v2004_v48, %v2003_v56  ;;  %1920 = vrot.lane.b32.xlu1 %v7922_v54, %s8681_s18  ;;  %7935 = vtanh.f32 %v1903_v52  ;;  %v9393_v54 = vld [vmem:[#allocation10 + $0x10] sm:$0xff] }
 0x8d0   :  { %v2007_v59 = vsel %vm665_vm8, %v2006_v61, %v2005_v57 }
 0x8d2   :  { %v7924_v1 = vpop.eup %7923 }
 0x8d3   :  { %1922 = vrot.lane.b32.xlu1 %v7924_v1, %s8681_s18  ;;  %v7926_v11 = vpop.eup %7925  ;;  %v9400_v1 = vld [vmem:[#allocation10 + $0x8] sm:$0xff] }
 0x8d6   :  { %v7928_v2 = vpop.eup %7927 }
 0x8d7   :  { %1924 = vrot.lane.b32.xlu0 %v7928_v2, %s8681_s18  ;;  %1928 = vrot.lane.b32.xlu1 %v7926_v11, %s8681_s18  ;;  %v7930_v19 = vpop.eup %7929 }
 0x8da   :  { %v7932_v40 = vpop.eup %7931 }
 0x8db   :  { %1926 = vrot.lane.b32.xlu0 %v7930_v19, %s8681_s18  ;;  %1932 = vrot.lane.b32.xlu1 %v7932_v40, %s8681_s18  ;;  %v7934_v9 = vpop.eup %7933  ;;  %v9408_v40 = vld [vmem:[#allocation10] sm:$0xff] }
 0x8dc   :  { %v7936_v62 = vpop.eup %7935 }
 0x8df   :  { %1930 = vrot.lane.b32.xlu0 %v7934_v9, %s8681_s18  ;;  %1957 = vperm.xlu1 %7744, %v1955_v7  }
 0x8e3   :  { %1934 = vrot.lane.b32.xlu0 %v7936_v62, %s8681_s18  ;;  %v2077_v62 = vld [vmem:[#allocation2 + $0x4] sm:$0x1] }
 0x941   :  { %v1921_v15 = vpop.permute.xlu1 %1920 }
 0x942   :  { %v1944_v29 = vmul.f32 %v1921_v15, %v9282_v39 }
 0x945   :  { %v1923_v17 = vpop.permute.xlu1 %1922 }
 0x946   :  { %v1945_v21 = vmul.f32 %v1923_v17, %v9289_v60 }
 0x948   :  { %v1968_v41 = vrot.slane %v1945_v21, 7 }
 0x949   :  { %v1925_v14 = vpop.permute.xlu0 %1924  ;;  %v1929_v16 = vpop.permute.xlu1 %1928 }
 0x94a   :  { %v1946_v43 = vmul.f32 %v1925_v14, %v9297_v4  ;;  %v1948_v31 = vmul.f32 %v1929_v16, %v9293_v34  ;;  %v1969_v20 = vsel %vm647_vm2, %v1968_v41, %v1944_v29  ;;  %v2079_v16 = vld [vmem:[#allocation2 + $0x24] sm:$0x1]  ;;  %v2080_v29 = vld [vmem:[#allocation2 + $0x34] sm:$0x1] }
 0x94c   :  { %v1970_v32 = vrot.slane %v1946_v43, 6  ;;  %v1974_v6 = vrot.slane %v1948_v31, 4  ;;  %v2078_v43 = vld [vmem:[#allocation2 + $0x14] sm:$0x1] }
 0x94d   :  { %v1927_v18 = vpop.permute.xlu0 %1926  ;;  %v1933_v22 = vpop.permute.xlu1 %1932 }
 0x94e   :  { %v1947_v13 = vmul.f32 %v1927_v18, %v9285_v38  ;;  %v1971_v23 = vsel %vm650_vm3, %v1970_v32, %v1969_v20  ;;  %v1950_v10 = vmul.f32 %v1933_v22, %v9305_v30 }
 0x950   :  { %v1972_v58 = vrot.slane %v1947_v13, 5  ;;  %v1978_v44 = vrot.slane %v1950_v10, 2 }
 0x951   :  { %v1931_v60 = vpop.permute.xlu0 %1930 }
 0x952   :  { %v1973_v25 = vsel %vm653_vm4, %v1972_v58, %v1971_v23  ;;  %v1949_v4 = vmul.f32 %v1931_v60, %v9301_v53  ;;  %v2081_v58 = vld [vmem:[#allocation2 + $0x44] sm:$0x1] }
 0x953   :  { %v1975_v39 = vsel %vm656_vm5, %v1974_v6, %v1973_v25  ;;  %v2083_v23 = vld [vmem:[#allocation2 + $0x64] sm:$0x1]  ;;  %v2084_v25 = vld [vmem:[#allocation2 + $0x74] sm:$0x1] }
 0x954   :  { %v1976_v33 = vrot.slane %v1949_v4, 3 }
 0x955   :  { %v1935_v38 = vpop.permute.xlu0 %1934 }
 0x956   :  { %v1977_v34 = vsel %vm659_vm6, %v1976_v33, %v1975_v39  ;;  %v1951_v36 = vmul.f32 %v1935_v38, %v9309_v63  ;;  %v2082_v39 = vld [vmem:[#allocation2 + $0x54] sm:$0x1] }
 0x957   :  { %v1979_v51 = vsel %vm662_vm7, %v1978_v44, %v1977_v34 }
 0x958   :  { %v1980_v50 = vrot.slane %v1951_v36, 1 }
 0x95a   :  { %v1958_v12 = vpop.permute.xlu1 %1957  ;;  %v1981_v55 = vsel %vm665_vm8, %v1980_v50, %v1979_v51 }
 0x95b   :  { %vm1959_vm10 = vcmp.eq.s32.totalorder %v1958_v12, 1  ;;  %1982 = vrot.lane.b32.xlu0 %v1981_v55, %s8679_s1 }
 0x95c   :  { %v9359_v53 = vsel %vm1959_vm10, %v2007_v59, %v9227_v24 }
 0x95d   :  { %v2264_v30 = vrot.slane %v9359_v53, 2  ;;  %v2263_v42 = vrot.slane %v9359_v53, 1  ;;  %v2265_v63 = vrot.slane %v9359_v53, 3  ;;  %v2267_v45 = vrot.slane %v9359_v53, 5 }
 0x95e   :  { %v2266_v24 = vrot.slane %v9359_v53, 4  ;;  %v2269_v3 = vrot.slane %v9359_v53, 7  ;;  %v2268_v5 = vrot.slane %v9359_v53, 6 }
 0x95f   :  { %2274 = vrot.lane.b32.xlu0 %v2264_v30, %s8679_s1  ;;  %2272 = vrot.lane.b32.xlu1 %v2263_v42, %s8679_s1 }
 0x963   :  { %2276 = vrot.lane.b32.xlu0 %v2265_v63, %s8679_s1  ;;  %2270 = vrot.lane.b32.xlu1 %v9359_v53, %s8679_s1 }
 0x967   :  { %2280 = vrot.lane.b32.xlu0 %v2267_v45, %s8679_s1  ;;  %2278 = vrot.lane.b32.xlu1 %v2266_v24, %s8679_s1 }
 0x96b   :  { %2284 = vrot.lane.b32.xlu0 %v2269_v3, %s8679_s1  ;;  %2282 = vrot.lane.b32.xlu1 %v2268_v5, %s8679_s1 }
 0x9cd   :  { %v1983_v37 = vpop.permute.xlu0 %1982 }
 0x9ce   :  { %v9379_v49 = vsel %vm1959_vm10, %v1983_v37, %v9247_v27  ;;  %v2010_v46 = vsel %vm1959_vm10, %v1983_v37, 0.0 }
 0x9cf   :  { %v2012_v26 = vcombine.high %v2010_v46, %v2010_v46  ;;  %v2019_v8 = vrot.slane %v2010_v46, %v8966_v28  ;;  %7605 = vmatmul.mubr.msk.f32.vlgmr.msra.gmra.mxu0 %vm70_vm0, %v9379_v49 }
 0x9d0   :  { %7619 = vmatpush3.msra.mxu0 %v9385_v47  ;;  %7626 = vmatprep.mubr.msk.f32.mxu0 %vm8678_vm1, %v8677_v0 }
 0x9d1   :  { %v2026_v48 = vrot.slane %v2012_v26, %v8966_v28  ;;  %v2027_v52 = vcombine.high %v2019_v8, %v2019_v8  ;;  %v2035_v27 = vrot.slane %v2019_v8, %v8966_v28  ;;  %7620 = vmatprep.subr.mxu0 %v8677_v0  ;;  %v2273_v46 = vpop.permute.xlu1 %2272 }
 0x9d2   :  { %7621 = vmatpush3.msra.mxu0 %v9393_v54 }
 0x9d3   :  { %v2028_v56 = vcombine.high %v2026_v48, %v2026_v48  ;;  %v2042_v57 = vrot.slane %v2026_v48, %v8966_v28  ;;  %v2049_v61 = vrot.slane %v2027_v52, %v8966_v28  ;;  %v2057_v59 = vcombine.high %v2035_v27, %v2035_v27  ;;  %2069 = vst.msk [vmem:[#allocation11 + $0x3] sm:$0x1] %vm754_vm11, %v2035_v27  ;;  %v2275_v52 = vpop.permute.xlu0 %2274 }
 0x9d4   :  { %7622 = vmatprep.subr.mxu0 %v8677_v0 }
 0x9d5   :  { %7623 = vmatpush3.msra.mxu0 %v9400_v1  ;;  %v2056_v11 = vrot.slane %v2028_v56, %v8966_v28  ;;  %v2058_v2 = vcombine.high %v2042_v57, %v2042_v57  ;;  %v2059_v19 = vcombine.high %v2049_v61, %v2049_v61  ;;  %2070 = vst.msk [vmem:[#allocation11 + $0x13] sm:$0x1] %vm754_vm11, %v2049_v61  ;;  %2071 = vst.msk [vmem:[#allocation11 + $0x23] sm:$0x1] %vm754_vm11, %v2057_v59 }
 0x9d6   :  { %2073 = vst.msk [vmem:[#allocation11 + $0x43] sm:$0x1] %vm754_vm11, %v2042_v57  ;;  %7624 = vmatprep.subr.mxu0 %v8677_v0 }
 0x9d7   :  { %7625 = vmatpush3.msra.mxu0 %v9408_v40  ;;  %v2060_v7 = vcombine.high %v2056_v11, %v2056_v11  ;;  %2072 = vst.msk [vmem:[#allocation11 + $0x33] sm:$0x1] %vm754_vm11, %v2059_v19  ;;  %2074 = vst.msk [vmem:[#allocation11 + $0x53] sm:$0x1] %vm754_vm11, %v2056_v11 }
 0x9d8   :  { %2075 = vst.msk [vmem:[#allocation11 + $0x63] sm:$0x1] %vm754_vm11, %v2058_v2  ;;  %7640 = vmatprep.subr.mxu0 %v8677_v0 }
 0x9d9   :  { %2076 = vst.msk [vmem:[#allocation11 + $0x73] sm:$0x1] %vm754_vm11, %v2060_v7 }
 0xa8f   :  { %v2154_v9 = vpop.f32.mrf.mxu0 }
 0xa90   :  { %v2159_v15 = vrot.slane %v2154_v9, 1  ;;  %v2160_v17 = vrot.slane %v2154_v9, 2  ;;  %v2161_v21 = vrot.slane %v2154_v9, 3  ;;  %v2162_v14 = vrot.slane %v2154_v9, 4 }
 0xa91   :  { %v2164_v41 = vrot.slane %v2154_v9, 6  ;;  %v2174_v32 = vadd.f32 %v2154_v9, %v2077_v62  ;;  %v7606_v18 = vpop.f32.mrf.mxu0  ;;  %v2165_v13 = vrot.slane %v2154_v9, 7  ;;  %v2163_v4 = vrot.slane %v2154_v9, 5  ;;  %v2271_v9 = vpop.permute.xlu1 %2270 }
 0xa92   :  { %v2175_v31 = vadd.f32 %v2159_v15, %v2078_v43  ;;  %v2176_v20 = vadd.f32 %v2160_v17, %v2079_v16  ;;  %v2177_v22 = vadd.f32 %v2161_v21, %v2080_v29  ;;  %v2178_v60 = vadd.f32 %v2162_v14, %v2081_v58  ;;  %v2277_v14 = vpop.permute.xlu0 %2276 }
 0xa93   :  { %7937 = vtanh.f32 %v2174_v32  ;;  %v2180_v6 = vadd.f32 %v2164_v41, %v2083_v23  ;;  %v2181_v10 = vadd.f32 %v2165_v13, %v2084_v25  ;;  %v2182_v33 = vmul.f32 0.5, %v2174_v32 }
 0xa94   :  { %7939 = vtanh.f32 %v2176_v20  ;;  %v2185_v38 = vmul.f32 0.5, %v2177_v22  ;;  %v2179_v34 = vadd.f32 %v2163_v4, %v2082_v39  ;;  %v2183_v36 = vmul.f32 0.5, %v2175_v31 }
 0xa95   :  { %7941 = vtanh.f32 %v2175_v31  ;;  %v2186_v44 = vmul.f32 0.5, %v2178_v60  ;;  %v2184_v50 = vmul.f32 0.5, %v2176_v20  ;;  %v2188_v12 = vmul.f32 0.5, %v2180_v6  ;;  %v2279_v31 = vpop.permute.xlu1 %2278 }
 0xa96   :  { %7943 = vtanh.f32 %v2177_v22  ;;  %v2187_v51 = vmul.f32 0.5, %v2179_v34  ;;  %v2189_v30 = vmul.f32 0.5, %v2181_v10  ;;  %v2281_v23 = vpop.permute.xlu0 %2280 }
 0xa97   :  { %7945 = vtanh.f32 %v2178_v60 }
 0xa98   :  { %7947 = vtanh.f32 %v2180_v6 }
 0xa99   :  { %7949 = vtanh.f32 %v2181_v10  ;;  %v2283_v10 = vpop.permute.xlu1 %2282 }
 0xa9a   :  { %7951 = vtanh.f32 %v2182_v33  ;;  %v2285_v39 = vpop.permute.xlu0 %2284 }
 0xa9b   :  { %7953 = vtanh.f32 %v2185_v38 }
 0xa9c   :  { %7955 = vtanh.f32 %v2183_v36 }
 0xa9d   :  { %7957 = vtanh.f32 %v2186_v44 }
 0xa9e   :  { %7959 = vtanh.f32 %v2184_v50 }
 0xa9f   :  { %7961 = vtanh.f32 %v2179_v34 }
 0xaa0   :  { %v7938_v55 = vpop.eup %7937  ;;  %7963 = vtanh.f32 %v2187_v51 }
 0xaa1   :  { %2230 = vrot.lane.b32.xlu1 %v7938_v55, %s8680_s4  ;;  %v7940_v42 = vpop.eup %7939  ;;  %7965 = vtanh.f32 %v2188_v12 }
 0xaa2   :  { %v7942_v63 = vpop.eup %7941  ;;  %2234 = vrot.lane.b32.xlu0 %v7940_v42, %s8680_s4  ;;  %7967 = vtanh.f32 %v2189_v30 }
 0xaa3   :  { %v7944_v45 = vpop.eup %7943 }
 0xaa4   :  { %v7946_v24 = vpop.eup %7945 }
 0xaa5   :  { %2232 = vrot.lane.b32.xlu1 %v7942_v63, %s8680_s4  ;;  %v7948_v3 = vpop.eup %7947 }
 0xaa6   :  { %v7950_v5 = vpop.eup %7949  ;;  %2236 = vrot.lane.b32.xlu0 %v7944_v45, %s8680_s4 }
 0xaa7   :  { %v7952_v37 = vpop.eup %7951 }
 0xaa8   :  { %v7954_v26 = vpop.eup %7953  ;;  %v2198_v8 = vmul.f32 0.5, %v7952_v37 }
 0xaa9   :  { %2242 = vrot.lane.b32.xlu1 %v7948_v3, %s8680_s4  ;;  %v7956_v48 = vpop.eup %7955  ;;  %v2201_v27 = vmul.f32 0.5, %v7954_v26 }
 0xaaa   :  { %v7958_v56 = vpop.eup %7957  ;;  %2238 = vrot.lane.b32.xlu0 %v7946_v24, %s8680_s4  ;;  %v9422_v57 = vadd.f32 0.5, %v2198_v8  ;;  %v2199_v61 = vmul.f32 0.5, %v7956_v48 }
 0xaab   :  { %v7960_v59 = vpop.eup %7959  ;;  %v9425_v2 = vadd.f32 0.5, %v2201_v27  ;;  %v2202_v19 = vmul.f32 0.5, %v7958_v56 }
 0xaac   :  { %v7962_v11 = vpop.eup %7961  ;;  %v2294_v62 = vmul.f32 %v2271_v9, %v9422_v57  ;;  %v9429_v15 = vadd.f32 0.5, %v2199_v61  ;;  %v2200_v17 = vmul.f32 0.5, %v7960_v59 }
 0xaad   :  { %2244 = vrot.lane.b32.xlu1 %v7950_v5, %s8680_s4  ;;  %v7964_v7 = vpop.eup %7963  ;;  %v2297_v43 = vmul.f32 %v2277_v14, %v9425_v2  ;;  %v9433_v16 = vadd.f32 0.5, %v2202_v19 }
 0xaae   :  { %2240 = vrot.lane.b32.xlu0 %v7962_v11, %s8680_s4  ;;  %v7966_v21 = vpop.eup %7965  ;;  %v2203_v41 = vmul.f32 0.5, %v7964_v7  ;;  %v2295_v18 = vmul.f32 %v2273_v46, %v9429_v15  ;;  %v9437_v29 = vadd.f32 0.5, %v2200_v17 }
 0xaaf   :  { %v7968_v32 = vpop.eup %7967  ;;  %v2204_v13 = vmul.f32 0.5, %v7966_v21  ;;  %v2298_v20 = vmul.f32 %v2279_v31, %v9433_v16 }
 0xab0   :  { %v9441_v58 = vadd.f32 0.5, %v2203_v41  ;;  %v2205_v22 = vmul.f32 0.5, %v7968_v32  ;;  %v2296_v60 = vmul.f32 %v2275_v52, %v9437_v29 }
 0xab1   :  { %2310 = vrot.lane.b32.xlu1 %v2294_v62, %s8681_s18  ;;  %v9445_v25 = vadd.f32 0.5, %v2204_v13 }
 0xab2   :  { %2316 = vrot.lane.b32.xlu0 %v2297_v43, %s8681_s18  ;;  %v2299_v4 = vmul.f32 %v2281_v23, %v9441_v58  ;;  %v9449_v6 = vadd.f32 0.5, %v2205_v22 }
 0xab3   :  { %v2300_v33 = vmul.f32 %v2283_v10, %v9445_v25 }
 0xab4   :  { %v2301_v38 = vmul.f32 %v2285_v39, %v9449_v6 }
 0xab5   :  { %2312 = vrot.lane.b32.xlu1 %v2295_v18, %s8681_s18 }
 0xab6   :  { %2318 = vrot.lane.b32.xlu0 %v2298_v20, %s8681_s18 }
 0xab9   :  { %2314 = vrot.lane.b32.xlu1 %v2296_v60, %s8681_s18 }
 0xaba   :  { %2320 = vrot.lane.b32.xlu0 %v2299_v4, %s8681_s18 }
 0xabd   :  { %2322 = vrot.lane.b32.xlu1 %v2300_v33, %s8681_s18 }
 0xabe   :  { %2324 = vrot.lane.b32.xlu0 %v2301_v38, %s8681_s18 }
 0xb13   :  { %v2231_v34 = vpop.permute.xlu1 %2230 }
 0xb14   :  { %v2235_v36 = vpop.permute.xlu0 %2234  ;;  %v2254_v42 = vmul.f32 %v2231_v34, %v9422_v57 }
 0xb15   :  { %v2256_v48 = vmul.f32 %v2235_v36, %v9437_v29 }
 0xb17   :  { %v2233_v44 = vpop.permute.xlu1 %2232 }
 0xb18   :  { %v2237_v50 = vpop.permute.xlu0 %2236  ;;  %v2255_v3 = vmul.f32 %v2233_v44, %v9429_v15 }
 0xb19   :  { %v2257_v26 = vmul.f32 %v2237_v50, %v9425_v2 }
 0xb1b   :  { %v2243_v51 = vpop.permute.xlu1 %2242 }
 0xb1c   :  { %v2239_v12 = vpop.permute.xlu0 %2238  ;;  %v2260_v9 = vmul.f32 %v2243_v51, %v9445_v25  ;;  %v9478_v51 = vld [vmem:[%s11021_s0] sm:$0xff] }
 0xb1d   :  { %v2258_v37 = vmul.f32 %v2239_v12, %v9433_v16  ;;  %vm2392_vm12 = vcmp.gt.s32.totalorder %v9478_v51, 4  ;;  %vm2830_vm14 = vcmp.gt.s32.totalorder %v9478_v51, 5 }
 0xb1f   :  { %v2245_v55 = vpop.permute.xlu1 %2244 }
 0xb20   :  { %v2241_v30 = vpop.permute.xlu0 %2240  ;;  %v2261_v21 = vmul.f32 %v2245_v55, %v9449_v6  ;;  %v2393_v55 = vsel %vm2392_vm12, 1, %v8682_v35 }
 0xb21   :  { %v2259_v59 = vmul.f32 %v2241_v30, %v9441_v58 }
 0xb23   :  { %v2311_v63 = vpop.permute.xlu1 %2310 }
 0xb24   :  { %v2334_v45 = vadd.f32 %v2311_v63, %v2254_v42  ;;  %v2317_v24 = vpop.permute.xlu0 %2316 }
 0xb25   :  { %v2337_v56 = vadd.f32 %v2317_v24, %v2257_v26 }
 0xb26   :  { %7969 = vtanh.f32 %v2334_v45 }
 0xb27   :  { %v2313_v5 = vpop.permute.xlu1 %2312  ;;  %v2436_v14 = vrot.slane %v2337_v56, 5 }
 0xb28   :  { %v2335_v46 = vadd.f32 %v2313_v5, %v2255_v3  ;;  %v2319_v8 = vpop.permute.xlu0 %2318 }
 0xb29   :  { %v2338_v27 = vadd.f32 %v2319_v8, %v2258_v37 }
 0xb2a   :  { %7971 = vtanh.f32 %v2335_v46  ;;  %v2432_v52 = vrot.slane %v2335_v46, 7 }
 0xb2b   :  { %v2315_v61 = vpop.permute.xlu1 %2314  ;;  %7973 = vtanh.f32 %v2338_v27  ;;  %v2438_v41 = vrot.slane %v2338_v27, 4 }
 0xb2c   :  { %v2433_v11 = vsel %vm647_vm2, %v2432_v52, %v2334_v45  ;;  %v2336_v19 = vadd.f32 %v2315_v61, %v2256_v48  ;;  %v2321_v7 = vpop.permute.xlu0 %2320 }
 0xb2d   :  { %v2339_v17 = vadd.f32 %v2321_v7, %v2259_v59 }
 0xb2e   :  { %7975 = vtanh.f32 %v2336_v19  ;;  %v2434_v62 = vrot.slane %v2336_v19, 6 }
 0xb2f   :  { %v2323_v43 = vpop.permute.xlu1 %2322  ;;  %v2440_v18 = vrot.slane %v2339_v17, 3  ;;  %7977 = vtanh.f32 %v2337_v56 }
 0xb30   :  { %v2435_v32 = vsel %vm650_vm3, %v2434_v62, %v2433_v11  ;;  %v2340_v13 = vadd.f32 %v2323_v43, %v2260_v9  ;;  %v2325_v20 = vpop.permute.xlu0 %2324 }
 0xb31   :  { %v2437_v31 = vsel %vm653_vm4, %v2436_v14, %v2435_v32  ;;  %v2341_v60 = vadd.f32 %v2325_v20, %v2261_v21 }
 0xb32   :  { %v2439_v22 = vsel %vm656_vm5, %v2438_v41, %v2437_v31  ;;  %7979 = vtanh.f32 %v2340_v13  ;;  %v2442_v23 = vrot.slane %v2340_v13, 2 }
 0xb33   :  { %v7970_v4 = vpop.eup %7969  ;;  %v2441_v10 = vsel %vm659_vm6, %v2440_v18, %v2439_v22  ;;  %v2444_v39 = vrot.slane %v2341_v60, 1  ;;  %7981 = vtanh.f32 %v2339_v17 }
 0xb34   :  { %v2443_v33 = vsel %vm662_vm7, %v2442_v23, %v2441_v10  ;;  %2358 = vrot.lane.b32.xlu1 %v7970_v4, %s8681_s18  ;;  %7983 = vtanh.f32 %v2341_v60 }
 0xb35   :  { %v2445_v38 = vsel %vm665_vm8, %v2444_v39, %v2443_v33 }
 0xb37   :  { %v7972_v34 = vpop.eup %7971 }
 0xb38   :  { %2360 = vrot.lane.b32.xlu1 %v7972_v34, %s8681_s18  ;;  %v7974_v36 = vpop.eup %7973 }
 0xb3b   :  { %v7976_v44 = vpop.eup %7975 }
 0xb3c   :  { %2362 = vrot.lane.b32.xlu0 %v7976_v44, %s8681_s18  ;;  %2366 = vrot.lane.b32.xlu1 %v7974_v36, %s8681_s18  ;;  %v7978_v50 = vpop.eup %7977 }
 0xb3f   :  { %v7980_v12 = vpop.eup %7979 }
 0xb40   :  { %2364 = vrot.lane.b32.xlu0 %v7978_v50, %s8681_s18  ;;  %2370 = vrot.lane.b32.xlu1 %v7980_v12, %s8681_s18  ;;  %v7982_v30 = vpop.eup %7981 }
 0xb41   :  { %v7984_v42 = vpop.eup %7983 }
 0xb44   :  { %2368 = vrot.lane.b32.xlu0 %v7982_v30, %s8681_s18  ;;  %2395 = vperm.xlu1 %7744, %v2393_v55   ;;  %v2515_v55 = vld [vmem:[#allocation2 + $0x5] sm:$0x1] }
 0xb48   :  { %2372 = vrot.lane.b32.xlu0 %v7984_v42, %s8681_s18 }
 0xba6   :  { %v2359_v63 = vpop.permute.xlu1 %2358 }
 0xba7   :  { %v2382_v48 = vmul.f32 %v2359_v63, %v9422_v57 }
 0xbaa   :  { %v2361_v45 = vpop.permute.xlu1 %2360 }
 0xbab   :  { %v2383_v24 = vmul.f32 %v2361_v45, %v9429_v15 }
 0xbad   :  { %v2406_v46 = vrot.slane %v2383_v24, 7  ;;  %v2516_v24 = vld [vmem:[#allocation2 + $0x15] sm:$0x1] }
 0xbae   :  { %v2363_v3 = vpop.permute.xlu0 %2362  ;;  %v2367_v37 = vpop.permute.xlu1 %2366 }
 0xbaf   :  { %v2384_v5 = vmul.f32 %v2363_v3, %v9437_v29  ;;  %v2386_v27 = vmul.f32 %v2367_v37, %v9433_v16  ;;  %v2407_v56 = vsel %vm647_vm2, %v2406_v46, %v2382_v48  ;;  %v2517_v3 = vld [vmem:[#allocation2 + $0x25] sm:$0x1]  ;;  %v2518_v46 = vld [vmem:[#allocation2 + $0x35] sm:$0x1] }
 0xbb1   :  { %v2408_v26 = vrot.slane %v2384_v5, 6  ;;  %v2412_v7 = vrot.slane %v2386_v27, 4 }
 0xbb2   :  { %v2365_v8 = vpop.permute.xlu0 %2364  ;;  %v2371_v59 = vpop.permute.xlu1 %2370 }
 0xbb3   :  { %v2385_v52 = vmul.f32 %v2365_v8, %v9425_v2  ;;  %v2409_v11 = vsel %vm650_vm3, %v2408_v26, %v2407_v56  ;;  %v2388_v9 = vmul.f32 %v2371_v59, %v9445_v25  ;;  %v2521_v56 = vld [vmem:[#allocation2 + $0x65] sm:$0x1]  ;;  %v2522_v59 = vld [vmem:[#allocation2 + $0x75] sm:$0x1] }
 0xbb5   :  { %v2410_v61 = vrot.slane %v2385_v52, 5  ;;  %v2416_v21 = vrot.slane %v2388_v9, 2  ;;  %v2519_v52 = vld [vmem:[#allocation2 + $0x45] sm:$0x1] }
 0xbb6   :  { %v2369_v15 = vpop.permute.xlu0 %2368 }
 0xbb7   :  { %v2411_v19 = vsel %vm653_vm4, %v2410_v61, %v2409_v11  ;;  %v2387_v29 = vmul.f32 %v2369_v15, %v9441_v58 }
 0xbb8   :  { %v2413_v57 = vsel %vm656_vm5, %v2412_v7, %v2411_v19  ;;  %v2520_v7 = vld [vmem:[#allocation2 + $0x55] sm:$0x1] }
 0xbb9   :  { %v2414_v62 = vrot.slane %v2387_v29, 3 }
 0xbba   :  { %v2373_v2 = vpop.permute.xlu0 %2372 }
 0xbbb   :  { %v2415_v16 = vsel %vm659_vm6, %v2414_v62, %v2413_v57  ;;  %v2389_v17 = vmul.f32 %v2373_v2, %v9449_v6 }
 0xbbc   :  { %v2417_v43 = vsel %vm662_vm7, %v2416_v21, %v2415_v16 }
 0xbbd   :  { %v2418_v14 = vrot.slane %v2389_v17, 1 }
 0xbbf   :  { %v2396_v41 = vpop.permute.xlu1 %2395  ;;  %v2419_v32 = vsel %vm665_vm8, %v2418_v14, %v2417_v43 }
 0xbc0   :  { %vm2397_vm13 = vcmp.eq.s32.totalorder %v2396_v41, 1  ;;  %2420 = vrot.lane.b32.xlu0 %v2419_v32, %s8679_s1 }
 0xbc1   :  { %v9504_v58 = vsel %vm2397_vm13, %v2445_v38, %v9359_v53 }
 0xbc2   :  { %v2702_v25 = vrot.slane %v9504_v58, 2  ;;  %v2701_v18 = vrot.slane %v9504_v58, 1  ;;  %v2703_v6 = vrot.slane %v9504_v58, 3  ;;  %v2705_v13 = vrot.slane %v9504_v58, 5 }
 0xbc3   :  { %v2704_v53 = vrot.slane %v9504_v58, 4  ;;  %v2707_v31 = vrot.slane %v9504_v58, 7  ;;  %v2706_v20 = vrot.slane %v9504_v58, 6 }
 0xbc4   :  { %2712 = vrot.lane.b32.xlu0 %v2702_v25, %s8679_s1  ;;  %2710 = vrot.lane.b32.xlu1 %v2701_v18, %s8679_s1 }
 0xbc8   :  { %2714 = vrot.lane.b32.xlu0 %v2703_v6, %s8679_s1  ;;  %2708 = vrot.lane.b32.xlu1 %v9504_v58, %s8679_s1 }
 0xbcc   :  { %2718 = vrot.lane.b32.xlu0 %v2705_v13, %s8679_s1  ;;  %2716 = vrot.lane.b32.xlu1 %v2704_v53, %s8679_s1 }
 0xbd0   :  { %2722 = vrot.lane.b32.xlu0 %v2707_v31, %s8679_s1  ;;  %2720 = vrot.lane.b32.xlu1 %v2706_v20, %s8679_s1 }
 0xc32   :  { %v2421_v22 = vpop.permute.xlu0 %2420 }
 0xc33   :  { %v9524_v23 = vsel %vm2397_vm13, %v2421_v22, %v9379_v49  ;;  %v2448_v60 = vsel %vm2397_vm13, %v2421_v22, 0.0 }
 0xc34   :  { %v2450_v4 = vcombine.high %v2448_v60, %v2448_v60  ;;  %v2457_v10 = vrot.slane %v2448_v60, %v8966_v28  ;;  %7616 = vmatmul.mubr.msk.f32.vlgmr.msra.gmra.mxu1 %vm70_vm0, %v9524_v23 }
 0xc35   :  { %7630 = vmatpush3.msra.mxu1 %v9385_v47  ;;  %7637 = vmatprep.mubr.msk.f32.mxu1 %vm8678_vm1, %v8677_v0 }
 0xc36   :  { %v2464_v33 = vrot.slane %v2450_v4, %v8966_v28  ;;  %v2465_v39 = vcombine.high %v2457_v10, %v2457_v10  ;;  %v2473_v38 = vrot.slane %v2457_v10, %v8966_v28  ;;  %7631 = vmatprep.subr.mxu1 %v8677_v0  ;;  %v2711_v31 = vpop.permute.xlu1 %2710  ;;  %v2713_v4 = vpop.permute.xlu0 %2712 }
 0xc37   :  { %7632 = vmatpush3.msra.mxu1 %v9393_v54 }
 0xc38   :  { %v2466_v49 = vcombine.high %v2464_v33, %v2464_v33  ;;  %v2480_v34 = vrot.slane %v2464_v33, %v8966_v28  ;;  %v2487_v36 = vrot.slane %v2465_v39, %v8966_v28  ;;  %v2495_v44 = vcombine.high %v2473_v38, %v2473_v38  ;;  %2507 = vst.msk [vmem:[#allocation11 + $0x4] sm:$0x1] %vm754_vm11, %v2473_v38 }
 0xc39   :  { %7633 = vmatprep.subr.mxu1 %v8677_v0 }
 0xc3a   :  { %7634 = vmatpush3.msra.mxu1 %v9400_v1  ;;  %v2494_v47 = vrot.slane %v2466_v49, %v8966_v28  ;;  %v2496_v50 = vcombine.high %v2480_v34, %v2480_v34  ;;  %v2497_v12 = vcombine.high %v2487_v36, %v2487_v36  ;;  %2508 = vst.msk [vmem:[#allocation11 + $0x14] sm:$0x1] %vm754_vm11, %v2487_v36  ;;  %2509 = vst.msk [vmem:[#allocation11 + $0x24] sm:$0x1] %vm754_vm11, %v2495_v44 }
 0xc3b   :  { %2511 = vst.msk [vmem:[#allocation11 + $0x44] sm:$0x1] %vm754_vm11, %v2480_v34  ;;  %7635 = vmatprep.subr.mxu1 %v8677_v0 }
 0xc3c   :  { %7636 = vmatpush3.msra.mxu1 %v9408_v40  ;;  %v2498_v54 = vcombine.high %v2494_v47, %v2494_v47  ;;  %2510 = vst.msk [vmem:[#allocation11 + $0x34] sm:$0x1] %vm754_vm11, %v2497_v12  ;;  %2512 = vst.msk [vmem:[#allocation11 + $0x54] sm:$0x1] %vm754_vm11, %v2494_v47 }
 0xc3d   :  { %2513 = vst.msk [vmem:[#allocation11 + $0x64] sm:$0x1] %vm754_vm11, %v2496_v50  ;;  %7651 = vmatprep.subr.mxu1 %v8677_v0  ;;  %v2709_v50 = vpop.permute.xlu1 %2708 }
 0xc3e   :  { %2514 = vst.msk [vmem:[#allocation11 + $0x74] sm:$0x1] %vm754_vm11, %v2498_v54 }
 0xcf4   :  { %v2592_v1 = vpop.f32.mrf.mxu1 }
 0xcf5   :  { %v2597_v30 = vrot.slane %v2592_v1, 1  ;;  %v2598_v42 = vrot.slane %v2592_v1, 2  ;;  %v2599_v63 = vrot.slane %v2592_v1, 3  ;;  %v2600_v45 = vrot.slane %v2592_v1, 4 }
 0xcf6   :  { %v2602_v40 = vrot.slane %v2592_v1, 6  ;;  %v2612_v5 = vadd.f32 %v2592_v1, %v2515_v55  ;;  %v7617_v37 = vpop.f32.mrf.mxu1  ;;  %v2603_v26 = vrot.slane %v2592_v1, 7  ;;  %v2601_v11 = vrot.slane %v2592_v1, 5 }
 0xcf7   :  { %v2613_v8 = vadd.f32 %v2597_v30, %v2516_v24  ;;  %v2614_v48 = vadd.f32 %v2598_v42, %v2517_v3  ;;  %v2615_v27 = vadd.f32 %v2599_v63, %v2518_v46  ;;  %v2616_v61 = vadd.f32 %v2600_v45, %v2519_v52  ;;  %v2715_v30 = vpop.permute.xlu0 %2714  ;;  %v2717_v37 = vpop.permute.xlu1 %2716 }
 0xcf8   :  { %7985 = vtanh.f32 %v2612_v5  ;;  %v2618_v15 = vadd.f32 %v2602_v40, %v2521_v56  ;;  %v2619_v19 = vadd.f32 %v2603_v26, %v2522_v59  ;;  %v2620_v29 = vmul.f32 0.5, %v2612_v5 }
 0xcf9   :  { %7987 = vtanh.f32 %v2614_v48  ;;  %v2623_v9 = vmul.f32 0.5, %v2615_v27  ;;  %v2617_v62 = vadd.f32 %v2601_v11, %v2520_v7  ;;  %v2621_v57 = vmul.f32 0.5, %v2613_v8 }
 0xcfa   :  { %7989 = vtanh.f32 %v2613_v8  ;;  %v2624_v2 = vmul.f32 0.5, %v2616_v61  ;;  %v2622_v16 = vmul.f32 0.5, %v2614_v48  ;;  %v2626_v21 = vmul.f32 0.5, %v2618_v15 }
 0xcfb   :  { %7991 = vtanh.f32 %v2615_v27  ;;  %v2625_v17 = vmul.f32 0.5, %v2617_v62  ;;  %v2627_v43 = vmul.f32 0.5, %v2619_v19  ;;  %v2719_v48 = vpop.permute.xlu0 %2718  ;;  %v2721_v59 = vpop.permute.xlu1 %2720 }
 0xcfc   :  { %7993 = vtanh.f32 %v2616_v61 }
 0xcfd   :  { %7995 = vtanh.f32 %v2618_v15 }
 0xcfe   :  { %7997 = vtanh.f32 %v2619_v19 }
 0xcff   :  { %7999 = vtanh.f32 %v2620_v29  ;;  %v2723_v15 = vpop.permute.xlu0 %2722 }
 0xd00   :  { %8001 = vtanh.f32 %v2623_v9 }
 0xd01   :  { %8003 = vtanh.f32 %v2621_v57 }
 0xd02   :  { %8005 = vtanh.f32 %v2624_v2 }
 0xd03   :  { %8007 = vtanh.f32 %v2622_v16 }
 0xd04   :  { %8009 = vtanh.f32 %v2617_v62 }
 0xd05   :  { %v7986_v14 = vpop.eup %7985  ;;  %8011 = vtanh.f32 %v2625_v17 }
 0xd06   :  { %2668 = vrot.lane.b32.xlu1 %v7986_v14, %s8680_s4  ;;  %v7988_v41 = vpop.eup %7987  ;;  %8013 = vtanh.f32 %v2626_v21 }
 0xd07   :  { %v7990_v32 = vpop.eup %7989  ;;  %2672 = vrot.lane.b32.xlu0 %v7988_v41, %s8680_s4  ;;  %8015 = vtanh.f32 %v2627_v43 }
 0xd08   :  { %v7992_v25 = vpop.eup %7991 }
 0xd09   :  { %v7994_v18 = vpop.eup %7993 }
 0xd0a   :  { %2670 = vrot.lane.b32.xlu1 %v7990_v32, %s8680_s4  ;;  %v7996_v6 = vpop.eup %7995 }
 0xd0b   :  { %v7998_v13 = vpop.eup %7997  ;;  %2674 = vrot.lane.b32.xlu0 %v7992_v25, %s8680_s4 }
 0xd0c   :  { %v8000_v53 = vpop.eup %7999 }
 0xd0d   :  { %v8002_v20 = vpop.eup %8001  ;;  %v2636_v22 = vmul.f32 0.5, %v8000_v53 }
 0xd0e   :  { %2680 = vrot.lane.b32.xlu1 %v7996_v6, %s8680_s4  ;;  %v8004_v60 = vpop.eup %8003  ;;  %v2639_v10 = vmul.f32 0.5, %v8002_v20 }
 0xd0f   :  { %v8006_v33 = vpop.eup %8005  ;;  %2676 = vrot.lane.b32.xlu0 %v7994_v18, %s8680_s4  ;;  %v9559_v39 = vadd.f32 0.5, %v2636_v22  ;;  %v2637_v38 = vmul.f32 0.5, %v8004_v60 }
 0xd10   :  { %v8008_v49 = vpop.eup %8007  ;;  %v9562_v36 = vadd.f32 0.5, %v2639_v10  ;;  %v2640_v44 = vmul.f32 0.5, %v8006_v33 }
 0xd11   :  { %v8010_v34 = vpop.eup %8009  ;;  %v2732_v12 = vmul.f32 %v2709_v50, %v9559_v39  ;;  %v9566_v54 = vadd.f32 0.5, %v2637_v38  ;;  %v2638_v1 = vmul.f32 0.5, %v8008_v49 }
 0xd12   :  { %2682 = vrot.lane.b32.xlu1 %v7998_v13, %s8680_s4  ;;  %v8012_v47 = vpop.eup %8011  ;;  %v2735_v42 = vmul.f32 %v2715_v30, %v9562_v36  ;;  %v9570_v63 = vadd.f32 0.5, %v2640_v44 }
 0xd13   :  { %2678 = vrot.lane.b32.xlu0 %v8010_v34, %s8680_s4  ;;  %v8014_v55 = vpop.eup %8013  ;;  %v2641_v45 = vmul.f32 0.5, %v8012_v47  ;;  %v2733_v3 = vmul.f32 %v2711_v31, %v9566_v54  ;;  %v9574_v40 = vadd.f32 0.5, %v2638_v1 }
 0xd14   :  { %v8016_v24 = vpop.eup %8015  ;;  %v2642_v5 = vmul.f32 0.5, %v8014_v55  ;;  %v2736_v46 = vmul.f32 %v2717_v37, %v9570_v63 }
 0xd15   :  { %v9578_v26 = vadd.f32 0.5, %v2641_v45  ;;  %v2643_v8 = vmul.f32 0.5, %v8016_v24  ;;  %v2734_v52 = vmul.f32 %v2713_v4, %v9574_v40 }
 0xd16   :  { %2748 = vrot.lane.b32.xlu1 %v2732_v12, %s8681_s18  ;;  %v9582_v27 = vadd.f32 0.5, %v2642_v5 }
 0xd17   :  { %2754 = vrot.lane.b32.xlu0 %v2735_v42, %s8681_s18  ;;  %v2737_v56 = vmul.f32 %v2719_v48, %v9578_v26  ;;  %v9586_v61 = vadd.f32 0.5, %v2643_v8 }
 0xd18   :  { %v2738_v11 = vmul.f32 %v2721_v59, %v9582_v27 }
 0xd19   :  { %v2739_v19 = vmul.f32 %v2723_v15, %v9586_v61 }
 0xd1a   :  { %2750 = vrot.lane.b32.xlu1 %v2733_v3, %s8681_s18 }
 0xd1b   :  { %2756 = vrot.lane.b32.xlu0 %v2736_v46, %s8681_s18 }
 0xd1e   :  { %2752 = vrot.lane.b32.xlu1 %v2734_v52, %s8681_s18 }
 0xd1f   :  { %2758 = vrot.lane.b32.xlu0 %v2737_v56, %s8681_s18 }
 0xd22   :  { %2760 = vrot.lane.b32.xlu1 %v2738_v11, %s8681_s18 }
 0xd23   :  { %2762 = vrot.lane.b32.xlu0 %v2739_v19, %s8681_s18 }
 0xd78   :  { %v2669_v29 = vpop.permute.xlu1 %2668 }
 0xd79   :  { %v2673_v7 = vpop.permute.xlu0 %2672  ;;  %v2692_v21 = vmul.f32 %v2669_v29, %v9559_v39 }
 0xd7a   :  { %v2694_v31 = vmul.f32 %v2673_v7, %v9574_v40 }
 0xd7c   :  { %v2671_v9 = vpop.permute.xlu1 %2670 }
 0xd7d   :  { %v2675_v62 = vpop.permute.xlu0 %2674  ;;  %v2693_v32 = vmul.f32 %v2671_v9, %v9566_v54  ;;  %v2831_v9 = vsel %vm2830_vm14, 1, %v8682_v35 }
 0xd7e   :  { %v2695_v13 = vmul.f32 %v2675_v62, %v9562_v36 }
 0xd80   :  { %v2681_v57 = vpop.permute.xlu1 %2680 }
 0xd81   :  { %v2677_v2 = vpop.permute.xlu0 %2676  ;;  %v2698_v34 = vmul.f32 %v2681_v57, %v9582_v27 }
 0xd82   :  { %v2696_v18 = vmul.f32 %v2677_v2, %v9570_v63 }
 0xd84   :  { %v2683_v16 = vpop.permute.xlu1 %2682 }
 0xd85   :  { %v2679_v17 = vpop.permute.xlu0 %2678  ;;  %v2699_v50 = vmul.f32 %v2683_v16, %v9586_v61 }
 0xd86   :  { %v2697_v10 = vmul.f32 %v2679_v17, %v9578_v26 }
 0xd88   :  { %v2749_v14 = vpop.permute.xlu1 %2748 }
 0xd89   :  { %v2772_v43 = vadd.f32 %v2749_v14, %v2692_v21  ;;  %v2755_v41 = vpop.permute.xlu0 %2754 }
 0xd8a   :  { %v2775_v60 = vadd.f32 %v2755_v41, %v2695_v13 }
 0xd8b   :  { %8017 = vtanh.f32 %v2772_v43 }
 0xd8c   :  { %v2751_v25 = vpop.permute.xlu1 %2750  ;;  %v2874_v12 = vrot.slane %v2775_v60, 5 }
 0xd8d   :  { %v2773_v6 = vadd.f32 %v2751_v25, %v2693_v32  ;;  %v2757_v53 = vpop.permute.xlu0 %2756 }
 0xd8e   :  { %v2776_v22 = vadd.f32 %v2757_v53, %v2696_v18 }
 0xd8f   :  { %8019 = vtanh.f32 %v2773_v6  ;;  %v2870_v20 = vrot.slane %v2773_v6, 7 }
 0xd90   :  { %v2753_v4 = vpop.permute.xlu1 %2752  ;;  %8021 = vtanh.f32 %v2776_v22  ;;  %v2876_v55 = vrot.slane %v2776_v22, 4 }
 0xd91   :  { %v2871_v33 = vsel %vm647_vm2, %v2870_v20, %v2772_v43  ;;  %v2774_v38 = vadd.f32 %v2753_v4, %v2694_v31  ;;  %v2759_v49 = vpop.permute.xlu0 %2758 }
 0xd92   :  { %v2777_v47 = vadd.f32 %v2759_v49, %v2697_v10 }
 0xd93   :  { %8023 = vtanh.f32 %v2774_v38  ;;  %v2872_v44 = vrot.slane %v2774_v38, 6 }
 0xd94   :  { %v2761_v1 = vpop.permute.xlu1 %2760  ;;  %v2878_v42 = vrot.slane %v2777_v47, 3  ;;  %8025 = vtanh.f32 %v2775_v60 }
 0xd95   :  { %v2873_v30 = vsel %vm650_vm3, %v2872_v44, %v2871_v33  ;;  %v2778_v45 = vadd.f32 %v2761_v1, %v2698_v34  ;;  %v2763_v3 = vpop.permute.xlu0 %2762 }
 0xd96   :  { %v2875_v24 = vsel %vm653_vm4, %v2874_v12, %v2873_v30  ;;  %v2779_v46 = vadd.f32 %v2763_v3, %v2699_v50 }
 0xd97   :  { %v2877_v5 = vsel %vm656_vm5, %v2876_v55, %v2875_v24  ;;  %8027 = vtanh.f32 %v2778_v45  ;;  %v2880_v37 = vrot.slane %v2778_v45, 2 }
 0xd98   :  { %v8018_v8 = vpop.eup %8017  ;;  %v2879_v48 = vsel %vm659_vm6, %v2878_v42, %v2877_v5  ;;  %v2882_v56 = vrot.slane %v2779_v46, 1  ;;  %8029 = vtanh.f32 %v2777_v47  ;;  %v9662_v5 = vld [vmem:[#allocation10 + $0x18] sm:$0xff] }
 0xd99   :  { %v2881_v52 = vsel %vm662_vm7, %v2880_v37, %v2879_v48  ;;  %2796 = vrot.lane.b32.xlu1 %v8018_v8, %s8681_s18  ;;  %8031 = vtanh.f32 %v2779_v46  ;;  %v9670_v8 = vld [vmem:[#allocation10 + $0x10] sm:$0xff] }
 0xd9a   :  { %v2883_v59 = vsel %vm665_vm8, %v2882_v56, %v2881_v52 }
 0xd9c   :  { %v8020_v11 = vpop.eup %8019 }
 0xd9d   :  { %2798 = vrot.lane.b32.xlu1 %v8020_v11, %s8681_s18  ;;  %v8022_v15 = vpop.eup %8021  ;;  %v9677_v11 = vld [vmem:[#allocation10 + $0x8] sm:$0xff] }
 0xda0   :  { %v8024_v19 = vpop.eup %8023 }
 0xda1   :  { %2800 = vrot.lane.b32.xlu0 %v8024_v19, %s8681_s18  ;;  %2804 = vrot.lane.b32.xlu1 %v8022_v15, %s8681_s18  ;;  %v8026_v29 = vpop.eup %8025 }
 0xda4   :  { %v8028_v7 = vpop.eup %8027 }
 0xda5   :  { %2802 = vrot.lane.b32.xlu0 %v8026_v29, %s8681_s18  ;;  %2808 = vrot.lane.b32.xlu1 %v8028_v7, %s8681_s18  ;;  %v8030_v62 = vpop.eup %8029  ;;  %v9685_v7 = vld [vmem:[#allocation10] sm:$0xff] }
 0xda6   :  { %v8032_v57 = vpop.eup %8031 }
 0xda9   :  { %2806 = vrot.lane.b32.xlu0 %v8030_v62, %s8681_s18  ;;  %2833 = vperm.xlu1 %7744, %v2831_v9  }
 0xdad   :  { %2810 = vrot.lane.b32.xlu0 %v8032_v57, %s8681_s18  ;;  %v2953_v57 = vld [vmem:[#allocation2 + $0x6] sm:$0x1] }
 0xe0b   :  { %v2797_v2 = vpop.permute.xlu1 %2796 }
 0xe0c   :  { %v2820_v25 = vmul.f32 %v2797_v2, %v9559_v39 }
 0xe0f   :  { %v2799_v16 = vpop.permute.xlu1 %2798 }
 0xe10   :  { %v2821_v17 = vmul.f32 %v2799_v16, %v9566_v54 }
 0xe12   :  { %v2844_v43 = vrot.slane %v2821_v17, 7 }
 0xe13   :  { %v2801_v21 = vpop.permute.xlu0 %2800  ;;  %v2805_v14 = vpop.permute.xlu1 %2804 }
 0xe14   :  { %v2822_v51 = vmul.f32 %v2801_v21, %v9574_v40  ;;  %v2824_v6 = vmul.f32 %v2805_v14, %v9570_v63  ;;  %v2845_v13 = vsel %vm647_vm2, %v2844_v43, %v2820_v25  ;;  %v2955_v14 = vld [vmem:[#allocation2 + $0x26] sm:$0x1]  ;;  %v2956_v25 = vld [vmem:[#allocation2 + $0x36] sm:$0x1] }
 0xe16   :  { %v2846_v41 = vrot.slane %v2822_v51, 6  ;;  %v2850_v60 = vrot.slane %v2824_v6, 4  ;;  %v2954_v51 = vld [vmem:[#allocation2 + $0x16] sm:$0x1] }
 0xe17   :  { %v2803_v32 = vpop.permute.xlu0 %2802  ;;  %v2809_v31 = vpop.permute.xlu1 %2808 }
 0xe18   :  { %v2823_v18 = vmul.f32 %v2803_v32, %v9562_v36  ;;  %v2847_v20 = vsel %vm650_vm3, %v2846_v41, %v2845_v13  ;;  %v2826_v4 = vmul.f32 %v2809_v31, %v9582_v27 }
 0xe1a   :  { %v2848_v53 = vrot.slane %v2823_v18, 5  ;;  %v2854_v38 = vrot.slane %v2826_v4, 2 }
 0xe1b   :  { %v2807_v54 = vpop.permute.xlu0 %2806 }
 0xe1c   :  { %v2849_v22 = vsel %vm653_vm4, %v2848_v53, %v2847_v20  ;;  %v2825_v40 = vmul.f32 %v2807_v54, %v9578_v26  ;;  %v2957_v53 = vld [vmem:[#allocation2 + $0x46] sm:$0x1] }
 0xe1d   :  { %v2851_v39 = vsel %vm656_vm5, %v2850_v60, %v2849_v22  ;;  %v2959_v20 = vld [vmem:[#allocation2 + $0x66] sm:$0x1]  ;;  %v2960_v22 = vld [vmem:[#allocation2 + $0x76] sm:$0x1] }
 0xe1e   :  { %v2852_v10 = vrot.slane %v2825_v40, 3 }
 0xe1f   :  { %v2811_v36 = vpop.permute.xlu0 %2810 }
 0xe20   :  { %v2853_v63 = vsel %vm659_vm6, %v2852_v10, %v2851_v39  ;;  %v2827_v33 = vmul.f32 %v2811_v36, %v9586_v61  ;;  %v2958_v39 = vld [vmem:[#allocation2 + $0x56] sm:$0x1] }
 0xe21   :  { %v2855_v34 = vsel %vm662_vm7, %v2854_v38, %v2853_v63 }
 0xe22   :  { %v2856_v49 = vrot.slane %v2827_v33, 1 }
 0xe24   :  { %v2834_v44 = vpop.permute.xlu1 %2833  ;;  %v2857_v47 = vsel %vm665_vm8, %v2856_v49, %v2855_v34 }
 0xe25   :  { %vm2835_vm15 = vcmp.eq.s32.totalorder %v2834_v44, 1  ;;  %2858 = vrot.lane.b32.xlu0 %v2857_v47, %s8679_s1 }
 0xe26   :  { %v9636_v26 = vsel %vm2835_vm15, %v2883_v59, %v9504_v58 }
 0xe27   :  { %v3140_v27 = vrot.slane %v9636_v26, 2  ;;  %v3139_v50 = vrot.slane %v9636_v26, 1  ;;  %v3141_v61 = vrot.slane %v9636_v26, 3  ;;  %v3143_v12 = vrot.slane %v9636_v26, 5 }
 0xe28   :  { %v3142_v58 = vrot.slane %v9636_v26, 4  ;;  %v3145_v1 = vrot.slane %v9636_v26, 7  ;;  %v3144_v55 = vrot.slane %v9636_v26, 6 }
 0xe29   :  { %3150 = vrot.lane.b32.xlu0 %v3140_v27, %s8679_s1  ;;  %3148 = vrot.lane.b32.xlu1 %v3139_v50, %s8679_s1 }
 0xe2d   :  { %3152 = vrot.lane.b32.xlu0 %v3141_v61, %s8679_s1  ;;  %3146 = vrot.lane.b32.xlu1 %v9636_v26, %s8679_s1 }
 0xe31   :  { %3156 = vrot.lane.b32.xlu0 %v3143_v12, %s8679_s1  ;;  %3154 = vrot.lane.b32.xlu1 %v3142_v58, %s8679_s1 }
 0xe35   :  { %3160 = vrot.lane.b32.xlu0 %v3145_v1, %s8679_s1  ;;  %3158 = vrot.lane.b32.xlu1 %v3144_v55, %s8679_s1 }
 0xe97   :  { %v2859_v30 = vpop.permute.xlu0 %2858 }
 0xe98   :  { %v9656_v42 = vsel %vm2835_vm15, %v2859_v30, %v9524_v23  ;;  %v2886_v45 = vsel %vm2835_vm15, %v2859_v30, 0.0 }
 0xe99   :  { %v2888_v24 = vcombine.high %v2886_v45, %v2886_v45  ;;  %v2895_v3 = vrot.slane %v2886_v45, %v8966_v28  ;;  %7627 = vmatmul.mubr.msk.f32.vlgmr.msra.gmra.mxu0 %vm70_vm0, %v9656_v42 }
 0xe9a   :  { %7641 = vmatpush3.msra.mxu0 %v9662_v5  ;;  %7648 = vmatprep.mubr.msk.f32.mxu0 %vm8678_vm1, %v8677_v0 }
 0xe9b   :  { %v2902_v37 = vrot.slane %v2888_v24, %v8966_v28  ;;  %v2903_v46 = vcombine.high %v2895_v3, %v2895_v3  ;;  %v2911_v23 = vrot.slane %v2895_v3, %v8966_v28  ;;  %7642 = vmatprep.subr.mxu0 %v8677_v0  ;;  %v3149_v45 = vpop.permute.xlu1 %3148 }
 0xe9c   :  { %7643 = vmatpush3.msra.mxu0 %v9670_v8 }
 0xe9d   :  { %v2904_v48 = vcombine.high %v2902_v37, %v2902_v37  ;;  %v2918_v52 = vrot.slane %v2902_v37, %v8966_v28  ;;  %v2925_v56 = vrot.slane %v2903_v46, %v8966_v28  ;;  %v2933_v59 = vcombine.high %v2911_v23, %v2911_v23  ;;  %2945 = vst.msk [vmem:[#allocation11 + $0x5] sm:$0x1] %vm754_vm11, %v2911_v23  ;;  %v3151_v46 = vpop.permute.xlu0 %3150 }
 0xe9e   :  { %7644 = vmatprep.subr.mxu0 %v8677_v0 }
 0xe9f   :  { %7645 = vmatpush3.msra.mxu0 %v9677_v11  ;;  %v2932_v15 = vrot.slane %v2904_v48, %v8966_v28  ;;  %v2934_v19 = vcombine.high %v2918_v52, %v2918_v52  ;;  %v2935_v29 = vcombine.high %v2925_v56, %v2925_v56  ;;  %2946 = vst.msk [vmem:[#allocation11 + $0x15] sm:$0x1] %vm754_vm11, %v2925_v56  ;;  %2947 = vst.msk [vmem:[#allocation11 + $0x25] sm:$0x1] %vm754_vm11, %v2933_v59 }
 0xea0   :  { %2949 = vst.msk [vmem:[#allocation11 + $0x45] sm:$0x1] %vm754_vm11, %v2918_v52  ;;  %7646 = vmatprep.subr.mxu0 %v8677_v0 }
 0xea1   :  { %7647 = vmatpush3.msra.mxu0 %v9685_v7  ;;  %v2936_v9 = vcombine.high %v2932_v15, %v2932_v15  ;;  %2948 = vst.msk [vmem:[#allocation11 + $0x35] sm:$0x1] %vm754_vm11, %v2935_v29  ;;  %2950 = vst.msk [vmem:[#allocation11 + $0x55] sm:$0x1] %vm754_vm11, %v2932_v15 }
 0xea2   :  { %2951 = vst.msk [vmem:[#allocation11 + $0x65] sm:$0x1] %vm754_vm11, %v2934_v19  ;;  %7662 = vmatprep.subr.mxu0 %v8677_v0 }
 0xea3   :  { %2952 = vst.msk [vmem:[#allocation11 + $0x75] sm:$0x1] %vm754_vm11, %v2936_v9 }
 0xf59   :  { %v3030_v62 = vpop.f32.mrf.mxu0 }
 0xf5a   :  { %v3035_v2 = vrot.slane %v3030_v62, 1  ;;  %v3036_v16 = vrot.slane %v3030_v62, 2  ;;  %v3037_v17 = vrot.slane %v3030_v62, 3  ;;  %v3038_v21 = vrot.slane %v3030_v62, 4 }
 0xf5b   :  { %v3040_v43 = vrot.slane %v3030_v62, 6  ;;  %v3050_v41 = vadd.f32 %v3030_v62, %v2953_v57  ;;  %v7628_v32 = vpop.f32.mrf.mxu0  ;;  %v3041_v18 = vrot.slane %v3030_v62, 7  ;;  %v3039_v40 = vrot.slane %v3030_v62, 5  ;;  %v3147_v62 = vpop.permute.xlu1 %3146 }
 0xf5c   :  { %v3051_v6 = vadd.f32 %v3035_v2, %v2954_v51  ;;  %v3052_v13 = vadd.f32 %v3036_v16, %v2955_v14  ;;  %v3053_v31 = vadd.f32 %v3037_v17, %v2956_v25  ;;  %v3054_v54 = vadd.f32 %v3038_v21, %v2957_v53  ;;  %v3153_v21 = vpop.permute.xlu0 %3152 }
 0xf5d   :  { %8033 = vtanh.f32 %v3050_v41  ;;  %v3056_v60 = vadd.f32 %v3040_v43, %v2959_v20  ;;  %v3057_v4 = vadd.f32 %v3041_v18, %v2960_v22  ;;  %v3058_v10 = vmul.f32 0.5, %v3050_v41 }
 0xf5e   :  { %8035 = vtanh.f32 %v3052_v13  ;;  %v3061_v36 = vmul.f32 0.5, %v3053_v31  ;;  %v3055_v63 = vadd.f32 %v3039_v40, %v2958_v39  ;;  %v3059_v33 = vmul.f32 0.5, %v3051_v6 }
 0xf5f   :  { %8037 = vtanh.f32 %v3051_v6  ;;  %v3062_v38 = vmul.f32 0.5, %v3054_v54  ;;  %v3060_v49 = vmul.f32 0.5, %v3052_v13  ;;  %v3064_v44 = vmul.f32 0.5, %v3056_v60  ;;  %v3155_v6 = vpop.permute.xlu1 %3154 }
 0xf60   :  { %8039 = vtanh.f32 %v3053_v31  ;;  %v3063_v34 = vmul.f32 0.5, %v3055_v63  ;;  %v3065_v27 = vmul.f32 0.5, %v3057_v4  ;;  %v3157_v20 = vpop.permute.xlu0 %3156 }
 0xf61   :  { %8041 = vtanh.f32 %v3054_v54 }
 0xf62   :  { %8043 = vtanh.f32 %v3056_v60 }
 0xf63   :  { %8045 = vtanh.f32 %v3057_v4  ;;  %v3159_v4 = vpop.permute.xlu1 %3158 }
 0xf64   :  { %8047 = vtanh.f32 %v3058_v10  ;;  %v3161_v39 = vpop.permute.xlu0 %3160 }
 0xf65   :  { %8049 = vtanh.f32 %v3061_v36 }
 0xf66   :  { %8051 = vtanh.f32 %v3059_v33 }
 0xf67   :  { %8053 = vtanh.f32 %v3062_v38 }
 0xf68   :  { %8055 = vtanh.f32 %v3060_v49 }
 0xf69   :  { %8057 = vtanh.f32 %v3055_v63 }
 0xf6a   :  { %v8034_v47 = vpop.eup %8033  ;;  %8059 = vtanh.f32 %v3063_v34 }
 0xf6b   :  { %3106 = vrot.lane.b32.xlu1 %v8034_v47, %s8680_s4  ;;  %v8036_v50 = vpop.eup %8035  ;;  %8061 = vtanh.f32 %v3064_v44 }
 0xf6c   :  { %v8038_v61 = vpop.eup %8037  ;;  %3110 = vrot.lane.b32.xlu0 %v8036_v50, %s8680_s4  ;;  %8063 = vtanh.f32 %v3065_v27 }
 0xf6d   :  { %v8040_v12 = vpop.eup %8039 }
 0xf6e   :  { %v8042_v58 = vpop.eup %8041 }
 0xf6f   :  { %3108 = vrot.lane.b32.xlu1 %v8038_v61, %s8680_s4  ;;  %v8044_v1 = vpop.eup %8043 }
 0xf70   :  { %v8046_v55 = vpop.eup %8045  ;;  %3112 = vrot.lane.b32.xlu0 %v8040_v12, %s8680_s4 }
 0xf71   :  { %v8048_v30 = vpop.eup %8047 }
 0xf72   :  { %v8050_v24 = vpop.eup %8049  ;;  %v3074_v3 = vmul.f32 0.5, %v8048_v30 }
 0xf73   :  { %3118 = vrot.lane.b32.xlu1 %v8044_v1, %s8680_s4  ;;  %v8052_v37 = vpop.eup %8051  ;;  %v3077_v23 = vmul.f32 0.5, %v8050_v24 }
 0xf74   :  { %v8054_v48 = vpop.eup %8053  ;;  %3114 = vrot.lane.b32.xlu0 %v8042_v58, %s8680_s4  ;;  %v9699_v52 = vadd.f32 0.5, %v3074_v3  ;;  %v3075_v56 = vmul.f32 0.5, %v8052_v37 }
 0xf75   :  { %v8056_v59 = vpop.eup %8055  ;;  %v9702_v19 = vadd.f32 0.5, %v3077_v23  ;;  %v3078_v29 = vmul.f32 0.5, %v8054_v48 }
 0xf76   :  { %v8058_v15 = vpop.eup %8057  ;;  %v3170_v57 = vmul.f32 %v3147_v62, %v9699_v52  ;;  %v9706_v2 = vadd.f32 0.5, %v3075_v56  ;;  %v3076_v16 = vmul.f32 0.5, %v8056_v59 }
 0xf77   :  { %3120 = vrot.lane.b32.xlu1 %v8046_v55, %s8680_s4  ;;  %v8060_v9 = vpop.eup %8059  ;;  %v3173_v51 = vmul.f32 %v3153_v21, %v9702_v19  ;;  %v9710_v14 = vadd.f32 0.5, %v3078_v29 }
 0xf78   :  { %3116 = vrot.lane.b32.xlu0 %v8058_v15, %s8680_s4  ;;  %v8062_v17 = vpop.eup %8061  ;;  %v3079_v43 = vmul.f32 0.5, %v8060_v9  ;;  %v3171_v32 = vmul.f32 %v3149_v45, %v9706_v2  ;;  %v9714_v25 = vadd.f32 0.5, %v3076_v16 }
 0xf79   :  { %v8064_v41 = vpop.eup %8063  ;;  %v3080_v18 = vmul.f32 0.5, %v8062_v17  ;;  %v3174_v13 = vmul.f32 %v3155_v6, %v9710_v14 }
 0xf7a   :  { %v9718_v53 = vadd.f32 0.5, %v3079_v43  ;;  %v3081_v31 = vmul.f32 0.5, %v8064_v41  ;;  %v3172_v54 = vmul.f32 %v3151_v46, %v9714_v25 }
 0xf7b   :  { %3186 = vrot.lane.b32.xlu1 %v3170_v57, %s8681_s18  ;;  %v9722_v22 = vadd.f32 0.5, %v3080_v18 }
 0xf7c   :  { %3192 = vrot.lane.b32.xlu0 %v3173_v51, %s8681_s18  ;;  %v3175_v40 = vmul.f32 %v3157_v20, %v9718_v53  ;;  %v9726_v60 = vadd.f32 0.5, %v3081_v31 }
 0xf7d   :  { %v3176_v10 = vmul.f32 %v3159_v4, %v9722_v22 }
 0xf7e   :  { %v3177_v36 = vmul.f32 %v3161_v39, %v9726_v60 }
 0xf7f   :  { %3188 = vrot.lane.b32.xlu1 %v3171_v32, %s8681_s18 }
 0xf80   :  { %3194 = vrot.lane.b32.xlu0 %v3174_v13, %s8681_s18 }
 0xf83   :  { %3190 = vrot.lane.b32.xlu1 %v3172_v54, %s8681_s18 }
 0xf84   :  { %3196 = vrot.lane.b32.xlu0 %v3175_v40, %s8681_s18 }
 0xf87   :  { %3198 = vrot.lane.b32.xlu1 %v3176_v10, %s8681_s18 }
 0xf88   :  { %3200 = vrot.lane.b32.xlu0 %v3177_v36, %s8681_s18 }
 0xfdd   :  { %v3107_v63 = vpop.permute.xlu1 %3106 }
 0xfde   :  { %v3111_v33 = vpop.permute.xlu0 %3110  ;;  %v3130_v50 = vmul.f32 %v3107_v63, %v9699_v52 }
 0xfdf   :  { %v3132_v37 = vmul.f32 %v3111_v33, %v9714_v25 }
 0xfe1   :  { %v3109_v38 = vpop.permute.xlu1 %3108 }
 0xfe2   :  { %v3113_v49 = vpop.permute.xlu0 %3112  ;;  %v3131_v1 = vmul.f32 %v3109_v38, %v9706_v2 }
 0xfe3   :  { %v3133_v24 = vmul.f32 %v3113_v49, %v9702_v19 }
 0xfe5   :  { %v3119_v34 = vpop.permute.xlu1 %3118 }
 0xfe6   :  { %v3115_v44 = vpop.permute.xlu0 %3114  ;;  %v3136_v62 = vmul.f32 %v3119_v34, %v9722_v22  ;;  %v9755_v34 = vld [vmem:[%s11021_s0] sm:$0xff] }
 0xfe7   :  { %v3134_v30 = vmul.f32 %v3115_v44, %v9710_v14  ;;  %vm3268_vm9 = vcmp.gt.s32.totalorder %v9755_v34, 6  ;;  %vm3706_vm12 = vcmp.gt.s32.totalorder %v9755_v34, 7 }
 0xfe9   :  { %v3121_v47 = vpop.permute.xlu1 %3120 }
 0xfea   :  { %v3117_v27 = vpop.permute.xlu0 %3116  ;;  %v3137_v17 = vmul.f32 %v3121_v47, %v9726_v60  ;;  %v3269_v47 = vsel %vm3268_vm9, 1, %v8682_v35 }
 0xfeb   :  { %v3135_v59 = vmul.f32 %v3117_v27, %v9718_v53 }
 0xfed   :  { %v3187_v61 = vpop.permute.xlu1 %3186 }
 0xfee   :  { %v3210_v12 = vadd.f32 %v3187_v61, %v3130_v50  ;;  %v3193_v58 = vpop.permute.xlu0 %3192 }
 0xfef   :  { %v3213_v48 = vadd.f32 %v3193_v58, %v3133_v24 }
 0xff0   :  { %8065 = vtanh.f32 %v3210_v12 }
 0xff1   :  { %v3189_v55 = vpop.permute.xlu1 %3188  ;;  %v3312_v21 = vrot.slane %v3213_v48, 5 }
 0xff2   :  { %v3211_v45 = vadd.f32 %v3189_v55, %v3131_v1  ;;  %v3195_v3 = vpop.permute.xlu0 %3194 }
 0xff3   :  { %v3214_v23 = vadd.f32 %v3195_v3, %v3134_v30 }
 0xff4   :  { %8067 = vtanh.f32 %v3211_v45  ;;  %v3308_v46 = vrot.slane %v3211_v45, 7 }
 0xff5   :  { %v3191_v56 = vpop.permute.xlu1 %3190  ;;  %8069 = vtanh.f32 %v3214_v23  ;;  %v3314_v43 = vrot.slane %v3214_v23, 4 }
 0xff6   :  { %v3309_v15 = vsel %vm647_vm2, %v3308_v46, %v3210_v12  ;;  %v3212_v29 = vadd.f32 %v3191_v56, %v3132_v37  ;;  %v3197_v9 = vpop.permute.xlu0 %3196 }
 0xff7   :  { %v3215_v16 = vadd.f32 %v3197_v9, %v3135_v59 }
 0xff8   :  { %8071 = vtanh.f32 %v3212_v29  ;;  %v3310_v57 = vrot.slane %v3212_v29, 6 }
 0xff9   :  { %v3199_v51 = vpop.permute.xlu1 %3198  ;;  %v3316_v32 = vrot.slane %v3215_v16, 3  ;;  %8073 = vtanh.f32 %v3213_v48 }
 0xffa   :  { %v3311_v41 = vsel %vm650_vm3, %v3310_v57, %v3309_v15  ;;  %v3216_v18 = vadd.f32 %v3199_v51, %v3136_v62  ;;  %v3201_v13 = vpop.permute.xlu0 %3200 }
 0xffb   :  { %v3313_v6 = vsel %vm653_vm4, %v3312_v21, %v3311_v41  ;;  %v3217_v54 = vadd.f32 %v3201_v13, %v3137_v17 }
 0xffc   :  { %v3315_v31 = vsel %vm656_vm5, %v3314_v43, %v3313_v6  ;;  %8075 = vtanh.f32 %v3216_v18  ;;  %v3318_v20 = vrot.slane %v3216_v18, 2 }
 0xffd   :  { %v8066_v40 = vpop.eup %8065  ;;  %v3317_v4 = vsel %vm659_vm6, %v3316_v32, %v3315_v31  ;;  %v3320_v39 = vrot.slane %v3217_v54, 1  ;;  %8077 = vtanh.f32 %v3215_v16 }
 0xffe   :  { %v3319_v10 = vsel %vm662_vm7, %v3318_v20, %v3317_v4  ;;  %3234 = vrot.lane.b32.xlu1 %v8066_v40, %s8681_s18  ;;  %8079 = vtanh.f32 %v3217_v54 }
 0xfff   :  { %v3321_v36 = vsel %vm665_vm8, %v3320_v39, %v3319_v10 }
0x1001   :  { %v8068_v63 = vpop.eup %8067 }
0x1002   :  { %3236 = vrot.lane.b32.xlu1 %v8068_v63, %s8681_s18  ;;  %v8070_v33 = vpop.eup %8069 }
0x1005   :  { %v8072_v38 = vpop.eup %8071 }
0x1006   :  { %3238 = vrot.lane.b32.xlu0 %v8072_v38, %s8681_s18  ;;  %3242 = vrot.lane.b32.xlu1 %v8070_v33, %s8681_s18  ;;  %v8074_v49 = vpop.eup %8073 }
0x1009   :  { %v8076_v44 = vpop.eup %8075 }
0x100a   :  { %3240 = vrot.lane.b32.xlu0 %v8074_v49, %s8681_s18  ;;  %3246 = vrot.lane.b32.xlu1 %v8076_v44, %s8681_s18  ;;  %v8078_v27 = vpop.eup %8077 }
0x100b   :  { %v8080_v50 = vpop.eup %8079 }
0x100e   :  { %3244 = vrot.lane.b32.xlu0 %v8078_v27, %s8681_s18  ;;  %3271 = vperm.xlu1 %7744, %v3269_v47   ;;  %v3391_v47 = vld [vmem:[#allocation2 + $0x7] sm:$0x1] }
0x1012   :  { %3248 = vrot.lane.b32.xlu0 %v8080_v50, %s8681_s18 }
0x1070   :  { %v3235_v61 = vpop.permute.xlu1 %3234 }
0x1071   :  { %v3258_v37 = vmul.f32 %v3235_v61, %v9699_v52 }
0x1074   :  { %v3237_v12 = vpop.permute.xlu1 %3236 }
0x1075   :  { %v3259_v58 = vmul.f32 %v3237_v12, %v9706_v2 }
0x1077   :  { %v3282_v45 = vrot.slane %v3259_v58, 7  ;;  %v3392_v58 = vld [vmem:[#allocation2 + $0x17] sm:$0x1] }
0x1078   :  { %v3239_v1 = vpop.permute.xlu0 %3238  ;;  %v3243_v30 = vpop.permute.xlu1 %3242 }
0x1079   :  { %v3260_v55 = vmul.f32 %v3239_v1, %v9714_v25  ;;  %v3262_v23 = vmul.f32 %v3243_v30, %v9710_v14  ;;  %v3283_v48 = vsel %vm647_vm2, %v3282_v45, %v3258_v37  ;;  %v3393_v1 = vld [vmem:[#allocation2 + $0x27] sm:$0x1]  ;;  %v3394_v45 = vld [vmem:[#allocation2 + $0x37] sm:$0x1] }
0x107b   :  { %v3284_v24 = vrot.slane %v3260_v55, 6  ;;  %v3288_v9 = vrot.slane %v3262_v23, 4 }
0x107c   :  { %v3241_v3 = vpop.permute.xlu0 %3240  ;;  %v3247_v59 = vpop.permute.xlu1 %3246 }
0x107d   :  { %v3261_v46 = vmul.f32 %v3241_v3, %v9702_v19  ;;  %v3285_v15 = vsel %vm650_vm3, %v3284_v24, %v3283_v48  ;;  %v3264_v62 = vmul.f32 %v3247_v59, %v9722_v22  ;;  %v3397_v48 = vld [vmem:[#allocation2 + $0x67] sm:$0x1]  ;;  %v3398_v59 = vld [vmem:[#allocation2 + $0x77] sm:$0x1] }
0x107f   :  { %v3286_v56 = vrot.slane %v3261_v46, 5  ;;  %v3292_v17 = vrot.slane %v3264_v62, 2  ;;  %v3395_v46 = vld [vmem:[#allocation2 + $0x47] sm:$0x1] }
0x1080   :  { %v3245_v2 = vpop.permute.xlu0 %3244 }
0x1081   :  { %v3287_v29 = vsel %vm653_vm4, %v3286_v56, %v3285_v15  ;;  %v3263_v25 = vmul.f32 %v3245_v2, %v9718_v53 }
0x1082   :  { %v3289_v52 = vsel %vm656_vm5, %v3288_v9, %v3287_v29  ;;  %v3396_v9 = vld [vmem:[#allocation2 + $0x57] sm:$0x1] }
0x1083   :  { %v3290_v57 = vrot.slane %v3263_v25, 3 }
0x1084   :  { %v3249_v19 = vpop.permute.xlu0 %3248 }
0x1085   :  { %v3291_v14 = vsel %vm659_vm6, %v3290_v57, %v3289_v52  ;;  %v3265_v16 = vmul.f32 %v3249_v19, %v9726_v60 }
0x1086   :  { %v3293_v51 = vsel %vm662_vm7, %v3292_v17, %v3291_v14 }
0x1087   :  { %v3294_v21 = vrot.slane %v3265_v16, 1 }
0x1089   :  { %v3272_v43 = vpop.permute.xlu1 %3271  ;;  %v3295_v41 = vsel %vm665_vm8, %v3294_v21, %v3293_v51 }
0x108a   :  { %vm3273_vm10 = vcmp.eq.s32.totalorder %v3272_v43, 1  ;;  %3296 = vrot.lane.b32.xlu0 %v3295_v41, %s8679_s1 }
0x108b   :  { %v9781_v53 = vsel %vm3273_vm10, %v3321_v36, %v9636_v26 }
0x108c   :  { %v3578_v22 = vrot.slane %v9781_v53, 2  ;;  %v3577_v32 = vrot.slane %v9781_v53, 1  ;;  %v3579_v60 = vrot.slane %v9781_v53, 3  ;;  %v3581_v18 = vrot.slane %v9781_v53, 5 }
0x108d   :  { %v3580_v26 = vrot.slane %v9781_v53, 4  ;;  %v3583_v6 = vrot.slane %v9781_v53, 7  ;;  %v3582_v13 = vrot.slane %v9781_v53, 6 }
0x108e   :  { %3588 = vrot.lane.b32.xlu0 %v3578_v22, %s8679_s1  ;;  %3586 = vrot.lane.b32.xlu1 %v3577_v32, %s8679_s1 }
0x1092   :  { %3590 = vrot.lane.b32.xlu0 %v3579_v60, %s8679_s1  ;;  %3584 = vrot.lane.b32.xlu1 %v9781_v53, %s8679_s1 }
0x1096   :  { %3594 = vrot.lane.b32.xlu0 %v3581_v18, %s8679_s1  ;;  %3592 = vrot.lane.b32.xlu1 %v3580_v26, %s8679_s1 }
0x109a   :  { %3598 = vrot.lane.b32.xlu0 %v3583_v6, %s8679_s1  ;;  %3596 = vrot.lane.b32.xlu1 %v3582_v13, %s8679_s1 }
0x10fc   :  { %v3297_v31 = vpop.permute.xlu0 %3296 }
0x10fd   :  { %v9801_v20 = vsel %vm3273_vm10, %v3297_v31, %v9656_v42  ;;  %v3324_v54 = vsel %vm3273_vm10, %v3297_v31, 0.0 }
0x10fe   :  { %v3326_v40 = vcombine.high %v3324_v54, %v3324_v54  ;;  %v3333_v4 = vrot.slane %v3324_v54, %v8966_v28  ;;  %7638 = vmatmul.mubr.msk.f32.vlgmr.msra.gmra.mxu1 %vm70_vm0, %v9801_v20 }
0x10ff   :  { %7652 = vmatpush3.msra.mxu1 %v9662_v5  ;;  %7659 = vmatprep.mubr.msk.f32.mxu1 %vm8678_vm1, %v8677_v0 }
0x1100   :  { %v3340_v10 = vrot.slane %v3326_v40, %v8966_v28  ;;  %v3341_v39 = vcombine.high %v3333_v4, %v3333_v4  ;;  %v3349_v36 = vrot.slane %v3333_v4, %v8966_v28  ;;  %7653 = vmatprep.subr.mxu1 %v8677_v0  ;;  %v3587_v6 = vpop.permute.xlu1 %3586  ;;  %v3589_v40 = vpop.permute.xlu0 %3588 }
0x1101   :  { %7654 = vmatpush3.msra.mxu1 %v9670_v8 }
0x1102   :  { %v3342_v42 = vcombine.high %v3340_v10, %v3340_v10  ;;  %v3356_v63 = vrot.slane %v3340_v10, %v8966_v28  ;;  %v3363_v33 = vrot.slane %v3341_v39, %v8966_v28  ;;  %v3371_v38 = vcombine.high %v3349_v36, %v3349_v36  ;;  %3383 = vst.msk [vmem:[#allocation11 + $0x6] sm:$0x1] %vm754_vm11, %v3349_v36 }
0x1103   :  { %7655 = vmatprep.subr.mxu1 %v8677_v0 }
0x1104   :  { %7656 = vmatpush3.msra.mxu1 %v9677_v11  ;;  %v3370_v5 = vrot.slane %v3342_v42, %v8966_v28  ;;  %v3372_v49 = vcombine.high %v3356_v63, %v3356_v63  ;;  %v3373_v44 = vcombine.high %v3363_v33, %v3363_v33  ;;  %3384 = vst.msk [vmem:[#allocation11 + $0x16] sm:$0x1] %vm754_vm11, %v3363_v33  ;;  %3385 = vst.msk [vmem:[#allocation11 + $0x26] sm:$0x1] %vm754_vm11, %v3371_v38 }
0x1105   :  { %3387 = vst.msk [vmem:[#allocation11 + $0x46] sm:$0x1] %vm754_vm11, %v3356_v63  ;;  %7657 = vmatprep.subr.mxu1 %v8677_v0 }
0x1106   :  { %7658 = vmatpush3.msra.mxu1 %v9685_v7  ;;  %v3374_v8 = vcombine.high %v3370_v5, %v3370_v5  ;;  %3386 = vst.msk [vmem:[#allocation11 + $0x36] sm:$0x1] %vm754_vm11, %v3373_v44  ;;  %3388 = vst.msk [vmem:[#allocation11 + $0x56] sm:$0x1] %vm754_vm11, %v3370_v5 }
0x1107   :  { %3389 = vst.msk [vmem:[#allocation11 + $0x66] sm:$0x1] %vm754_vm11, %v3372_v49  ;;  %7673 = vmatprep.subr.mxu1 %v8677_v0  ;;  %v3585_v49 = vpop.permute.xlu1 %3584 }
0x1108   :  { %3390 = vst.msk [vmem:[#allocation11 + $0x76] sm:$0x1] %vm754_vm11, %v3374_v8 }
0x11be   :  { %v3468_v11 = vpop.f32.mrf.mxu1 }
0x11bf   :  { %v3473_v27 = vrot.slane %v3468_v11, 1  ;;  %v3474_v50 = vrot.slane %v3468_v11, 2  ;;  %v3475_v61 = vrot.slane %v3468_v11, 3  ;;  %v3476_v12 = vrot.slane %v3468_v11, 4 }
0x11c0   :  { %v3478_v7 = vrot.slane %v3468_v11, 6  ;;  %v3488_v55 = vadd.f32 %v3468_v11, %v3391_v47  ;;  %v7639_v30 = vpop.f32.mrf.mxu1  ;;  %v3479_v24 = vrot.slane %v3468_v11, 7  ;;  %v3477_v15 = vrot.slane %v3468_v11, 5 }
0x11c1   :  { %v3489_v3 = vadd.f32 %v3473_v27, %v3392_v58  ;;  %v3490_v37 = vadd.f32 %v3474_v50, %v3393_v1  ;;  %v3491_v23 = vadd.f32 %v3475_v61, %v3394_v45  ;;  %v3492_v56 = vadd.f32 %v3476_v12, %v3395_v46  ;;  %v3591_v27 = vpop.permute.xlu0 %3590  ;;  %v3593_v30 = vpop.permute.xlu1 %3592 }
0x11c2   :  { %8081 = vtanh.f32 %v3488_v55  ;;  %v3494_v2 = vadd.f32 %v3478_v7, %v3397_v48  ;;  %v3495_v29 = vadd.f32 %v3479_v24, %v3398_v59  ;;  %v3496_v25 = vmul.f32 0.5, %v3488_v55 }
0x11c3   :  { %8083 = vtanh.f32 %v3490_v37  ;;  %v3499_v62 = vmul.f32 0.5, %v3491_v23  ;;  %v3493_v57 = vadd.f32 %v3477_v15, %v3396_v9  ;;  %v3497_v52 = vmul.f32 0.5, %v3489_v3 }
0x11c4   :  { %8085 = vtanh.f32 %v3489_v3  ;;  %v3500_v19 = vmul.f32 0.5, %v3492_v56  ;;  %v3498_v14 = vmul.f32 0.5, %v3490_v37  ;;  %v3502_v17 = vmul.f32 0.5, %v3494_v2 }
0x11c5   :  { %8087 = vtanh.f32 %v3491_v23  ;;  %v3501_v16 = vmul.f32 0.5, %v3493_v57  ;;  %v3503_v51 = vmul.f32 0.5, %v3495_v29  ;;  %v3595_v37 = vpop.permute.xlu0 %3594  ;;  %v3597_v59 = vpop.permute.xlu1 %3596 }
0x11c6   :  { %8089 = vtanh.f32 %v3492_v56 }
0x11c7   :  { %8091 = vtanh.f32 %v3494_v2 }
0x11c8   :  { %8093 = vtanh.f32 %v3495_v29 }
0x11c9   :  { %8095 = vtanh.f32 %v3496_v25  ;;  %v3599_v2 = vpop.permute.xlu0 %3598 }
0x11ca   :  { %8097 = vtanh.f32 %v3499_v62 }
0x11cb   :  { %8099 = vtanh.f32 %v3497_v52 }
0x11cc   :  { %8101 = vtanh.f32 %v3500_v19 }
0x11cd   :  { %8103 = vtanh.f32 %v3498_v14 }
0x11ce   :  { %8105 = vtanh.f32 %v3493_v57 }
0x11cf   :  { %v8082_v21 = vpop.eup %8081  ;;  %8107 = vtanh.f32 %v3501_v16 }
0x11d0   :  { %3544 = vrot.lane.b32.xlu1 %v8082_v21, %s8680_s4  ;;  %v8084_v43 = vpop.eup %8083  ;;  %8109 = vtanh.f32 %v3502_v17 }
0x11d1   :  { %v8086_v41 = vpop.eup %8085  ;;  %3548 = vrot.lane.b32.xlu0 %v8084_v43, %s8680_s4  ;;  %8111 = vtanh.f32 %v3503_v51 }
0x11d2   :  { %v8088_v22 = vpop.eup %8087 }
0x11d3   :  { %v8090_v32 = vpop.eup %8089 }
0x11d4   :  { %3546 = vrot.lane.b32.xlu1 %v8086_v41, %s8680_s4  ;;  %v8092_v60 = vpop.eup %8091 }
0x11d5   :  { %v8094_v18 = vpop.eup %8093  ;;  %3550 = vrot.lane.b32.xlu0 %v8088_v22, %s8680_s4 }
0x11d6   :  { %v8096_v26 = vpop.eup %8095 }
0x11d7   :  { %v8098_v13 = vpop.eup %8097  ;;  %v3512_v31 = vmul.f32 0.5, %v8096_v26 }
0x11d8   :  { %3556 = vrot.lane.b32.xlu1 %v8092_v60, %s8680_s4  ;;  %v8100_v54 = vpop.eup %8099  ;;  %v3515_v4 = vmul.f32 0.5, %v8098_v13 }
0x11d9   :  { %v8102_v10 = vpop.eup %8101  ;;  %3552 = vrot.lane.b32.xlu0 %v8090_v32, %s8680_s4  ;;  %v9836_v39 = vadd.f32 0.5, %v3512_v31  ;;  %v3513_v36 = vmul.f32 0.5, %v8100_v54 }
0x11da   :  { %v8104_v42 = vpop.eup %8103  ;;  %v9839_v33 = vadd.f32 0.5, %v3515_v4  ;;  %v3516_v38 = vmul.f32 0.5, %v8102_v10 }
0x11db   :  { %v8106_v63 = vpop.eup %8105  ;;  %v3608_v44 = vmul.f32 %v3585_v49, %v9836_v39  ;;  %v9843_v8 = vadd.f32 0.5, %v3513_v36  ;;  %v3514_v11 = vmul.f32 0.5, %v8104_v42 }
0x11dc   :  { %3558 = vrot.lane.b32.xlu1 %v8094_v18, %s8680_s4  ;;  %v8108_v5 = vpop.eup %8107  ;;  %v3611_v50 = vmul.f32 %v3591_v27, %v9839_v33  ;;  %v9847_v61 = vadd.f32 0.5, %v3516_v38 }
0x11dd   :  { %3554 = vrot.lane.b32.xlu0 %v8106_v63, %s8680_s4  ;;  %v8110_v47 = vpop.eup %8109  ;;  %v3517_v12 = vmul.f32 0.5, %v8108_v5  ;;  %v3609_v1 = vmul.f32 %v3587_v6, %v9843_v8  ;;  %v9851_v7 = vadd.f32 0.5, %v3514_v11 }
0x11de   :  { %v8112_v58 = vpop.eup %8111  ;;  %v3518_v55 = vmul.f32 0.5, %v8110_v47  ;;  %v3612_v45 = vmul.f32 %v3593_v30, %v9847_v61 }
0x11df   :  { %v9855_v24 = vadd.f32 0.5, %v3517_v12  ;;  %v3519_v3 = vmul.f32 0.5, %v8112_v58  ;;  %v3610_v46 = vmul.f32 %v3589_v40, %v9851_v7 }
0x11e0   :  { %3624 = vrot.lane.b32.xlu1 %v3608_v44, %s8681_s18  ;;  %v9859_v23 = vadd.f32 0.5, %v3518_v55 }
0x11e1   :  { %3630 = vrot.lane.b32.xlu0 %v3611_v50, %s8681_s18  ;;  %v3613_v48 = vmul.f32 %v3595_v37, %v9855_v24  ;;  %v9863_v56 = vadd.f32 0.5, %v3519_v3 }
0x11e2   :  { %v3614_v15 = vmul.f32 %v3597_v59, %v9859_v23 }
0x11e3   :  { %v3615_v29 = vmul.f32 %v3599_v2, %v9863_v56 }
0x11e4   :  { %3626 = vrot.lane.b32.xlu1 %v3609_v1, %s8681_s18 }
0x11e5   :  { %3632 = vrot.lane.b32.xlu0 %v3612_v45, %s8681_s18 }
0x11e8   :  { %3628 = vrot.lane.b32.xlu1 %v3610_v46, %s8681_s18 }
0x11e9   :  { %3634 = vrot.lane.b32.xlu0 %v3613_v48, %s8681_s18 }
0x11ec   :  { %3636 = vrot.lane.b32.xlu1 %v3614_v15, %s8681_s18 }
0x11ed   :  { %3638 = vrot.lane.b32.xlu0 %v3615_v29, %s8681_s18 }
0x1242   :  { %v3545_v25 = vpop.permute.xlu1 %3544 }
0x1243   :  { %v3549_v9 = vpop.permute.xlu0 %3548  ;;  %v3568_v17 = vmul.f32 %v3545_v25, %v9836_v39 }
0x1244   :  { %v3570_v6 = vmul.f32 %v3549_v9, %v9851_v7 }
0x1246   :  { %v3547_v62 = vpop.permute.xlu1 %3546 }
0x1247   :  { %v3551_v57 = vpop.permute.xlu0 %3550  ;;  %v3569_v41 = vmul.f32 %v3547_v62, %v9843_v8  ;;  %v3707_v62 = vsel %vm3706_vm12, 1, %v8682_v35 }
0x1248   :  { %v3571_v18 = vmul.f32 %v3551_v57, %v9839_v33 }
0x124a   :  { %v3557_v52 = vpop.permute.xlu1 %3556 }
0x124b   :  { %v3553_v19 = vpop.permute.xlu0 %3552  ;;  %v3574_v63 = vmul.f32 %v3557_v52, %v9859_v23 }
0x124c   :  { %v3572_v32 = vmul.f32 %v3553_v19, %v9847_v61 }
0x124e   :  { %v3559_v14 = vpop.permute.xlu1 %3558 }
0x124f   :  { %v3555_v16 = vpop.permute.xlu0 %3554  ;;  %v3575_v49 = vmul.f32 %v3559_v14, %v9863_v56 }
0x1250   :  { %v3573_v4 = vmul.f32 %v3555_v16, %v9855_v24 }
0x1252   :  { %v3625_v21 = vpop.permute.xlu1 %3624 }
0x1253   :  { %v3648_v51 = vadd.f32 %v3625_v21, %v3568_v17  ;;  %v3631_v43 = vpop.permute.xlu0 %3630 }
0x1254   :  { %v3651_v54 = vadd.f32 %v3631_v43, %v3571_v18 }
0x1255   :  { %8113 = vtanh.f32 %v3648_v51 }
0x1256   :  { %v3627_v22 = vpop.permute.xlu1 %3626  ;;  %v3750_v44 = vrot.slane %v3651_v54, 5 }
0x1257   :  { %v3649_v60 = vadd.f32 %v3627_v22, %v3569_v41  ;;  %v3633_v26 = vpop.permute.xlu0 %3632 }
0x1258   :  { %v3652_v31 = vadd.f32 %v3633_v26, %v3572_v32 }
0x1259   :  { %8115 = vtanh.f32 %v3649_v60  ;;  %v3746_v13 = vrot.slane %v3649_v60, 7 }
0x125a   :  { %v3629_v40 = vpop.permute.xlu1 %3628  ;;  %8117 = vtanh.f32 %v3652_v31  ;;  %v3752_v47 = vrot.slane %v3652_v31, 4 }
0x125b   :  { %v3747_v10 = vsel %vm647_vm2, %v3746_v13, %v3648_v51  ;;  %v3650_v36 = vadd.f32 %v3629_v40, %v3570_v6  ;;  %v3635_v42 = vpop.permute.xlu0 %3634 }
0x125c   :  { %v3653_v5 = vadd.f32 %v3635_v42, %v3573_v4 }
0x125d   :  { %8119 = vtanh.f32 %v3650_v36  ;;  %v3748_v38 = vrot.slane %v3650_v36, 6 }
0x125e   :  { %v3637_v11 = vpop.permute.xlu1 %3636  ;;  %v3754_v50 = vrot.slane %v3653_v5, 3  ;;  %8121 = vtanh.f32 %v3651_v54 }
0x125f   :  { %v3749_v27 = vsel %vm650_vm3, %v3748_v38, %v3747_v10  ;;  %v3654_v12 = vadd.f32 %v3637_v11, %v3574_v63  ;;  %v3639_v1 = vpop.permute.xlu0 %3638 }
0x1260   :  { %v3751_v58 = vsel %vm653_vm4, %v3750_v44, %v3749_v27  ;;  %v3655_v45 = vadd.f32 %v3639_v1, %v3575_v49 }
0x1261   :  { %v3753_v55 = vsel %vm656_vm5, %v3752_v47, %v3751_v58  ;;  %8123 = vtanh.f32 %v3654_v12  ;;  %v3756_v30 = vrot.slane %v3654_v12, 2 }
0x1262   :  { %v8114_v3 = vpop.eup %8113  ;;  %v3755_v37 = vsel %vm659_vm6, %v3754_v50, %v3753_v55  ;;  %v3758_v48 = vrot.slane %v3655_v45, 1  ;;  %8125 = vtanh.f32 %v3653_v5  ;;  %v9939_v55 = vld [vmem:[#allocation10 + $0x18] sm:$0xff] }
0x1263   :  { %v3757_v46 = vsel %vm662_vm7, %v3756_v30, %v3755_v37  ;;  %3672 = vrot.lane.b32.xlu1 %v8114_v3, %s8681_s18  ;;  %8127 = vtanh.f32 %v3655_v45  ;;  %v9947_v3 = vld [vmem:[#allocation10 + $0x10] sm:$0xff] }
0x1264   :  { %v3759_v59 = vsel %vm665_vm8, %v3758_v48, %v3757_v46 }
0x1266   :  { %v8116_v15 = vpop.eup %8115 }
0x1267   :  { %3674 = vrot.lane.b32.xlu1 %v8116_v15, %s8681_s18  ;;  %v8118_v2 = vpop.eup %8117  ;;  %v9954_v15 = vld [vmem:[#allocation10 + $0x8] sm:$0xff] }
0x126a   :  { %v8120_v29 = vpop.eup %8119 }
0x126b   :  { %3676 = vrot.lane.b32.xlu0 %v8120_v29, %s8681_s18  ;;  %3680 = vrot.lane.b32.xlu1 %v8118_v2, %s8681_s18  ;;  %v8122_v25 = vpop.eup %8121 }
0x126e   :  { %v8124_v9 = vpop.eup %8123 }
0x126f   :  { %3678 = vrot.lane.b32.xlu0 %v8122_v25, %s8681_s18  ;;  %3684 = vrot.lane.b32.xlu1 %v8124_v9, %s8681_s18  ;;  %v8126_v57 = vpop.eup %8125  ;;  %v9962_v9 = vld [vmem:[#allocation10] sm:$0xff] }
0x1270   :  { %v8128_v52 = vpop.eup %8127 }
0x1273   :  { %3682 = vrot.lane.b32.xlu0 %v8126_v57, %s8681_s18  ;;  %3709 = vperm.xlu1 %7744, %v3707_v62  }
0x1277   :  { %3686 = vrot.lane.b32.xlu0 %v8128_v52, %s8681_s18  ;;  %v3829_v52 = vld [vmem:[#allocation2 + $0x8] sm:$0x1] }
0x12d5   :  { %v3673_v19 = vpop.permute.xlu1 %3672 }
0x12d6   :  { %v3696_v22 = vmul.f32 %v3673_v19, %v9836_v39 }
0x12d9   :  { %v3675_v14 = vpop.permute.xlu1 %3674 }
0x12da   :  { %v3697_v16 = vmul.f32 %v3675_v14, %v9843_v8 }
0x12dc   :  { %v3720_v51 = vrot.slane %v3697_v16, 7 }
0x12dd   :  { %v3677_v17 = vpop.permute.xlu0 %3676  ;;  %v3681_v21 = vpop.permute.xlu1 %3680 }
0x12de   :  { %v3698_v34 = vmul.f32 %v3677_v17, %v9851_v7  ;;  %v3700_v60 = vmul.f32 %v3681_v21, %v9847_v61  ;;  %v3721_v18 = vsel %vm647_vm2, %v3720_v51, %v3696_v22  ;;  %v3831_v21 = vld [vmem:[#allocation2 + $0x28] sm:$0x1]  ;;  %v3832_v22 = vld [vmem:[#allocation2 + $0x38] sm:$0x1] }
0x12e0   :  { %v3722_v43 = vrot.slane %v3698_v34, 6  ;;  %v3726_v54 = vrot.slane %v3700_v60, 4  ;;  %v3830_v34 = vld [vmem:[#allocation2 + $0x18] sm:$0x1] }
0x12e1   :  { %v3679_v41 = vpop.permute.xlu0 %3678  ;;  %v3685_v6 = vpop.permute.xlu1 %3684 }
0x12e2   :  { %v3699_v32 = vmul.f32 %v3679_v41, %v9839_v33  ;;  %v3723_v13 = vsel %vm650_vm3, %v3722_v43, %v3721_v18  ;;  %v3702_v40 = vmul.f32 %v3685_v6, %v9859_v23 }
0x12e4   :  { %v3724_v26 = vrot.slane %v3699_v32, 5  ;;  %v3730_v36 = vrot.slane %v3702_v40, 2 }
0x12e5   :  { %v3683_v8 = vpop.permute.xlu0 %3682 }
0x12e6   :  { %v3725_v31 = vsel %vm653_vm4, %v3724_v26, %v3723_v13  ;;  %v3701_v7 = vmul.f32 %v3683_v8, %v9855_v24  ;;  %v3833_v26 = vld [vmem:[#allocation2 + $0x48] sm:$0x1] }
0x12e7   :  { %v3727_v39 = vsel %vm656_vm5, %v3726_v54, %v3725_v31  ;;  %v3835_v13 = vld [vmem:[#allocation2 + $0x68] sm:$0x1]  ;;  %v3836_v31 = vld [vmem:[#allocation2 + $0x78] sm:$0x1] }
0x12e8   :  { %v3728_v4 = vrot.slane %v3701_v7, 3 }
0x12e9   :  { %v3687_v33 = vpop.permute.xlu0 %3686 }
0x12ea   :  { %v3729_v61 = vsel %vm659_vm6, %v3728_v4, %v3727_v39  ;;  %v3703_v10 = vmul.f32 %v3687_v33, %v9863_v56  ;;  %v3834_v39 = vld [vmem:[#allocation2 + $0x58] sm:$0x1] }
0x12eb   :  { %v3731_v63 = vsel %vm662_vm7, %v3730_v36, %v3729_v61 }
0x12ec   :  { %v3732_v42 = vrot.slane %v3703_v10, 1 }
0x12ee   :  { %v3710_v38 = vpop.permute.xlu1 %3709  ;;  %v3733_v5 = vsel %vm665_vm8, %v3732_v42, %v3731_v63 }
0x12ef   :  { %vm3711_vm13 = vcmp.eq.s32.totalorder %v3710_v38, 1  ;;  %3734 = vrot.lane.b32.xlu0 %v3733_v5, %s8679_s1 }
0x12f0   :  { %v9913_v24 = vsel %vm3711_vm13, %v3759_v59, %v9781_v53 }
0x12f1   :  { %v4016_v23 = vrot.slane %v9913_v24, 2  ;;  %v4015_v49 = vrot.slane %v9913_v24, 1  ;;  %v4017_v56 = vrot.slane %v9913_v24, 3  ;;  %v4019_v44 = vrot.slane %v9913_v24, 5 }
0x12f2   :  { %v4018_v53 = vrot.slane %v9913_v24, 4  ;;  %v4021_v11 = vrot.slane %v9913_v24, 7  ;;  %v4020_v47 = vrot.slane %v9913_v24, 6 }
0x12f3   :  { %4026 = vrot.lane.b32.xlu0 %v4016_v23, %s8679_s1  ;;  %4024 = vrot.lane.b32.xlu1 %v4015_v49, %s8679_s1 }
0x12f7   :  { %4028 = vrot.lane.b32.xlu0 %v4017_v56, %s8679_s1  ;;  %4022 = vrot.lane.b32.xlu1 %v9913_v24, %s8679_s1 }
0x12fb   :  { %4032 = vrot.lane.b32.xlu0 %v4019_v44, %s8679_s1  ;;  %4030 = vrot.lane.b32.xlu1 %v4018_v53, %s8679_s1 }
0x12ff   :  { %4036 = vrot.lane.b32.xlu0 %v4021_v11, %s8679_s1  ;;  %4034 = vrot.lane.b32.xlu1 %v4020_v47, %s8679_s1 }
0x1361   :  { %v3735_v27 = vpop.permute.xlu0 %3734 }
0x1362   :  { %v9933_v50 = vsel %vm3711_vm13, %v3735_v27, %v9801_v20  ;;  %v3762_v12 = vsel %vm3711_vm13, %v3735_v27, 0.0 }
0x1363   :  { %v3764_v58 = vcombine.high %v3762_v12, %v3762_v12  ;;  %v3771_v1 = vrot.slane %v3762_v12, %v8966_v28  ;;  %7649 = vmatmul.mubr.msk.f32.vlgmr.msra.gmra.mxu0 %vm70_vm0, %v9933_v50 }
0x1364   :  { %7663 = vmatpush3.msra.mxu0 %v9939_v55  ;;  %7670 = vmatprep.mubr.msk.f32.mxu0 %vm8678_vm1, %v8677_v0 }
0x1365   :  { %v3778_v30 = vrot.slane %v3764_v58, %v8966_v28  ;;  %v3779_v45 = vcombine.high %v3771_v1, %v3771_v1  ;;  %v3787_v20 = vrot.slane %v3771_v1, %v8966_v28  ;;  %7664 = vmatprep.subr.mxu0 %v8677_v0  ;;  %v4025_v12 = vpop.permute.xlu1 %4024 }
0x1366   :  { %7665 = vmatpush3.msra.mxu0 %v9947_v3 }
0x1367   :  { %v3780_v37 = vcombine.high %v3778_v30, %v3778_v30  ;;  %v3794_v46 = vrot.slane %v3778_v30, %v8966_v28  ;;  %v3801_v48 = vrot.slane %v3779_v45, %v8966_v28  ;;  %v3809_v59 = vcombine.high %v3787_v20, %v3787_v20  ;;  %3821 = vst.msk [vmem:[#allocation11 + $0x7] sm:$0x1] %vm754_vm11, %v3787_v20  ;;  %v4027_v45 = vpop.permute.xlu0 %4026 }
0x1368   :  { %7666 = vmatprep.subr.mxu0 %v8677_v0 }
0x1369   :  { %7667 = vmatpush3.msra.mxu0 %v9954_v15  ;;  %v3808_v2 = vrot.slane %v3780_v37, %v8966_v28  ;;  %v3810_v29 = vcombine.high %v3794_v46, %v3794_v46  ;;  %v3811_v25 = vcombine.high %v3801_v48, %v3801_v48  ;;  %3822 = vst.msk [vmem:[#allocation11 + $0x17] sm:$0x1] %vm754_vm11, %v3801_v48  ;;  %3823 = vst.msk [vmem:[#allocation11 + $0x27] sm:$0x1] %vm754_vm11, %v3809_v59 }
0x136a   :  { %3825 = vst.msk [vmem:[#allocation11 + $0x47] sm:$0x1] %vm754_vm11, %v3794_v46  ;;  %7668 = vmatprep.subr.mxu0 %v8677_v0 }
0x136b   :  { %7669 = vmatpush3.msra.mxu0 %v9962_v9  ;;  %v3812_v62 = vcombine.high %v3808_v2, %v3808_v2  ;;  %3824 = vst.msk [vmem:[#allocation11 + $0x37] sm:$0x1] %vm754_vm11, %v3811_v25  ;;  %3826 = vst.msk [vmem:[#allocation11 + $0x57] sm:$0x1] %vm754_vm11, %v3808_v2 }
0x136c   :  { %3827 = vst.msk [vmem:[#allocation11 + $0x67] sm:$0x1] %vm754_vm11, %v3810_v29  ;;  %7684 = vmatprep.subr.mxu0 %v8677_v0 }
0x136d   :  { %3828 = vst.msk [vmem:[#allocation11 + $0x77] sm:$0x1] %vm754_vm11, %v3812_v62 }
0x1423   :  { %v3906_v57 = vpop.f32.mrf.mxu0 }
0x1424   :  { %v3911_v19 = vrot.slane %v3906_v57, 1  ;;  %v3912_v14 = vrot.slane %v3906_v57, 2  ;;  %v3913_v16 = vrot.slane %v3906_v57, 3  ;;  %v3914_v17 = vrot.slane %v3906_v57, 4 }
0x1425   :  { %v3916_v51 = vrot.slane %v3906_v57, 6  ;;  %v3926_v43 = vadd.f32 %v3906_v57, %v3829_v52  ;;  %v7650_v41 = vpop.f32.mrf.mxu0  ;;  %v3917_v32 = vrot.slane %v3906_v57, 7  ;;  %v3915_v7 = vrot.slane %v3906_v57, 5  ;;  %v4023_v57 = vpop.permute.xlu1 %4022 }
0x1426   :  { %v3927_v60 = vadd.f32 %v3911_v19, %v3830_v34  ;;  %v3928_v18 = vadd.f32 %v3912_v14, %v3831_v21  ;;  %v3929_v6 = vadd.f32 %v3913_v16, %v3832_v22  ;;  %v3930_v8 = vadd.f32 %v3914_v17, %v3833_v26  ;;  %v4029_v17 = vpop.permute.xlu0 %4028 }
0x1427   :  { %8129 = vtanh.f32 %v3926_v43  ;;  %v3932_v54 = vadd.f32 %v3916_v51, %v3835_v13  ;;  %v3933_v40 = vadd.f32 %v3917_v32, %v3836_v31  ;;  %v3934_v4 = vmul.f32 0.5, %v3926_v43 }
0x1428   :  { %8131 = vtanh.f32 %v3928_v18  ;;  %v3937_v33 = vmul.f32 0.5, %v3929_v6  ;;  %v3931_v61 = vadd.f32 %v3915_v7, %v3834_v39  ;;  %v3935_v10 = vmul.f32 0.5, %v3927_v60 }
0x1429   :  { %8133 = vtanh.f32 %v3927_v60  ;;  %v3938_v36 = vmul.f32 0.5, %v3930_v8  ;;  %v3936_v42 = vmul.f32 0.5, %v3928_v18  ;;  %v3940_v38 = vmul.f32 0.5, %v3932_v54  ;;  %v4031_v60 = vpop.permute.xlu1 %4030 }
0x142a   :  { %8135 = vtanh.f32 %v3929_v6  ;;  %v3939_v63 = vmul.f32 0.5, %v3931_v61  ;;  %v3941_v23 = vmul.f32 0.5, %v3933_v40  ;;  %v4033_v13 = vpop.permute.xlu0 %4032 }
0x142b   :  { %8137 = vtanh.f32 %v3930_v8 }
0x142c   :  { %8139 = vtanh.f32 %v3932_v54 }
0x142d   :  { %8141 = vtanh.f32 %v3933_v40  ;;  %v4035_v40 = vpop.permute.xlu1 %4034 }
0x142e   :  { %8143 = vtanh.f32 %v3934_v4  ;;  %v4037_v39 = vpop.permute.xlu0 %4036 }
0x142f   :  { %8145 = vtanh.f32 %v3937_v33 }
0x1430   :  { %8147 = vtanh.f32 %v3935_v10 }
0x1431   :  { %8149 = vtanh.f32 %v3938_v36 }
0x1432   :  { %8151 = vtanh.f32 %v3936_v42 }
0x1433   :  { %8153 = vtanh.f32 %v3931_v61 }
0x1434   :  { %v8130_v5 = vpop.eup %8129  ;;  %8155 = vtanh.f32 %v3939_v63 }
0x1435   :  { %3982 = vrot.lane.b32.xlu1 %v8130_v5, %s8680_s4  ;;  %v8132_v49 = vpop.eup %8131  ;;  %8157 = vtanh.f32 %v3940_v38 }
0x1436   :  { %v8134_v56 = vpop.eup %8133  ;;  %3986 = vrot.lane.b32.xlu0 %v8132_v49, %s8680_s4  ;;  %8159 = vtanh.f32 %v3941_v23 }
0x1437   :  { %v8136_v44 = vpop.eup %8135 }
0x1438   :  { %v8138_v53 = vpop.eup %8137 }
0x1439   :  { %3984 = vrot.lane.b32.xlu1 %v8134_v56, %s8680_s4  ;;  %v8140_v11 = vpop.eup %8139 }
0x143a   :  { %v8142_v47 = vpop.eup %8141  ;;  %3988 = vrot.lane.b32.xlu0 %v8136_v44, %s8680_s4 }
0x143b   :  { %v8144_v27 = vpop.eup %8143 }
0x143c   :  { %v8146_v58 = vpop.eup %8145  ;;  %v3950_v1 = vmul.f32 0.5, %v8144_v27 }
0x143d   :  { %3994 = vrot.lane.b32.xlu1 %v8140_v11, %s8680_s4  ;;  %v8148_v30 = vpop.eup %8147  ;;  %v3953_v20 = vmul.f32 0.5, %v8146_v58 }
0x143e   :  { %v8150_v37 = vpop.eup %8149  ;;  %3990 = vrot.lane.b32.xlu0 %v8138_v53, %s8680_s4  ;;  %v9976_v46 = vadd.f32 0.5, %v3950_v1  ;;  %v3951_v48 = vmul.f32 0.5, %v8148_v30 }
0x143f   :  { %v8152_v59 = vpop.eup %8151  ;;  %v9979_v29 = vadd.f32 0.5, %v3953_v20  ;;  %v3954_v25 = vmul.f32 0.5, %v8150_v37 }
0x1440   :  { %v8154_v2 = vpop.eup %8153  ;;  %v4046_v52 = vmul.f32 %v4023_v57, %v9976_v46  ;;  %v9983_v19 = vadd.f32 0.5, %v3951_v48  ;;  %v3952_v14 = vmul.f32 0.5, %v8152_v59 }
0x1441   :  { %3996 = vrot.lane.b32.xlu1 %v8142_v47, %s8680_s4  ;;  %v8156_v62 = vpop.eup %8155  ;;  %v4049_v34 = vmul.f32 %v4029_v17, %v9979_v29  ;;  %v9987_v21 = vadd.f32 0.5, %v3954_v25 }
0x1442   :  { %3992 = vrot.lane.b32.xlu0 %v8154_v2, %s8680_s4  ;;  %v8158_v16 = vpop.eup %8157  ;;  %v3955_v51 = vmul.f32 0.5, %v8156_v62  ;;  %v4047_v41 = vmul.f32 %v4025_v12, %v9983_v19  ;;  %v9991_v22 = vadd.f32 0.5, %v3952_v14 }
0x1443   :  { %v8160_v43 = vpop.eup %8159  ;;  %v3956_v32 = vmul.f32 0.5, %v8158_v16  ;;  %v4050_v18 = vmul.f32 %v4031_v60, %v9987_v21 }
0x1444   :  { %v9995_v26 = vadd.f32 0.5, %v3955_v51  ;;  %v3957_v6 = vmul.f32 0.5, %v8160_v43  ;;  %v4048_v8 = vmul.f32 %v4027_v45, %v9991_v22 }
0x1445   :  { %4062 = vrot.lane.b32.xlu1 %v4046_v52, %s8681_s18  ;;  %v9999_v31 = vadd.f32 0.5, %v3956_v32 }
0x1446   :  { %4068 = vrot.lane.b32.xlu0 %v4049_v34, %s8681_s18  ;;  %v4051_v7 = vmul.f32 %v4033_v13, %v9995_v26  ;;  %v10003_v54 = vadd.f32 0.5, %v3957_v6 }
0x1447   :  { %v4052_v4 = vmul.f32 %v4035_v40, %v9999_v31 }
0x1448   :  { %v4053_v33 = vmul.f32 %v4037_v39, %v10003_v54 }
0x1449   :  { %4064 = vrot.lane.b32.xlu1 %v4047_v41, %s8681_s18 }
0x144a   :  { %4070 = vrot.lane.b32.xlu0 %v4050_v18, %s8681_s18 }
0x144d   :  { %4066 = vrot.lane.b32.xlu1 %v4048_v8, %s8681_s18 }
0x144e   :  { %4072 = vrot.lane.b32.xlu0 %v4051_v7, %s8681_s18 }
0x1451   :  { %4074 = vrot.lane.b32.xlu1 %v4052_v4, %s8681_s18 }
0x1452   :  { %4076 = vrot.lane.b32.xlu0 %v4053_v33, %s8681_s18 }
0x14a7   :  { %v3983_v61 = vpop.permute.xlu1 %3982 }
0x14a8   :  { %v3987_v10 = vpop.permute.xlu0 %3986  ;;  %v4006_v49 = vmul.f32 %v3983_v61, %v9976_v46 }
0x14a9   :  { %v4008_v30 = vmul.f32 %v3987_v10, %v9991_v22 }
0x14ab   :  { %v3985_v36 = vpop.permute.xlu1 %3984 }
0x14ac   :  { %v3989_v42 = vpop.permute.xlu0 %3988  ;;  %v4007_v11 = vmul.f32 %v3985_v36, %v9983_v19 }
0x14ad   :  { %v4009_v58 = vmul.f32 %v3989_v42, %v9979_v29 }
0x14af   :  { %v3995_v63 = vpop.permute.xlu1 %3994 }
0x14b0   :  { %v3991_v38 = vpop.permute.xlu0 %3990  ;;  %v4012_v57 = vmul.f32 %v3995_v63, %v9999_v31  ;;  %v10032_v63 = vld [vmem:[%s11021_s0] sm:$0xff] }
0x14b1   :  { %v4010_v27 = vmul.f32 %v3991_v38, %v9987_v21  ;;  %vm4144_vm14 = vcmp.gt.s32.totalorder %v10032_v63, 8  ;;  %vm4582_vm9 = vcmp.gt.s32.totalorder %v10032_v63, 9 }
0x14b3   :  { %v3997_v5 = vpop.permute.xlu1 %3996 }
0x14b4   :  { %v3993_v23 = vpop.permute.xlu0 %3992  ;;  %v4013_v16 = vmul.f32 %v3997_v5, %v10003_v54  ;;  %v4145_v5 = vsel %vm4144_vm14, 1, %v8682_v35 }
0x14b5   :  { %v4011_v59 = vmul.f32 %v3993_v23, %v9995_v26 }
0x14b7   :  { %v4063_v56 = vpop.permute.xlu1 %4062 }
0x14b8   :  { %v4086_v44 = vadd.f32 %v4063_v56, %v4006_v49  ;;  %v4069_v53 = vpop.permute.xlu0 %4068 }
0x14b9   :  { %v4089_v37 = vadd.f32 %v4069_v53, %v4009_v58 }
0x14ba   :  { %8161 = vtanh.f32 %v4086_v44 }
0x14bb   :  { %v4065_v47 = vpop.permute.xlu1 %4064  ;;  %v4188_v17 = vrot.slane %v4089_v37, 5 }
0x14bc   :  { %v4087_v12 = vadd.f32 %v4065_v47, %v4007_v11  ;;  %v4071_v1 = vpop.permute.xlu0 %4070 }
0x14bd   :  { %v4090_v20 = vadd.f32 %v4071_v1, %v4010_v27 }
0x14be   :  { %8163 = vtanh.f32 %v4087_v12  ;;  %v4184_v45 = vrot.slane %v4087_v12, 7 }
0x14bf   :  { %v4067_v48 = vpop.permute.xlu1 %4066  ;;  %8165 = vtanh.f32 %v4090_v20  ;;  %v4190_v51 = vrot.slane %v4090_v20, 4 }
0x14c0   :  { %v4185_v2 = vsel %vm647_vm2, %v4184_v45, %v4086_v44  ;;  %v4088_v25 = vadd.f32 %v4067_v48, %v4008_v30  ;;  %v4073_v62 = vpop.permute.xlu0 %4072 }
0x14c1   :  { %v4091_v14 = vadd.f32 %v4073_v62, %v4011_v59 }
0x14c2   :  { %8167 = vtanh.f32 %v4088_v25  ;;  %v4186_v52 = vrot.slane %v4088_v25, 6 }
0x14c3   :  { %v4075_v34 = vpop.permute.xlu1 %4074  ;;  %v4192_v41 = vrot.slane %v4091_v14, 3  ;;  %8169 = vtanh.f32 %v4089_v37 }
0x14c4   :  { %v4187_v43 = vsel %vm650_vm3, %v4186_v52, %v4185_v2  ;;  %v4092_v32 = vadd.f32 %v4075_v34, %v4012_v57  ;;  %v4077_v18 = vpop.permute.xlu0 %4076 }
0x14c5   :  { %v4189_v60 = vsel %vm653_vm4, %v4188_v17, %v4187_v43  ;;  %v4093_v8 = vadd.f32 %v4077_v18, %v4013_v16 }
0x14c6   :  { %v4191_v6 = vsel %vm656_vm5, %v4190_v51, %v4189_v60  ;;  %8171 = vtanh.f32 %v4092_v32  ;;  %v4194_v13 = vrot.slane %v4092_v32, 2 }
0x14c7   :  { %v8162_v7 = vpop.eup %8161  ;;  %v4193_v40 = vsel %vm659_vm6, %v4192_v41, %v4191_v6  ;;  %v4196_v39 = vrot.slane %v4093_v8, 1  ;;  %8173 = vtanh.f32 %v4091_v14 }
0x14c8   :  { %v4195_v4 = vsel %vm662_vm7, %v4194_v13, %v4193_v40  ;;  %4110 = vrot.lane.b32.xlu1 %v8162_v7, %s8681_s18  ;;  %8175 = vtanh.f32 %v4093_v8 }
0x14c9   :  { %v4197_v33 = vsel %vm665_vm8, %v4196_v39, %v4195_v4 }
0x14cb   :  { %v8164_v61 = vpop.eup %8163 }
0x14cc   :  { %4112 = vrot.lane.b32.xlu1 %v8164_v61, %s8681_s18  ;;  %v8166_v10 = vpop.eup %8165 }
0x14cf   :  { %v8168_v36 = vpop.eup %8167 }
0x14d0   :  { %4114 = vrot.lane.b32.xlu0 %v8168_v36, %s8681_s18  ;;  %4118 = vrot.lane.b32.xlu1 %v8166_v10, %s8681_s18  ;;  %v8170_v42 = vpop.eup %8169 }
0x14d3   :  { %v8172_v38 = vpop.eup %8171 }
0x14d4   :  { %4116 = vrot.lane.b32.xlu0 %v8170_v42, %s8681_s18  ;;  %4122 = vrot.lane.b32.xlu1 %v8172_v38, %s8681_s18  ;;  %v8174_v23 = vpop.eup %8173 }
0x14d5   :  { %v8176_v49 = vpop.eup %8175 }
0x14d8   :  { %4120 = vrot.lane.b32.xlu0 %v8174_v23, %s8681_s18  ;;  %4147 = vperm.xlu1 %7744, %v4145_v5   ;;  %v4267_v5 = vld [vmem:[#allocation2 + $0x9] sm:$0x1] }
0x14dc   :  { %4124 = vrot.lane.b32.xlu0 %v8176_v49, %s8681_s18 }
0x153a   :  { %v4111_v56 = vpop.permute.xlu1 %4110 }
0x153b   :  { %v4134_v30 = vmul.f32 %v4111_v56, %v9976_v46 }
0x153e   :  { %v4113_v44 = vpop.permute.xlu1 %4112 }
0x153f   :  { %v4135_v53 = vmul.f32 %v4113_v44, %v9983_v19 }
0x1541   :  { %v4158_v12 = vrot.slane %v4135_v53, 7  ;;  %v4268_v53 = vld [vmem:[#allocation2 + $0x19] sm:$0x1] }
0x1542   :  { %v4115_v11 = vpop.permute.xlu0 %4114  ;;  %v4119_v27 = vpop.permute.xlu1 %4118 }
0x1543   :  { %v4136_v47 = vmul.f32 %v4115_v11, %v9991_v22  ;;  %v4138_v20 = vmul.f32 %v4119_v27, %v9987_v21  ;;  %v4159_v37 = vsel %vm647_vm2, %v4158_v12, %v4134_v30  ;;  %v4269_v11 = vld [vmem:[#allocation2 + $0x29] sm:$0x1]  ;;  %v4270_v12 = vld [vmem:[#allocation2 + $0x39] sm:$0x1] }
0x1545   :  { %v4160_v58 = vrot.slane %v4136_v47, 6  ;;  %v4164_v62 = vrot.slane %v4138_v20, 4 }
0x1546   :  { %v4117_v1 = vpop.permute.xlu0 %4116  ;;  %v4123_v59 = vpop.permute.xlu1 %4122 }
0x1547   :  { %v4137_v45 = vmul.f32 %v4117_v1, %v9979_v29  ;;  %v4161_v2 = vsel %vm650_vm3, %v4160_v58, %v4159_v37  ;;  %v4140_v57 = vmul.f32 %v4123_v59, %v9999_v31  ;;  %v4273_v37 = vld [vmem:[#allocation2 + $0x69] sm:$0x1]  ;;  %v4274_v59 = vld [vmem:[#allocation2 + $0x79] sm:$0x1] }
0x1549   :  { %v4162_v48 = vrot.slane %v4137_v45, 5  ;;  %v4168_v16 = vrot.slane %v4140_v57, 2  ;;  %v4271_v45 = vld [vmem:[#allocation2 + $0x49] sm:$0x1] }
0x154a   :  { %v4121_v19 = vpop.permute.xlu0 %4120 }
0x154b   :  { %v4163_v25 = vsel %vm653_vm4, %v4162_v48, %v4161_v2  ;;  %v4139_v22 = vmul.f32 %v4121_v19, %v9995_v26 }
0x154c   :  { %v4165_v46 = vsel %vm656_vm5, %v4164_v62, %v4163_v25  ;;  %v4272_v62 = vld [vmem:[#allocation2 + $0x59] sm:$0x1] }
0x154d   :  { %v4166_v52 = vrot.slane %v4139_v22, 3 }
0x154e   :  { %v4125_v29 = vpop.permute.xlu0 %4124 }
0x154f   :  { %v4167_v21 = vsel %vm659_vm6, %v4166_v52, %v4165_v46  ;;  %v4141_v14 = vmul.f32 %v4125_v29, %v10003_v54 }
0x1550   :  { %v4169_v34 = vsel %vm662_vm7, %v4168_v16, %v4167_v21 }
0x1551   :  { %v4170_v17 = vrot.slane %v4141_v14, 1 }
0x1553   :  { %v4148_v51 = vpop.permute.xlu1 %4147  ;;  %v4171_v43 = vsel %vm665_vm8, %v4170_v17, %v4169_v34 }
0x1554   :  { %vm4149_vm15 = vcmp.eq.s32.totalorder %v4148_v51, 1  ;;  %4172 = vrot.lane.b32.xlu0 %v4171_v43, %s8679_s1 }
0x1555   :  { %v10058_v26 = vsel %vm4149_vm15, %v4197_v33, %v9913_v24 }
0x1556   :  { %v4454_v31 = vrot.slane %v10058_v26, 2  ;;  %v4453_v41 = vrot.slane %v10058_v26, 1  ;;  %v4455_v54 = vrot.slane %v10058_v26, 3  ;;  %v4457_v32 = vrot.slane %v10058_v26, 5 }
0x1557   :  { %v4456_v24 = vrot.slane %v10058_v26, 4  ;;  %v4459_v60 = vrot.slane %v10058_v26, 7  ;;  %v4458_v18 = vrot.slane %v10058_v26, 6 }
0x1558   :  { %4464 = vrot.lane.b32.xlu0 %v4454_v31, %s8679_s1  ;;  %4462 = vrot.lane.b32.xlu1 %v4453_v41, %s8679_s1 }
0x155c   :  { %4466 = vrot.lane.b32.xlu0 %v4455_v54, %s8679_s1  ;;  %4460 = vrot.lane.b32.xlu1 %v10058_v26, %s8679_s1 }
0x1560   :  { %4470 = vrot.lane.b32.xlu0 %v4457_v32, %s8679_s1  ;;  %4468 = vrot.lane.b32.xlu1 %v4456_v24, %s8679_s1 }
0x1564   :  { %4474 = vrot.lane.b32.xlu0 %v4459_v60, %s8679_s1  ;;  %4472 = vrot.lane.b32.xlu1 %v4458_v18, %s8679_s1 }
0x15c6   :  { %v4173_v6 = vpop.permute.xlu0 %4172 }
0x15c7   :  { %v10078_v13 = vsel %vm4149_vm15, %v4173_v6, %v9933_v50  ;;  %v4200_v8 = vsel %vm4149_vm15, %v4173_v6, 0.0 }
0x15c8   :  { %v4202_v7 = vcombine.high %v4200_v8, %v4200_v8  ;;  %v4209_v40 = vrot.slane %v4200_v8, %v8966_v28  ;;  %7660 = vmatmul.mubr.msk.f32.vlgmr.msra.gmra.mxu1 %vm70_vm0, %v10078_v13 }
0x15c9   :  { %7674 = vmatpush3.msra.mxu1 %v9939_v55  ;;  %7681 = vmatprep.mubr.msk.f32.mxu1 %vm8678_vm1, %v8677_v0 }
0x15ca   :  { %v4216_v4 = vrot.slane %v4202_v7, %v8966_v28  ;;  %v4217_v39 = vcombine.high %v4209_v40, %v4209_v40  ;;  %v4225_v33 = vrot.slane %v4209_v40, %v8966_v28  ;;  %7675 = vmatprep.subr.mxu1 %v8677_v0  ;;  %v4463_v60 = vpop.permute.xlu1 %4462  ;;  %v4465_v7 = vpop.permute.xlu0 %4464 }
0x15cb   :  { %7676 = vmatpush3.msra.mxu1 %v9947_v3 }
0x15cc   :  { %v4218_v50 = vcombine.high %v4216_v4, %v4216_v4  ;;  %v4232_v61 = vrot.slane %v4216_v4, %v8966_v28  ;;  %v4239_v10 = vrot.slane %v4217_v39, %v8966_v28  ;;  %v4247_v36 = vcombine.high %v4225_v33, %v4225_v33  ;;  %4259 = vst.msk [vmem:[#allocation11 + $0x8] sm:$0x1] %vm754_vm11, %v4225_v33 }
0x15cd   :  { %7677 = vmatprep.subr.mxu1 %v8677_v0 }
0x15ce   :  { %7678 = vmatpush3.msra.mxu1 %v9954_v15  ;;  %v4246_v55 = vrot.slane %v4218_v50, %v8966_v28  ;;  %v4248_v42 = vcombine.high %v4232_v61, %v4232_v61  ;;  %v4249_v38 = vcombine.high %v4239_v10, %v4239_v10  ;;  %4260 = vst.msk [vmem:[#allocation11 + $0x18] sm:$0x1] %vm754_vm11, %v4239_v10  ;;  %4261 = vst.msk [vmem:[#allocation11 + $0x28] sm:$0x1] %vm754_vm11, %v4247_v36 }
0x15cf   :  { %4263 = vst.msk [vmem:[#allocation11 + $0x48] sm:$0x1] %vm754_vm11, %v4232_v61  ;;  %7679 = vmatprep.subr.mxu1 %v8677_v0 }
0x15d0   :  { %7680 = vmatpush3.msra.mxu1 %v9962_v9  ;;  %v4250_v3 = vcombine.high %v4246_v55, %v4246_v55  ;;  %4262 = vst.msk [vmem:[#allocation11 + $0x38] sm:$0x1] %vm754_vm11, %v4249_v38  ;;  %4264 = vst.msk [vmem:[#allocation11 + $0x58] sm:$0x1] %vm754_vm11, %v4246_v55 }
0x15d1   :  { %4265 = vst.msk [vmem:[#allocation11 + $0x68] sm:$0x1] %vm754_vm11, %v4248_v42  ;;  %7695 = vmatprep.subr.mxu1 %v8677_v0  ;;  %v4461_v42 = vpop.permute.xlu1 %4460 }
0x15d2   :  { %4266 = vst.msk [vmem:[#allocation11 + $0x78] sm:$0x1] %vm754_vm11, %v4250_v3 }
0x1688   :  { %v4344_v15 = vpop.f32.mrf.mxu1 }
0x1689   :  { %v4349_v23 = vrot.slane %v4344_v15, 1  ;;  %v4350_v49 = vrot.slane %v4344_v15, 2  ;;  %v4351_v56 = vrot.slane %v4344_v15, 3  ;;  %v4352_v44 = vrot.slane %v4344_v15, 4 }
0x168a   :  { %v4354_v9 = vrot.slane %v4344_v15, 6  ;;  %v4364_v47 = vadd.f32 %v4344_v15, %v4267_v5  ;;  %v7661_v27 = vpop.f32.mrf.mxu1  ;;  %v4355_v58 = vrot.slane %v4344_v15, 7  ;;  %v4353_v2 = vrot.slane %v4344_v15, 5 }
0x168b   :  { %v4365_v1 = vadd.f32 %v4349_v23, %v4268_v53  ;;  %v4366_v30 = vadd.f32 %v4350_v49, %v4269_v11  ;;  %v4367_v20 = vadd.f32 %v4351_v56, %v4270_v12  ;;  %v4368_v48 = vadd.f32 %v4352_v44, %v4271_v45  ;;  %v4467_v23 = vpop.permute.xlu0 %4466  ;;  %v4469_v27 = vpop.permute.xlu1 %4468 }
0x168c   :  { %8177 = vtanh.f32 %v4364_v47  ;;  %v4370_v19 = vadd.f32 %v4354_v9, %v4273_v37  ;;  %v4371_v25 = vadd.f32 %v4355_v58, %v4274_v59  ;;  %v4372_v22 = vmul.f32 0.5, %v4364_v47 }
0x168d   :  { %8179 = vtanh.f32 %v4366_v30  ;;  %v4375_v57 = vmul.f32 0.5, %v4367_v20  ;;  %v4369_v52 = vadd.f32 %v4353_v2, %v4272_v62  ;;  %v4373_v46 = vmul.f32 0.5, %v4365_v1 }
0x168e   :  { %8181 = vtanh.f32 %v4365_v1  ;;  %v4376_v29 = vmul.f32 0.5, %v4368_v48  ;;  %v4374_v21 = vmul.f32 0.5, %v4366_v30  ;;  %v4378_v16 = vmul.f32 0.5, %v4370_v19 }
0x168f   :  { %8183 = vtanh.f32 %v4367_v20  ;;  %v4377_v14 = vmul.f32 0.5, %v4369_v52  ;;  %v4379_v34 = vmul.f32 0.5, %v4371_v25  ;;  %v4471_v30 = vpop.permute.xlu0 %4470  ;;  %v4473_v59 = vpop.permute.xlu1 %4472 }
0x1690   :  { %8185 = vtanh.f32 %v4368_v48 }
0x1691   :  { %8187 = vtanh.f32 %v4370_v19 }
0x1692   :  { %8189 = vtanh.f32 %v4371_v25 }
0x1693   :  { %8191 = vtanh.f32 %v4372_v22  ;;  %v4475_v19 = vpop.permute.xlu0 %4474 }
0x1694   :  { %8193 = vtanh.f32 %v4375_v57 }
0x1695   :  { %8195 = vtanh.f32 %v4373_v46 }
0x1696   :  { %8197 = vtanh.f32 %v4376_v29 }
0x1697   :  { %8199 = vtanh.f32 %v4374_v21 }
0x1698   :  { %8201 = vtanh.f32 %v4369_v52 }
0x1699   :  { %v8178_v17 = vpop.eup %8177  ;;  %8203 = vtanh.f32 %v4377_v14 }
0x169a   :  { %4420 = vrot.lane.b32.xlu1 %v8178_v17, %s8680_s4  ;;  %v8180_v51 = vpop.eup %8179  ;;  %8205 = vtanh.f32 %v4378_v16 }
0x169b   :  { %v8182_v43 = vpop.eup %8181  ;;  %4424 = vrot.lane.b32.xlu0 %v8180_v51, %s8680_s4  ;;  %8207 = vtanh.f32 %v4379_v34 }
0x169c   :  { %v8184_v31 = vpop.eup %8183 }
0x169d   :  { %v8186_v41 = vpop.eup %8185 }
0x169e   :  { %4422 = vrot.lane.b32.xlu1 %v8182_v43, %s8680_s4  ;;  %v8188_v54 = vpop.eup %8187 }
0x169f   :  { %v8190_v32 = vpop.eup %8189  ;;  %4426 = vrot.lane.b32.xlu0 %v8184_v31, %s8680_s4 }
0x16a0   :  { %v8192_v24 = vpop.eup %8191 }
0x16a1   :  { %v8194_v18 = vpop.eup %8193  ;;  %v4388_v6 = vmul.f32 0.5, %v8192_v24 }
0x16a2   :  { %4432 = vrot.lane.b32.xlu1 %v8188_v54, %s8680_s4  ;;  %v8196_v8 = vpop.eup %8195  ;;  %v4391_v40 = vmul.f32 0.5, %v8194_v18 }
0x16a3   :  { %v8198_v4 = vpop.eup %8197  ;;  %4428 = vrot.lane.b32.xlu0 %v8186_v41, %s8680_s4  ;;  %v10113_v39 = vadd.f32 0.5, %v4388_v6  ;;  %v4389_v33 = vmul.f32 0.5, %v8196_v8 }
0x16a4   :  { %v8200_v50 = vpop.eup %8199  ;;  %v10116_v10 = vadd.f32 0.5, %v4391_v40  ;;  %v4392_v36 = vmul.f32 0.5, %v8198_v4 }
0x16a5   :  { %v8202_v61 = vpop.eup %8201  ;;  %v4484_v38 = vmul.f32 %v4461_v42, %v10113_v39  ;;  %v10120_v3 = vadd.f32 0.5, %v4389_v33  ;;  %v4390_v15 = vmul.f32 0.5, %v8200_v50 }
0x16a6   :  { %4434 = vrot.lane.b32.xlu1 %v8190_v32, %s8680_s4  ;;  %v8204_v55 = vpop.eup %8203  ;;  %v4487_v49 = vmul.f32 %v4467_v23, %v10116_v10  ;;  %v10124_v56 = vadd.f32 0.5, %v4392_v36 }
0x16a7   :  { %4430 = vrot.lane.b32.xlu0 %v8202_v61, %s8680_s4  ;;  %v8206_v5 = vpop.eup %8205  ;;  %v4393_v44 = vmul.f32 0.5, %v8204_v55  ;;  %v4485_v11 = vmul.f32 %v4463_v60, %v10120_v3  ;;  %v10128_v9 = vadd.f32 0.5, %v4390_v15 }
0x16a8   :  { %v8208_v53 = vpop.eup %8207  ;;  %v4394_v47 = vmul.f32 0.5, %v8206_v5  ;;  %v4488_v12 = vmul.f32 %v4469_v27, %v10124_v56 }
0x16a9   :  { %v10132_v58 = vadd.f32 0.5, %v4393_v44  ;;  %v4395_v1 = vmul.f32 0.5, %v8208_v53  ;;  %v4486_v45 = vmul.f32 %v4465_v7, %v10128_v9 }
0x16aa   :  { %4500 = vrot.lane.b32.xlu1 %v4484_v38, %s8681_s18  ;;  %v10136_v20 = vadd.f32 0.5, %v4394_v47 }
0x16ab   :  { %4506 = vrot.lane.b32.xlu0 %v4487_v49, %s8681_s18  ;;  %v4489_v37 = vmul.f32 %v4471_v30, %v10132_v58  ;;  %v10140_v48 = vadd.f32 0.5, %v4395_v1 }
0x16ac   :  { %v4490_v2 = vmul.f32 %v4473_v59, %v10136_v20 }
0x16ad   :  { %v4491_v25 = vmul.f32 %v4475_v19, %v10140_v48 }
0x16ae   :  { %4502 = vrot.lane.b32.xlu1 %v4485_v11, %s8681_s18 }
0x16af   :  { %4508 = vrot.lane.b32.xlu0 %v4488_v12, %s8681_s18 }
0x16b2   :  { %4504 = vrot.lane.b32.xlu1 %v4486_v45, %s8681_s18 }
0x16b3   :  { %4510 = vrot.lane.b32.xlu0 %v4489_v37, %s8681_s18 }
0x16b6   :  { %4512 = vrot.lane.b32.xlu1 %v4490_v2, %s8681_s18 }
0x16b7   :  { %4514 = vrot.lane.b32.xlu0 %v4491_v25, %s8681_s18 }
0x170c   :  { %v4421_v22 = vpop.permute.xlu1 %4420 }
0x170d   :  { %v4425_v62 = vpop.permute.xlu0 %4424  ;;  %v4444_v16 = vmul.f32 %v4421_v22, %v10113_v39 }
0x170e   :  { %v4446_v60 = vmul.f32 %v4425_v62, %v10128_v9 }
0x1710   :  { %v4423_v57 = vpop.permute.xlu1 %4422 }
0x1711   :  { %v4427_v52 = vpop.permute.xlu0 %4426  ;;  %v4445_v43 = vmul.f32 %v4423_v57, %v10120_v3  ;;  %v4583_v57 = vsel %vm4582_vm9, 1, %v8682_v35 }
0x1712   :  { %v4447_v32 = vmul.f32 %v4427_v52, %v10116_v10 }
0x1714   :  { %v4433_v46 = vpop.permute.xlu1 %4432 }
0x1715   :  { %v4429_v29 = vpop.permute.xlu0 %4428  ;;  %v4450_v61 = vmul.f32 %v4433_v46, %v10136_v20 }
0x1716   :  { %v4448_v41 = vmul.f32 %v4429_v29, %v10124_v56 }
0x1718   :  { %v4435_v21 = vpop.permute.xlu1 %4434 }
0x1719   :  { %v4431_v14 = vpop.permute.xlu0 %4430  ;;  %v4451_v42 = vmul.f32 %v4435_v21, %v10140_v48 }
0x171a   :  { %v4449_v40 = vmul.f32 %v4431_v14, %v10132_v58 }
0x171c   :  { %v4501_v17 = vpop.permute.xlu1 %4500 }
0x171d   :  { %v4524_v34 = vadd.f32 %v4501_v17, %v4444_v16  ;;  %v4507_v51 = vpop.permute.xlu0 %4506 }
0x171e   :  { %v4527_v8 = vadd.f32 %v4507_v51, %v4447_v32 }
0x171f   :  { %8209 = vtanh.f32 %v4524_v34 }
0x1720   :  { %v4503_v31 = vpop.permute.xlu1 %4502  ;;  %v4626_v38 = vrot.slane %v4527_v8, 5 }
0x1721   :  { %v4525_v54 = vadd.f32 %v4503_v31, %v4445_v43  ;;  %v4509_v24 = vpop.permute.xlu0 %4508 }
0x1722   :  { %v4528_v6 = vadd.f32 %v4509_v24, %v4448_v41 }
0x1723   :  { %8211 = vtanh.f32 %v4525_v54  ;;  %v4622_v18 = vrot.slane %v4525_v54, 7 }
0x1724   :  { %v4505_v7 = vpop.permute.xlu1 %4504  ;;  %8213 = vtanh.f32 %v4528_v6  ;;  %v4628_v5 = vrot.slane %v4528_v6, 4 }
0x1725   :  { %v4623_v4 = vsel %vm647_vm2, %v4622_v18, %v4524_v34  ;;  %v4526_v33 = vadd.f32 %v4505_v7, %v4446_v60  ;;  %v4511_v50 = vpop.permute.xlu0 %4510 }
0x1726   :  { %v4529_v55 = vadd.f32 %v4511_v50, %v4449_v40 }
0x1727   :  { %8215 = vtanh.f32 %v4526_v33  ;;  %v4624_v36 = vrot.slane %v4526_v33, 6 }
0x1728   :  { %v4513_v15 = vpop.permute.xlu1 %4512  ;;  %v4630_v49 = vrot.slane %v4529_v55, 3  ;;  %8217 = vtanh.f32 %v4527_v8 }
0x1729   :  { %v4625_v23 = vsel %vm650_vm3, %v4624_v36, %v4623_v4  ;;  %v4530_v44 = vadd.f32 %v4513_v15, %v4450_v61  ;;  %v4515_v11 = vpop.permute.xlu0 %4514 }
0x172a   :  { %v4627_v53 = vsel %vm653_vm4, %v4626_v38, %v4625_v23  ;;  %v4531_v12 = vadd.f32 %v4515_v11, %v4451_v42 }
0x172b   :  { %v4629_v47 = vsel %vm656_vm5, %v4628_v5, %v4627_v53  ;;  %8219 = vtanh.f32 %v4530_v44  ;;  %v4632_v27 = vrot.slane %v4530_v44, 2 }
0x172c   :  { %v8210_v1 = vpop.eup %8209  ;;  %v4631_v30 = vsel %vm659_vm6, %v4630_v49, %v4629_v47  ;;  %v4634_v37 = vrot.slane %v4531_v12, 1  ;;  %8221 = vtanh.f32 %v4529_v55  ;;  %v10216_v47 = vld [vmem:[#allocation10 + $0x18] sm:$0xff] }
0x172d   :  { %v4633_v45 = vsel %vm662_vm7, %v4632_v27, %v4631_v30  ;;  %4548 = vrot.lane.b32.xlu1 %v8210_v1, %s8681_s18  ;;  %8223 = vtanh.f32 %v4531_v12  ;;  %v10224_v1 = vld [vmem:[#allocation10 + $0x10] sm:$0xff] }
0x172e   :  { %v4635_v59 = vsel %vm665_vm8, %v4634_v37, %v4633_v45 }
0x1730   :  { %v8212_v2 = vpop.eup %8211 }
0x1731   :  { %4550 = vrot.lane.b32.xlu1 %v8212_v2, %s8681_s18  ;;  %v8214_v19 = vpop.eup %8213  ;;  %v10231_v2 = vld [vmem:[#allocation10 + $0x8] sm:$0xff] }
0x1734   :  { %v8216_v25 = vpop.eup %8215 }
0x1735   :  { %4552 = vrot.lane.b32.xlu0 %v8216_v25, %s8681_s18  ;;  %4556 = vrot.lane.b32.xlu1 %v8214_v19, %s8681_s18  ;;  %v8218_v22 = vpop.eup %8217 }
0x1738   :  { %v8220_v62 = vpop.eup %8219 }
0x1739   :  { %4554 = vrot.lane.b32.xlu0 %v8218_v22, %s8681_s18  ;;  %4560 = vrot.lane.b32.xlu1 %v8220_v62, %s8681_s18  ;;  %v8222_v52 = vpop.eup %8221  ;;  %v10239_v62 = vld [vmem:[#allocation10] sm:$0xff] }
0x173a   :  { %v8224_v46 = vpop.eup %8223 }
0x173d   :  { %4558 = vrot.lane.b32.xlu0 %v8222_v52, %s8681_s18  ;;  %4585 = vperm.xlu1 %7744, %v4583_v57  }
0x1741   :  { %4562 = vrot.lane.b32.xlu0 %v8224_v46, %s8681_s18  ;;  %v4705_v46 = vld [vmem:[#allocation2 + $0xa] sm:$0x1] }
0x179f   :  { %v4549_v29 = vpop.permute.xlu1 %4548 }
0x17a0   :  { %v4572_v31 = vmul.f32 %v4549_v29, %v10113_v39 }
0x17a3   :  { %v4551_v21 = vpop.permute.xlu1 %4550 }
0x17a4   :  { %v4573_v14 = vmul.f32 %v4551_v21, %v10120_v3 }
0x17a6   :  { %v4596_v34 = vrot.slane %v4573_v14, 7 }
0x17a7   :  { %v4553_v16 = vpop.permute.xlu0 %4552  ;;  %v4557_v17 = vpop.permute.xlu1 %4556 }
0x17a8   :  { %v4574_v63 = vmul.f32 %v4553_v16, %v10128_v9  ;;  %v4576_v54 = vmul.f32 %v4557_v17, %v10124_v56  ;;  %v4597_v32 = vsel %vm647_vm2, %v4596_v34, %v4572_v31  ;;  %v4707_v17 = vld [vmem:[#allocation2 + $0x2a] sm:$0x1]  ;;  %v4708_v31 = vld [vmem:[#allocation2 + $0x3a] sm:$0x1] }
0x17aa   :  { %v4598_v51 = vrot.slane %v4574_v63, 6  ;;  %v4602_v8 = vrot.slane %v4576_v54, 4  ;;  %v4706_v63 = vld [vmem:[#allocation2 + $0x1a] sm:$0x1] }
0x17ab   :  { %v4555_v43 = vpop.permute.xlu0 %4554  ;;  %v4561_v60 = vpop.permute.xlu1 %4560 }
0x17ac   :  { %v4575_v41 = vmul.f32 %v4555_v43, %v10116_v10  ;;  %v4599_v18 = vsel %vm650_vm3, %v4598_v51, %v4597_v32  ;;  %v4578_v7 = vmul.f32 %v4561_v60, %v10136_v20 }
0x17ae   :  { %v4600_v24 = vrot.slane %v4575_v41, 5  ;;  %v4606_v33 = vrot.slane %v4578_v7, 2 }
0x17af   :  { %v4559_v3 = vpop.permute.xlu0 %4558 }
0x17b0   :  { %v4601_v6 = vsel %vm653_vm4, %v4600_v24, %v4599_v18  ;;  %v4577_v9 = vmul.f32 %v4559_v3, %v10132_v58  ;;  %v4709_v24 = vld [vmem:[#allocation2 + $0x4a] sm:$0x1] }
0x17b1   :  { %v4603_v39 = vsel %vm656_vm5, %v4602_v8, %v4601_v6  ;;  %v4711_v18 = vld [vmem:[#allocation2 + $0x6a] sm:$0x1]  ;;  %v4712_v6 = vld [vmem:[#allocation2 + $0x7a] sm:$0x1] }
0x17b2   :  { %v4604_v40 = vrot.slane %v4577_v9, 3 }
0x17b3   :  { %v4563_v10 = vpop.permute.xlu0 %4562 }
0x17b4   :  { %v4605_v56 = vsel %vm659_vm6, %v4604_v40, %v4603_v39  ;;  %v4579_v4 = vmul.f32 %v4563_v10, %v10140_v48  ;;  %v4710_v39 = vld [vmem:[#allocation2 + $0x5a] sm:$0x1] }
0x17b5   :  { %v4607_v61 = vsel %vm662_vm7, %v4606_v33, %v4605_v56 }
0x17b6   :  { %v4608_v50 = vrot.slane %v4579_v4, 1 }
0x17b8   :  { %v4586_v36 = vpop.permute.xlu1 %4585  ;;  %v4609_v55 = vsel %vm665_vm8, %v4608_v50, %v4607_v61 }
0x17b9   :  { %vm4587_vm10 = vcmp.eq.s32.totalorder %v4586_v36, 1  ;;  %4610 = vrot.lane.b32.xlu0 %v4609_v55, %s8679_s1 }
0x17ba   :  { %v10190_v58 = vsel %vm4587_vm10, %v4635_v59, %v10058_v26 }
0x17bb   :  { %v4892_v20 = vrot.slane %v10190_v58, 2  ;;  %v4891_v42 = vrot.slane %v10190_v58, 1  ;;  %v4893_v48 = vrot.slane %v10190_v58, 3  ;;  %v4895_v38 = vrot.slane %v10190_v58, 5 }
0x17bc   :  { %v4894_v26 = vrot.slane %v10190_v58, 4  ;;  %v4897_v15 = vrot.slane %v10190_v58, 7  ;;  %v4896_v5 = vrot.slane %v10190_v58, 6 }
0x17bd   :  { %4902 = vrot.lane.b32.xlu0 %v4892_v20, %s8679_s1  ;;  %4900 = vrot.lane.b32.xlu1 %v4891_v42, %s8679_s1 }
0x17c1   :  { %4904 = vrot.lane.b32.xlu0 %v4893_v48, %s8679_s1  ;;  %4898 = vrot.lane.b32.xlu1 %v10190_v58, %s8679_s1 }
0x17c5   :  { %4908 = vrot.lane.b32.xlu0 %v4895_v38, %s8679_s1  ;;  %4906 = vrot.lane.b32.xlu1 %v4894_v26, %s8679_s1 }
0x17c9   :  { %4912 = vrot.lane.b32.xlu0 %v4897_v15, %s8679_s1  ;;  %4910 = vrot.lane.b32.xlu1 %v4896_v5, %s8679_s1 }
0x182b   :  { %v4611_v23 = vpop.permute.xlu0 %4610 }
0x182c   :  { %v10210_v49 = vsel %vm4587_vm10, %v4611_v23, %v10078_v13  ;;  %v4638_v44 = vsel %vm4587_vm10, %v4611_v23, 0.0 }
0x182d   :  { %v4640_v53 = vcombine.high %v4638_v44, %v4638_v44  ;;  %v4647_v11 = vrot.slane %v4638_v44, %v8966_v28  ;;  %7671 = vmatmul.mubr.msk.f32.vlgmr.msra.gmra.mxu0 %vm70_vm0, %v10210_v49 }
0x182e   :  { %7685 = vmatpush3.msra.mxu0 %v10216_v47  ;;  %7692 = vmatprep.mubr.msk.f32.mxu0 %vm8678_vm1, %v8677_v0 }
0x182f   :  { %v4654_v27 = vrot.slane %v4640_v53, %v8966_v28  ;;  %v4655_v12 = vcombine.high %v4647_v11, %v4647_v11  ;;  %v4663_v13 = vrot.slane %v4647_v11, %v8966_v28  ;;  %7686 = vmatprep.subr.mxu0 %v8677_v0  ;;  %v4901_v44 = vpop.permute.xlu1 %4900 }
0x1830   :  { %7687 = vmatpush3.msra.mxu0 %v10224_v1 }
0x1831   :  { %v4656_v30 = vcombine.high %v4654_v27, %v4654_v27  ;;  %v4670_v45 = vrot.slane %v4654_v27, %v8966_v28  ;;  %v4677_v37 = vrot.slane %v4655_v12, %v8966_v28  ;;  %v4685_v59 = vcombine.high %v4663_v13, %v4663_v13  ;;  %4697 = vst.msk [vmem:[#allocation11 + $0x9] sm:$0x1] %vm754_vm11, %v4663_v13  ;;  %v4903_v12 = vpop.permute.xlu0 %4902 }
0x1832   :  { %7688 = vmatprep.subr.mxu0 %v8677_v0 }
0x1833   :  { %7689 = vmatpush3.msra.mxu0 %v10231_v2  ;;  %v4684_v19 = vrot.slane %v4656_v30, %v8966_v28  ;;  %v4686_v25 = vcombine.high %v4670_v45, %v4670_v45  ;;  %v4687_v22 = vcombine.high %v4677_v37, %v4677_v37  ;;  %4698 = vst.msk [vmem:[#allocation11 + $0x19] sm:$0x1] %vm754_vm11, %v4677_v37  ;;  %4699 = vst.msk [vmem:[#allocation11 + $0x29] sm:$0x1] %vm754_vm11, %v4685_v59 }
0x1834   :  { %4701 = vst.msk [vmem:[#allocation11 + $0x49] sm:$0x1] %vm754_vm11, %v4670_v45  ;;  %7690 = vmatprep.subr.mxu0 %v8677_v0 }
0x1835   :  { %7691 = vmatpush3.msra.mxu0 %v10239_v62  ;;  %v4688_v57 = vcombine.high %v4684_v19, %v4684_v19  ;;  %4700 = vst.msk [vmem:[#allocation11 + $0x39] sm:$0x1] %vm754_vm11, %v4687_v22  ;;  %4702 = vst.msk [vmem:[#allocation11 + $0x59] sm:$0x1] %vm754_vm11, %v4684_v19 }
0x1836   :  { %4703 = vst.msk [vmem:[#allocation11 + $0x69] sm:$0x1] %vm754_vm11, %v4686_v25  ;;  %7706 = vmatprep.subr.mxu0 %v8677_v0 }
0x1837   :  { %4704 = vst.msk [vmem:[#allocation11 + $0x79] sm:$0x1] %vm754_vm11, %v4688_v57 }
0x18ed   :  { %v4782_v52 = vpop.f32.mrf.mxu0 }
0x18ee   :  { %v4787_v29 = vrot.slane %v4782_v52, 1  ;;  %v4788_v21 = vrot.slane %v4782_v52, 2  ;;  %v4789_v14 = vrot.slane %v4782_v52, 3  ;;  %v4790_v16 = vrot.slane %v4782_v52, 4 }
0x18ef   :  { %v4792_v34 = vrot.slane %v4782_v52, 6  ;;  %v4802_v51 = vadd.f32 %v4782_v52, %v4705_v46  ;;  %v7672_v43 = vpop.f32.mrf.mxu0  ;;  %v4793_v41 = vrot.slane %v4782_v52, 7  ;;  %v4791_v9 = vrot.slane %v4782_v52, 5  ;;  %v4899_v52 = vpop.permute.xlu1 %4898 }
0x18f0   :  { %v4803_v54 = vadd.f32 %v4787_v29, %v4706_v63  ;;  %v4804_v32 = vadd.f32 %v4788_v21, %v4707_v17  ;;  %v4805_v60 = vadd.f32 %v4789_v14, %v4708_v31  ;;  %v4806_v3 = vadd.f32 %v4790_v16, %v4709_v24  ;;  %v4905_v16 = vpop.permute.xlu0 %4904 }
0x18f1   :  { %8225 = vtanh.f32 %v4802_v51  ;;  %v4808_v8 = vadd.f32 %v4792_v34, %v4711_v18  ;;  %v4809_v7 = vadd.f32 %v4793_v41, %v4712_v6  ;;  %v4810_v40 = vmul.f32 0.5, %v4802_v51 }
0x18f2   :  { %8227 = vtanh.f32 %v4804_v32  ;;  %v4813_v10 = vmul.f32 0.5, %v4805_v60  ;;  %v4807_v56 = vadd.f32 %v4791_v9, %v4710_v39  ;;  %v4811_v4 = vmul.f32 0.5, %v4803_v54 }
0x18f3   :  { %8229 = vtanh.f32 %v4803_v54  ;;  %v4814_v33 = vmul.f32 0.5, %v4806_v3  ;;  %v4812_v50 = vmul.f32 0.5, %v4804_v32  ;;  %v4816_v36 = vmul.f32 0.5, %v4808_v8  ;;  %v4907_v54 = vpop.permute.xlu1 %4906 }
0x18f4   :  { %8231 = vtanh.f32 %v4805_v60  ;;  %v4815_v61 = vmul.f32 0.5, %v4807_v56  ;;  %v4817_v20 = vmul.f32 0.5, %v4809_v7  ;;  %v4909_v18 = vpop.permute.xlu0 %4908 }
0x18f5   :  { %8233 = vtanh.f32 %v4806_v3 }
0x18f6   :  { %8235 = vtanh.f32 %v4808_v8 }
0x18f7   :  { %8237 = vtanh.f32 %v4809_v7  ;;  %v4911_v7 = vpop.permute.xlu1 %4910 }
0x18f8   :  { %8239 = vtanh.f32 %v4810_v40  ;;  %v4913_v39 = vpop.permute.xlu0 %4912 }
0x18f9   :  { %8241 = vtanh.f32 %v4813_v10 }
0x18fa   :  { %8243 = vtanh.f32 %v4811_v4 }
0x18fb   :  { %8245 = vtanh.f32 %v4814_v33 }
0x18fc   :  { %8247 = vtanh.f32 %v4812_v50 }
0x18fd   :  { %8249 = vtanh.f32 %v4807_v56 }
0x18fe   :  { %v8226_v55 = vpop.eup %8225  ;;  %8251 = vtanh.f32 %v4815_v61 }
0x18ff   :  { %4858 = vrot.lane.b32.xlu1 %v8226_v55, %s8680_s4  ;;  %v8228_v42 = vpop.eup %8227  ;;  %8253 = vtanh.f32 %v4816_v36 }
0x1900   :  { %v8230_v48 = vpop.eup %8229  ;;  %4862 = vrot.lane.b32.xlu0 %v8228_v42, %s8680_s4  ;;  %8255 = vtanh.f32 %v4817_v20 }
0x1901   :  { %v8232_v38 = vpop.eup %8231 }
0x1902   :  { %v8234_v26 = vpop.eup %8233 }
0x1903   :  { %4860 = vrot.lane.b32.xlu1 %v8230_v48, %s8680_s4  ;;  %v8236_v15 = vpop.eup %8235 }
0x1904   :  { %v8238_v5 = vpop.eup %8237  ;;  %4864 = vrot.lane.b32.xlu0 %v8232_v38, %s8680_s4 }
0x1905   :  { %v8240_v23 = vpop.eup %8239 }
0x1906   :  { %v8242_v53 = vpop.eup %8241  ;;  %v4826_v11 = vmul.f32 0.5, %v8240_v23 }
0x1907   :  { %4870 = vrot.lane.b32.xlu1 %v8236_v15, %s8680_s4  ;;  %v8244_v27 = vpop.eup %8243  ;;  %v4829_v13 = vmul.f32 0.5, %v8242_v53 }
0x1908   :  { %v8246_v30 = vpop.eup %8245  ;;  %4866 = vrot.lane.b32.xlu0 %v8234_v26, %s8680_s4  ;;  %v10253_v45 = vadd.f32 0.5, %v4826_v11  ;;  %v4827_v37 = vmul.f32 0.5, %v8244_v27 }
0x1909   :  { %v8248_v59 = vpop.eup %8247  ;;  %v10256_v25 = vadd.f32 0.5, %v4829_v13  ;;  %v4830_v22 = vmul.f32 0.5, %v8246_v30 }
0x190a   :  { %v8250_v19 = vpop.eup %8249  ;;  %v4922_v46 = vmul.f32 %v4899_v52, %v10253_v45  ;;  %v10260_v29 = vadd.f32 0.5, %v4827_v37  ;;  %v4828_v21 = vmul.f32 0.5, %v8248_v59 }
0x190b   :  { %4872 = vrot.lane.b32.xlu1 %v8238_v5, %s8680_s4  ;;  %v8252_v57 = vpop.eup %8251  ;;  %v4925_v63 = vmul.f32 %v4905_v16, %v10256_v25  ;;  %v10264_v17 = vadd.f32 0.5, %v4830_v22 }
0x190c   :  { %4868 = vrot.lane.b32.xlu0 %v8250_v19, %s8680_s4  ;;  %v8254_v14 = vpop.eup %8253  ;;  %v4831_v34 = vmul.f32 0.5, %v8252_v57  ;;  %v4923_v43 = vmul.f32 %v4901_v44, %v10260_v29  ;;  %v10268_v31 = vadd.f32 0.5, %v4828_v21 }
0x190d   :  { %v8256_v51 = vpop.eup %8255  ;;  %v4832_v41 = vmul.f32 0.5, %v8254_v14  ;;  %v4926_v32 = vmul.f32 %v4907_v54, %v10264_v17 }
0x190e   :  { %v10272_v24 = vadd.f32 0.5, %v4831_v34  ;;  %v4833_v60 = vmul.f32 0.5, %v8256_v51  ;;  %v4924_v3 = vmul.f32 %v4903_v12, %v10268_v31 }
0x190f   :  { %4938 = vrot.lane.b32.xlu1 %v4922_v46, %s8681_s18  ;;  %v10276_v6 = vadd.f32 0.5, %v4832_v41 }
0x1910   :  { %4944 = vrot.lane.b32.xlu0 %v4925_v63, %s8681_s18  ;;  %v4927_v9 = vmul.f32 %v4909_v18, %v10272_v24  ;;  %v10280_v8 = vadd.f32 0.5, %v4833_v60 }
0x1911   :  { %v4928_v40 = vmul.f32 %v4911_v7, %v10276_v6 }
0x1912   :  { %v4929_v10 = vmul.f32 %v4913_v39, %v10280_v8 }
0x1913   :  { %4940 = vrot.lane.b32.xlu1 %v4923_v43, %s8681_s18 }
0x1914   :  { %4946 = vrot.lane.b32.xlu0 %v4926_v32, %s8681_s18 }
0x1917   :  { %4942 = vrot.lane.b32.xlu1 %v4924_v3, %s8681_s18 }
0x1918   :  { %4948 = vrot.lane.b32.xlu0 %v4927_v9, %s8681_s18 }
0x191b   :  { %4950 = vrot.lane.b32.xlu1 %v4928_v40, %s8681_s18 }
0x191c   :  { %4952 = vrot.lane.b32.xlu0 %v4929_v10, %s8681_s18 }
0x1971   :  { %v4859_v56 = vpop.permute.xlu1 %4858 }
0x1972   :  { %v4863_v4 = vpop.permute.xlu0 %4862  ;;  %v4882_v42 = vmul.f32 %v4859_v56, %v10253_v45 }
0x1973   :  { %v4884_v27 = vmul.f32 %v4863_v4, %v10268_v31 }
0x1975   :  { %v4861_v33 = vpop.permute.xlu1 %4860 }
0x1976   :  { %v4865_v50 = vpop.permute.xlu0 %4864  ;;  %v4883_v15 = vmul.f32 %v4861_v33, %v10260_v29 }
0x1977   :  { %v4885_v53 = vmul.f32 %v4865_v50, %v10256_v25 }
0x1979   :  { %v4871_v61 = vpop.permute.xlu1 %4870 }
0x197a   :  { %v4867_v36 = vpop.permute.xlu0 %4866  ;;  %v4888_v52 = vmul.f32 %v4871_v61, %v10276_v6  ;;  %v10309_v61 = vld [vmem:[%s11021_s0] sm:$0xff] }
0x197b   :  { %v4886_v23 = vmul.f32 %v4867_v36, %v10264_v17  ;;  %vm5020_vm12 = vcmp.gt.s32.totalorder %v10309_v61, 10  ;;  %vm5458_vm14 = vcmp.gt.s32.totalorder %v10309_v61, 11 }
0x197d   :  { %v4873_v55 = vpop.permute.xlu1 %4872 }
0x197e   :  { %v4869_v20 = vpop.permute.xlu0 %4868  ;;  %v4889_v14 = vmul.f32 %v4873_v55, %v10280_v8  ;;  %v5021_v55 = vsel %vm5020_vm12, 1, %v8682_v35 }
0x197f   :  { %v4887_v59 = vmul.f32 %v4869_v20, %v10272_v24 }
0x1981   :  { %v4939_v48 = vpop.permute.xlu1 %4938 }
0x1982   :  { %v4962_v38 = vadd.f32 %v4939_v48, %v4882_v42  ;;  %v4945_v26 = vpop.permute.xlu0 %4944 }
0x1983   :  { %v4965_v30 = vadd.f32 %v4945_v26, %v4885_v53 }
0x1984   :  { %8257 = vtanh.f32 %v4962_v38 }
0x1985   :  { %v4941_v5 = vpop.permute.xlu1 %4940  ;;  %v5064_v16 = vrot.slane %v4965_v30, 5 }
0x1986   :  { %v4963_v44 = vadd.f32 %v4941_v5, %v4883_v15  ;;  %v4947_v11 = vpop.permute.xlu0 %4946 }
0x1987   :  { %v4966_v13 = vadd.f32 %v4947_v11, %v4886_v23 }
0x1988   :  { %8259 = vtanh.f32 %v4963_v44  ;;  %v5060_v12 = vrot.slane %v4963_v44, 7 }
0x1989   :  { %v4943_v37 = vpop.permute.xlu1 %4942  ;;  %8261 = vtanh.f32 %v4966_v13  ;;  %v5066_v34 = vrot.slane %v4966_v13, 4 }
0x198a   :  { %v5061_v19 = vsel %vm647_vm2, %v5060_v12, %v4962_v38  ;;  %v4964_v22 = vadd.f32 %v4943_v37, %v4884_v27  ;;  %v4949_v57 = vpop.permute.xlu0 %4948 }
0x198b   :  { %v4967_v21 = vadd.f32 %v4949_v57, %v4887_v59 }
0x198c   :  { %8263 = vtanh.f32 %v4964_v22  ;;  %v5062_v46 = vrot.slane %v4964_v22, 6 }
0x198d   :  { %v4951_v63 = vpop.permute.xlu1 %4950  ;;  %v5068_v43 = vrot.slane %v4967_v21, 3  ;;  %8265 = vtanh.f32 %v4965_v30 }
0x198e   :  { %v5063_v51 = vsel %vm650_vm3, %v5062_v46, %v5061_v19  ;;  %v4968_v41 = vadd.f32 %v4951_v63, %v4888_v52  ;;  %v4953_v32 = vpop.permute.xlu0 %4952 }
0x198f   :  { %v5065_v54 = vsel %vm653_vm4, %v5064_v16, %v5063_v51  ;;  %v4969_v3 = vadd.f32 %v4953_v32, %v4889_v14 }
0x1990   :  { %v5067_v60 = vsel %vm656_vm5, %v5066_v34, %v5065_v54  ;;  %8267 = vtanh.f32 %v4968_v41  ;;  %v5070_v18 = vrot.slane %v4968_v41, 2 }
0x1991   :  { %v8258_v9 = vpop.eup %8257  ;;  %v5069_v7 = vsel %vm659_vm6, %v5068_v43, %v5067_v60  ;;  %v5072_v39 = vrot.slane %v4969_v3, 1  ;;  %8269 = vtanh.f32 %v4967_v21 }
0x1992   :  { %v5071_v40 = vsel %vm662_vm7, %v5070_v18, %v5069_v7  ;;  %4986 = vrot.lane.b32.xlu1 %v8258_v9, %s8681_s18  ;;  %8271 = vtanh.f32 %v4969_v3 }
0x1993   :  { %v5073_v10 = vsel %vm665_vm8, %v5072_v39, %v5071_v40 }
0x1995   :  { %v8260_v56 = vpop.eup %8259 }
0x1996   :  { %4988 = vrot.lane.b32.xlu1 %v8260_v56, %s8681_s18  ;;  %v8262_v4 = vpop.eup %8261 }
0x1999   :  { %v8264_v33 = vpop.eup %8263 }
0x199a   :  { %4990 = vrot.lane.b32.xlu0 %v8264_v33, %s8681_s18  ;;  %4994 = vrot.lane.b32.xlu1 %v8262_v4, %s8681_s18  ;;  %v8266_v50 = vpop.eup %8265 }
0x199d   :  { %v8268_v36 = vpop.eup %8267 }
0x199e   :  { %4992 = vrot.lane.b32.xlu0 %v8266_v50, %s8681_s18  ;;  %4998 = vrot.lane.b32.xlu1 %v8268_v36, %s8681_s18  ;;  %v8270_v20 = vpop.eup %8269 }
0x199f   :  { %v8272_v42 = vpop.eup %8271 }
0x19a2   :  { %4996 = vrot.lane.b32.xlu0 %v8270_v20, %s8681_s18  ;;  %5023 = vperm.xlu1 %7744, %v5021_v55   ;;  %v5143_v55 = vld [vmem:[#allocation2 + $0xb] sm:$0x1] }
0x19a6   :  { %5000 = vrot.lane.b32.xlu0 %v8272_v42, %s8681_s18 }
0x1a04   :  { %v4987_v48 = vpop.permute.xlu1 %4986 }
0x1a05   :  { %v5010_v27 = vmul.f32 %v4987_v48, %v10253_v45 }
0x1a08   :  { %v4989_v38 = vpop.permute.xlu1 %4988 }
0x1a09   :  { %v5011_v26 = vmul.f32 %v4989_v38, %v10260_v29 }
0x1a0b   :  { %v5034_v44 = vrot.slane %v5011_v26, 7  ;;  %v5144_v26 = vld [vmem:[#allocation2 + $0x1b] sm:$0x1] }
0x1a0c   :  { %v4991_v15 = vpop.permute.xlu0 %4990  ;;  %v4995_v23 = vpop.permute.xlu1 %4994 }
0x1a0d   :  { %v5012_v5 = vmul.f32 %v4991_v15, %v10268_v31  ;;  %v5014_v13 = vmul.f32 %v4995_v23, %v10264_v17  ;;  %v5035_v30 = vsel %vm647_vm2, %v5034_v44, %v5010_v27  ;;  %v5145_v15 = vld [vmem:[#allocation2 + $0x2b] sm:$0x1]  ;;  %v5146_v44 = vld [vmem:[#allocation2 + $0x3b] sm:$0x1] }
0x1a0f   :  { %v5036_v53 = vrot.slane %v5012_v5, 6  ;;  %v5040_v57 = vrot.slane %v5014_v13, 4 }
0x1a10   :  { %v4993_v11 = vpop.permute.xlu0 %4992  ;;  %v4999_v59 = vpop.permute.xlu1 %4998 }
0x1a11   :  { %v5013_v12 = vmul.f32 %v4993_v11, %v10256_v25  ;;  %v5037_v19 = vsel %vm650_vm3, %v5036_v53, %v5035_v30  ;;  %v5016_v52 = vmul.f32 %v4999_v59, %v10276_v6  ;;  %v5149_v30 = vld [vmem:[#allocation2 + $0x6b] sm:$0x1]  ;;  %v5150_v59 = vld [vmem:[#allocation2 + $0x7b] sm:$0x1] }
0x1a13   :  { %v5038_v37 = vrot.slane %v5013_v12, 5  ;;  %v5044_v14 = vrot.slane %v5016_v52, 2  ;;  %v5147_v12 = vld [vmem:[#allocation2 + $0x4b] sm:$0x1] }
0x1a14   :  { %v4997_v29 = vpop.permute.xlu0 %4996 }
0x1a15   :  { %v5039_v22 = vsel %vm653_vm4, %v5038_v37, %v5037_v19  ;;  %v5015_v31 = vmul.f32 %v4997_v29, %v10272_v24 }
0x1a16   :  { %v5041_v45 = vsel %vm656_vm5, %v5040_v57, %v5039_v22  ;;  %v5148_v57 = vld [vmem:[#allocation2 + $0x5b] sm:$0x1] }
0x1a17   :  { %v5042_v46 = vrot.slane %v5015_v31, 3 }
0x1a18   :  { %v5001_v25 = vpop.permute.xlu0 %5000 }
0x1a19   :  { %v5043_v17 = vsel %vm659_vm6, %v5042_v46, %v5041_v45  ;;  %v5017_v21 = vmul.f32 %v5001_v25, %v10280_v8 }
0x1a1a   :  { %v5045_v63 = vsel %vm662_vm7, %v5044_v14, %v5043_v17 }
0x1a1b   :  { %v5046_v16 = vrot.slane %v5017_v21, 1 }
0x1a1d   :  { %v5024_v34 = vpop.permute.xlu1 %5023  ;;  %v5047_v51 = vsel %vm665_vm8, %v5046_v16, %v5045_v63 }
0x1a1e   :  { %vm5025_vm13 = vcmp.eq.s32.totalorder %v5024_v34, 1  ;;  %5048 = vrot.lane.b32.xlu0 %v5047_v51, %s8679_s1 }
0x1a1f   :  { %v10335_v24 = vsel %vm5025_vm13, %v5073_v10, %v10190_v58 }
0x1a20   :  { %v5330_v6 = vrot.slane %v10335_v24, 2  ;;  %v5329_v43 = vrot.slane %v10335_v24, 1  ;;  %v5331_v8 = vrot.slane %v10335_v24, 3  ;;  %v5333_v41 = vrot.slane %v10335_v24, 5 }
0x1a21   :  { %v5332_v58 = vrot.slane %v10335_v24, 4  ;;  %v5335_v54 = vrot.slane %v10335_v24, 7  ;;  %v5334_v32 = vrot.slane %v10335_v24, 6 }
0x1a22   :  { %5340 = vrot.lane.b32.xlu0 %v5330_v6, %s8679_s1  ;;  %5338 = vrot.lane.b32.xlu1 %v5329_v43, %s8679_s1 }
0x1a26   :  { %5342 = vrot.lane.b32.xlu0 %v5331_v8, %s8679_s1  ;;  %5336 = vrot.lane.b32.xlu1 %v10335_v24, %s8679_s1 }
0x1a2a   :  { %5346 = vrot.lane.b32.xlu0 %v5333_v41, %s8679_s1  ;;  %5344 = vrot.lane.b32.xlu1 %v5332_v58, %s8679_s1 }
0x1a2e   :  { %5350 = vrot.lane.b32.xlu0 %v5335_v54, %s8679_s1  ;;  %5348 = vrot.lane.b32.xlu1 %v5334_v32, %s8679_s1 }
0x1a90   :  { %v5049_v60 = vpop.permute.xlu0 %5048 }
0x1a91   :  { %v10355_v18 = vsel %vm5025_vm13, %v5049_v60, %v10210_v49  ;;  %v5076_v3 = vsel %vm5025_vm13, %v5049_v60, 0.0 }
0x1a92   :  { %v5078_v9 = vcombine.high %v5076_v3, %v5076_v3  ;;  %v5085_v7 = vrot.slane %v5076_v3, %v8966_v28  ;;  %7682 = vmatmul.mubr.msk.f32.vlgmr.msra.gmra.mxu1 %vm70_vm0, %v10355_v18 }
0x1a93   :  { %7696 = vmatpush3.msra.mxu1 %v10216_v47  ;;  %7703 = vmatprep.mubr.msk.f32.mxu1 %vm8678_vm1, %v8677_v0 }
0x1a94   :  { %v5092_v40 = vrot.slane %v5078_v9, %v8966_v28  ;;  %v5093_v39 = vcombine.high %v5085_v7, %v5085_v7  ;;  %v5101_v10 = vrot.slane %v5085_v7, %v8966_v28  ;;  %7697 = vmatprep.subr.mxu1 %v8677_v0  ;;  %v5339_v54 = vpop.permute.xlu1 %5338  ;;  %v5341_v9 = vpop.permute.xlu0 %5340 }
0x1a95   :  { %7698 = vmatpush3.msra.mxu1 %v10224_v1 }
0x1a96   :  { %v5094_v49 = vcombine.high %v5092_v40, %v5092_v40  ;;  %v5108_v56 = vrot.slane %v5092_v40, %v8966_v28  ;;  %v5115_v4 = vrot.slane %v5093_v39, %v8966_v28  ;;  %v5123_v33 = vcombine.high %v5101_v10, %v5101_v10  ;;  %5135 = vst.msk [vmem:[#allocation11 + $0xa] sm:$0x1] %vm754_vm11, %v5101_v10 }
0x1a97   :  { %7699 = vmatprep.subr.mxu1 %v8677_v0 }
0x1a98   :  { %7700 = vmatpush3.msra.mxu1 %v10231_v2  ;;  %v5122_v47 = vrot.slane %v5094_v49, %v8966_v28  ;;  %v5124_v50 = vcombine.high %v5108_v56, %v5108_v56  ;;  %v5125_v36 = vcombine.high %v5115_v4, %v5115_v4  ;;  %5136 = vst.msk [vmem:[#allocation11 + $0x1a] sm:$0x1] %vm754_vm11, %v5115_v4  ;;  %5137 = vst.msk [vmem:[#allocation11 + $0x2a] sm:$0x1] %vm754_vm11, %v5123_v33 }
0x1a99   :  { %5139 = vst.msk [vmem:[#allocation11 + $0x4a] sm:$0x1] %vm754_vm11, %v5108_v56  ;;  %7701 = vmatprep.subr.mxu1 %v8677_v0 }
0x1a9a   :  { %7702 = vmatpush3.msra.mxu1 %v10239_v62  ;;  %v5126_v1 = vcombine.high %v5122_v47, %v5122_v47  ;;  %5138 = vst.msk [vmem:[#allocation11 + $0x3a] sm:$0x1] %vm754_vm11, %v5125_v36  ;;  %5140 = vst.msk [vmem:[#allocation11 + $0x5a] sm:$0x1] %vm754_vm11, %v5122_v47 }
0x1a9b   :  { %5141 = vst.msk [vmem:[#allocation11 + $0x6a] sm:$0x1] %vm754_vm11, %v5124_v50  ;;  %7717 = vmatprep.subr.mxu1 %v8677_v0  ;;  %v5337_v50 = vpop.permute.xlu1 %5336 }
0x1a9c   :  { %5142 = vst.msk [vmem:[#allocation11 + $0x7a] sm:$0x1] %vm754_vm11, %v5126_v1 }
0x1b52   :  { %v5220_v2 = vpop.f32.mrf.mxu1 }
0x1b53   :  { %v5225_v20 = vrot.slane %v5220_v2, 1  ;;  %v5226_v42 = vrot.slane %v5220_v2, 2  ;;  %v5227_v48 = vrot.slane %v5220_v2, 3  ;;  %v5228_v38 = vrot.slane %v5220_v2, 4 }
0x1b54   :  { %v5230_v62 = vrot.slane %v5220_v2, 6  ;;  %v5240_v5 = vadd.f32 %v5220_v2, %v5143_v55  ;;  %v7683_v23 = vpop.f32.mrf.mxu1  ;;  %v5231_v53 = vrot.slane %v5220_v2, 7  ;;  %v5229_v19 = vrot.slane %v5220_v2, 5 }
0x1b55   :  { %v5241_v11 = vadd.f32 %v5225_v20, %v5144_v26  ;;  %v5242_v27 = vadd.f32 %v5226_v42, %v5145_v15  ;;  %v5243_v13 = vadd.f32 %v5227_v48, %v5146_v44  ;;  %v5244_v37 = vadd.f32 %v5228_v38, %v5147_v12  ;;  %v5343_v20 = vpop.permute.xlu0 %5342  ;;  %v5345_v23 = vpop.permute.xlu1 %5344 }
0x1b56   :  { %8273 = vtanh.f32 %v5240_v5  ;;  %v5246_v29 = vadd.f32 %v5230_v62, %v5149_v30  ;;  %v5247_v22 = vadd.f32 %v5231_v53, %v5150_v59  ;;  %v5248_v31 = vmul.f32 0.5, %v5240_v5 }
0x1b57   :  { %8275 = vtanh.f32 %v5242_v27  ;;  %v5251_v52 = vmul.f32 0.5, %v5243_v13  ;;  %v5245_v46 = vadd.f32 %v5229_v19, %v5148_v57  ;;  %v5249_v45 = vmul.f32 0.5, %v5241_v11 }
0x1b58   :  { %8277 = vtanh.f32 %v5241_v11  ;;  %v5252_v25 = vmul.f32 0.5, %v5244_v37  ;;  %v5250_v17 = vmul.f32 0.5, %v5242_v27  ;;  %v5254_v14 = vmul.f32 0.5, %v5246_v29 }
0x1b59   :  { %8279 = vtanh.f32 %v5243_v13  ;;  %v5253_v21 = vmul.f32 0.5, %v5245_v46  ;;  %v5255_v63 = vmul.f32 0.5, %v5247_v22  ;;  %v5347_v27 = vpop.permute.xlu0 %5346  ;;  %v5349_v59 = vpop.permute.xlu1 %5348 }
0x1b5a   :  { %8281 = vtanh.f32 %v5244_v37 }
0x1b5b   :  { %8283 = vtanh.f32 %v5246_v29 }
0x1b5c   :  { %8285 = vtanh.f32 %v5247_v22 }
0x1b5d   :  { %8287 = vtanh.f32 %v5248_v31  ;;  %v5351_v29 = vpop.permute.xlu0 %5350 }
0x1b5e   :  { %8289 = vtanh.f32 %v5251_v52 }
0x1b5f   :  { %8291 = vtanh.f32 %v5249_v45 }
0x1b60   :  { %8293 = vtanh.f32 %v5252_v25 }
0x1b61   :  { %8295 = vtanh.f32 %v5250_v17 }
0x1b62   :  { %8297 = vtanh.f32 %v5245_v46 }
0x1b63   :  { %v8274_v16 = vpop.eup %8273  ;;  %8299 = vtanh.f32 %v5253_v21 }
0x1b64   :  { %5296 = vrot.lane.b32.xlu1 %v8274_v16, %s8680_s4  ;;  %v8276_v34 = vpop.eup %8275  ;;  %8301 = vtanh.f32 %v5254_v14 }
0x1b65   :  { %v8278_v51 = vpop.eup %8277  ;;  %5300 = vrot.lane.b32.xlu0 %v8276_v34, %s8680_s4  ;;  %8303 = vtanh.f32 %v5255_v63 }
0x1b66   :  { %v8280_v6 = vpop.eup %8279 }
0x1b67   :  { %v8282_v43 = vpop.eup %8281 }
0x1b68   :  { %5298 = vrot.lane.b32.xlu1 %v8278_v51, %s8680_s4  ;;  %v8284_v8 = vpop.eup %8283 }
0x1b69   :  { %v8286_v41 = vpop.eup %8285  ;;  %5302 = vrot.lane.b32.xlu0 %v8280_v6, %s8680_s4 }
0x1b6a   :  { %v8288_v58 = vpop.eup %8287 }
0x1b6b   :  { %v8290_v32 = vpop.eup %8289  ;;  %v5264_v60 = vmul.f32 0.5, %v8288_v58 }
0x1b6c   :  { %5308 = vrot.lane.b32.xlu1 %v8284_v8, %s8680_s4  ;;  %v8292_v3 = vpop.eup %8291  ;;  %v5267_v7 = vmul.f32 0.5, %v8290_v32 }
0x1b6d   :  { %v8294_v40 = vpop.eup %8293  ;;  %5304 = vrot.lane.b32.xlu0 %v8282_v43, %s8680_s4  ;;  %v10390_v39 = vadd.f32 0.5, %v5264_v60  ;;  %v5265_v10 = vmul.f32 0.5, %v8292_v3 }
0x1b6e   :  { %v8296_v49 = vpop.eup %8295  ;;  %v10393_v4 = vadd.f32 0.5, %v5267_v7  ;;  %v5268_v33 = vmul.f32 0.5, %v8294_v40 }
0x1b6f   :  { %v8298_v56 = vpop.eup %8297  ;;  %v5360_v36 = vmul.f32 %v5337_v50, %v10390_v39  ;;  %v10397_v1 = vadd.f32 0.5, %v5265_v10  ;;  %v5266_v2 = vmul.f32 0.5, %v8296_v49 }
0x1b70   :  { %5310 = vrot.lane.b32.xlu1 %v8286_v41, %s8680_s4  ;;  %v8300_v47 = vpop.eup %8299  ;;  %v5363_v42 = vmul.f32 %v5343_v20, %v10393_v4  ;;  %v10401_v48 = vadd.f32 0.5, %v5268_v33 }
0x1b71   :  { %5306 = vrot.lane.b32.xlu0 %v8298_v56, %s8680_s4  ;;  %v8302_v55 = vpop.eup %8301  ;;  %v5269_v38 = vmul.f32 0.5, %v8300_v47  ;;  %v5361_v15 = vmul.f32 %v5339_v54, %v10397_v1  ;;  %v10405_v62 = vadd.f32 0.5, %v5266_v2 }
0x1b72   :  { %v8304_v26 = vpop.eup %8303  ;;  %v5270_v5 = vmul.f32 0.5, %v8302_v55  ;;  %v5364_v44 = vmul.f32 %v5345_v23, %v10401_v48 }
0x1b73   :  { %v10409_v53 = vadd.f32 0.5, %v5269_v38  ;;  %v5271_v11 = vmul.f32 0.5, %v8304_v26  ;;  %v5362_v12 = vmul.f32 %v5341_v9, %v10405_v62 }
0x1b74   :  { %5376 = vrot.lane.b32.xlu1 %v5360_v36, %s8681_s18  ;;  %v10413_v13 = vadd.f32 0.5, %v5270_v5 }
0x1b75   :  { %5382 = vrot.lane.b32.xlu0 %v5363_v42, %s8681_s18  ;;  %v5365_v30 = vmul.f32 %v5347_v27, %v10409_v53  ;;  %v10417_v37 = vadd.f32 0.5, %v5271_v11 }
0x1b76   :  { %v5366_v19 = vmul.f32 %v5349_v59, %v10413_v13 }
0x1b77   :  { %v5367_v22 = vmul.f32 %v5351_v29, %v10417_v37 }
0x1b78   :  { %5378 = vrot.lane.b32.xlu1 %v5361_v15, %s8681_s18 }
0x1b79   :  { %5384 = vrot.lane.b32.xlu0 %v5364_v44, %s8681_s18 }
0x1b7c   :  { %5380 = vrot.lane.b32.xlu1 %v5362_v12, %s8681_s18 }
0x1b7d   :  { %5386 = vrot.lane.b32.xlu0 %v5365_v30, %s8681_s18 }
0x1b80   :  { %5388 = vrot.lane.b32.xlu1 %v5366_v19, %s8681_s18 }
0x1b81   :  { %5390 = vrot.lane.b32.xlu0 %v5367_v22, %s8681_s18 }
0x1bd6   :  { %v5297_v31 = vpop.permute.xlu1 %5296 }
0x1bd7   :  { %v5301_v57 = vpop.permute.xlu0 %5300  ;;  %v5320_v14 = vmul.f32 %v5297_v31, %v10390_v39 }
0x1bd8   :  { %v5322_v54 = vmul.f32 %v5301_v57, %v10405_v62 }
0x1bda   :  { %v5299_v52 = vpop.permute.xlu1 %5298 }
0x1bdb   :  { %v5303_v46 = vpop.permute.xlu0 %5302  ;;  %v5321_v51 = vmul.f32 %v5299_v52, %v10397_v1  ;;  %v5459_v52 = vsel %vm5458_vm14, 1, %v8682_v35 }
0x1bdc   :  { %v5323_v41 = vmul.f32 %v5303_v46, %v10393_v4 }
0x1bde   :  { %v5309_v45 = vpop.permute.xlu1 %5308 }
0x1bdf   :  { %v5305_v25 = vpop.permute.xlu0 %5304  ;;  %v5326_v56 = vmul.f32 %v5309_v45, %v10413_v13 }
0x1be0   :  { %v5324_v43 = vmul.f32 %v5305_v25, %v10401_v48 }
0x1be2   :  { %v5311_v17 = vpop.permute.xlu1 %5310 }
0x1be3   :  { %v5307_v21 = vpop.permute.xlu0 %5306  ;;  %v5327_v50 = vmul.f32 %v5311_v17, %v10417_v37 }
0x1be4   :  { %v5325_v7 = vmul.f32 %v5307_v21, %v10409_v53 }
0x1be6   :  { %v5377_v16 = vpop.permute.xlu1 %5376 }
0x1be7   :  { %v5400_v63 = vadd.f32 %v5377_v16, %v5320_v14  ;;  %v5383_v34 = vpop.permute.xlu0 %5382 }
0x1be8   :  { %v5403_v3 = vadd.f32 %v5383_v34, %v5323_v41 }
0x1be9   :  { %8305 = vtanh.f32 %v5400_v63 }
0x1bea   :  { %v5379_v6 = vpop.permute.xlu1 %5378  ;;  %v5502_v36 = vrot.slane %v5403_v3, 5 }
0x1beb   :  { %v5401_v8 = vadd.f32 %v5379_v6, %v5321_v51  ;;  %v5385_v58 = vpop.permute.xlu0 %5384 }
0x1bec   :  { %v5404_v60 = vadd.f32 %v5385_v58, %v5324_v43 }
0x1bed   :  { %8307 = vtanh.f32 %v5401_v8  ;;  %v5498_v32 = vrot.slane %v5401_v8, 7 }
0x1bee   :  { %v5381_v9 = vpop.permute.xlu1 %5380  ;;  %8309 = vtanh.f32 %v5404_v60  ;;  %v5504_v55 = vrot.slane %v5404_v60, 4 }
0x1bef   :  { %v5499_v40 = vsel %vm647_vm2, %v5498_v32, %v5400_v63  ;;  %v5402_v10 = vadd.f32 %v5381_v9, %v5322_v54  ;;  %v5387_v49 = vpop.permute.xlu0 %5386 }
0x1bf0   :  { %v5405_v47 = vadd.f32 %v5387_v49, %v5325_v7 }
0x1bf1   :  { %8311 = vtanh.f32 %v5402_v10  ;;  %v5500_v33 = vrot.slane %v5402_v10, 6 }
0x1bf2   :  { %v5389_v2 = vpop.permute.xlu1 %5388  ;;  %v5506_v42 = vrot.slane %v5405_v47, 3  ;;  %8313 = vtanh.f32 %v5403_v3 }
0x1bf3   :  { %v5501_v20 = vsel %vm650_vm3, %v5500_v33, %v5499_v40  ;;  %v5406_v38 = vadd.f32 %v5389_v2, %v5326_v56  ;;  %v5391_v15 = vpop.permute.xlu0 %5390 }
0x1bf4   :  { %v5503_v26 = vsel %vm653_vm4, %v5502_v36, %v5501_v20  ;;  %v5407_v44 = vadd.f32 %v5391_v15, %v5327_v50 }
0x1bf5   :  { %v5505_v5 = vsel %vm656_vm5, %v5504_v55, %v5503_v26  ;;  %8315 = vtanh.f32 %v5406_v38  ;;  %v5508_v23 = vrot.slane %v5406_v38, 2 }
0x1bf6   :  { %v8306_v11 = vpop.eup %8305  ;;  %v5507_v27 = vsel %vm659_vm6, %v5506_v42, %v5505_v5  ;;  %v5510_v30 = vrot.slane %v5407_v44, 1  ;;  %8317 = vtanh.f32 %v5405_v47  ;;  %v10493_v5 = vld [vmem:[#allocation10 + $0x18] sm:$0xff] }
0x1bf7   :  { %v5509_v12 = vsel %vm662_vm7, %v5508_v23, %v5507_v27  ;;  %5424 = vrot.lane.b32.xlu1 %v8306_v11, %s8681_s18  ;;  %8319 = vtanh.f32 %v5407_v44  ;;  %v10501_v11 = vld [vmem:[#allocation10 + $0x10] sm:$0xff] }
0x1bf8   :  { %v5511_v59 = vsel %vm665_vm8, %v5510_v30, %v5509_v12 }
0x1bfa   :  { %v8308_v19 = vpop.eup %8307 }
0x1bfb   :  { %5426 = vrot.lane.b32.xlu1 %v8308_v19, %s8681_s18  ;;  %v8310_v29 = vpop.eup %8309  ;;  %v10508_v19 = vld [vmem:[#allocation10 + $0x8] sm:$0xff] }
0x1bfe   :  { %v8312_v22 = vpop.eup %8311 }
0x1bff   :  { %5428 = vrot.lane.b32.xlu0 %v8312_v22, %s8681_s18  ;;  %5432 = vrot.lane.b32.xlu1 %v8310_v29, %s8681_s18  ;;  %v8314_v31 = vpop.eup %8313 }
0x1c02   :  { %v8316_v57 = vpop.eup %8315 }
0x1c03   :  { %5430 = vrot.lane.b32.xlu0 %v8314_v31, %s8681_s18  ;;  %5436 = vrot.lane.b32.xlu1 %v8316_v57, %s8681_s18  ;;  %v8318_v46 = vpop.eup %8317  ;;  %v10516_v57 = vld [vmem:[#allocation10] sm:$0xff] }
0x1c04   :  { %v8320_v45 = vpop.eup %8319 }
0x1c07   :  { %5434 = vrot.lane.b32.xlu0 %v8318_v46, %s8681_s18  ;;  %5461 = vperm.xlu1 %7744, %v5459_v52  }
0x1c0b   :  { %5438 = vrot.lane.b32.xlu0 %v8320_v45, %s8681_s18  ;;  %v5581_v45 = vld [vmem:[#allocation2 + $0xc] sm:$0x1] }
0x1c69   :  { %v5425_v25 = vpop.permute.xlu1 %5424 }
0x1c6a   :  { %v5448_v6 = vmul.f32 %v5425_v25, %v10390_v39 }
0x1c6d   :  { %v5427_v17 = vpop.permute.xlu1 %5426 }
0x1c6e   :  { %v5449_v21 = vmul.f32 %v5427_v17, %v10397_v1 }
0x1c70   :  { %v5472_v63 = vrot.slane %v5449_v21, 7 }
0x1c71   :  { %v5429_v14 = vpop.permute.xlu0 %5428  ;;  %v5433_v16 = vpop.permute.xlu1 %5432 }
0x1c72   :  { %v5450_v61 = vmul.f32 %v5429_v14, %v10405_v62  ;;  %v5452_v8 = vmul.f32 %v5433_v16, %v10401_v48  ;;  %v5473_v41 = vsel %vm647_vm2, %v5472_v63, %v5448_v6  ;;  %v5583_v16 = vld [vmem:[#allocation2 + $0x2c] sm:$0x1]  ;;  %v5584_v6 = vld [vmem:[#allocation2 + $0x3c] sm:$0x1] }
0x1c74   :  { %v5474_v34 = vrot.slane %v5450_v61, 6  ;;  %v5478_v3 = vrot.slane %v5452_v8, 4  ;;  %v5582_v61 = vld [vmem:[#allocation2 + $0x1c] sm:$0x1] }
0x1c75   :  { %v5431_v51 = vpop.permute.xlu0 %5430  ;;  %v5437_v54 = vpop.permute.xlu1 %5436 }
0x1c76   :  { %v5451_v43 = vmul.f32 %v5431_v51, %v10393_v4  ;;  %v5475_v32 = vsel %vm650_vm3, %v5474_v34, %v5473_v41  ;;  %v5454_v9 = vmul.f32 %v5437_v54, %v10413_v13 }
0x1c78   :  { %v5476_v58 = vrot.slane %v5451_v43, 5  ;;  %v5482_v10 = vrot.slane %v5454_v9, 2 }
0x1c79   :  { %v5435_v1 = vpop.permute.xlu0 %5434 }
0x1c7a   :  { %v5477_v60 = vsel %vm653_vm4, %v5476_v58, %v5475_v32  ;;  %v5453_v62 = vmul.f32 %v5435_v1, %v10409_v53  ;;  %v5585_v58 = vld [vmem:[#allocation2 + $0x4c] sm:$0x1] }
0x1c7b   :  { %v5479_v39 = vsel %vm656_vm5, %v5478_v3, %v5477_v60  ;;  %v5587_v32 = vld [vmem:[#allocation2 + $0x6c] sm:$0x1]  ;;  %v5588_v60 = vld [vmem:[#allocation2 + $0x7c] sm:$0x1] }
0x1c7c   :  { %v5480_v7 = vrot.slane %v5453_v62, 3 }
0x1c7d   :  { %v5439_v4 = vpop.permute.xlu0 %5438 }
0x1c7e   :  { %v5481_v48 = vsel %vm659_vm6, %v5480_v7, %v5479_v39  ;;  %v5455_v40 = vmul.f32 %v5439_v4, %v10417_v37  ;;  %v5586_v39 = vld [vmem:[#allocation2 + $0x5c] sm:$0x1] }
0x1c7f   :  { %v5483_v56 = vsel %vm662_vm7, %v5482_v10, %v5481_v48 }
0x1c80   :  { %v5484_v49 = vrot.slane %v5455_v40, 1 }
0x1c82   :  { %v5462_v33 = vpop.permute.xlu1 %5461  ;;  %v5485_v47 = vsel %vm665_vm8, %v5484_v49, %v5483_v56 }
0x1c83   :  { %vm5463_vm15 = vcmp.eq.s32.totalorder %v5462_v33, 1  ;;  %5486 = vrot.lane.b32.xlu0 %v5485_v47, %s8679_s1 }
0x1c84   :  { %v10467_v53 = vsel %vm5463_vm15, %v5511_v59, %v10335_v24 }
0x1c85   :  { %v5768_v13 = vrot.slane %v10467_v53, 2  ;;  %v5767_v50 = vrot.slane %v10467_v53, 1  ;;  %v5769_v37 = vrot.slane %v10467_v53, 3  ;;  %v5771_v36 = vrot.slane %v10467_v53, 5 }
0x1c86   :  { %v5770_v24 = vrot.slane %v10467_v53, 4  ;;  %v5773_v2 = vrot.slane %v10467_v53, 7  ;;  %v5772_v55 = vrot.slane %v10467_v53, 6 }
0x1c87   :  { %5778 = vrot.lane.b32.xlu0 %v5768_v13, %s8679_s1  ;;  %5776 = vrot.lane.b32.xlu1 %v5767_v50, %s8679_s1 }
0x1c8b   :  { %5780 = vrot.lane.b32.xlu0 %v5769_v37, %s8679_s1  ;;  %5774 = vrot.lane.b32.xlu1 %v10467_v53, %s8679_s1 }
0x1c8f   :  { %5784 = vrot.lane.b32.xlu0 %v5771_v36, %s8679_s1  ;;  %5782 = vrot.lane.b32.xlu1 %v5770_v24, %s8679_s1 }
0x1c93   :  { %5788 = vrot.lane.b32.xlu0 %v5773_v2, %s8679_s1  ;;  %5786 = vrot.lane.b32.xlu1 %v5772_v55, %s8679_s1 }
0x1cf5   :  { %v5487_v20 = vpop.permute.xlu0 %5486 }
0x1cf6   :  { %v10487_v42 = vsel %vm5463_vm15, %v5487_v20, %v10355_v18  ;;  %v5514_v38 = vsel %vm5463_vm15, %v5487_v20, 0.0 }
0x1cf7   :  { %v5516_v26 = vcombine.high %v5514_v38, %v5514_v38  ;;  %v5523_v15 = vrot.slane %v5514_v38, %v8966_v28  ;;  %7693 = vmatmul.mubr.msk.f32.vlgmr.msra.gmra.mxu0 %vm70_vm0, %v10487_v42 }
0x1cf8   :  { %7707 = vmatpush3.msra.mxu0 %v10493_v5  ;;  %7714 = vmatprep.mubr.msk.f32.mxu0 %vm8678_vm1, %v8677_v0 }
0x1cf9   :  { %v5530_v23 = vrot.slane %v5516_v26, %v8966_v28  ;;  %v5531_v44 = vcombine.high %v5523_v15, %v5523_v15  ;;  %v5539_v18 = vrot.slane %v5523_v15, %v8966_v28  ;;  %7708 = vmatprep.subr.mxu0 %v8677_v0  ;;  %v5777_v38 = vpop.permute.xlu1 %5776 }
0x1cfa   :  { %7709 = vmatpush3.msra.mxu0 %v10501_v11 }
0x1cfb   :  { %v5532_v27 = vcombine.high %v5530_v23, %v5530_v23  ;;  %v5546_v12 = vrot.slane %v5530_v23, %v8966_v28  ;;  %v5553_v30 = vrot.slane %v5531_v44, %v8966_v28  ;;  %v5561_v59 = vcombine.high %v5539_v18, %v5539_v18  ;;  %5573 = vst.msk [vmem:[#allocation11 + $0xb] sm:$0x1] %vm754_vm11, %v5539_v18  ;;  %v5779_v44 = vpop.permute.xlu0 %5778 }
0x1cfc   :  { %7710 = vmatprep.subr.mxu0 %v8677_v0 }
0x1cfd   :  { %7711 = vmatpush3.msra.mxu0 %v10508_v19  ;;  %v5560_v29 = vrot.slane %v5532_v27, %v8966_v28  ;;  %v5562_v22 = vcombine.high %v5546_v12, %v5546_v12  ;;  %v5563_v31 = vcombine.high %v5553_v30, %v5553_v30  ;;  %5574 = vst.msk [vmem:[#allocation11 + $0x1b] sm:$0x1] %vm754_vm11, %v5553_v30  ;;  %5575 = vst.msk [vmem:[#allocation11 + $0x2b] sm:$0x1] %vm754_vm11, %v5561_v59 }
0x1cfe   :  { %5577 = vst.msk [vmem:[#allocation11 + $0x4b] sm:$0x1] %vm754_vm11, %v5546_v12  ;;  %7712 = vmatprep.subr.mxu0 %v8677_v0 }
0x1cff   :  { %7713 = vmatpush3.msra.mxu0 %v10516_v57  ;;  %v5564_v52 = vcombine.high %v5560_v29, %v5560_v29  ;;  %5576 = vst.msk [vmem:[#allocation11 + $0x3b] sm:$0x1] %vm754_vm11, %v5563_v31  ;;  %5578 = vst.msk [vmem:[#allocation11 + $0x5b] sm:$0x1] %vm754_vm11, %v5560_v29 }
0x1d00   :  { %5579 = vst.msk [vmem:[#allocation11 + $0x6b] sm:$0x1] %vm754_vm11, %v5562_v22 }
0x1d01   :  { %5580 = vst.msk [vmem:[#allocation11 + $0x7b] sm:$0x1] %vm754_vm11, %v5564_v52 }
0x1db7   :  { %v5658_v46 = vpop.f32.mrf.mxu0 }
0x1db8   :  { %v5663_v25 = vrot.slane %v5658_v46, 1  ;;  %v5664_v17 = vrot.slane %v5658_v46, 2  ;;  %v5665_v21 = vrot.slane %v5658_v46, 3  ;;  %v5666_v14 = vrot.slane %v5658_v46, 4 }
0x1db9   :  { %v5668_v63 = vrot.slane %v5658_v46, 6  ;;  %v5678_v34 = vadd.f32 %v5658_v46, %v5581_v45  ;;  %v7694_v51 = vpop.f32.mrf.mxu0  ;;  %v5669_v43 = vrot.slane %v5658_v46, 7  ;;  %v5667_v62 = vrot.slane %v5658_v46, 5  ;;  %v5775_v46 = vpop.permute.xlu1 %5774 }
0x1dba   :  { %v5679_v8 = vadd.f32 %v5663_v25, %v5582_v61  ;;  %v5680_v41 = vadd.f32 %v5664_v17, %v5583_v16  ;;  %v5681_v54 = vadd.f32 %v5665_v21, %v5584_v6  ;;  %v5682_v1 = vadd.f32 %v5666_v14, %v5585_v58  ;;  %v5781_v14 = vpop.permute.xlu0 %5780 }
0x1dbb   :  { %8321 = vtanh.f32 %v5678_v34  ;;  %v5684_v3 = vadd.f32 %v5668_v63, %v5587_v32  ;;  %v5685_v9 = vadd.f32 %v5669_v43, %v5588_v60  ;;  %v5686_v7 = vmul.f32 0.5, %v5678_v34 }
0x1dbc   :  { %8323 = vtanh.f32 %v5680_v41  ;;  %v5689_v4 = vmul.f32 0.5, %v5681_v54  ;;  %v5683_v48 = vadd.f32 %v5667_v62, %v5586_v39  ;;  %v5687_v40 = vmul.f32 0.5, %v5679_v8 }
0x1dbd   :  { %8325 = vtanh.f32 %v5679_v8  ;;  %v5690_v10 = vmul.f32 0.5, %v5682_v1  ;;  %v5688_v49 = vmul.f32 0.5, %v5680_v41  ;;  %v5692_v33 = vmul.f32 0.5, %v5684_v3  ;;  %v5783_v8 = vpop.permute.xlu1 %5782 }
0x1dbe   :  { %8327 = vtanh.f32 %v5681_v54  ;;  %v5691_v56 = vmul.f32 0.5, %v5683_v48  ;;  %v5693_v13 = vmul.f32 0.5, %v5685_v9  ;;  %v5785_v32 = vpop.permute.xlu0 %5784 }
0x1dbf   :  { %8329 = vtanh.f32 %v5682_v1 }
0x1dc0   :  { %8331 = vtanh.f32 %v5684_v3 }
0x1dc1   :  { %8333 = vtanh.f32 %v5685_v9  ;;  %v5787_v9 = vpop.permute.xlu1 %5786 }
0x1dc2   :  { %8335 = vtanh.f32 %v5686_v7  ;;  %v5789_v39 = vpop.permute.xlu0 %5788 }
0x1dc3   :  { %8337 = vtanh.f32 %v5689_v4 }
0x1dc4   :  { %8339 = vtanh.f32 %v5687_v40 }
0x1dc5   :  { %8341 = vtanh.f32 %v5690_v10 }
0x1dc6   :  { %8343 = vtanh.f32 %v5688_v49 }
0x1dc7   :  { %8345 = vtanh.f32 %v5683_v48 }
0x1dc8   :  { %v8322_v47 = vpop.eup %8321  ;;  %8347 = vtanh.f32 %v5691_v56 }
0x1dc9   :  { %5734 = vrot.lane.b32.xlu1 %v8322_v47, %s8680_s4  ;;  %v8324_v50 = vpop.eup %8323  ;;  %8349 = vtanh.f32 %v5692_v33 }
0x1dca   :  { %v8326_v37 = vpop.eup %8325  ;;  %5738 = vrot.lane.b32.xlu0 %v8324_v50, %s8680_s4  ;;  %8351 = vtanh.f32 %v5693_v13 }
0x1dcb   :  { %v8328_v36 = vpop.eup %8327 }
0x1dcc   :  { %v8330_v24 = vpop.eup %8329 }
0x1dcd   :  { %5736 = vrot.lane.b32.xlu1 %v8326_v37, %s8680_s4  ;;  %v8332_v2 = vpop.eup %8331 }
0x1dce   :  { %v8334_v55 = vpop.eup %8333  ;;  %5740 = vrot.lane.b32.xlu0 %v8328_v36, %s8680_s4 }
0x1dcf   :  { %v8336_v20 = vpop.eup %8335 }
0x1dd0   :  { %v8338_v26 = vpop.eup %8337  ;;  %v5702_v15 = vmul.f32 0.5, %v8336_v20 }
0x1dd1   :  { %5746 = vrot.lane.b32.xlu1 %v8332_v2, %s8680_s4  ;;  %v8340_v23 = vpop.eup %8339  ;;  %v5705_v18 = vmul.f32 0.5, %v8338_v26 }
0x1dd2   :  { %v8342_v27 = vpop.eup %8341  ;;  %5742 = vrot.lane.b32.xlu0 %v8330_v24, %s8680_s4  ;;  %v10529_v12 = vadd.f32 0.5, %v5702_v15  ;;  %v5703_v30 = vmul.f32 0.5, %v8340_v23 }
0x1dd3   :  { %v8344_v59 = vpop.eup %8343  ;;  %v10532_v22 = vadd.f32 0.5, %v5705_v18  ;;  %v5706_v31 = vmul.f32 0.5, %v8342_v27 }
0x1dd4   :  { %v8346_v29 = vpop.eup %8345  ;;  %v5798_v45 = vmul.f32 %v5775_v46, %v10529_v12  ;;  %v10536_v25 = vadd.f32 0.5, %v5703_v30  ;;  %v5704_v17 = vmul.f32 0.5, %v8344_v59 }
0x1dd5   :  { %5748 = vrot.lane.b32.xlu1 %v8334_v55, %s8680_s4  ;;  %v8348_v52 = vpop.eup %8347  ;;  %v5801_v61 = vmul.f32 %v5781_v14, %v10532_v22  ;;  %v10540_v16 = vadd.f32 0.5, %v5706_v31 }
0x1dd6   :  { %5744 = vrot.lane.b32.xlu0 %v8346_v29, %s8680_s4  ;;  %v8350_v21 = vpop.eup %8349  ;;  %v5707_v63 = vmul.f32 0.5, %v8348_v52  ;;  %v5799_v51 = vmul.f32 %v5777_v38, %v10536_v25  ;;  %v10544_v6 = vadd.f32 0.5, %v5704_v17 }
0x1dd7   :  { %v8352_v34 = vpop.eup %8351  ;;  %v5708_v43 = vmul.f32 0.5, %v8350_v21  ;;  %v5802_v41 = vmul.f32 %v5783_v8, %v10540_v16 }
0x1dd8   :  { %v10548_v58 = vadd.f32 0.5, %v5707_v63  ;;  %v5709_v54 = vmul.f32 0.5, %v8352_v34  ;;  %v5800_v1 = vmul.f32 %v5779_v44, %v10544_v6 }
0x1dd9   :  { %5814 = vrot.lane.b32.xlu1 %v5798_v45, %s8681_s18  ;;  %v10552_v60 = vadd.f32 0.5, %v5708_v43 }
0x1dda   :  { %5820 = vrot.lane.b32.xlu0 %v5801_v61, %s8681_s18  ;;  %v5803_v62 = vmul.f32 %v5785_v32, %v10548_v58  ;;  %v10556_v3 = vadd.f32 0.5, %v5709_v54 }
0x1ddb   :  { %v5804_v7 = vmul.f32 %v5787_v9, %v10552_v60 }
0x1ddc   :  { %v5805_v4 = vmul.f32 %v5789_v39, %v10556_v3 }
0x1ddd   :  { %5816 = vrot.lane.b32.xlu1 %v5799_v51, %s8681_s18 }
0x1dde   :  { %5822 = vrot.lane.b32.xlu0 %v5802_v41, %s8681_s18 }
0x1de1   :  { %5818 = vrot.lane.b32.xlu1 %v5800_v1, %s8681_s18 }
0x1de2   :  { %5824 = vrot.lane.b32.xlu0 %v5803_v62, %s8681_s18 }
0x1de5   :  { %5826 = vrot.lane.b32.xlu1 %v5804_v7, %s8681_s18 }
0x1de6   :  { %5828 = vrot.lane.b32.xlu0 %v5805_v4, %s8681_s18 }
0x1e3b   :  { %v5735_v48 = vpop.permute.xlu1 %5734 }
0x1e3c   :  { %v5739_v40 = vpop.permute.xlu0 %5738  ;;  %v5758_v50 = vmul.f32 %v5735_v48, %v10529_v12 }
0x1e3d   :  { %v5760_v23 = vmul.f32 %v5739_v40, %v10544_v6 }
0x1e3f   :  { %v5737_v10 = vpop.permute.xlu1 %5736 }
0x1e40   :  { %v5741_v49 = vpop.permute.xlu0 %5740  ;;  %v5759_v2 = vmul.f32 %v5737_v10, %v10536_v25 }
0x1e41   :  { %v5761_v26 = vmul.f32 %v5741_v49, %v10532_v22 }
0x1e43   :  { %v5747_v56 = vpop.permute.xlu1 %5746 }
0x1e44   :  { %v5743_v33 = vpop.permute.xlu0 %5742  ;;  %v5764_v46 = vmul.f32 %v5747_v56, %v10552_v60  ;;  %v10585_v56 = vld [vmem:[%s11021_s0] sm:$0xff] }
0x1e45   :  { %v5762_v20 = vmul.f32 %v5743_v33, %v10540_v16  ;;  %vm5896_vm9 = vcmp.gt.s32.totalorder %v10585_v56, 12 }
0x1e47   :  { %v5749_v47 = vpop.permute.xlu1 %5748 }
0x1e48   :  { %v5745_v13 = vpop.permute.xlu0 %5744  ;;  %v5765_v21 = vmul.f32 %v5749_v47, %v10556_v3  ;;  %v5897_v47 = vsel %vm5896_vm9, 1, %v8682_v35 }
0x1e49   :  { %v5763_v59 = vmul.f32 %v5745_v13, %v10548_v58 }
0x1e4b   :  { %v5815_v37 = vpop.permute.xlu1 %5814 }
0x1e4c   :  { %v5838_v36 = vadd.f32 %v5815_v37, %v5758_v50  ;;  %v5821_v24 = vpop.permute.xlu0 %5820 }
0x1e4d   :  { %v5841_v27 = vadd.f32 %v5821_v24, %v5761_v26 }
0x1e4e   :  { %8353 = vtanh.f32 %v5838_v36 }
0x1e4f   :  { %v5817_v55 = vpop.permute.xlu1 %5816  ;;  %v5940_v14 = vrot.slane %v5841_v27, 5 }
0x1e50   :  { %v5839_v38 = vadd.f32 %v5817_v55, %v5759_v2  ;;  %v5823_v15 = vpop.permute.xlu0 %5822 }
0x1e51   :  { %v5842_v18 = vadd.f32 %v5823_v15, %v5762_v20 }
0x1e52   :  { %8355 = vtanh.f32 %v5839_v38  ;;  %v5936_v44 = vrot.slane %v5839_v38, 7 }
0x1e53   :  { %v5819_v30 = vpop.permute.xlu1 %5818  ;;  %8357 = vtanh.f32 %v5842_v18  ;;  %v5942_v63 = vrot.slane %v5842_v18, 4 }
0x1e54   :  { %v5937_v29 = vsel %vm647_vm2, %v5936_v44, %v5838_v36  ;;  %v5840_v31 = vadd.f32 %v5819_v30, %v5760_v23  ;;  %v5825_v52 = vpop.permute.xlu0 %5824 }
0x1e55   :  { %v5843_v17 = vadd.f32 %v5825_v52, %v5763_v59 }
0x1e56   :  { %8359 = vtanh.f32 %v5840_v31  ;;  %v5938_v45 = vrot.slane %v5840_v31, 6 }
0x1e57   :  { %v5827_v61 = vpop.permute.xlu1 %5826  ;;  %v5944_v51 = vrot.slane %v5843_v17, 3  ;;  %8361 = vtanh.f32 %v5841_v27 }
0x1e58   :  { %v5939_v34 = vsel %vm650_vm3, %v5938_v45, %v5937_v29  ;;  %v5844_v43 = vadd.f32 %v5827_v61, %v5764_v46  ;;  %v5829_v41 = vpop.permute.xlu0 %5828 }
0x1e59   :  { %v5941_v8 = vsel %vm653_vm4, %v5940_v14, %v5939_v34  ;;  %v5845_v1 = vadd.f32 %v5829_v41, %v5765_v21 }
0x1e5a   :  { %v5943_v54 = vsel %vm656_vm5, %v5942_v63, %v5941_v8  ;;  %8363 = vtanh.f32 %v5844_v43  ;;  %v5946_v32 = vrot.slane %v5844_v43, 2 }
0x1e5b   :  { %v8354_v62 = vpop.eup %8353  ;;  %v5945_v9 = vsel %vm659_vm6, %v5944_v51, %v5943_v54  ;;  %v5948_v39 = vrot.slane %v5845_v1, 1  ;;  %8365 = vtanh.f32 %v5843_v17 }
0x1e5c   :  { %v5947_v7 = vsel %vm662_vm7, %v5946_v32, %v5945_v9  ;;  %5862 = vrot.lane.b32.xlu1 %v8354_v62, %s8681_s18  ;;  %8367 = vtanh.f32 %v5845_v1 }
0x1e5d   :  { %v5949_v4 = vsel %vm665_vm8, %v5948_v39, %v5947_v7 }
0x1e5f   :  { %v8356_v48 = vpop.eup %8355 }
0x1e60   :  { %5864 = vrot.lane.b32.xlu1 %v8356_v48, %s8681_s18  ;;  %v8358_v40 = vpop.eup %8357 }
0x1e63   :  { %v8360_v10 = vpop.eup %8359 }
0x1e64   :  { %5866 = vrot.lane.b32.xlu0 %v8360_v10, %s8681_s18  ;;  %5870 = vrot.lane.b32.xlu1 %v8358_v40, %s8681_s18  ;;  %v8362_v49 = vpop.eup %8361 }
0x1e67   :  { %v8364_v33 = vpop.eup %8363 }
0x1e68   :  { %5868 = vrot.lane.b32.xlu0 %v8362_v49, %s8681_s18  ;;  %5874 = vrot.lane.b32.xlu1 %v8364_v33, %s8681_s18  ;;  %v8366_v13 = vpop.eup %8365 }
0x1e69   :  { %v8368_v50 = vpop.eup %8367 }
0x1e6c   :  { %5872 = vrot.lane.b32.xlu0 %v8366_v13, %s8681_s18  ;;  %5899 = vperm.xlu1 %7744, %v5897_v47   ;;  %v6019_v47 = vld [vmem:[#allocation2 + $0xd] sm:$0x1] }
0x1e70   :  { %5876 = vrot.lane.b32.xlu0 %v8368_v50, %s8681_s18 }
0x1ece   :  { %v5863_v37 = vpop.permute.xlu1 %5862 }
0x1ecf   :  { %v5886_v23 = vmul.f32 %v5863_v37, %v10529_v12 }
0x1ed2   :  { %v5865_v36 = vpop.permute.xlu1 %5864 }
0x1ed3   :  { %v5887_v24 = vmul.f32 %v5865_v36, %v10536_v25 }
0x1ed5   :  { %v5910_v38 = vrot.slane %v5887_v24, 7  ;;  %v6020_v24 = vld [vmem:[#allocation2 + $0x1d] sm:$0x1] }
0x1ed6   :  { %v5867_v2 = vpop.permute.xlu0 %5866  ;;  %v5871_v20 = vpop.permute.xlu1 %5870 }
0x1ed7   :  { %v5888_v55 = vmul.f32 %v5867_v2, %v10544_v6  ;;  %v5890_v18 = vmul.f32 %v5871_v20, %v10540_v16  ;;  %v5911_v27 = vsel %vm647_vm2, %v5910_v38, %v5886_v23  ;;  %v6021_v2 = vld [vmem:[#allocation2 + $0x2d] sm:$0x1]  ;;  %v6022_v20 = vld [vmem:[#allocation2 + $0x3d] sm:$0x1] }
0x1ed8   :  { %v6023_v23 = vld [vmem:[#allocation2 + $0x4d] sm:$0x1] }
0x1ed9   :  { %v5912_v26 = vrot.slane %v5888_v55, 6  ;;  %v5916_v52 = vrot.slane %v5890_v18, 4  ;;  %v6025_v18 = vld [vmem:[#allocation2 + $0x6d] sm:$0x1] }
0x1eda   :  { %v5869_v15 = vpop.permute.xlu0 %5868  ;;  %v5875_v59 = vpop.permute.xlu1 %5874 }
0x1edb   :  { %v5889_v44 = vmul.f32 %v5869_v15, %v10532_v22  ;;  %v5913_v29 = vsel %vm650_vm3, %v5912_v26, %v5911_v27  ;;  %v5892_v46 = vmul.f32 %v5875_v59, %v10552_v60 }
0x1edd   :  { %v5914_v30 = vrot.slane %v5889_v44, 5  ;;  %v5920_v21 = vrot.slane %v5892_v46, 2 }
0x1ede   :  { %v5873_v25 = vpop.permute.xlu0 %5872 }
0x1edf   :  { %v5915_v31 = vsel %vm653_vm4, %v5914_v30, %v5913_v29  ;;  %v5891_v6 = vmul.f32 %v5873_v25, %v10548_v58  ;;  %v6026_v30 = vld [vmem:[#allocation2 + $0x7d] sm:$0x1] }
0x1ee0   :  { %v5917_v12 = vsel %vm656_vm5, %v5916_v52, %v5915_v31 }
0x1ee1   :  { %v5918_v45 = vrot.slane %v5891_v6, 3  ;;  %v6024_v6 = vld [vmem:[#allocation2 + $0x5d] sm:$0x1] }
0x1ee2   :  { %v5877_v22 = vpop.permute.xlu0 %5876 }
0x1ee3   :  { %v5919_v16 = vsel %vm659_vm6, %v5918_v45, %v5917_v12  ;;  %v5893_v17 = vmul.f32 %v5877_v22, %v10556_v3 }
0x1ee4   :  { %v5921_v61 = vsel %vm662_vm7, %v5920_v21, %v5919_v16 }
0x1ee5   :  { %v5922_v14 = vrot.slane %v5893_v17, 1 }
0x1ee7   :  { %v5900_v63 = vpop.permute.xlu1 %5899  ;;  %v5923_v34 = vsel %vm665_vm8, %v5922_v14, %v5921_v61 }
0x1ee8   :  { %vm5901_vm10 = vcmp.eq.s32.totalorder %v5900_v63, 1  ;;  %5924 = vrot.lane.b32.xlu0 %v5923_v34, %s8679_s1 }
0x1ee9   :  { %v10611_v58 = vsel %vm5901_vm10, %v5949_v4, %v10467_v53 }
0x1eea   :  { %v6206_v60 = vrot.slane %v10611_v58, 2  ;;  %v6205_v51 = vrot.slane %v10611_v58, 1  ;;  %v6207_v3 = vrot.slane %v10611_v58, 3  ;;  %v6209_v43 = vrot.slane %v10611_v58, 5 }
0x1eeb   :  { %v6208_v53 = vrot.slane %v10611_v58, 4  ;;  %v6211_v8 = vrot.slane %v10611_v58, 7  ;;  %v6210_v41 = vrot.slane %v10611_v58, 6 }
0x1eec   :  { %6216 = vrot.lane.b32.xlu0 %v6206_v60, %s8679_s1  ;;  %6214 = vrot.lane.b32.xlu1 %v6205_v51, %s8679_s1 }
0x1ef0   :  { %6218 = vrot.lane.b32.xlu0 %v6207_v3, %s8679_s1  ;;  %6212 = vrot.lane.b32.xlu1 %v10611_v58, %s8679_s1 }
0x1ef4   :  { %6222 = vrot.lane.b32.xlu0 %v6209_v43, %s8679_s1  ;;  %6220 = vrot.lane.b32.xlu1 %v6208_v53, %s8679_s1 }
0x1ef8   :  { %6226 = vrot.lane.b32.xlu0 %v6211_v8, %s8679_s1  ;;  %6224 = vrot.lane.b32.xlu1 %v6210_v41, %s8679_s1 }
0x1f5a   :  { %v5925_v54 = vpop.permute.xlu0 %5924 }
0x1f5b   :  { %v10631_v32 = vsel %vm5901_vm10, %v5925_v54, %v10487_v42  ;;  %v5952_v1 = vsel %vm5901_vm10, %v5925_v54, 0.0 }
0x1f5c   :  { %v5954_v62 = vcombine.high %v5952_v1, %v5952_v1  ;;  %v5961_v9 = vrot.slane %v5952_v1, %v8966_v28  ;;  %7704 = vmatmul.mubr.msk.f32.vlgmr.msra.gmra.mxu1 %vm70_vm0, %v10631_v32 }
0x1f5d   :  { %7718 = vmatpush3.msra.mxu1 %v10493_v5  ;;  %7725 = vmatprep.mubr.msk.f32.mxu1 %vm8678_vm1, %v8677_v0  ;;  %vm6334_vm1 = vcmp.gt.s32.totalorder %v10585_v56, 13 }
0x1f5e   :  { %v5968_v7 = vrot.slane %v5954_v62, %v8966_v28  ;;  %v5969_v39 = vcombine.high %v5961_v9, %v5961_v9  ;;  %v5977_v4 = vrot.slane %v5961_v9, %v8966_v28  ;;  %7719 = vmatprep.subr.mxu1 %v8677_v0  ;;  %v6215_v53 = vpop.permute.xlu1 %6214  ;;  %v6217_v1 = vpop.permute.xlu0 %6216 }
0x1f5f   :  { %7720 = vmatpush3.msra.mxu1 %v10501_v11 }
0x1f60   :  { %v5970_v42 = vcombine.high %v5968_v7, %v5968_v7  ;;  %v5984_v48 = vrot.slane %v5968_v7, %v8966_v28  ;;  %v5991_v40 = vrot.slane %v5969_v39, %v8966_v28  ;;  %v5999_v10 = vcombine.high %v5977_v4, %v5977_v4  ;;  %6011 = vst.msk [vmem:[#allocation11 + $0xc] sm:$0x1] %vm754_vm11, %v5977_v4 }
0x1f61   :  { %7721 = vmatprep.subr.mxu1 %v8677_v0 }
0x1f62   :  { %7722 = vmatpush3.msra.mxu1 %v10508_v19  ;;  %v5998_v5 = vrot.slane %v5970_v42, %v8966_v28  ;;  %v6000_v49 = vcombine.high %v5984_v48, %v5984_v48  ;;  %v6001_v33 = vcombine.high %v5991_v40, %v5991_v40  ;;  %6012 = vst.msk [vmem:[#allocation11 + $0x1c] sm:$0x1] %vm754_vm11, %v5991_v40  ;;  %6013 = vst.msk [vmem:[#allocation11 + $0x2c] sm:$0x1] %vm754_vm11, %v5999_v10 }
0x1f63   :  { %6015 = vst.msk [vmem:[#allocation11 + $0x4c] sm:$0x1] %vm754_vm11, %v5984_v48  ;;  %7723 = vmatprep.subr.mxu1 %v8677_v0 }
0x1f64   :  { %7724 = vmatpush3.msra.mxu1 %v10516_v57  ;;  %v6002_v11 = vcombine.high %v5998_v5, %v5998_v5  ;;  %6014 = vst.msk [vmem:[#allocation11 + $0x3c] sm:$0x1] %vm754_vm11, %v6001_v33  ;;  %6016 = vst.msk [vmem:[#allocation11 + $0x5c] sm:$0x1] %vm754_vm11, %v5998_v5  ;;  %v6213_v5 = vpop.permute.xlu1 %6212 }
0x1f65   :  { %6017 = vst.msk [vmem:[#allocation11 + $0x6c] sm:$0x1] %vm754_vm11, %v6000_v49 }
0x1f66   :  { %6018 = vst.msk [vmem:[#allocation11 + $0x7c] sm:$0x1] %vm754_vm11, %v6002_v11 }
0x201c   :  { %v6096_v19 = vpop.f32.mrf.mxu1 }
0x201d   :  { %v6101_v13 = vrot.slane %v6096_v19, 1  ;;  %v6102_v50 = vrot.slane %v6096_v19, 2  ;;  %v6103_v37 = vrot.slane %v6096_v19, 3  ;;  %v6104_v36 = vrot.slane %v6096_v19, 4 }
0x201e   :  { %v6106_v0 = vrot.slane %v6096_v19, 6  ;;  %v6116_v55 = vadd.f32 %v6096_v19, %v6019_v47  ;;  %v7705_v57 = vpop.f32.mrf.mxu1  ;;  %v6107_v38 = vrot.slane %v6096_v19, 7  ;;  %v6105_v59 = vrot.slane %v6096_v19, 5  ;;  %v6219_v47 = vpop.permute.xlu0 %6218 }
0x201f   :  { %v6117_v26 = vadd.f32 %v6101_v13, %v6020_v24  ;;  %v6118_v15 = vadd.f32 %v6102_v50, %v6021_v2  ;;  %v6119_v44 = vadd.f32 %v6103_v37, %v6022_v20  ;;  %v6120_v27 = vadd.f32 %v6104_v36, %v6023_v23 }
0x2020   :  { %8369 = vtanh.f32 %v6116_v55  ;;  %v6122_v29 = vadd.f32 %v6106_v0, %v6025_v18  ;;  %v6123_v25 = vadd.f32 %v6107_v38, %v6026_v30  ;;  %v6124_v31 = vmul.f32 0.5, %v6116_v55  ;;  %v6221_v55 = vpop.permute.xlu1 %6220 }
0x2021   :  { %8371 = vtanh.f32 %v6118_v15  ;;  %v6127_v52 = vmul.f32 0.5, %v6119_v44  ;;  %v6121_v46 = vadd.f32 %v6105_v59, %v6024_v6  ;;  %v6125_v45 = vmul.f32 0.5, %v6117_v26 }
0x2022   :  { %8373 = vtanh.f32 %v6117_v26  ;;  %v6128_v12 = vmul.f32 0.5, %v6120_v27  ;;  %v6126_v22 = vmul.f32 0.5, %v6118_v15  ;;  %v6130_v17 = vmul.f32 0.5, %v6122_v29  ;;  %v6223_v26 = vpop.permute.xlu0 %6222 }
0x2023   :  { %8375 = vtanh.f32 %v6119_v44  ;;  %v6129_v16 = vmul.f32 0.5, %v6121_v46  ;;  %v6131_v14 = vmul.f32 0.5, %v6123_v25 }
0x2024   :  { %8377 = vtanh.f32 %v6120_v27  ;;  %v6225_v27 = vpop.permute.xlu1 %6224 }
0x2025   :  { %8379 = vtanh.f32 %v6122_v29 }
0x2026   :  { %8381 = vtanh.f32 %v6123_v25  ;;  %v6227_v59 = vpop.permute.xlu0 %6226 }
0x2027   :  { %8383 = vtanh.f32 %v6124_v31 }
0x2028   :  { %8385 = vtanh.f32 %v6127_v52 }
0x2029   :  { %8387 = vtanh.f32 %v6125_v45 }
0x202a   :  { %8389 = vtanh.f32 %v6128_v12 }
0x202b   :  { %8391 = vtanh.f32 %v6126_v22 }
0x202c   :  { %8393 = vtanh.f32 %v6121_v46 }
0x202d   :  { %v8370_v21 = vpop.eup %8369  ;;  %8395 = vtanh.f32 %v6129_v16 }
0x202e   :  { %6172 = vrot.lane.b32.xlu1 %v8370_v21, %s8680_s4  ;;  %v8372_v61 = vpop.eup %8371  ;;  %8397 = vtanh.f32 %v6130_v17 }
0x202f   :  { %v8374_v63 = vpop.eup %8373  ;;  %6176 = vrot.lane.b32.xlu0 %v8372_v61, %s8680_s4  ;;  %8399 = vtanh.f32 %v6131_v14 }
0x2030   :  { %v8376_v34 = vpop.eup %8375 }
0x2031   :  { %v8378_v60 = vpop.eup %8377 }
0x2032   :  { %6174 = vrot.lane.b32.xlu1 %v8374_v63, %s8680_s4  ;;  %v8380_v51 = vpop.eup %8379 }
0x2033   :  { %v8382_v3 = vpop.eup %8381  ;;  %6178 = vrot.lane.b32.xlu0 %v8376_v34, %s8680_s4 }
0x2034   :  { %v8384_v43 = vpop.eup %8383 }
0x2035   :  { %v8386_v8 = vpop.eup %8385  ;;  %v6140_v41 = vmul.f32 0.5, %v8384_v43 }
0x2036   :  { %6184 = vrot.lane.b32.xlu1 %v8380_v51, %s8680_s4  ;;  %v8388_v54 = vpop.eup %8387  ;;  %v6143_v62 = vmul.f32 0.5, %v8386_v8 }
0x2037   :  { %v8390_v9 = vpop.eup %8389  ;;  %6180 = vrot.lane.b32.xlu0 %v8378_v60, %s8680_s4  ;;  %v10665_v7 = vadd.f32 0.5, %v6140_v41  ;;  %v6141_v39 = vmul.f32 0.5, %v8388_v54 }
0x2038   :  { %v8392_v4 = vpop.eup %8391  ;;  %v10668_v48 = vadd.f32 0.5, %v6143_v62  ;;  %v6144_v40 = vmul.f32 0.5, %v8390_v9 }
0x2039   :  { %v8394_v42 = vpop.eup %8393  ;;  %v6236_v49 = vmul.f32 %v6213_v5, %v10665_v7  ;;  %v10672_v33 = vadd.f32 0.5, %v6141_v39  ;;  %v6142_v11 = vmul.f32 0.5, %v8392_v4 }
0x203a   :  { %6186 = vrot.lane.b32.xlu1 %v8382_v3, %s8680_s4  ;;  %v8396_v10 = vpop.eup %8395  ;;  %v6239_v13 = vmul.f32 %v6219_v47, %v10668_v48  ;;  %v10676_v50 = vadd.f32 0.5, %v6144_v40 }
0x203b   :  { %6182 = vrot.lane.b32.xlu0 %v8394_v42, %s8680_s4  ;;  %v8398_v19 = vpop.eup %8397  ;;  %v6145_v37 = vmul.f32 0.5, %v8396_v10  ;;  %v6237_v24 = vmul.f32 %v6215_v53, %v10672_v33  ;;  %v10680_v2 = vadd.f32 0.5, %v6142_v11 }
0x203c   :  { %v8400_v36 = vpop.eup %8399  ;;  %v6146_v0 = vmul.f32 0.5, %v8398_v19  ;;  %v6240_v57 = vmul.f32 %v6221_v55, %v10676_v50 }
0x203d   :  { %v10684_v20 = vadd.f32 0.5, %v6145_v37  ;;  %v6147_v38 = vmul.f32 0.5, %v8400_v36  ;;  %v6238_v15 = vmul.f32 %v6217_v1, %v10680_v2 }
0x203e   :  { %6252 = vrot.lane.b32.xlu1 %v6236_v49, %s8681_s18  ;;  %v10688_v23 = vadd.f32 0.5, %v6146_v0 }
0x203f   :  { %6258 = vrot.lane.b32.xlu0 %v6239_v13, %s8681_s18  ;;  %v6241_v44 = vmul.f32 %v6223_v26, %v10684_v20  ;;  %v10692_v18 = vadd.f32 0.5, %v6147_v38 }
0x2040   :  { %v6242_v30 = vmul.f32 %v6225_v27, %v10688_v23 }
0x2041   :  { %v6243_v29 = vmul.f32 %v6227_v59, %v10692_v18 }
0x2042   :  { %6254 = vrot.lane.b32.xlu1 %v6237_v24, %s8681_s18 }
0x2043   :  { %6260 = vrot.lane.b32.xlu0 %v6240_v57, %s8681_s18 }
0x2046   :  { %6256 = vrot.lane.b32.xlu1 %v6238_v15, %s8681_s18 }
0x2047   :  { %6262 = vrot.lane.b32.xlu0 %v6241_v44, %s8681_s18 }
0x204a   :  { %6264 = vrot.lane.b32.xlu1 %v6242_v30, %s8681_s18 }
0x204b   :  { %6266 = vrot.lane.b32.xlu0 %v6243_v29, %s8681_s18 }
0x20a0   :  { %v6173_v25 = vpop.permute.xlu1 %6172 }
0x20a1   :  { %v6177_v31 = vpop.permute.xlu0 %6176  ;;  %v6196_v16 = vmul.f32 %v6173_v25, %v10665_v7 }
0x20a2   :  { %v6198_v43 = vmul.f32 %v6177_v31, %v10680_v2  ;;  %v6335_v31 = vsel %vm6334_vm1, 1, %v8682_v35 }
0x20a4   :  { %v6175_v6 = vpop.permute.xlu1 %6174 }
0x20a5   :  { %v6179_v52 = vpop.permute.xlu0 %6178  ;;  %v6197_v61 = vmul.f32 %v6175_v6, %v10672_v33 }
0x20a6   :  { %v6199_v51 = vmul.f32 %v6179_v52, %v10668_v48 }
0x20a8   :  { %v6185_v46 = vpop.permute.xlu1 %6184 }
0x20a9   :  { %v6181_v45 = vpop.permute.xlu0 %6180  ;;  %v6202_v4 = vmul.f32 %v6185_v46, %v10688_v23 }
0x20aa   :  { %v6200_v34 = vmul.f32 %v6181_v45, %v10676_v50 }
0x20ac   :  { %v6187_v12 = vpop.permute.xlu1 %6186 }
0x20ad   :  { %v6183_v22 = vpop.permute.xlu0 %6182  ;;  %v6203_v10 = vmul.f32 %v6187_v12, %v10692_v18 }
0x20ae   :  { %v6201_v1 = vmul.f32 %v6183_v22, %v10684_v20 }
0x20b0   :  { %v6253_v17 = vpop.permute.xlu1 %6252 }
0x20b1   :  { %v6276_v21 = vadd.f32 %v6253_v17, %v6196_v16  ;;  %v6259_v14 = vpop.permute.xlu0 %6258 }
0x20b2   :  { %v6279_v41 = vadd.f32 %v6259_v14, %v6199_v51 }
0x20b3   :  { %8401 = vtanh.f32 %v6276_v21 }
0x20b4   :  { %v6255_v63 = vpop.permute.xlu1 %6254  ;;  %v6378_v5 = vrot.slane %v6279_v41, 5 }
0x20b5   :  { %v6277_v60 = vadd.f32 %v6255_v63, %v6197_v61  ;;  %v6261_v3 = vpop.permute.xlu0 %6260 }
0x20b6   :  { %v6280_v8 = vadd.f32 %v6261_v3, %v6200_v34 }
0x20b7   :  { %8403 = vtanh.f32 %v6277_v60  ;;  %v6374_v53 = vrot.slane %v6277_v60, 7 }
0x20b8   :  { %v6257_v54 = vpop.permute.xlu1 %6256  ;;  %8405 = vtanh.f32 %v6280_v8  ;;  %v6380_v11 = vrot.slane %v6280_v8, 4 }
0x20b9   :  { %v6375_v62 = vsel %vm647_vm2, %v6374_v53, %v6276_v21  ;;  %v6278_v9 = vadd.f32 %v6257_v54, %v6198_v43  ;;  %v6263_v39 = vpop.permute.xlu0 %6262 }
0x20ba   :  { %v6281_v40 = vadd.f32 %v6263_v39, %v6201_v1 }
0x20bb   :  { %8407 = vtanh.f32 %v6278_v9  ;;  %v6376_v42 = vrot.slane %v6278_v9, 6 }
0x20bc   :  { %v6265_v49 = vpop.permute.xlu1 %6264  ;;  %v6382_v47 = vrot.slane %v6281_v40, 3  ;;  %8409 = vtanh.f32 %v6279_v41 }
0x20bd   :  { %v6377_v19 = vsel %vm650_vm3, %v6376_v42, %v6375_v62  ;;  %v6282_v13 = vadd.f32 %v6265_v49, %v6202_v4  ;;  %v6267_v36 = vpop.permute.xlu0 %6266 }
0x20be   :  { %v6379_v37 = vsel %vm653_vm4, %v6378_v5, %v6377_v19  ;;  %v6283_v55 = vadd.f32 %v6267_v36, %v6203_v10 }
0x20bf   :  { %v6381_v24 = vsel %vm656_vm5, %v6380_v11, %v6379_v37  ;;  %8411 = vtanh.f32 %v6282_v13  ;;  %v6384_v0 = vrot.slane %v6282_v13, 2 }
0x20c0   :  { %v8402_v57 = vpop.eup %8401  ;;  %v6383_v38 = vsel %vm659_vm6, %v6382_v47, %v6381_v24  ;;  %v6386_v15 = vrot.slane %v6283_v55, 1  ;;  %8413 = vtanh.f32 %v6281_v40 }
0x20c1   :  { %v6385_v26 = vsel %vm662_vm7, %v6384_v0, %v6383_v38  ;;  %6300 = vrot.lane.b32.xlu1 %v8402_v57, %s8681_s18  ;;  %8415 = vtanh.f32 %v6283_v55 }
0x20c2   :  { %v6387_v44 = vsel %vm665_vm8, %v6386_v15, %v6385_v26 }
0x20c4   :  { %v8404_v27 = vpop.eup %8403 }
0x20c5   :  { %6302 = vrot.lane.b32.xlu1 %v8404_v27, %s8681_s18  ;;  %v8406_v30 = vpop.eup %8405 }
0x20c8   :  { %v8408_v59 = vpop.eup %8407 }
0x20c9   :  { %6304 = vrot.lane.b32.xlu0 %v8408_v59, %s8681_s18  ;;  %6308 = vrot.lane.b32.xlu1 %v8406_v30, %s8681_s18  ;;  %v8410_v29 = vpop.eup %8409  ;;  %v6457_v59 = vld [vmem:[#allocation2 + $0xe] sm:$0x1] }
0x20cc   :  { %v8412_v25 = vpop.eup %8411 }
0x20cd   :  { %6306 = vrot.lane.b32.xlu0 %v8410_v29, %s8681_s18  ;;  %6312 = vrot.lane.b32.xlu1 %v8412_v25, %s8681_s18  ;;  %v8414_v6 = vpop.eup %8413 }
0x20ce   :  { %v8416_v52 = vpop.eup %8415 }
0x20d1   :  { %6310 = vrot.lane.b32.xlu0 %v8414_v6, %s8681_s18  ;;  %6337 = vperm.xlu1 %7744, %v6335_v31  }
0x20d5   :  { %6314 = vrot.lane.b32.xlu0 %v8416_v52, %s8681_s18  ;;  %v6458_v52 = vld [vmem:[#allocation2 + $0x1e] sm:$0x1] }
0x2133   :  { %v6301_v46 = vpop.permute.xlu1 %6300 }
0x2134   :  { %v6324_v61 = vmul.f32 %v6301_v46, %v10665_v7  ;;  %v6459_v46 = vld [vmem:[#allocation2 + $0x2e] sm:$0x1] }
0x2137   :  { %v6303_v45 = vpop.permute.xlu1 %6302 }
0x2138   :  { %v6325_v12 = vmul.f32 %v6303_v45, %v10672_v33 }
0x213a   :  { %v6348_v17 = vrot.slane %v6325_v12, 7 }
0x213b   :  { %v6305_v22 = vpop.permute.xlu0 %6304  ;;  %v6309_v16 = vpop.permute.xlu1 %6308 }
0x213c   :  { %v6326_v56 = vmul.f32 %v6305_v22, %v10680_v2  ;;  %v6328_v34 = vmul.f32 %v6309_v16, %v10676_v50  ;;  %v6349_v60 = vsel %vm647_vm2, %v6348_v17, %v6324_v61 }
0x213e   :  { %v6350_v21 = vrot.slane %v6326_v56, 6  ;;  %v6354_v8 = vrot.slane %v6328_v34, 4  ;;  %v6460_v56 = vld [vmem:[#allocation2 + $0x3e] sm:$0x1] }
0x213f   :  { %v6307_v14 = vpop.permute.xlu0 %6306  ;;  %v6313_v3 = vpop.permute.xlu1 %6312 }
0x2140   :  { %v6327_v63 = vmul.f32 %v6307_v14, %v10668_v48  ;;  %v6351_v43 = vsel %vm650_vm3, %v6350_v21, %v6349_v60  ;;  %v6330_v41 = vmul.f32 %v6313_v3, %v10688_v23  ;;  %v6461_v14 = vld [vmem:[#allocation2 + $0x4e] sm:$0x1]  ;;  %v6464_v60 = vld [vmem:[#allocation2 + $0x7e] sm:$0x1] }
0x2142   :  { %v6352_v51 = vrot.slane %v6327_v63, 5  ;;  %v6358_v62 = vrot.slane %v6330_v41, 2  ;;  %v6463_v63 = vld [vmem:[#allocation2 + $0x6e] sm:$0x1] }
0x2143   :  { %v6311_v33 = vpop.permute.xlu0 %6310 }
0x2144   :  { %v6353_v53 = vsel %vm653_vm4, %v6352_v51, %v6351_v43  ;;  %v6329_v2 = vmul.f32 %v6311_v33, %v10684_v20 }
0x2145   :  { %v6355_v7 = vsel %vm656_vm5, %v6354_v8, %v6353_v53  ;;  %v6462_v53 = vld [vmem:[#allocation2 + $0x5e] sm:$0x1] }
0x2146   :  { %v6356_v54 = vrot.slane %v6329_v2, 3 }
0x2147   :  { %v6315_v48 = vpop.permute.xlu0 %6314 }
0x2148   :  { %v6357_v50 = vsel %vm659_vm6, %v6356_v54, %v6355_v7  ;;  %v6331_v1 = vmul.f32 %v6315_v48, %v10692_v18 }
0x2149   :  { %v6359_v39 = vsel %vm662_vm7, %v6358_v62, %v6357_v50 }
0x214a   :  { %v6360_v9 = vrot.slane %v6331_v1, 1 }
0x214c   :  { %v6338_v4 = vpop.permute.xlu1 %6337  ;;  %v6361_v42 = vsel %vm665_vm8, %v6360_v9, %v6359_v39 }
0x214d   :  { %vm6339_vm12 = vcmp.eq.s32.totalorder %v6338_v4, 1  ;;  %6362 = vrot.lane.b32.xlu0 %v6361_v42, %s8679_s1 }
0x214e   :  { %v10742_v20 = vsel %vm6339_vm12, %v6387_v44, %v10611_v58 }
0x214f   :  { %v6644_v23 = vrot.slane %v10742_v20, 2  ;;  %v6643_v40 = vrot.slane %v10742_v20, 1  ;;  %v6645_v18 = vrot.slane %v10742_v20, 3  ;;  %v6647_v10 = vrot.slane %v10742_v20, 5 }
0x2150   :  { %v6646_v58 = vrot.slane %v10742_v20, 4  ;;  %v6649_v5 = vrot.slane %v10742_v20, 7  ;;  %v6648_v49 = vrot.slane %v10742_v20, 6 }
0x2151   :  { %6654 = vrot.lane.b32.xlu0 %v6644_v23, %s8679_s1  ;;  %6652 = vrot.lane.b32.xlu1 %v6643_v40, %s8679_s1 }
0x2155   :  { %6656 = vrot.lane.b32.xlu0 %v6645_v18, %s8679_s1  ;;  %6650 = vrot.lane.b32.xlu1 %v10742_v20, %s8679_s1 }
0x2159   :  { %6660 = vrot.lane.b32.xlu0 %v6647_v10, %s8679_s1  ;;  %6658 = vrot.lane.b32.xlu1 %v6646_v58, %s8679_s1 }
0x215d   :  { %6664 = vrot.lane.b32.xlu0 %v6649_v5, %s8679_s1  ;;  %6662 = vrot.lane.b32.xlu1 %v6648_v49, %s8679_s1 }
0x21bf   :  { %v6363_v11 = vpop.permute.xlu0 %6362 }
0x21c0   :  { %v10762_v19 = vsel %vm6339_vm12, %v6363_v11, %v10631_v32  ;;  %v6390_v47 = vsel %vm6339_vm12, %v6363_v11, 0.0 }
0x21c1   :  { %v6392_v13 = vcombine.high %v6390_v47, %v6390_v47  ;;  %v6399_v37 = vrot.slane %v6390_v47, %v8966_v28  ;;  %7715 = vmatmul.mubr.msk.f32.vlgmr.msra.gmra.mxu0 %vm70_vm0, %v10762_v19 }
0x21c3   :  { %v6406_v36 = vrot.slane %v6392_v13, %v8966_v28  ;;  %v6407_v24 = vcombine.high %v6399_v37, %v6399_v37  ;;  %v6415_v0 = vrot.slane %v6399_v37, %v8966_v28  ;;  %v6653_v10 = vpop.permute.xlu1 %6652  ;;  %v6655_v11 = vpop.permute.xlu0 %6654 }
0x21c5   :  { %v6408_v55 = vcombine.high %v6406_v36, %v6406_v36  ;;  %v6422_v57 = vrot.slane %v6406_v36, %v8966_v28  ;;  %v6429_v38 = vrot.slane %v6407_v24, %v8966_v28  ;;  %v6437_v32 = vcombine.high %v6415_v0, %v6415_v0  ;;  %6449 = vst.msk [vmem:[#allocation11 + $0xd] sm:$0x1] %vm754_vm11, %v6415_v0 }
0x21c7   :  { %v6436_v26 = vrot.slane %v6408_v55, %v8966_v28  ;;  %v6438_v15 = vcombine.high %v6422_v57, %v6422_v57  ;;  %v6439_v44 = vcombine.high %v6429_v38, %v6429_v38  ;;  %6450 = vst.msk [vmem:[#allocation11 + $0x1d] sm:$0x1] %vm754_vm11, %v6429_v38  ;;  %6451 = vst.msk [vmem:[#allocation11 + $0x2d] sm:$0x1] %vm754_vm11, %v6437_v32  ;;  %v6651_v32 = vpop.permute.xlu1 %6650 }
0x21c8   :  { %6453 = vst.msk [vmem:[#allocation11 + $0x4d] sm:$0x1] %vm754_vm11, %v6422_v57 }
0x21c9   :  { %v6440_v27 = vcombine.high %v6436_v26, %v6436_v26  ;;  %6452 = vst.msk [vmem:[#allocation11 + $0x3d] sm:$0x1] %vm754_vm11, %v6439_v44  ;;  %6454 = vst.msk [vmem:[#allocation11 + $0x5d] sm:$0x1] %vm754_vm11, %v6436_v26 }
0x21ca   :  { %6455 = vst.msk [vmem:[#allocation11 + $0x6d] sm:$0x1] %vm754_vm11, %v6438_v15 }
0x21cb   :  { %6456 = vst.msk [vmem:[#allocation11 + $0x7d] sm:$0x1] %vm754_vm11, %v6440_v27 }
0x2281   :  { %v6534_v30 = vpop.f32.mrf.mxu0 }
0x2282   :  { %v6539_v29 = vrot.slane %v6534_v30, 1  ;;  %v6540_v25 = vrot.slane %v6534_v30, 2  ;;  %v6541_v31 = vrot.slane %v6534_v30, 3  ;;  %v6542_v6 = vrot.slane %v6534_v30, 4 }
0x2283   :  { %v6544_v45 = vrot.slane %v6534_v30, 6  ;;  %v6554_v12 = vadd.f32 %v6534_v30, %v6457_v59  ;;  %v7716_v22 = vpop.f32.mrf.mxu0  ;;  %v6545_v16 = vrot.slane %v6534_v30, 7  ;;  %v6543_v51 = vrot.slane %v6534_v30, 5  ;;  %v6657_v30 = vpop.permute.xlu0 %6656 }
0x2284   :  { %v6555_v17 = vadd.f32 %v6539_v29, %v6458_v52  ;;  %v6556_v21 = vadd.f32 %v6540_v25, %v6459_v46  ;;  %v6557_v61 = vadd.f32 %v6541_v31, %v6460_v56  ;;  %v6558_v34 = vadd.f32 %v6542_v6, %v6461_v14 }
0x2285   :  { %8417 = vtanh.f32 %v6554_v12  ;;  %v6560_v3 = vadd.f32 %v6544_v45, %v6463_v63  ;;  %v6561_v43 = vadd.f32 %v6545_v16, %v6464_v60  ;;  %v6562_v33 = vmul.f32 0.5, %v6554_v12  ;;  %v6659_v45 = vpop.permute.xlu1 %6658 }
0x2286   :  { %8419 = vtanh.f32 %v6556_v21  ;;  %v6565_v2 = vmul.f32 0.5, %v6557_v61  ;;  %v6559_v8 = vadd.f32 %v6543_v51, %v6462_v53  ;;  %v6563_v41 = vmul.f32 0.5, %v6555_v17 }
0x2287   :  { %8421 = vtanh.f32 %v6555_v17  ;;  %v6566_v54 = vmul.f32 0.5, %v6558_v34  ;;  %v6564_v7 = vmul.f32 0.5, %v6556_v21  ;;  %v6568_v50 = vmul.f32 0.5, %v6560_v3  ;;  %v6661_v16 = vpop.permute.xlu0 %6660 }
0x2288   :  { %8423 = vtanh.f32 %v6557_v61  ;;  %v6567_v48 = vmul.f32 0.5, %v6559_v8  ;;  %v6569_v62 = vmul.f32 0.5, %v6561_v43 }
0x2289   :  { %8425 = vtanh.f32 %v6558_v34  ;;  %v6663_v63 = vpop.permute.xlu1 %6662 }
0x228a   :  { %8427 = vtanh.f32 %v6560_v3 }
0x228b   :  { %8429 = vtanh.f32 %v6561_v43  ;;  %v6665_v60 = vpop.permute.xlu0 %6664 }
0x228c   :  { %8431 = vtanh.f32 %v6562_v33 }
0x228d   :  { %8433 = vtanh.f32 %v6565_v2 }
0x228e   :  { %8435 = vtanh.f32 %v6563_v41 }
0x228f   :  { %8437 = vtanh.f32 %v6566_v54 }
0x2290   :  { %8439 = vtanh.f32 %v6564_v7 }
0x2291   :  { %8441 = vtanh.f32 %v6559_v8 }
0x2292   :  { %v8418_v1 = vpop.eup %8417  ;;  %8443 = vtanh.f32 %v6567_v48 }
0x2293   :  { %6610 = vrot.lane.b32.xlu1 %v8418_v1, %s8680_s4  ;;  %v8420_v9 = vpop.eup %8419  ;;  %8445 = vtanh.f32 %v6568_v50 }
0x2294   :  { %v8422_v39 = vpop.eup %8421  ;;  %6614 = vrot.lane.b32.xlu0 %v8420_v9, %s8680_s4  ;;  %8447 = vtanh.f32 %v6569_v62 }
0x2295   :  { %v8424_v4 = vpop.eup %8423 }
0x2296   :  { %v8426_v42 = vpop.eup %8425 }
0x2297   :  { %6612 = vrot.lane.b32.xlu1 %v8422_v39, %s8680_s4  ;;  %v8428_v23 = vpop.eup %8427 }
0x2298   :  { %v8430_v40 = vpop.eup %8429  ;;  %6616 = vrot.lane.b32.xlu0 %v8424_v4, %s8680_s4 }
0x2299   :  { %v8432_v18 = vpop.eup %8431 }
0x229a   :  { %v8434_v58 = vpop.eup %8433  ;;  %v6578_v5 = vmul.f32 0.5, %v8432_v18 }
0x229b   :  { %6622 = vrot.lane.b32.xlu1 %v8428_v23, %s8680_s4  ;;  %v8436_v49 = vpop.eup %8435  ;;  %v6581_v47 = vmul.f32 0.5, %v8434_v58 }
0x229c   :  { %v8438_v13 = vpop.eup %8437  ;;  %6618 = vrot.lane.b32.xlu0 %v8426_v42, %s8680_s4  ;;  %v10787_v37 = vadd.f32 0.5, %v6578_v5  ;;  %v6579_v36 = vmul.f32 0.5, %v8436_v49 }
0x229d   :  { %v8440_v24 = vpop.eup %8439  ;;  %v10790_v55 = vadd.f32 0.5, %v6581_v47  ;;  %v6582_v57 = vmul.f32 0.5, %v8438_v13 }
0x229e   :  { %v8442_v0 = vpop.eup %8441  ;;  %v6674_v26 = vmul.f32 %v6651_v32, %v10787_v37  ;;  %v10794_v15 = vadd.f32 0.5, %v6579_v36  ;;  %v6580_v44 = vmul.f32 0.5, %v8440_v24 }
0x229f   :  { %6624 = vrot.lane.b32.xlu1 %v8430_v40, %s8680_s4  ;;  %v8444_v38 = vpop.eup %8443  ;;  %v6677_v59 = vmul.f32 %v6657_v30, %v10790_v55  ;;  %v10798_v29 = vadd.f32 0.5, %v6582_v57 }
0x22a0   :  { %6620 = vrot.lane.b32.xlu0 %v8442_v0, %s8680_s4  ;;  %v8446_v27 = vpop.eup %8445  ;;  %v6583_v25 = vmul.f32 0.5, %v8444_v38  ;;  %v6675_v6 = vmul.f32 %v6653_v10, %v10794_v15  ;;  %v10802_v52 = vadd.f32 0.5, %v6580_v44 }
0x22a1   :  { %v8448_v31 = vpop.eup %8447  ;;  %v6584_v46 = vmul.f32 0.5, %v8446_v27  ;;  %v6678_v12 = vmul.f32 %v6659_v45, %v10798_v29 }
0x22a2   :  { %v10806_v22 = vadd.f32 0.5, %v6583_v25  ;;  %v6585_v56 = vmul.f32 0.5, %v8448_v31  ;;  %v6676_v17 = vmul.f32 %v6655_v11, %v10802_v52 }
0x22a3   :  { %6690 = vrot.lane.b32.xlu1 %v6674_v26, %s8681_s18  ;;  %v10810_v21 = vadd.f32 0.5, %v6584_v46 }
0x22a4   :  { %6696 = vrot.lane.b32.xlu0 %v6677_v59, %s8681_s18  ;;  %v6679_v14 = vmul.f32 %v6661_v16, %v10806_v22  ;;  %v10814_v61 = vadd.f32 0.5, %v6585_v56 }
0x22a5   :  { %v6680_v34 = vmul.f32 %v6663_v63, %v10810_v21 }
0x22a6   :  { %v6681_v51 = vmul.f32 %v6665_v60, %v10814_v61 }
0x22a7   :  { %6692 = vrot.lane.b32.xlu1 %v6675_v6, %s8681_s18 }
0x22a8   :  { %6698 = vrot.lane.b32.xlu0 %v6678_v12, %s8681_s18 }
0x22ab   :  { %6694 = vrot.lane.b32.xlu1 %v6676_v17, %s8681_s18 }
0x22ac   :  { %6700 = vrot.lane.b32.xlu0 %v6679_v14, %s8681_s18 }
0x22af   :  { %6702 = vrot.lane.b32.xlu1 %v6680_v34, %s8681_s18 }
0x22b0   :  { %6704 = vrot.lane.b32.xlu0 %v6681_v51, %s8681_s18  ;;  %v10843_v51 = vld [vmem:[%s11021_s0] sm:$0xff]  ;;  %s8684_s0 = smov [#allocation12]  }
0x22b1   :  { %vm6772_vm13 = vcmp.gt.s32.totalorder %v10843_v51, 14  ;;  %vm7210_vm15 = vcmp.gt.s32.totalorder %v10843_v51, 15  ;;  %s7360_s14 = sshll.u32 %s8684_s0, 4  ;;  %s7361_s14 = int_to_ptr.vmem [resolvable:$true] %s7360_s14 }
0x22b2   :  { %s8604_s3 = scalar_lea.vmem %s7361_s14, 128  ;;  %p8609_p2 = scmp.lt.s32.totalorder %s7361_s14, %s7361_s14 }
0x22b3   :  { %p8605_p1 = scmp.ne.s32.totalorder %s7361_s14, %s8604_s3  ;;  %p8610_p3 = scmp.lt.s32.totalorder %s8604_s3, %s8604_s3 }
0x22b5   :  { %p8611_p4 = por %p8610_p3, %p8609_p2 }
0x22b7   :  { %p8612_p5 = pnand %p8611_p4, %p8605_p1 }
0x2305   :  { %v6611_v3 = vpop.permute.xlu1 %6610 }
0x2306   :  { %v6615_v43 = vpop.permute.xlu0 %6614  ;;  %v6634_v7 = vmul.f32 %v6611_v3, %v10787_v37 }
0x2307   :  { %v6636_v40 = vmul.f32 %v6615_v43, %v10802_v52  ;;  %v6773_v43 = vsel %vm6772_vm13, 1, %v8682_v35 }
0x2309   :  { %v6613_v33 = vpop.permute.xlu1 %6612 }
0x230a   :  { %v6617_v53 = vpop.permute.xlu0 %6616  ;;  %v6635_v62 = vmul.f32 %v6613_v33, %v10794_v15 }
0x230b   :  { %v6637_v42 = vmul.f32 %v6617_v53, %v10790_v55 }
0x230d   :  { %v6623_v2 = vpop.permute.xlu1 %6622 }
0x230e   :  { %v6619_v8 = vpop.permute.xlu0 %6618  ;;  %v6640_v36 = vmul.f32 %v6623_v2, %v10810_v21 }
0x230f   :  { %v6638_v39 = vmul.f32 %v6619_v8, %v10798_v29 }
0x2311   :  { %v6625_v41 = vpop.permute.xlu1 %6624 }
0x2312   :  { %v6621_v54 = vpop.permute.xlu0 %6620  ;;  %v6641_v57 = vmul.f32 %v6625_v41, %v10814_v61 }
0x2313   :  { %v6639_v49 = vmul.f32 %v6621_v54, %v10806_v22 }
0x2315   :  { %v6691_v48 = vpop.permute.xlu1 %6690 }
0x2316   :  { %v6714_v50 = vadd.f32 %v6691_v48, %v6634_v7  ;;  %v6697_v1 = vpop.permute.xlu0 %6696 }
0x2317   :  { %v6717_v58 = vadd.f32 %v6697_v1, %v6637_v42 }
0x2318   :  { %8449 = vtanh.f32 %v6714_v50 }
0x2319   :  { %v6693_v9 = vpop.permute.xlu1 %6692  ;;  %v6816_v38 = vrot.slane %v6717_v58, 5 }
0x231a   :  { %v6715_v4 = vadd.f32 %v6693_v9, %v6635_v62  ;;  %v6699_v23 = vpop.permute.xlu0 %6698 }
0x231b   :  { %v6718_v10 = vadd.f32 %v6699_v23, %v6638_v39 }
0x231c   :  { %8451 = vtanh.f32 %v6715_v4  ;;  %v6812_v18 = vrot.slane %v6715_v4, 7 }
0x231d   :  { %v6695_v5 = vpop.permute.xlu1 %6694  ;;  %8453 = vtanh.f32 %v6718_v10  ;;  %v6818_v26 = vrot.slane %v6718_v10, 4 }
0x231e   :  { %v6813_v11 = vsel %vm647_vm2, %v6812_v18, %v6714_v50  ;;  %v6716_v47 = vadd.f32 %v6695_v5, %v6636_v40  ;;  %v6701_v13 = vpop.permute.xlu0 %6700 }
0x231f   :  { %v6719_v0 = vadd.f32 %v6701_v13, %v6639_v49 }
0x2320   :  { %8455 = vtanh.f32 %v6716_v47  ;;  %v6814_v24 = vrot.slane %v6716_v47, 6 }
0x2321   :  { %v6703_v32 = vpop.permute.xlu1 %6702  ;;  %v6820_v27 = vrot.slane %v6719_v0, 3  ;;  %8457 = vtanh.f32 %v6717_v58 }
0x2322   :  { %v6815_v44 = vsel %vm650_vm3, %v6814_v24, %v6813_v11  ;;  %v6720_v30 = vadd.f32 %v6703_v32, %v6640_v36  ;;  %v6705_v25 = vpop.permute.xlu0 %6704 }
0x2323   :  { %v6817_v59 = vsel %vm653_vm4, %v6816_v38, %v6815_v44  ;;  %v6721_v46 = vadd.f32 %v6705_v25, %v6641_v57 }
0x2324   :  { %v6819_v31 = vsel %vm656_vm5, %v6818_v26, %v6817_v59  ;;  %8459 = vtanh.f32 %v6720_v30  ;;  %v6822_v6 = vrot.slane %v6720_v30, 2 }
0x2325   :  { %v8450_v45 = vpop.eup %8449  ;;  %v6821_v12 = vsel %vm659_vm6, %v6820_v27, %v6819_v31  ;;  %v6824_v16 = vrot.slane %v6721_v46, 1  ;;  %8461 = vtanh.f32 %v6719_v0 }
0x2326   :  { %v6823_v56 = vsel %vm662_vm7, %v6822_v6, %v6821_v12  ;;  %6738 = vrot.lane.b32.xlu1 %v8450_v45, %s8681_s18  ;;  %8463 = vtanh.f32 %v6721_v46 }
0x2327   :  { %v6825_v17 = vsel %vm665_vm8, %v6824_v16, %v6823_v56 }
0x2329   :  { %v8452_v14 = vpop.eup %8451 }
0x232a   :  { %6740 = vrot.lane.b32.xlu1 %v8452_v14, %s8681_s18  ;;  %v8454_v63 = vpop.eup %8453 }
0x232d   :  { %v8456_v34 = vpop.eup %8455 }
0x232e   :  { %6742 = vrot.lane.b32.xlu0 %v8456_v34, %s8681_s18  ;;  %6746 = vrot.lane.b32.xlu1 %v8454_v63, %s8681_s18  ;;  %v8458_v60 = vpop.eup %8457 }
0x2331   :  { %v8460_v3 = vpop.eup %8459 }
0x2332   :  { %6744 = vrot.lane.b32.xlu0 %v8458_v60, %s8681_s18  ;;  %6750 = vrot.lane.b32.xlu1 %v8460_v3, %s8681_s18  ;;  %v8462_v33 = vpop.eup %8461  ;;  %v6895_v60 = vld [vmem:[#allocation2 + $0xf] sm:$0x1] }
0x2333   :  { %v8464_v53 = vpop.eup %8463 }
0x2336   :  { %6748 = vrot.lane.b32.xlu0 %v8462_v33, %s8681_s18  ;;  %6775 = vperm.xlu1 %7744, %v6773_v43  }
0x233a   :  { %6752 = vrot.lane.b32.xlu0 %v8464_v53, %s8681_s18 }
0x2398   :  { %v6739_v2 = vpop.permute.xlu1 %6738 }
0x2399   :  { %v6762_v9 = vmul.f32 %v6739_v2, %v10787_v37  ;;  %v6896_v2 = vld [vmem:[#allocation2 + $0x1f] sm:$0x1] }
0x239c   :  { %v6741_v8 = vpop.permute.xlu1 %6740 }
0x239d   :  { %v6763_v41 = vmul.f32 %v6741_v8, %v10794_v15  ;;  %v6897_v8 = vld [vmem:[#allocation2 + $0x2f] sm:$0x1] }
0x239f   :  { %v6786_v50 = vrot.slane %v6763_v41, 7 }
0x23a0   :  { %v6743_v54 = vpop.permute.xlu0 %6742  ;;  %v6747_v48 = vpop.permute.xlu1 %6746 }
0x23a1   :  { %v6764_v7 = vmul.f32 %v6743_v54, %v10802_v52  ;;  %v6766_v4 = vmul.f32 %v6747_v48, %v10798_v29  ;;  %v6787_v42 = vsel %vm647_vm2, %v6786_v50, %v6762_v9  ;;  %v6898_v48 = vld [vmem:[#allocation2 + $0x3f] sm:$0x1]  ;;  %v6899_v9 = vld [vmem:[#allocation2 + $0x4f] sm:$0x1] }
0x23a3   :  { %v6788_v1 = vrot.slane %v6764_v7, 6  ;;  %v6792_v58 = vrot.slane %v6766_v4, 4  ;;  %v6901_v4 = vld [vmem:[#allocation2 + $0x6f] sm:$0x1] }
0x23a4   :  { %v6745_v62 = vpop.permute.xlu0 %6744  ;;  %v6751_v40 = vpop.permute.xlu1 %6750 }
0x23a5   :  { %v6765_v39 = vmul.f32 %v6745_v62, %v10790_v55  ;;  %v6789_v18 = vsel %vm650_vm3, %v6788_v1, %v6787_v42  ;;  %v6768_v5 = vmul.f32 %v6751_v40, %v10810_v21 }
0x23a7   :  { %v6790_v23 = vrot.slane %v6765_v39, 5  ;;  %v6796_v47 = vrot.slane %v6768_v5, 2 }
0x23a8   :  { %v6749_v15 = vpop.permute.xlu0 %6748 }
0x23a9   :  { %v6791_v10 = vsel %vm653_vm4, %v6790_v23, %v6789_v18  ;;  %v6767_v52 = vmul.f32 %v6749_v15, %v10806_v22  ;;  %v6902_v23 = vld [vmem:[#allocation2 + $0x7f] sm:$0x1] }
0x23aa   :  { %v6793_v37 = vsel %vm656_vm5, %v6792_v58, %v6791_v10 }
0x23ab   :  { %v6794_v49 = vrot.slane %v6767_v52, 3  ;;  %v6900_v52 = vld [vmem:[#allocation2 + $0x5f] sm:$0x1] }
0x23ac   :  { %v6753_v55 = vpop.permute.xlu0 %6752 }
0x23ad   :  { %v6795_v29 = vsel %vm659_vm6, %v6794_v49, %v6793_v37  ;;  %v6769_v11 = vmul.f32 %v6753_v55, %v10814_v61 }
0x23ae   :  { %v6797_v36 = vsel %vm662_vm7, %v6796_v47, %v6795_v29 }
0x23af   :  { %v6798_v13 = vrot.slane %v6769_v11, 1 }
0x23b1   :  { %v6776_v24 = vpop.permute.xlu1 %6775  ;;  %v6799_v0 = vsel %vm665_vm8, %v6798_v13, %v6797_v36 }
0x23b2   :  { %vm6777_vm14 = vcmp.eq.s32.totalorder %v6776_v24, 1  ;;  %6800 = vrot.lane.b32.xlu0 %v6799_v0, %s8679_s1 }
0x23b3   :  { %v10869_v22 = vsel %vm6777_vm14, %v6825_v17, %v10742_v20 }
0x23b4   :  { %v7082_v21 = vrot.slane %v10869_v22, 2  ;;  %v7081_v57 = vrot.slane %v10869_v22, 1  ;;  %v7083_v61 = vrot.slane %v10869_v22, 3  ;;  %v7085_v38 = vrot.slane %v10869_v22, 5 }
0x23b5   :  { %v7084_v20 = vrot.slane %v10869_v22, 4  ;;  %v7087_v32 = vrot.slane %v10869_v22, 7  ;;  %v7086_v26 = vrot.slane %v10869_v22, 6 }
0x23b6   :  { %7092 = vrot.lane.b32.xlu0 %v7082_v21, %s8679_s1  ;;  %7090 = vrot.lane.b32.xlu1 %v7081_v57, %s8679_s1 }
0x23ba   :  { %7094 = vrot.lane.b32.xlu0 %v7083_v61, %s8679_s1  ;;  %7088 = vrot.lane.b32.xlu1 %v10869_v22, %s8679_s1 }
0x23be   :  { %7098 = vrot.lane.b32.xlu0 %v7085_v38, %s8679_s1  ;;  %7096 = vrot.lane.b32.xlu1 %v7084_v20, %s8679_s1 }
0x23c2   :  { %7102 = vrot.lane.b32.xlu0 %v7087_v32, %s8679_s1  ;;  %7100 = vrot.lane.b32.xlu1 %v7086_v26, %s8679_s1 }
0x2424   :  { %v6801_v44 = vpop.permute.xlu0 %6800 }
0x2425   :  { %v10889_v27 = vsel %vm6777_vm14, %v6801_v44, %v10762_v19  ;;  %v6828_v30 = vsel %vm6777_vm14, %v6801_v44, 0.0 }
0x2426   :  { %v6830_v59 = vcombine.high %v6828_v30, %v6828_v30  ;;  %v6837_v25 = vrot.slane %v6828_v30, %v8966_v28  ;;  %7726 = vmatmul.mubr.msk.f32.vlgmr.msra.gmra.mxu1 %vm70_vm0, %v10889_v27 }
0x2428   :  { %v6844_v31 = vrot.slane %v6830_v59, %v8966_v28  ;;  %v6845_v6 = vcombine.high %v6837_v25, %v6837_v25  ;;  %v6853_v46 = vrot.slane %v6837_v25, %v8966_v28  ;;  %v7091_v20 = vpop.permute.xlu1 %7090  ;;  %v7093_v30 = vpop.permute.xlu0 %7092 }
0x242a   :  { %v6846_v45 = vcombine.high %v6844_v31, %v6844_v31  ;;  %v6860_v12 = vrot.slane %v6844_v31, %v8966_v28  ;;  %v6867_v56 = vrot.slane %v6845_v6, %v8966_v28  ;;  %v6875_v19 = vcombine.high %v6853_v46, %v6853_v46  ;;  %6887 = vst.msk [vmem:[#allocation11 + $0xe] sm:$0x1] %vm754_vm11, %v6853_v46 }
0x242c   :  { %v6874_v16 = vrot.slane %v6846_v45, %v8966_v28  ;;  %v6876_v17 = vcombine.high %v6860_v12, %v6860_v12  ;;  %v6877_v14 = vcombine.high %v6867_v56, %v6867_v56  ;;  %6888 = vst.msk [vmem:[#allocation11 + $0x1e] sm:$0x1] %vm754_vm11, %v6867_v56  ;;  %6889 = vst.msk [vmem:[#allocation11 + $0x2e] sm:$0x1] %vm754_vm11, %v6875_v19 }
0x242d   :  { %6891 = vst.msk [vmem:[#allocation11 + $0x4e] sm:$0x1] %vm754_vm11, %v6860_v12 }
0x242e   :  { %v6878_v63 = vcombine.high %v6874_v16, %v6874_v16  ;;  %6890 = vst.msk [vmem:[#allocation11 + $0x3e] sm:$0x1] %vm754_vm11, %v6877_v14  ;;  %6892 = vst.msk [vmem:[#allocation11 + $0x5e] sm:$0x1] %vm754_vm11, %v6874_v16  ;;  %v7089_v16 = vpop.permute.xlu1 %7088 }
0x242f   :  { %6893 = vst.msk [vmem:[#allocation11 + $0x6e] sm:$0x1] %vm754_vm11, %v6876_v17 }
0x2430   :  { %6894 = vst.msk [vmem:[#allocation11 + $0x7e] sm:$0x1] %vm754_vm11, %v6878_v63 }
0x24e6   :  { %v6972_v34 = vpop.f32.mrf.mxu1 }
0x24e7   :  { %v6977_v3 = vrot.slane %v6972_v34, 1  ;;  %v6978_v43 = vrot.slane %v6972_v34, 2  ;;  %v6979_v33 = vrot.slane %v6972_v34, 3  ;;  %v6980_v53 = vrot.slane %v6972_v34, 4 }
0x24e8   :  { %v6982_v41 = vrot.slane %v6972_v34, 6  ;;  %v6992_v54 = vadd.f32 %v6972_v34, %v6895_v60  ;;  %v7727_v7 = vpop.f32.mrf.mxu1  ;;  %v6983_v50 = vrot.slane %v6972_v34, 7  ;;  %v6981_v40 = vrot.slane %v6972_v34, 5  ;;  %v7095_v60 = vpop.permute.xlu0 %7094 }
0x24e9   :  { %v6993_v1 = vadd.f32 %v6977_v3, %v6896_v2  ;;  %v6994_v62 = vadd.f32 %v6978_v43, %v6897_v8  ;;  %v6995_v39 = vadd.f32 %v6979_v33, %v6898_v48  ;;  %v6996_v42 = vadd.f32 %v6980_v53, %v6899_v9 }
0x24ea   :  { %8465 = vtanh.f32 %v6992_v54  ;;  %v6998_v18 = vadd.f32 %v6982_v41, %v6901_v4  ;;  %v6999_v15 = vadd.f32 %v6983_v50, %v6902_v23  ;;  %v7000_v10 = vmul.f32 0.5, %v6992_v54  ;;  %v7097_v54 = vpop.permute.xlu1 %7096 }
0x24eb   :  { %8467 = vtanh.f32 %v6994_v62  ;;  %v7003_v58 = vmul.f32 0.5, %v6995_v39  ;;  %v6997_v5 = vadd.f32 %v6981_v40, %v6900_v52  ;;  %v7001_v49 = vmul.f32 0.5, %v6993_v1 }
0x24ec   :  { %8469 = vtanh.f32 %v6993_v1  ;;  %v7004_v37 = vmul.f32 0.5, %v6996_v42  ;;  %v7002_v55 = vmul.f32 0.5, %v6994_v62  ;;  %v7006_v11 = vmul.f32 0.5, %v6998_v18  ;;  %v7099_v1 = vpop.permute.xlu0 %7098 }
0x24ed   :  { %8471 = vtanh.f32 %v6995_v39  ;;  %v7005_v29 = vmul.f32 0.5, %v6997_v5  ;;  %v7007_v13 = vmul.f32 0.5, %v6999_v15 }
0x24ee   :  { %8473 = vtanh.f32 %v6996_v42  ;;  %v7101_v42 = vpop.permute.xlu1 %7100 }
0x24ef   :  { %8475 = vtanh.f32 %v6998_v18 }
0x24f0   :  { %8477 = vtanh.f32 %v6999_v15  ;;  %v7103_v40 = vpop.permute.xlu0 %7102 }
0x24f1   :  { %8479 = vtanh.f32 %v7000_v10 }
0x24f2   :  { %8481 = vtanh.f32 %v7003_v58 }
0x24f3   :  { %8483 = vtanh.f32 %v7001_v49 }
0x24f4   :  { %8485 = vtanh.f32 %v7004_v37 }
0x24f5   :  { %8487 = vtanh.f32 %v7002_v55 }
0x24f6   :  { %8489 = vtanh.f32 %v6997_v5 }
0x24f7   :  { %v8466_v47 = vpop.eup %8465  ;;  %8491 = vtanh.f32 %v7005_v29 }
0x24f8   :  { %7048 = vrot.lane.b32.xlu1 %v8466_v47, %s8680_s4  ;;  %v8468_v36 = vpop.eup %8467  ;;  %8493 = vtanh.f32 %v7006_v11 }
0x24f9   :  { %v8470_v24 = vpop.eup %8469  ;;  %7052 = vrot.lane.b32.xlu0 %v8468_v36, %s8680_s4  ;;  %8495 = vtanh.f32 %v7007_v13 }
0x24fa   :  { %v8472_v0 = vpop.eup %8471 }
0x24fb   :  { %v8474_v21 = vpop.eup %8473 }
0x24fc   :  { %7050 = vrot.lane.b32.xlu1 %v8470_v24, %s8680_s4  ;;  %v8476_v57 = vpop.eup %8475 }
0x24fd   :  { %v8478_v61 = vpop.eup %8477  ;;  %7054 = vrot.lane.b32.xlu0 %v8472_v0, %s8680_s4 }
0x24fe   :  { %v8480_v38 = vpop.eup %8479 }
0x24ff   :  { %v8482_v32 = vpop.eup %8481  ;;  %v7016_v26 = vmul.f32 0.5, %v8480_v38 }
0x2500   :  { %7060 = vrot.lane.b32.xlu1 %v8476_v57, %s8680_s4  ;;  %v8484_v44 = vpop.eup %8483  ;;  %v7019_v59 = vmul.f32 0.5, %v8482_v32 }
0x2501   :  { %v8486_v25 = vpop.eup %8485  ;;  %7056 = vrot.lane.b32.xlu0 %v8474_v21, %s8680_s4  ;;  %v10914_v31 = vadd.f32 0.5, %v7016_v26  ;;  %v7017_v6 = vmul.f32 0.5, %v8484_v44 }
0x2502   :  { %v8488_v46 = vpop.eup %8487  ;;  %v10917_v12 = vadd.f32 0.5, %v7019_v59  ;;  %v7020_v56 = vmul.f32 0.5, %v8486_v25 }
0x2503   :  { %v8490_v45 = vpop.eup %8489  ;;  %v7112_v17 = vmul.f32 %v7089_v16, %v10914_v31  ;;  %v10921_v14 = vadd.f32 0.5, %v7017_v6  ;;  %v7018_v63 = vmul.f32 0.5, %v8488_v46 }
0x2504   :  { %7062 = vrot.lane.b32.xlu1 %v8478_v61, %s8680_s4  ;;  %v8492_v19 = vpop.eup %8491  ;;  %v7115_v3 = vmul.f32 %v7095_v60, %v10917_v12  ;;  %v10925_v43 = vadd.f32 0.5, %v7020_v56 }
0x2505   :  { %7058 = vrot.lane.b32.xlu0 %v8490_v45, %s8680_s4  ;;  %v8494_v34 = vpop.eup %8493  ;;  %v7021_v33 = vmul.f32 0.5, %v8492_v19  ;;  %v7113_v2 = vmul.f32 %v7091_v20, %v10921_v14  ;;  %v10929_v8 = vadd.f32 0.5, %v7018_v63 }
0x2506   :  { %v8496_v53 = vpop.eup %8495  ;;  %v7022_v41 = vmul.f32 0.5, %v8494_v34  ;;  %v7116_v7 = vmul.f32 %v7097_v54, %v10925_v43 }
0x2507   :  { %v10933_v48 = vadd.f32 0.5, %v7021_v33  ;;  %v7023_v50 = vmul.f32 0.5, %v8496_v53  ;;  %v7114_v62 = vmul.f32 %v7093_v30, %v10929_v8 }
0x2508   :  { %7128 = vrot.lane.b32.xlu1 %v7112_v17, %s8681_s18  ;;  %v10937_v9 = vadd.f32 0.5, %v7022_v41 }
0x2509   :  { %7134 = vrot.lane.b32.xlu0 %v7115_v3, %s8681_s18  ;;  %v7117_v39 = vmul.f32 %v7099_v1, %v10933_v48  ;;  %v10941_v4 = vadd.f32 0.5, %v7023_v50 }
0x250a   :  { %v7118_v23 = vmul.f32 %v7101_v42, %v10937_v9 }
0x250b   :  { %v7119_v18 = vmul.f32 %v7103_v40, %v10941_v4 }
0x250c   :  { %7130 = vrot.lane.b32.xlu1 %v7113_v2, %s8681_s18 }
0x250d   :  { %7136 = vrot.lane.b32.xlu0 %v7116_v7, %s8681_s18 }
0x2510   :  { %7132 = vrot.lane.b32.xlu1 %v7114_v62, %s8681_s18 }
0x2511   :  { %7138 = vrot.lane.b32.xlu0 %v7117_v39, %s8681_s18 }
0x2514   :  { %7140 = vrot.lane.b32.xlu1 %v7118_v23, %s8681_s18 }
0x2515   :  { %7142 = vrot.lane.b32.xlu0 %v7119_v18, %s8681_s18 }
0x256a   :  { %v7049_v15 = vpop.permute.xlu1 %7048 }
0x256b   :  { %v7053_v10 = vpop.permute.xlu0 %7052  ;;  %v7072_v29 = vmul.f32 %v7049_v15, %v10914_v31 }
0x256c   :  { %v7074_v38 = vmul.f32 %v7053_v10, %v10929_v8  ;;  %v7211_v10 = vsel %vm7210_vm15, 1, %v8682_v35 }
0x256e   :  { %v7051_v52 = vpop.permute.xlu1 %7050 }
0x256f   :  { %v7055_v58 = vpop.permute.xlu0 %7054  ;;  %v7073_v36 = vmul.f32 %v7051_v52, %v10921_v14 }
0x2570   :  { %v7075_v57 = vmul.f32 %v7055_v58, %v10917_v12 }
0x2572   :  { %v7061_v5 = vpop.permute.xlu1 %7060 }
0x2573   :  { %v7057_v49 = vpop.permute.xlu0 %7056  ;;  %v7078_v46 = vmul.f32 %v7061_v5, %v10937_v9 }
0x2574   :  { %v7076_v0 = vmul.f32 %v7057_v49, %v10925_v43 }
0x2576   :  { %v7063_v37 = vpop.permute.xlu1 %7062 }
0x2577   :  { %v7059_v55 = vpop.permute.xlu0 %7058  ;;  %v7079_v19 = vmul.f32 %v7063_v37, %v10941_v4 }
0x2578   :  { %v7077_v30 = vmul.f32 %v7059_v55, %v10933_v48 }
0x257a   :  { %v7129_v11 = vpop.permute.xlu1 %7128 }
0x257b   :  { %v7152_v47 = vadd.f32 %v7129_v11, %v7072_v29  ;;  %v7135_v13 = vpop.permute.xlu0 %7134 }
0x257c   :  { %v7155_v26 = vadd.f32 %v7135_v13, %v7075_v57 }
0x257d   :  { %8497 = vtanh.f32 %v7152_v47 }
0x257e   :  { %v7131_v24 = vpop.permute.xlu1 %7130  ;;  %v7254_v16 = vrot.slane %v7155_v26, 5 }
0x257f   :  { %v7153_v21 = vadd.f32 %v7131_v24, %v7073_v36  ;;  %v7137_v61 = vpop.permute.xlu0 %7136 }
0x2580   :  { %v7156_v32 = vadd.f32 %v7137_v61, %v7076_v0 }
0x2581   :  { %8499 = vtanh.f32 %v7153_v21  ;;  %v7250_v20 = vrot.slane %v7153_v21, 7 }
0x2582   :  { %v7133_v44 = vpop.permute.xlu1 %7132  ;;  %8501 = vtanh.f32 %v7156_v32  ;;  %v7256_v63 = vrot.slane %v7156_v32, 4 }
0x2583   :  { %v7251_v59 = vsel %vm647_vm2, %v7250_v20, %v7152_v47  ;;  %v7154_v25 = vadd.f32 %v7133_v44, %v7074_v38  ;;  %v7139_v6 = vpop.permute.xlu0 %7138 }
0x2584   :  { %v7157_v56 = vadd.f32 %v7139_v6, %v7077_v30 }
0x2585   :  { %8503 = vtanh.f32 %v7154_v25  ;;  %v7252_v45 = vrot.slane %v7154_v25, 6 }
0x2586   :  { %v7141_v17 = vpop.permute.xlu1 %7140  ;;  %v7258_v60 = vrot.slane %v7157_v56, 3  ;;  %8505 = vtanh.f32 %v7155_v26 }
0x2587   :  { %v7253_v34 = vsel %vm650_vm3, %v7252_v45, %v7251_v59  ;;  %v7158_v3 = vadd.f32 %v7141_v17, %v7078_v46  ;;  %v7143_v53 = vpop.permute.xlu0 %7142 }
0x2588   :  { %v7255_v33 = vsel %vm653_vm4, %v7254_v16, %v7253_v34  ;;  %v7159_v54 = vadd.f32 %v7143_v53, %v7079_v19 }
0x2589   :  { %v7257_v2 = vsel %vm656_vm5, %v7256_v63, %v7255_v33  ;;  %8507 = vtanh.f32 %v7158_v3  ;;  %v7260_v41 = vrot.slane %v7158_v3, 2 }
0x258a   :  { %v8498_v7 = vpop.eup %8497  ;;  %v7259_v50 = vsel %vm659_vm6, %v7258_v60, %v7257_v2  ;;  %v7262_v1 = vrot.slane %v7159_v54, 1  ;;  %8509 = vtanh.f32 %v7157_v56 }
0x258b   :  { %7176 = vrot.lane.b32.xlu1 %v8498_v7, %s8681_s18  ;;  %v7261_v62 = vsel %vm662_vm7, %v7260_v41, %v7259_v50  ;;  %8511 = vtanh.f32 %v7159_v54 }
0x258c   :  { %v7263_v39 = vsel %vm665_vm8, %v7262_v1, %v7261_v62 }
0x258e   :  { %v8500_v42 = vpop.eup %8499 }
0x258f   :  { %7178 = vrot.lane.b32.xlu1 %v8500_v42, %s8681_s18  ;;  %v8502_v23 = vpop.eup %8501 }
0x2592   :  { %v8504_v40 = vpop.eup %8503 }
0x2593   :  { %7180 = vrot.lane.b32.xlu0 %v8504_v40, %s8681_s18  ;;  %7184 = vrot.lane.b32.xlu1 %v8502_v23, %s8681_s18  ;;  %v8506_v18 = vpop.eup %8505 }
0x2596   :  { %v8508_v15 = vpop.eup %8507 }
0x2597   :  { %7182 = vrot.lane.b32.xlu0 %v8506_v18, %s8681_s18  ;;  %7188 = vrot.lane.b32.xlu1 %v8508_v15, %s8681_s18  ;;  %v8510_v52 = vpop.eup %8509 }
0x2598   :  { %v8512_v58 = vpop.eup %8511 }
0x259b   :  { %7186 = vrot.lane.b32.xlu0 %v8510_v52, %s8681_s18  ;;  %7213 = vperm.xlu1 %7744, %v7211_v10  }
0x259f   :  { %7190 = vrot.lane.b32.xlu0 %v8512_v58, %s8681_s18 }
0x25fd   :  { %v7177_v5 = vpop.permute.xlu1 %7176 }
0x25fe   :  { %v7200_v35 = vmul.f32 %v7177_v5, %v10914_v31 }
0x2601   :  { %v7179_v49 = vpop.permute.xlu1 %7178 }
0x2602   :  { %v7201_v37 = vmul.f32 %v7179_v49, %v10921_v14 }
0x2604   :  { %v7224_v11 = vrot.slane %v7201_v37, 7 }
0x2605   :  { %v7181_v55 = vpop.permute.xlu0 %7180  ;;  %v7185_v29 = vpop.permute.xlu1 %7184 }
0x2606   :  { %v7202_v51 = vmul.f32 %v7181_v55, %v10929_v8  ;;  %v7204_v24 = vmul.f32 %v7185_v29, %v10925_v43  ;;  %v7225_v0 = vsel %vm647_vm2, %v7224_v11, %v7200_v35 }
0x2608   :  { %v7226_v47 = vrot.slane %v7202_v51, 6  ;;  %v7230_v20 = vrot.slane %v7204_v24, 4 }
0x2609   :  { %v7183_v13 = vpop.permute.xlu0 %7182  ;;  %v7189_v57 = vpop.permute.xlu1 %7188 }
0x260a   :  { %v7203_v36 = vmul.f32 %v7183_v13, %v10917_v12  ;;  %v7227_v61 = vsel %vm650_vm3, %v7226_v47, %v7225_v0  ;;  %v7206_v32 = vmul.f32 %v7189_v57, %v10937_v9 }
0x260c   :  { %v7228_v21 = vrot.slane %v7203_v36, 5  ;;  %v7234_v30 = vrot.slane %v7206_v32, 2 }
0x260d   :  { %v7187_v14 = vpop.permute.xlu0 %7186 }
0x260e   :  { %v7229_v38 = vsel %vm653_vm4, %v7228_v21, %v7227_v61  ;;  %v7205_v8 = vmul.f32 %v7187_v14, %v10933_v48 }
0x260f   :  { %v7231_v31 = vsel %vm656_vm5, %v7230_v20, %v7229_v38 }
0x2610   :  { %v7232_v26 = vrot.slane %v7205_v8, 3 }
0x2611   :  { %v7191_v12 = vpop.permute.xlu0 %7190 }
0x2612   :  { %v7233_v43 = vsel %vm659_vm6, %v7232_v26, %v7231_v31  ;;  %v7207_v44 = vmul.f32 %v7191_v12, %v10941_v4 }
0x2613   :  { %v7235_v25 = vsel %vm662_vm7, %v7234_v30, %v7233_v43 }
0x2614   :  { %v7236_v59 = vrot.slane %v7207_v44, 1 }
0x2616   :  { %v7214_v6 = vpop.permute.xlu1 %7213  ;;  %v7237_v46 = vsel %vm665_vm8, %v7236_v59, %v7235_v25 }
0x2617   :  { %vm7215_vm2 = vcmp.eq.s32.totalorder %v7214_v6, 1  ;;  %7238 = vrot.lane.b32.xlu0 %v7237_v46, %s8679_s1  ;;  %s7347_s1 = sshll.u32 %s8686_s16, 4  ;;  %s7348_s1 = int_to_ptr.vmem [resolvable:$true] %s7347_s1 }
0x2618   :  { %v7265_v48 = vsel %vm7215_vm2, %v7263_v39, %v10869_v22 }
0x2619   :  { %7334 = vst.msk [vmem:[#allocation4] sm:$0xff] %vm70_vm0, %v7265_v48 }
0x2620   :  { %v7340_v9 = vld [vmem:[#allocation4] sm:$0xff] }
0x2621   :  { %7341 = vst.msk [vmem:[#allocation14] sm:$0xff] %vm70_vm0, %v7340_v9 }
0x2689   :  { %v7239_v45 = vpop.permute.xlu0 %7238 }
0x268a   :  { %v7241_v4 = vsel %vm7215_vm2, %v7239_v45, %v10889_v27  ;;  %v7266_v56 = vsel %vm7215_vm2, %v7239_v45, 0.0 }
0x268b   :  { %v7268_v19 = vcombine.high %v7266_v56, %v7266_v56  ;;  %v7275_v16 = vrot.slane %v7266_v56, %v8966_v28  ;;  %7333 = vst.msk [vmem:[#allocation3] sm:$0xff] %vm70_vm0, %v7241_v4 }
0x268d   :  { %v7282_v17 = vrot.slane %v7268_v19, %v8966_v28  ;;  %v7283_v63 = vcombine.high %v7275_v16, %v7275_v16  ;;  %v7291_v34 = vrot.slane %v7275_v16, %v8966_v28 }
0x268f   :  { %v7284_v22 = vcombine.high %v7282_v17, %v7282_v17  ;;  %v7298_v60 = vrot.slane %v7282_v17, %v8966_v28  ;;  %v7305_v3 = vrot.slane %v7283_v63, %v8966_v28  ;;  %v7313_v33 = vcombine.high %v7291_v34, %v7291_v34  ;;  %7325 = vst.msk [vmem:[#allocation11 + $0xf] sm:$0x1] %vm754_vm11, %v7291_v34 }
0x2691   :  { %v7312_v27 = vrot.slane %v7284_v22, %v8966_v28  ;;  %v7314_v53 = vcombine.high %v7298_v60, %v7298_v60  ;;  %v7315_v2 = vcombine.high %v7305_v3, %v7305_v3  ;;  %7326 = vst.msk [vmem:[#allocation11 + $0x1f] sm:$0x1] %vm754_vm11, %v7305_v3  ;;  %7327 = vst.msk [vmem:[#allocation11 + $0x2f] sm:$0x1] %vm754_vm11, %v7313_v33 }
0x2692   :  { %7329 = vst.msk [vmem:[#allocation11 + $0x4f] sm:$0x1] %vm754_vm11, %v7298_v60  ;;  %v7338_v41 = vld [vmem:[#allocation3] sm:$0xff] }
0x2693   :  { %v7316_v54 = vcombine.high %v7312_v27, %v7312_v27  ;;  %7328 = vst.msk [vmem:[#allocation11 + $0x3f] sm:$0x1] %vm754_vm11, %v7315_v2  ;;  %7330 = vst.msk [vmem:[#allocation11 + $0x5f] sm:$0x1] %vm754_vm11, %v7312_v27 }
0x2694   :  { %7331 = vst.msk [vmem:[#allocation11 + $0x6f] sm:$0x1] %vm754_vm11, %v7314_v53 }
0x2695   :  { %7339 = vst.msk [vmem:[#allocation12] sm:$0xff] %vm70_vm0, %v7338_v41 }
0x2696   :  { %8615 = shalt.err (!%p8612_p5)
}
0x2697   :  { %7363 = dma.vmem_to_hbm [thread:$0]  %s7361_s14, 128, %s11027_s6, [#allocation13]   ;;  %7332 = vst.msk [vmem:[#allocation11 + $0x7f] sm:$0x1] %vm754_vm11, %v7316_v54 }
0x2698   :  { %s8624_s18 = scalar_lea.vmem %s7371_s2, 128  ;;  %p8629_p7 = scmp.lt.s32.totalorder %s7371_s2, %s7371_s2 }
0x2699   :  { %p8625_p6 = scmp.ne.s32.totalorder %s7371_s2, %s8624_s18  ;;  %p8630_p8 = scmp.lt.s32.totalorder %s8624_s18, %s8624_s18 }
0x269b   :  { %p8631_p9 = por %p8630_p8, %p8629_p7 }
0x269d   :  { %p8632_p10 = pnand %p8631_p9, %p8625_p6 }
0x269f   :  { %8635 = shalt.err (!%p8632_p10)
}
0x26a0   :  { %7373 = dma.vmem_to_hbm [thread:$0]  %s7371_s2, 128, %s11028_s7, [#allocation13]  }
0x26a1   :  { %s8644_s21 = scalar_lea.vmem %s7348_s1, 2048  ;;  %p8649_p12 = scmp.lt.s32.totalorder %s7348_s1, %s7348_s1 }
0x26a2   :  { %p8645_p11 = scmp.ne.s32.totalorder %s7348_s1, %s8644_s21  ;;  %p8650_p13 = scmp.lt.s32.totalorder %s8644_s21, %s8644_s21 }
0x26a4   :  { %p8651_p0 = por %p8650_p13, %p8649_p12 }
0x26a6   :  { %p8652_p1 = pnand %p8651_p0, %p8645_p11 }
0x26a8   :  { %8655 = shalt.err (!%p8652_p1)
}
0x26a9   :  { %7353 = dma.vmem_to_hbm [thread:$0]  %s7348_s1, 2048, %s11026_s5, [#allocation7], %s8674_s29, %s8674_s29, %s8675_s30  }
0x26aa   :  { %8668 = dma.done.wait [#allocation7], 2048  }
0x26ab   :  { %8669 = vsyncadd [#allocation7], 4294965248 }
0x26ac   :  { %8670 = dma.done.wait [#allocation13], 256  }
0x26ad   :  { %8671 = vsyncadd [#allocation13], 4294967040 }
0x26ae   :  { %7383 = vsyncpa [#allocation6], 1 }
0x26af   :  { %7384 = vsyncpa [#allocation9], 1 }
0x26b0   :  { %7385 = vsyncpa [#allocation7], 1 }
0x26b1   :  { %7386 = vsyncpa [#allocation13], 1 }

</bundles_post_ra>
